<compile_context>
chip_gen: v5e
topology: v5e:2x2
jax: 0.10.0
libtpu: 0.0.40
codegen_flags: <defaults>
</compile_context>

<pallas_src>
import jax
import jax.numpy as jnp
from jax.experimental import pallas as pl
from jax.experimental.pallas import tpu as pltpu

EPS = 1e-5


def fused_bn_add_conv_bn_kernel(x336_ref, x323_ref, w_ref,
                                g1_ref, b1_ref, g2_ref, b2_ref, o_ref):
    # ---- BatchNorm2d(144), training mode (batch stats over M, lanes) ----
    x = x336_ref[...]                                      # (C1, M) f32
    m = x.shape[1]
    inv_m = 1.0 / m
    mu1 = jnp.sum(x, axis=1, keepdims=True) * inv_m        # (C1, 1)
    ex2 = jnp.sum(x * x, axis=1, keepdims=True) * inv_m    # (C1, 1)
    var1 = ex2 - mu1 * mu1                                 # biased variance
    s1 = g1_ref[...] * jax.lax.rsqrt(var1 + EPS)           # (C1, 1)
    t1 = b1_ref[...] - mu1 * s1                            # (C1, 1)

    # ---- BN1 affine (single FMA) + residual add ----
    z = x * s1 + t1 + x323_ref[...]                        # (C1, M)

    # ---- 1x1 conv == channel matmul on the MXU (C2-tile of rows) ----
    w = w_ref[...]                                         # (TN, C1)
    y = jnp.dot(w, z, preferred_element_type=jnp.float32)  # (TN, M)

    # ---- BatchNorm2d(864) over this C2 tile, training mode ----
    # mean over M by linearity -> tiny mat-vec on the (idle) MXU
    zbar = jnp.sum(z, axis=1, keepdims=True) * inv_m       # (C1, 1)
    mu2 = jnp.dot(w, zbar, preferred_element_type=jnp.float32)   # (TN, 1)
    ey2 = jnp.sum(y * y, axis=1, keepdims=True) * inv_m    # (TN, 1)
    var2 = ey2 - mu2 * mu2
    s2 = g2_ref[...] * jax.lax.rsqrt(var2 + EPS)           # (TN, 1)
    t2 = b2_ref[...] - mu2 * s2
    o_ref[...] = y * s2 + t2                               # (TN, M)


def module_forward(x336, x323, w, g1, b1, g2, b2):
    """x336, x323: (N, C1, H, W) NCHW; w: (C2, C1, 1, 1); g*/b*: per-channel."""
    N, C1, H, W = x336.shape
    C2 = w.shape[0]
    M = N * H * W

    # NCHW -> (C, M).  For N == 1 this is a pure reshape (no transpose / copy).
    if N == 1:
        x336_cm = x336.reshape(C1, M)
        x323_cm = x323.reshape(C1, M)
    else:
        x336_cm = jnp.moveaxis(x336, 1, 0).reshape(C1, M)
        x323_cm = jnp.moveaxis(x323, 1, 0).reshape(C1, M)

    w_cm = w.reshape(C2, C1)                               # pure reshape, no .T

    # C2 tile size: 864 = 2 * 432; 432 % 8 == 0.  grid=(2,) gives
    # double-buffered weight/output DMA and a clean 2-way split on v7x.
    TN = 432
    assert C2 % TN == 0
    grid = (C2 // TN,)

    out_cm = pl.pallas_call(
        fused_bn_add_conv_bn_kernel,
        out_shape=jax.ShapeDtypeStruct((C2, M), jnp.float32),
        grid=grid,
        in_specs=[
            pl.BlockSpec((C1, M), lambda j: (0, 0)),       # x336 (VMEM-resident)
            pl.BlockSpec((C1, M), lambda j: (0, 0)),       # x323 (VMEM-resident)
            pl.BlockSpec((TN, C1), lambda j: (j, 0)),      # weight tile
            pl.BlockSpec((C1, 1), lambda j: (0, 0)),       # gamma1
            pl.BlockSpec((C1, 1), lambda j: (0, 0)),       # beta1
            pl.BlockSpec((TN, 1), lambda j: (j, 0)),       # gamma2 tile
            pl.BlockSpec((TN, 1), lambda j: (j, 0)),       # beta2 tile
        ],
        out_specs=pl.BlockSpec((TN, M), lambda j: (j, 0)),
        compiler_params=pltpu.CompilerParams(
            dimension_semantics=("parallel",)),
    )(x336_cm, x323_cm, w_cm,
      g1.reshape(C1, 1), b1.reshape(C1, 1),
      g2.reshape(C2, 1)[: C2], b2.reshape(C2, 1))

    # (C2, M) -> NCHW (pure reshape for N == 1).
    if N == 1:
        return out_cm.reshape(1, C2, H, W)
    return jnp.moveaxis(out_cm.reshape(C2, N, H, W), 0, 1)


def reference_forward(x336, x323, w, g1, b1, g2, b2):
    """Pure-JAX reference (training-mode BatchNorm, biased variance)."""
    def bn(x, g, b):
        mu = jnp.mean(x, axis=(0, 2, 3), keepdims=True)
        var = jnp.mean((x - mu) ** 2, axis=(0, 2, 3), keepdims=True)
        return (x - mu) * jax.lax.rsqrt(var + EPS) * g.reshape(1, -1, 1, 1) \
            + b.reshape(1, -1, 1, 1)

    x337 = bn(x336, g1, b1)
    x338 = x337 + x323
    x339 = jax.lax.conv_general_dilated(
        x338, w, window_strides=(1, 1), padding='VALID',
        dimension_numbers=('NCHW', 'OIHW', 'NCHW'))
    return bn(x339, g2, b2)


if __name__ == "__main__":
    N, C1, H, W = 1, 144, 14, 14
    C2 = 864

    key = jax.random.PRNGKey(0)
    k0, k1, k2, k3, k4, k5, k6 = jax.random.split(key, 7)

    x336 = jax.random.normal(k0, (N, C1, H, W), dtype=jnp.float32)
    x323 = jax.random.normal(k1, (N, C1, H, W), dtype=jnp.float32)

    # Deterministic parameter init (synthetic; not loaded from a checkpoint).
    w = jax.random.normal(k2, (C2, C1, 1, 1), dtype=jnp.float32) * 0.05
    g1 = 1.0 + 0.1 * jax.random.normal(k3, (C1,), dtype=jnp.float32)
    b1 = 0.1 * jax.random.normal(k4, (C1,), dtype=jnp.float32)
    g2 = 1.0 + 0.1 * jax.random.normal(k5, (C2,), dtype=jnp.float32)
    b2 = 0.1 * jax.random.normal(k6, (C2,), dtype=jnp.float32)

    # TODO(synk): training-mode BatchNorm also updates running_mean/running_var;
    # this forward-only kernel does not emulate that side effect.
    out = module_forward(x336, x323, w, g1, b1, g2, b2)
    out = jax.block_until_ready(out)

    ref = jax.block_until_ready(reference_forward(x336, x323, w, g1, b1, g2, b2))
    assert out.shape == (N, C2, H, W), out.shape
    assert jnp.allclose(out, ref, atol=1e-3, rtol=1e-3), \
        float(jnp.max(jnp.abs(out - ref)))

    print("KERNEL_OK")
</pallas_src>

<mosaic_0001>
module attributes {stable_mosaic.version = 11 : i64} {
  func.func @fused_bn_add_conv_bn_kernel(%arg0: i32, %arg1: memref<144x196xf32, #tpu.memory_space<vmem>>, %arg2: memref<144x196xf32, #tpu.memory_space<vmem>>, %arg3: memref<432x144xf32, #tpu.memory_space<vmem>>, %arg4: memref<144x1xf32, #tpu.memory_space<vmem>>, %arg5: memref<144x1xf32, #tpu.memory_space<vmem>>, %arg6: memref<432x1xf32, #tpu.memory_space<vmem>>, %arg7: memref<432x1xf32, #tpu.memory_space<vmem>>, %arg8: memref<432x196xf32, #tpu.memory_space<vmem>>) attributes {dimension_semantics = [#tpu.dimension_semantics<parallel>], iteration_bounds = array<i64: 2>, scalar_prefetch = 0 : i64, scratch_operands = 0 : i64, tpu.core_type = #tpu.core_type<tc>, window_params = [{pipeline_mode = #tpu.pipeline_mode<synchronous>, transform_indices = @transform_0, window_bounds = array<i64: 144, 196>}, {pipeline_mode = #tpu.pipeline_mode<synchronous>, transform_indices = @transform_1, window_bounds = array<i64: 144, 196>}, {transform_indices = @transform_2, window_bounds = array<i64: 432, 144>}, {pipeline_mode = #tpu.pipeline_mode<synchronous>, transform_indices = @transform_3, window_bounds = array<i64: 144, 1>}, {pipeline_mode = #tpu.pipeline_mode<synchronous>, transform_indices = @transform_4, window_bounds = array<i64: 144, 1>}, {transform_indices = @transform_5, window_bounds = array<i64: 432, 1>}, {transform_indices = @transform_6, window_bounds = array<i64: 432, 1>}, {transform_indices = @transform_7, window_bounds = array<i64: 432, 196>}]} {
    %c0 = arith.constant 0 : index
    %c0_0 = arith.constant 0 : index
    %0 = vector.load %arg1[%c0, %c0_0] : memref<144x196xf32, #tpu.memory_space<vmem>>, vector<144x196xf32>
    %cst = arith.constant dense<0.000000e+00> : vector<144xf32>
    %1 = vector.multi_reduction <add>, %0, %cst [1] : vector<144x196xf32> to vector<144xf32>
    %2 = vector.shape_cast %1 : vector<144xf32> to vector<144x1xf32>
    %cst_1 = arith.constant 0.00510204071 : f32
    %3 = vector.broadcast %cst_1 : f32 to vector<144x1xf32>
    %4 = arith.mulf %2, %3 : vector<144x1xf32>
    %5 = arith.mulf %0, %0 : vector<144x196xf32>
    %cst_2 = arith.constant dense<0.000000e+00> : vector<144xf32>
    %6 = vector.multi_reduction <add>, %5, %cst_2 [1] : vector<144x196xf32> to vector<144xf32>
    %7 = vector.shape_cast %6 : vector<144xf32> to vector<144x1xf32>
    %cst_3 = arith.constant 0.00510204071 : f32
    %8 = vector.broadcast %cst_3 : f32 to vector<144x1xf32>
    %9 = arith.mulf %7, %8 : vector<144x1xf32>
    %10 = arith.mulf %4, %4 : vector<144x1xf32>
    %11 = arith.subf %9, %10 : vector<144x1xf32>
    %c0_4 = arith.constant 0 : index
    %c0_5 = arith.constant 0 : index
    %12 = vector.load %arg4[%c0_4, %c0_5] : memref<144x1xf32, #tpu.memory_space<vmem>>, vector<144x1xf32>
    %cst_6 = arith.constant 9.99999974E-6 : f32
    %13 = vector.broadcast %cst_6 : f32 to vector<144x1xf32>
    %14 = arith.addf %11, %13 : vector<144x1xf32>
    %15 = math.rsqrt %14 : vector<144x1xf32>
    %16 = arith.mulf %12, %15 : vector<144x1xf32>
    %c0_7 = arith.constant 0 : index
    %c0_8 = arith.constant 0 : index
    %17 = vector.load %arg5[%c0_7, %c0_8] : memref<144x1xf32, #tpu.memory_space<vmem>>, vector<144x1xf32>
    %18 = arith.mulf %4, %16 : vector<144x1xf32>
    %19 = arith.subf %17, %18 : vector<144x1xf32>
    %20 = vector.broadcast %16 : vector<144x1xf32> to vector<144x196xf32>
    %21 = arith.mulf %0, %20 : vector<144x196xf32>
    %22 = vector.broadcast %19 : vector<144x1xf32> to vector<144x196xf32>
    %23 = arith.addf %21, %22 : vector<144x196xf32>
    %c0_9 = arith.constant 0 : index
    %c0_10 = arith.constant 0 : index
    %24 = vector.load %arg2[%c0_9, %c0_10] : memref<144x196xf32, #tpu.memory_space<vmem>>, vector<144x196xf32>
    %25 = arith.addf %23, %24 : vector<144x196xf32>
    %c0_11 = arith.constant 0 : index
    %c0_12 = arith.constant 0 : index
    %26 = vector.load %arg3[%c0_11, %c0_12] : memref<432x144xf32, #tpu.memory_space<vmem>>, vector<432x144xf32>
    %cst_13 = arith.constant dense<0.000000e+00> : vector<432x196xf32>
    %27 = tpu.matmul %26, %25, %cst_13 {dimension_numbers = #tpu.dot_dimension_numbers<[1], [0], [0], [1], [0, 0, 1, 1], [], []>} : vector<432x144xf32>, vector<144x196xf32>, vector<432x196xf32> -> vector<432x196xf32>
    %cst_14 = arith.constant dense<0.000000e+00> : vector<144xf32>
    %28 = vector.multi_reduction <add>, %25, %cst_14 [1] : vector<144x196xf32> to vector<144xf32>
    %29 = vector.shape_cast %28 : vector<144xf32> to vector<144x1xf32>
    %cst_15 = arith.constant 0.00510204071 : f32
    %30 = vector.broadcast %cst_15 : f32 to vector<144x1xf32>
    %31 = arith.mulf %29, %30 : vector<144x1xf32>
    %cst_16 = arith.constant dense<0.000000e+00> : vector<432x1xf32>
    %32 = tpu.matmul %26, %31, %cst_16 {dimension_numbers = #tpu.dot_dimension_numbers<[1], [0], [0], [1], [0, 0, 1, 1], [], []>} : vector<432x144xf32>, vector<144x1xf32>, vector<432x1xf32> -> vector<432x1xf32>
    %33 = arith.mulf %27, %27 : vector<432x196xf32>
    %cst_17 = arith.constant dense<0.000000e+00> : vector<432xf32>
    %34 = vector.multi_reduction <add>, %33, %cst_17 [1] : vector<432x196xf32> to vector<432xf32>
    %35 = vector.shape_cast %34 : vector<432xf32> to vector<432x1xf32>
    %cst_18 = arith.constant 0.00510204071 : f32
    %36 = vector.broadcast %cst_18 : f32 to vector<432x1xf32>
    %37 = arith.mulf %35, %36 : vector<432x1xf32>
    %38 = arith.mulf %32, %32 : vector<432x1xf32>
    %39 = arith.subf %37, %38 : vector<432x1xf32>
    %c0_19 = arith.constant 0 : index
    %c0_20 = arith.constant 0 : index
    %40 = vector.load %arg6[%c0_19, %c0_20] : memref<432x1xf32, #tpu.memory_space<vmem>>, vector<432x1xf32>
    %cst_21 = arith.constant 9.99999974E-6 : f32
    %41 = vector.broadcast %cst_21 : f32 to vector<432x1xf32>
    %42 = arith.addf %39, %41 : vector<432x1xf32>
    %43 = math.rsqrt %42 : vector<432x1xf32>
    %44 = arith.mulf %40, %43 : vector<432x1xf32>
    %c0_22 = arith.constant 0 : index
    %c0_23 = arith.constant 0 : index
    %45 = vector.load %arg7[%c0_22, %c0_23] : memref<432x1xf32, #tpu.memory_space<vmem>>, vector<432x1xf32>
    %46 = arith.mulf %32, %44 : vector<432x1xf32>
    %47 = arith.subf %45, %46 : vector<432x1xf32>
    %48 = vector.broadcast %44 : vector<432x1xf32> to vector<432x196xf32>
    %49 = arith.mulf %27, %48 : vector<432x196xf32>
    %50 = vector.broadcast %47 : vector<432x1xf32> to vector<432x196xf32>
    %51 = arith.addf %49, %50 : vector<432x196xf32>
    %c0_24 = arith.constant 0 : index
    %c0_25 = arith.constant 0 : index
    %52 = vector.load %arg8[%c0_24, %c0_25] : memref<432x196xf32, #tpu.memory_space<vmem>>, vector<432x196xf32>
    tpu.vector_store %arg8[%c0_24, %c0_25], %51 {strides = array<i32>} : memref<432x196xf32, #tpu.memory_space<vmem>>, vector<432x196xf32>,
    return
  }
  func.func @transform_0(%arg0: i32) -> (i32, i32) {
    %c0_i32 = arith.constant 0 : i32
    %c0_i32_0 = arith.constant 0 : i32
    %c0_i32_1 = arith.constant 0 : i32
    return %c0_i32, %c0_i32_0 : i32, i32
  }
  func.func @transform_1(%arg0: i32) -> (i32, i32) {
    %c0_i32 = arith.constant 0 : i32
    %c0_i32_0 = arith.constant 0 : i32
    %c0_i32_1 = arith.constant 0 : i32
    return %c0_i32, %c0_i32_0 : i32, i32
  }
  func.func @transform_2(%arg0: i32) -> (i32, i32) {
    %c0_i32 = arith.constant 0 : i32
    %c0_i32_0 = arith.constant 0 : i32
    return %arg0, %c0_i32 : i32, i32
  }
  func.func @transform_3(%arg0: i32) -> (i32, i32) {
    %c0_i32 = arith.constant 0 : i32
    %c0_i32_0 = arith.constant 0 : i32
    %c0_i32_1 = arith.constant 0 : i32
    return %c0_i32, %c0_i32_0 : i32, i32
  }
  func.func @transform_4(%arg0: i32) -> (i32, i32) {
    %c0_i32 = arith.constant 0 : i32
    %c0_i32_0 = arith.constant 0 : i32
    %c0_i32_1 = arith.constant 0 : i32
    return %c0_i32, %c0_i32_0 : i32, i32
  }
  func.func @transform_5(%arg0: i32) -> (i32, i32) {
    %c0_i32 = arith.constant 0 : i32
    %c0_i32_0 = arith.constant 0 : i32
    return %arg0, %c0_i32 : i32, i32
  }
  func.func @transform_6(%arg0: i32) -> (i32, i32) {
    %c0_i32 = arith.constant 0 : i32
    %c0_i32_0 = arith.constant 0 : i32
    return %arg0, %c0_i32 : i32, i32
  }
  func.func @transform_7(%arg0: i32) -> (i32, i32) {
    %c0_i32 = arith.constant 0 : i32
    %c0_i32_0 = arith.constant 0 : i32
    return %arg0, %c0_i32 : i32, i32
  }
}

</mosaic_0001>

<bundles_post_ra>
// kernel: tpu_custom_call.1
= control target key start
LH: loop header
LB: loop body
LE: loop exit
PB: predicated region body
PF: predicated region fallthrough
CT: control target
= control target key end

     0   :  { %s5414_s24 = smov 0   ;;  %s9516_s0 = inlined_call_operand.vmem [shape: f32[144,196], index: 0, kind: input, shape index: {}]   ;;  %s9517_s1 = inlined_call_operand.vmem [shape: f32[144,196], index: 1, kind: input, shape index: {}]   ;;  %s9518_s2 = inlined_call_operand.vmem [shape: f32[864,144], index: 2, kind: input, shape index: {}]   ;;  %s9519_s3 = inlined_call_operand.vmem [shape: f32[144,1], index: 3, kind: input, shape index: {}]   ;;  %s9520_s4 = inlined_call_operand.vmem [shape: f32[144,1], index: 4, kind: input, shape index: {}]   ;;  %s9521_s5 = inlined_call_operand.vmem [shape: f32[864,1], index: 5, kind: input, shape index: {}]   ;;  %s9522_s6 = inlined_call_operand.vmem [shape: f32[864,1], index: 6, kind: input, shape index: {}]   ;;  %s9523_s7 = inlined_call_operand.vmem [shape: f32[864,196], index: 7, kind: output, shape index: {}]  }
   0x1 LB: > { %s4963_s25 = sadd.s32 4294967295, %s5371_s24   ;;  %p4967_p0 = scmp.ge.s32.totalorder %s5371_s24, 1  ;;  %s5371_s24 = sphi %s5414_s24, %s17_s24  }
   0x2   : > { %p261_p1 = scmp.lt.s32.totalorder %s5371_s24, 3 }
   0x4   : > { %p262_p2 = pnand %p4967_p0, %p261_p1 }
   0x6   : > { %265 = sbr.rel (%p262_p2) target bundleno = 1926 (0x786), region = 48 }
   0xb   : > { %v5425_v0 = vld [vmem:[%s9516_s0 + $0x40] sm:$0xff]  ;;  %v5430_v1 = vld [vmem:[%s9516_s0 + $0x48] sm:$0xff]  ;;  %vm367_vm0 = vcmask 556032   ;;  %v5462_v10 = vld [vmem:[%s9516_s0 + $0x58] sm:$0xff]  ;;  %s6560_s12 = smul.u32 54, %s4963_s25 }
   0xc   : > { %v5435_v2 = vld [vmem:[%s9516_s0 + $0x20] sm:$0xff]  ;;  %v384_v3 = vsel %vm367_vm0, %v5430_v1, 0.0  ;;  %v5442_v4 = vld [vmem:[%s9516_s0 + $0x28] sm:$0xff]  ;;  %v5469_v13 = vld [vmem:[%s9516_s0 + $0x38] sm:$0xff]  ;;  %v388_v16 = vsel %vm367_vm0, %v5462_v10, 0.0 }
   0xd   : > { %v5447_v5 = vld [vmem:[%s9516_s0] sm:$0xff]  ;;  %v5452_v6 = vld [vmem:[%s9516_s0 + $0x8] sm:$0xff]  ;;  %v385_v7 = vadd.f32 %v384_v3, %v5425_v0  ;;  %v376_v8 = vsel %vm367_vm0, %v5442_v4, 0.0  ;;  %v5474_v14 = vld [vmem:[%s9516_s0 + $0x18] sm:$0xff]  ;;  %v380_v18 = vsel %vm367_vm0, %v5469_v13, 0.0  ;;  %p306_p3 = scmp.lt.s32.totalorder %s6560_s12, 107 }
   0xe   : > { %v368_v9 = vsel %vm367_vm0, %v5452_v6, 0.0  ;;  %v377_v11 = vadd.f32 %v376_v8, %v5435_v2  ;;  %v5479_v15 = vld [vmem:[%s9516_s0 + $0x50] sm:$0xff]  ;;  %v372_v20 = vsel %vm367_vm0, %v5474_v14, 0.0  ;;  %v5503_v24 = vld [vmem:[%s9516_s0 + $0x88] sm:$0xff]  ;;  %v5508_v25 = vld [vmem:[%s9516_s0 + $0x78] sm:$0xff] }
   0xf   : > { %v369_v12 = vadd.f32 %v368_v9, %v5447_v5  ;;  %386 = vadd.xlane.f32.xlu2 %v385_v7  ;;  %v5486_v17 = vld [vmem:[%s9516_s0 + $0x30] sm:$0xff]  ;;  %v389_v21 = vadd.f32 %v388_v16, %v5479_v15  ;;  %v5513_v26 = vld [vmem:[%s9516_s0 + $0x68] sm:$0xff]  ;;  %v5518_v27 = vld [vmem:[%s9516_s0 + $0x80] sm:$0xff]  ;;  %v400_v28 = vsel %vm367_vm0, %v5503_v24, 0.0  ;;  %v396_v30 = vsel %vm367_vm0, %v5508_v25, 0.0  ;;  %s10087_s12 = smov (!%p306_p3, %s6560_s12), 107 }
  0x10   : > { %378 = vadd.xlane.f32.xlu1 %v377_v11  ;;  %v5493_v19 = vld [vmem:[%s9516_s0 + $0x10] sm:$0xff]  ;;  %v381_v22 = vadd.f32 %v380_v18, %v5486_v17  ;;  %v5532_v31 = vld [vmem:[%s9516_s0 + $0x60] sm:$0xff]  ;;  %v392_v32 = vsel %vm367_vm0, %v5513_v26, 0.0  ;;  %v401_v33 = vadd.f32 %v400_v28, %v5518_v27  ;;  %v5542_v36 = vld [vmem:[%s9516_s0 + $0xb8] sm:$0xff]  ;;  %s5138_s29 = sshll.u32 %s10087_s12, 4  ;;  %s4970_s22 = sshll.u32 %s10087_s12, 3 }
  0x11   : > { %370 = vadd.xlane.f32.xlu0 %v369_v12  ;;  %v373_v23 = vadd.f32 %v372_v20, %v5493_v19  ;;  %v5525_v29 = vld [vmem:[%s9516_s0 + $0x70] sm:$0xff]  ;;  %v393_v35 = vadd.f32 %v392_v32, %v5532_v31  ;;  %v5547_v37 = vld [vmem:[%s9516_s0 + $0xa8] sm:$0xff]  ;;  %v5552_v38 = vld [vmem:[%s9516_s0 + $0x98] sm:$0xff]  ;;  %v412_v40 = vsel %vm367_vm0, %v5542_v36, 0.0  ;;  %v463_v20 = vmul.f32 %v5442_v4, %v5442_v4  ;;  %s6679_s18 = scalar_lea.vmem %s9518_s2, %s5138_s29  ;;  %s8005_s27 = scalar_lea.vmem %s9521_s5, %s4970_s22 }
  0x12   : > { %v397_v34 = vadd.f32 %v396_v30, %v5525_v29  ;;  %v5557_v39 = vld [vmem:[%s9516_s0 + $0xb0] sm:$0xff]  ;;  %v5564_v41 = vld [vmem:[%s9516_s0 + $0xa0] sm:$0xff]  ;;  %v408_v42 = vsel %vm367_vm0, %v5547_v37, 0.0  ;;  %v404_v44 = vsel %vm367_vm0, %v5552_v38, 0.0  ;;  %v5581_v48 = vld [vmem:[%s9516_s0 + $0xe8] sm:$0xff]  ;;  %v460_v30 = vmul.f32 %v5493_v19, %v5493_v19  ;;  %s8021_s8 = scalar_lea.vmem %s9522_s6, %s4970_s22  ;;  %s8206_s11 = scalar_lea.vmem %s9523_s7, %s5138_s29 }
  0x13   : > { %v5571_v43 = vld [vmem:[%s9516_s0 + $0x90] sm:$0xff]  ;;  %v413_v45 = vadd.f32 %v412_v40, %v5557_v39  ;;  %v409_v46 = vadd.f32 %v408_v42, %v5564_v41  ;;  %v5586_v49 = vld [vmem:[%s9516_s0 + $0xd8] sm:$0xff]  ;;  %v5591_v50 = vld [vmem:[%s9516_s0 + $0xc8] sm:$0xff]  ;;  %v424_v52 = vsel %vm367_vm0, %v5581_v48, 0.0  ;;  %v502_v28 = vsel %vm367_vm0, %v463_v20, 0.0 }
  0x14   : > { %v405_v47 = vadd.f32 %v404_v44, %v5571_v43  ;;  %v5596_v51 = vld [vmem:[%s9516_s0 + $0xe0] sm:$0xff]  ;;  %v5603_v53 = vld [vmem:[%s9516_s0 + $0xd0] sm:$0xff]  ;;  %v420_v54 = vsel %vm367_vm0, %v5586_v49, 0.0  ;;  %v416_v56 = vsel %vm367_vm0, %v5591_v50, 0.0  ;;  %v5620_v60 = vld [vmem:[%s9516_s0 + $0x118] sm:$0xff]  ;;  %v458_v4 = vmul.f32 %v5447_v5, %v5447_v5 }
  0x15   : > { %v5610_v55 = vld [vmem:[%s9516_s0 + $0xc0] sm:$0xff]  ;;  %v425_v57 = vadd.f32 %v424_v52, %v5596_v51  ;;  %v421_v58 = vadd.f32 %v420_v54, %v5603_v53  ;;  %v5625_v61 = vld [vmem:[%s9516_s0 + $0x108] sm:$0xff]  ;;  %v5630_v62 = vld [vmem:[%s9516_s0 + $0xf8] sm:$0xff]  ;;  %v436_v3 = vsel %vm367_vm0, %v5620_v60, 0.0  ;;  %v465_v40 = vmul.f32 %v5469_v13, %v5469_v13 }
  0x16   : > { %v417_v59 = vadd.f32 %v416_v56, %v5610_v55  ;;  %v5635_v63 = vld [vmem:[%s9516_s0 + $0x110] sm:$0xff]  ;;  %v5642_v7 = vld [vmem:[%s9516_s0 + $0x100] sm:$0xff]  ;;  %v432_v8 = vsel %vm367_vm0, %v5625_v61, 0.0  ;;  %v428_v11 = vsel %vm367_vm0, %v5630_v62, 0.0  ;;  %v468_v5 = vmul.f32 %v5479_v15, %v5479_v15 }
  0x17   : > { %390 = vadd.xlane.f32.xlu2 %v389_v21  ;;  %v5649_v9 = vld [vmem:[%s9516_s0 + $0xf0] sm:$0xff]  ;;  %v437_v12 = vadd.f32 %v436_v3, %v5635_v63  ;;  %v433_v16 = vadd.f32 %v432_v8, %v5642_v7  ;;  %v461_v21 = vmul.f32 %v5474_v14, %v5474_v14  ;;  %v466_v42 = vmul.f32 %v5425_v0, %v5425_v0 }
  0x18   : > { %382 = vadd.xlane.f32.xlu1 %v381_v22  ;;  %v429_v18 = vadd.f32 %v428_v11, %v5649_v9  ;;  %v459_v22 = vmul.f32 %v5452_v6, %v5452_v6  ;;  %v475_v15 = vmul.f32 %v5503_v24, %v5503_v24  ;;  %v471_v52 = vmul.f32 %v5513_v26, %v5513_v26 }
  0x19   : > { %374 = vadd.xlane.f32.xlu0 %v373_v23  ;;  %v462_v23 = vmul.f32 %v5435_v2, %v5435_v2  ;;  %v498_v32 = vsel %vm367_vm0, %v461_v21, 0.0  ;;  %v469_v2 = vmul.f32 %v5462_v10, %v5462_v10  ;;  %v464_v10 = vmul.f32 %v5486_v17, %v5486_v17 }
  0x1a   : > { %v494_v14 = vsel %vm367_vm0, %v459_v22, 0.0  ;;  %v499_v6 = vadd.f32 %v498_v32, %v460_v30  ;;  %v474_v0 = vmul.f32 %v5518_v27, %v5518_v27  ;;  %v526_v17 = vsel %vm367_vm0, %v475_v15, 0.0 }
  0x1b   : > { %v514_v19 = vsel %vm367_vm0, %v469_v2, 0.0  ;;  %v472_v54 = vmul.f32 %v5525_v29, %v5525_v29  ;;  %v470_v24 = vmul.f32 %v5532_v31, %v5532_v31  ;;  %v481_v27 = vmul.f32 %v5542_v36, %v5542_v36 }
  0x1c   : > { %v477_v3 = vmul.f32 %v5552_v38, %v5552_v38  ;;  %v480_v29 = vmul.f32 %v5557_v39, %v5557_v39  ;;  %v478_v8 = vmul.f32 %v5564_v41, %v5564_v41  ;;  %v476_v36 = vmul.f32 %v5571_v43, %v5571_v43 }
  0x1d   : > { %v538_v31 = vsel %vm367_vm0, %v481_v27, 0.0  ;;  %v487_v39 = vmul.f32 %v5581_v48, %v5581_v48  ;;  %v483_v20 = vmul.f32 %v5591_v50, %v5591_v50  ;;  %v486_v41 = vmul.f32 %v5596_v51, %v5596_v51 }
  0x1e   : > { %v484_v21 = vmul.f32 %v5603_v53, %v5603_v53  ;;  %v482_v48 = vmul.f32 %v5610_v55, %v5610_v55  ;;  %v493_v51 = vmul.f32 %v5620_v60, %v5620_v60  ;;  %v491_v30 = vmul.f32 %v5625_v61, %v5625_v61 }
  0x1f   : > { %402 = vadd.xlane.f32.xlu2 %v401_v33  ;;  %v503_v33 = vadd.f32 %v502_v28, %v462_v23  ;;  %v550_v43 = vsel %vm367_vm0, %v487_v39, 0.0  ;;  %v492_v53 = vmul.f32 %v5635_v63, %v5635_v63  ;;  %v490_v32 = vmul.f32 %v5642_v7, %v5642_v7 }
  0x20   : > { %398 = vadd.xlane.f32.xlu1 %v397_v34  ;;  %v495_v34 = vadd.f32 %v494_v14, %v458_v4  ;;  %v551_v23 = vadd.f32 %v550_v43, %v486_v41  ;;  %v489_v4 = vmul.f32 %v5630_v62, %v5630_v62  ;;  %v562_v55 = vsel %vm367_vm0, %v493_v51, 0.0 }
  0x21   : > { %394 = vadd.xlane.f32.xlu0 %v393_v35  ;;  %v467_v35 = vmul.f32 %v5430_v1, %v5430_v1  ;;  %v506_v1 = vsel %vm367_vm0, %v465_v40, 0.0  ;;  %v488_v60 = vmul.f32 %v5649_v9, %v5649_v9  ;;  %v558_v14 = vsel %vm367_vm0, %v491_v30, 0.0 }
  0x22   : > { %v554_v61 = vsel %vm367_vm0, %v489_v4, 0.0  ;;  %v559_v62 = vadd.f32 %v558_v14, %v490_v32 }
  0x23   : > { %v510_v44 = vsel %vm367_vm0, %v467_v35, 0.0 }
  0x24   : > { %v511_v13 = vadd.f32 %v510_v44, %v466_v42 }
  0x27   : > { %414 = vadd.xlane.f32.xlu2 %v413_v45  ;;  %v515_v45 = vadd.f32 %v514_v19, %v468_v5 }
  0x28   : > { %410 = vadd.xlane.f32.xlu1 %v409_v46  ;;  %v507_v46 = vadd.f32 %v506_v1, %v464_v10 }
  0x29   : > { %406 = vadd.xlane.f32.xlu0 %v405_v47  ;;  %v473_v47 = vmul.f32 %v5508_v25, %v5508_v25  ;;  %v518_v25 = vsel %vm367_vm0, %v471_v52, 0.0  ;;  %v5373_v52 = vmov 0  }
  0x2a   : > { %5155 = vset.pattern.permute.xlu2 %v5373_v52  ;;  %5154 = vset.pattern.permute.xlu1 %v5373_v52 }
  0x2b   : > { %v522_v56 = vsel %vm367_vm0, %v473_v47, 0.0  ;;  %5153 = vset.pattern.permute.xlu0 %v5373_v52 }
  0x2c   : > { %v523_v26 = vadd.f32 %v522_v56, %v472_v54 }
  0x2f   : > { %426 = vadd.xlane.f32.xlu2 %v425_v57  ;;  %v527_v57 = vadd.f32 %v526_v17, %v474_v0 }
  0x30   : > { %422 = vadd.xlane.f32.xlu1 %v421_v58  ;;  %v519_v58 = vadd.f32 %v518_v25, %v470_v24 }
  0x31   : > { %418 = vadd.xlane.f32.xlu0 %v417_v59  ;;  %v479_v59 = vmul.f32 %v5547_v37, %v5547_v37  ;;  %v530_v37 = vsel %vm367_vm0, %v477_v3, 0.0 }
  0x33   : > { %v534_v11 = vsel %vm367_vm0, %v479_v59, 0.0 }
  0x34   : > { %v535_v38 = vadd.f32 %v534_v11, %v478_v8 }
  0x37   : > { %438 = vadd.xlane.f32.xlu2 %v437_v12  ;;  %v539_v12 = vadd.f32 %v538_v31, %v480_v29 }
  0x38   : > { %434 = vadd.xlane.f32.xlu1 %v433_v16  ;;  %v531_v16 = vadd.f32 %v530_v37, %v476_v36 }
  0x39   : > { %430 = vadd.xlane.f32.xlu0 %v429_v18  ;;  %v485_v18 = vmul.f32 %v5586_v49, %v5586_v49  ;;  %v542_v49 = vsel %vm367_vm0, %v483_v20, 0.0 }
  0x3a   : > { %v543_v28 = vadd.f32 %v542_v49, %v482_v48 }
  0x3b   : > { %v546_v22 = vsel %vm367_vm0, %v485_v18, 0.0 }
  0x3c   : > { %v547_v50 = vadd.f32 %v546_v22, %v484_v21 }
  0x3f   : > { %504 = vadd.xlane.f32.xlu2 %v503_v33  ;;  %v563_v33 = vadd.f32 %v562_v55, %v492_v53 }
  0x40   : > { %500 = vadd.xlane.f32.xlu1 %v499_v6  ;;  %v555_v6 = vadd.f32 %v554_v61, %v488_v60 }
  0x41   : > { %496 = vadd.xlane.f32.xlu0 %v495_v34 }
  0x47   : > { %516 = vadd.xlane.f32.xlu2 %v515_v45 }
  0x48   : > { %512 = vadd.xlane.f32.xlu1 %v511_v13 }
  0x49   : > { %508 = vadd.xlane.f32.xlu0 %v507_v46 }
  0x4f   : > { %528 = vadd.xlane.f32.xlu2 %v527_v57 }
  0x50   : > { %524 = vadd.xlane.f32.xlu1 %v523_v26 }
  0x51   : > { %520 = vadd.xlane.f32.xlu0 %v519_v58 }
  0x57   : > { %540 = vadd.xlane.f32.xlu2 %v539_v12 }
  0x58   : > { %536 = vadd.xlane.f32.xlu1 %v535_v38 }
  0x59   : > { %532 = vadd.xlane.f32.xlu0 %v531_v16 }
  0x5f   : > { %552 = vadd.xlane.f32.xlu2 %v551_v23 }
  0x60   : > { %548 = vadd.xlane.f32.xlu1 %v547_v50 }
  0x61   : > { %544 = vadd.xlane.f32.xlu0 %v543_v28 }
  0x67   : > { %564 = vadd.xlane.f32.xlu2 %v563_v33 }
  0x68   : > { %560 = vadd.xlane.f32.xlu1 %v559_v62 }
  0x69   : > { %556 = vadd.xlane.f32.xlu0 %v555_v6 }
  0x82   : > { %v387_v63 = vpop.xlane.xlu2 %386 }
  0x83   : > { %v379_v34 = vpop.xlane.xlu1 %378  ;;  %v5752_v24 = vmul.f32 0.0051020407, %v387_v63 }
  0x84   : > { %v371_v2 = vpop.xlane.xlu0 %370  ;;  %v5746_v0 = vmul.f32 0.0051020407, %v379_v34 }
  0x85   : > { %v5748_v17 = vmul.f32 0.0051020407, %v371_v2  ;;  %v588_v16 = vmul.f32 %v5752_v24, %v5752_v24 }
  0x86   : > { %v586_v25 = vmul.f32 %v5746_v0, %v5746_v0 }
  0x87   : > { %v584_v57 = vmul.f32 %v5748_v17, %v5748_v17 }
  0x8a   : > { %v391_v35 = vpop.xlane.xlu2 %390 }
  0x8b   : > { %v383_v40 = vpop.xlane.xlu1 %382  ;;  %v5758_v26 = vmul.f32 0.0051020407, %v391_v35 }
  0x8c   : > { %v375_v5 = vpop.xlane.xlu0 %374  ;;  %v5760_v3 = vmul.f32 0.0051020407, %v383_v40 }
  0x8d   : > { %v5750_v54 = vmul.f32 0.0051020407, %v375_v5  ;;  %v589_v39 = vmul.f32 %v5758_v26, %v5758_v26 }
  0x8e   : > { %v587_v20 = vmul.f32 %v5760_v3, %v5760_v3 }
  0x8f   : > { %v585_v29 = vmul.f32 %v5750_v54, %v5750_v54 }
  0x92   : > { %v403_v7 = vpop.xlane.xlu2 %402 }
  0x93   : > { %v399_v19 = vpop.xlane.xlu1 %398  ;;  %v5764_v36 = vmul.f32 0.0051020407, %v403_v7 }
  0x94   : > { %v395_v42 = vpop.xlane.xlu0 %394  ;;  %v5766_v11 = vmul.f32 0.0051020407, %v399_v19 }
  0x95   : > { %v5776_v41 = vmul.f32 0.0051020407, %v395_v42  ;;  %v5784_v48 = vmul.f32 %v5764_v36, %v5764_v36 }
  0x96   : > { %v5788_v22 = vmul.f32 %v5766_v11, %v5766_v11 }
  0x97   : > { %v590_v60 = vmul.f32 %v5776_v41, %v5776_v41 }
  0x9a   : > { %v415_v9 = vpop.xlane.xlu2 %414 }
  0x9b   : > { %v411_v10 = vpop.xlane.xlu1 %410  ;;  %v5790_v49 = vmul.f32 0.0051020407, %v415_v9 }
  0x9c   : > { %v407_v44 = vpop.xlane.xlu0 %406  ;;  %v5793_v23 = vmul.f32 0.0051020407, %v411_v10 }
  0x9d   : > { %v5795_v50 = vmul.f32 0.0051020407, %v407_v44  ;;  %v5811_v62 = vmul.f32 %v5790_v49, %v5790_v49 }
  0x9e   : > { %v5819_v2 = vmul.f32 %v5793_v23, %v5793_v23 }
  0x9f   : > { %v5823_v35 = vmul.f32 %v5795_v50, %v5795_v50 }
  0xa2   : > { %v427_v1 = vpop.xlane.xlu2 %426 }
  0xa3   : > { %v423_v45 = vpop.xlane.xlu1 %422  ;;  %v5797_v28 = vmul.f32 0.0051020407, %v427_v1 }
  0xa4   : > { %v419_v13 = vpop.xlane.xlu0 %418  ;;  %v5800_v30 = vmul.f32 0.0051020407, %v423_v45 }
  0xa5   : > { %v5802_v4 = vmul.f32 0.0051020407, %v419_v13  ;;  %v5829_v19 = vmul.f32 %v5797_v28, %v5797_v28 }
  0xa6   : > { %v5833_v42 = vmul.f32 %v5800_v30, %v5800_v30 }
  0xa7   : > { %v5837_v9 = vmul.f32 %v5802_v4, %v5802_v4 }
  0xaa   : > { %v439_v46 = vpop.xlane.xlu2 %438 }
  0xab   : > { %v435_v15 = vpop.xlane.xlu1 %434  ;;  %v5807_v14 = vmul.f32 0.0051020407, %v439_v46 }
  0xac   : > { %v431_v47 = vpop.xlane.xlu0 %430  ;;  %v5813_v6 = vmul.f32 0.0051020407, %v435_v15 }
  0xad   : > { %v5815_v63 = vmul.f32 0.0051020407, %v431_v47  ;;  %v5845_v1 = vmul.f32 %v5807_v14, %v5807_v14 }
  0xae   : > { %v5857_v47 = vmul.f32 %v5813_v6, %v5813_v6 }
  0xaf   : > { %v5861_v52 = vmul.f32 %v5815_v63, %v5815_v63 }
  0xb2   : > { %v505_v56 = vpop.xlane.xlu2 %504 }
  0xb3   : > { %v568_v58 = vmul.f32 0.0051020407, %v505_v56  ;;  %v501_v27 = vpop.xlane.xlu1 %500 }
  0xb4   : > { %v497_v59 = vpop.xlane.xlu0 %496  ;;  %v567_v31 = vmul.f32 0.0051020407, %v501_v27 }
  0xb5   : > { %v566_v8 = vmul.f32 0.0051020407, %v497_v59  ;;  %v604_v37 = vsub.f32 %v568_v58, %v586_v25 }
  0xb6   : > { %v603_v12 = vsub.f32 %v567_v31, %v585_v29 }
  0xb7   : > { %v602_v38 = vsub.f32 %v566_v8, %v584_v57  ;;  %v5772_v18 = vadd.f32 1e-05, %v604_v37 }
  0xb8   : > { %v5778_v43 = vadd.f32 1e-05, %v603_v12 }
  0xb9   : > { %v5780_v21 = vadd.f32 1e-05, %v602_v38  ;;  %5156 = vrsqrt.f32 %v5772_v18  ;;  %vm682_vm1 = vweird.f32 %v5772_v18 }
  0xba   : > { %5158 = vrsqrt.f32 %v5778_v43  ;;  %v517_v51 = vpop.xlane.xlu2 %516  ;;  %vm672_vm2 = vweird.f32 %v5778_v43 }
  0xbb   : > { %5160 = vrsqrt.f32 %v5780_v21  ;;  %v571_v53 = vmul.f32 0.0051020407, %v517_v51  ;;  %v513_v55 = vpop.xlane.xlu1 %512  ;;  %vm662_vm4 = vweird.f32 %v5780_v21 }
  0xbc   : > { %v509_v32 = vpop.xlane.xlu0 %508  ;;  %v570_v61 = vmul.f32 0.0051020407, %v513_v55 }
  0xbd   : > { %v569_v33 = vmul.f32 0.0051020407, %v509_v32  ;;  %v607_v34 = vsub.f32 %v571_v53, %v589_v39 }
  0xbe   : > { %v606_v40 = vsub.f32 %v570_v61, %v588_v16 }
  0xbf   : > { %v605_v5 = vsub.f32 %v569_v33, %v587_v20  ;;  %v5825_v7 = vpop.eup %5156  ;;  %v5839_v10 = vadd.f32 1e-05, %v607_v34 }
  0xc0   : > { %v5841_v44 = vpop.eup %5158  ;;  %v677_v45 = vmul.f32 %v5825_v7, %v5772_v18  ;;  %v5849_v13 = vadd.f32 1e-05, %v606_v40  ;;  %vm683_vm3 = vweird.f32 %v5825_v7 }
  0xc1   : > { %v5851_v46 = vadd.f32 1e-05, %v605_v5  ;;  %v5853_v15 = vpop.eup %5160  ;;  %v667_v56 = vmul.f32 %v5841_v44, %v5778_v43  ;;  %5162 = vrsqrt.f32 %v5839_v10  ;;  %vm673_vm5 = vweird.f32 %v5841_v44  ;;  %vm684_vm7 = vmor %vm682_vm1, %vm683_vm3 }
  0xc2   : > { %v678_v25 = vmul.f32 %v5825_v7, %v677_v45  ;;  %v657_v57 = vmul.f32 %v5853_v15, %v5780_v21  ;;  %5164 = vrsqrt.f32 %v5849_v13  ;;  %v529_v58 = vpop.xlane.xlu2 %528  ;;  %vm663_vm6 = vweird.f32 %v5853_v15  ;;  %vm674_vm9 = vmor %vm672_vm2, %vm673_vm5 }
  0xc3   : > { %v668_v27 = vmul.f32 %v5841_v44, %v667_v56  ;;  %5166 = vrsqrt.f32 %v5851_v46  ;;  %v574_v59 = vmul.f32 0.0051020407, %v529_v58  ;;  %v525_v29 = vpop.xlane.xlu1 %524  ;;  %vm702_vm8 = vweird.f32 %v5849_v13  ;;  %vm664_vm11 = vmor %vm662_vm4, %vm663_vm6 }
  0xc4   : > { %v521_v31 = vpop.xlane.xlu0 %520  ;;  %v679_v8 = vmul.f32 0.5, %v678_v25  ;;  %v658_v37 = vmul.f32 %v5853_v15, %v657_v57  ;;  %v573_v12 = vmul.f32 0.0051020407, %v525_v29  ;;  %vm692_vm10 = vweird.f32 %v5851_v46 }
  0xc5   : > { %v572_v38 = vmul.f32 0.0051020407, %v521_v31  ;;  %v669_v16 = vmul.f32 0.5, %v668_v27  ;;  %v610_v39 = vsub.f32 %v574_v59, %v5784_v48  ;;  %vm712_vm15 = vweird.f32 %v5839_v10 }
  0xc6   : > { %v659_v20 = vmul.f32 0.5, %v658_v37  ;;  %v609_v51 = vsub.f32 %v573_v12, %v5788_v22  ;;  %v680_v55 = vsub.f32 1.5, %v679_v8  ;;  %v622_v22 = vld [vmem:[%s9519_s3 + $0x10] sm:$0xff]  ;;  %v621_v12 = vld [vmem:[%s9519_s3 + $0x8] sm:$0xff] }
  0xc7   : > { %v608_v53 = vsub.f32 %v572_v38, %v590_v60  ;;  %v5879_v32 = vpop.eup %5162  ;;  %v5881_v61 = vadd.f32 1e-05, %v610_v39  ;;  %v670_v33 = vsub.f32 1.5, %v669_v16 }
  0xc8   : > { %v5885_v34 = vpop.eup %5164  ;;  %v707_v48 = vmul.f32 %v5879_v32, %v5839_v10  ;;  %v5889_v40 = vadd.f32 1e-05, %v609_v51  ;;  %v681_v60 = vmul.f32 %v5825_v7, %v680_v55  ;;  %v660_v57 = vsub.f32 1.5, %v659_v20  ;;  %v620_v55 = vld [vmem:[%s9519_s3] sm:$0xff] }
  0xc9   : > { %v5891_v5 = vadd.f32 1e-05, %v608_v53  ;;  %v5897_v45 = vpop.eup %5166  ;;  %v697_v56 = vmul.f32 %v5885_v34, %v5849_v13  ;;  %5168 = vrsqrt.f32 %v5881_v61  ;;  %v671_v25 = vmul.f32 %v5841_v44, %v670_v33 }
  0xca   : > { %v687_v58 = vmul.f32 %v5897_v45, %v5851_v46  ;;  %5170 = vrsqrt.f32 %v5889_v40  ;;  %v541_v27 = vpop.xlane.xlu2 %540  ;;  %v685_v59 = vsel %vm684_vm7, %v5825_v7, %v681_v60  ;;  %v708_v38 = vmul.f32 %v5879_v32, %v707_v48 }
  0xcb   : > { %v698_v29 = vmul.f32 %v5885_v34, %v697_v56  ;;  %5172 = vrsqrt.f32 %v5891_v5  ;;  %v577_v31 = vmul.f32 0.0051020407, %v541_v27  ;;  %v537_v18 = vpop.xlane.xlu1 %536  ;;  %v5914_v37 = vmul.f32 %v685_v59, %v622_v22 }
  0xcc   : > { %v533_v8 = vpop.xlane.xlu0 %532  ;;  %v688_v16 = vmul.f32 %v5897_v45, %v687_v58  ;;  %v576_v7 = vmul.f32 0.0051020407, %v537_v18  ;;  %v675_v53 = vsel %vm674_vm9, %v5841_v44, %v671_v25  ;;  %v661_v33 = vmul.f32 %v5853_v15, %v660_v57 }
  0xcd   : > { %v575_v39 = vmul.f32 0.0051020407, %v533_v8  ;;  %v699_v20 = vmul.f32 0.5, %v698_v29  ;;  %v613_v51 = vsub.f32 %v577_v31, %v5811_v62  ;;  %920 = vperm.xlu2 %5155, %v5914_v37   ;;  %v5935_v60 = vmul.f32 %v675_v53, %v621_v12  ;;  %v624_v12 = vld [vmem:[%s9519_s3 + $0x20] sm:$0xff] }
  0xce   : > { %v689_v48 = vmul.f32 0.5, %v688_v16  ;;  %v612_v22 = vsub.f32 %v576_v7, %v5819_v2  ;;  %v665_v56 = vsel %vm664_vm11, %v5853_v15, %v661_v33  ;;  %vm703_vm12 = vweird.f32 %v5885_v34 }
  0xcf   : > { %v611_v43 = vsub.f32 %v575_v39, %v5823_v35  ;;  %v5941_v62 = vpop.eup %5168  ;;  %v5943_v44 = vadd.f32 1e-05, %v613_v51  ;;  %v700_v25 = vsub.f32 1.5, %v699_v20  ;;  %915 = vperm.xlu1 %5154, %v5935_v60   ;;  %v5956_v21 = vmul.f32 %v665_v56, %v620_v55  ;;  %vm704_vm13 = vmor %vm702_vm8, %vm703_vm12 }
  0xd0   : > { %v5947_v57 = vpop.eup %5170  ;;  %v737_v2 = vmul.f32 %v5941_v62, %v5881_v61  ;;  %v5951_v35 = vadd.f32 1e-05, %v612_v22  ;;  %v690_v29 = vsub.f32 1.5, %v689_v48  ;;  %v5964_v31 = vmul.f32 0.5, %v708_v38 }
  0xd1   : > { %v5953_v58 = vadd.f32 1e-05, %v611_v43  ;;  %v5958_v27 = vpop.eup %5172  ;;  %v727_v15 = vmul.f32 %v5947_v57, %v5889_v40  ;;  %5174 = vrsqrt.f32 %v5943_v44  ;;  %v701_v59 = vmul.f32 %v5885_v34, %v700_v25  ;;  %910 = vperm.xlu0 %5153, %v5956_v21   ;;  %v623_v43 = vld [vmem:[%s9519_s3 + $0x18] sm:$0xff] }
  0xd2   : > { %v717_v18 = vmul.f32 %v5958_v27, %v5891_v5  ;;  %5176 = vrsqrt.f32 %v5951_v35  ;;  %v553_v8 = vpop.xlane.xlu2 %552  ;;  %vm693_vm14 = vweird.f32 %v5897_v45  ;;  %v738_v51 = vmul.f32 %v5941_v62, %v737_v2 }
  0xd3   : > { %v728_v38 = vmul.f32 %v5947_v57, %v727_v15  ;;  %5178 = vrsqrt.f32 %v5953_v58  ;;  %v580_v16 = vmul.f32 0.0051020407, %v553_v8  ;;  %v549_v7 = vpop.xlane.xlu1 %548  ;;  %v705_v20 = vsel %vm704_vm13, %v5885_v34, %v701_v59  ;;  %vm694_vm1 = vmor %vm692_vm10, %vm693_vm14 }
  0xd4   : > { %v545_v39 = vpop.xlane.xlu0 %544  ;;  %v718_v53 = vmul.f32 %v5958_v27, %v717_v18  ;;  %v579_v55 = vmul.f32 0.0051020407, %v549_v7  ;;  %v5984_v22 = vmul.f32 %v705_v20, %v624_v12  ;;  %v691_v56 = vmul.f32 %v5897_v45, %v690_v29 }
  0xd5   : > { %v578_v33 = vmul.f32 0.0051020407, %v545_v39  ;;  %v729_v48 = vmul.f32 0.5, %v728_v38  ;;  %v616_v13 = vsub.f32 %v580_v16, %v5829_v19  ;;  %vm732_vm2 = vweird.f32 %v5889_v40 }
  0xd6   : > { %v5991_v34 = vmul.f32 0.5, %v718_v53  ;;  %v615_v25 = vsub.f32 %v579_v55, %v5833_v42  ;;  %v695_v59 = vsel %vm694_vm1, %v5897_v45, %v691_v56  ;;  %vm733_vm3 = vweird.f32 %v5947_v57  ;;  %v627_v53 = vld [vmem:[%s9519_s3 + $0x38] sm:$0xff] }
  0xd7   : > { %v614_v2 = vsub.f32 %v578_v33, %v5837_v9  ;;  %v6000_v19 = vpop.eup %5174  ;;  %v6002_v15 = vadd.f32 1e-05, %v616_v13  ;;  %v730_v29 = vsub.f32 1.5, %v729_v48  ;;  %930 = vperm.xlu1 %5154, %v5984_v22   ;;  %v6015_v8 = vmul.f32 %v695_v59, %v623_v43  ;;  %vm734_vm4 = vmor %vm732_vm2, %vm733_vm3 }
  0xd8   : > { %v6006_v18 = vpop.eup %5176  ;;  %v767_v42 = vmul.f32 %v6000_v19, %v5943_v44  ;;  %v6010_v9 = vadd.f32 1e-05, %v615_v25  ;;  %v710_v16 = vsub.f32 1.5, %v5964_v31  ;;  %vm713_vm5 = vweird.f32 %v5879_v32 }
  0xd9   : > { %v6012_v46 = vadd.f32 1e-05, %v614_v2  ;;  %v6017_v12 = vpop.eup %5178  ;;  %v757_v45 = vmul.f32 %v6006_v18, %v5951_v35  ;;  %5180 = vrsqrt.f32 %v6002_v15  ;;  %v731_v38 = vmul.f32 %v5947_v57, %v730_v29  ;;  %925 = vperm.xlu2 %5155, %v6015_v8   ;;  %vm714_vm6 = vmor %vm712_vm15, %vm713_vm5 }
  0xda   : > { %v768_v7 = vmul.f32 %v6000_v19, %v767_v42  ;;  %v747_v39 = vmul.f32 %v6017_v12, %v5953_v58  ;;  %5182 = vrsqrt.f32 %v6010_v9  ;;  %v565_v20 = vpop.xlane.xlu2 %564  ;;  %v739_v43 = vmul.f32 0.5, %v738_v51  ;;  %v625_v42 = vld [vmem:[%s9519_s3 + $0x28] sm:$0xff] }
  0xdb   : > { %v758_v31 = vmul.f32 %v6006_v18, %v757_v45  ;;  %5184 = vrsqrt.f32 %v6012_v46  ;;  %v583_v55 = vmul.f32 0.0051020407, %v565_v20  ;;  %v561_v33 = vpop.xlane.xlu1 %560  ;;  %v735_v13 = vsel %vm734_vm4, %v5947_v57, %v731_v38 }
  0xdc   : > { %v557_v48 = vpop.xlane.xlu0 %556  ;;  %v6040_v56 = vmul.f32 0.5, %v768_v7  ;;  %v582_v25 = vmul.f32 0.0051020407, %v561_v33  ;;  %v6043_v29 = vmul.f32 %v735_v13, %v627_v53  ;;  %v711_v45 = vmul.f32 %v5879_v32, %v710_v16 }
  0xdd   : > { %v581_v2 = vmul.f32 0.0051020407, %v557_v48  ;;  %v759_v59 = vmul.f32 0.5, %v758_v31  ;;  %v619_v40 = vsub.f32 %v583_v55, %v5845_v1  ;;  %v748_v20 = vmul.f32 %v6017_v12, %v747_v39  ;;  %v626_v31 = vld [vmem:[%s9519_s3 + $0x30] sm:$0xff] }
  0xde   : > { %v618_v57 = vsub.f32 %v582_v25, %v5857_v47  ;;  %v720_v1 = vsub.f32 1.5, %v5991_v34  ;;  %945 = vperm.xlu0 %5153, %v6043_v29   ;;  %v715_v16 = vsel %vm714_vm6, %v5879_v32, %v711_v45  ;;  %vm722_vm7 = vweird.f32 %v5891_v5 }
  0xdf   : > { %v617_v51 = vsub.f32 %v581_v2, %v5861_v52  ;;  %v6057_v38 = vpop.eup %5180  ;;  %v6059_v7 = vadd.f32 1e-05, %v619_v40  ;;  %vm723_vm8 = vweird.f32 %v5958_v27  ;;  %v6073_v39 = vmul.f32 %v715_v16, %v625_v42 }
  0xe0   : > { %v6065_v47 = vpop.eup %5182  ;;  %v797_v10 = vmul.f32 %v6057_v38, %v6002_v15  ;;  %v6069_v52 = vadd.f32 1e-05, %v618_v57  ;;  %v721_v55 = vmul.f32 %v5958_v27, %v720_v1  ;;  %v760_v33 = vsub.f32 1.5, %v759_v59  ;;  %vm724_vm9 = vmor %vm722_vm7, %vm723_vm8 }
  0xe1   : > { %v6071_v34 = vadd.f32 1e-05, %v617_v51  ;;  %v6075_v53 = vpop.eup %5184  ;;  %v787_v32 = vmul.f32 %v6065_v47, %v6010_v9  ;;  %5186 = vrsqrt.f32 %v6059_v7  ;;  %v749_v48 = vmul.f32 0.5, %v748_v20  ;;  %935 = vperm.xlu2 %5155, %v6073_v39   ;;  %v630_v20 = vld [vmem:[%s9519_s3 + $0x50] sm:$0xff] }
  0xe2   : > { %v798_v13 = vmul.f32 %v6057_v38, %v797_v10  ;;  %v777_v25 = vmul.f32 %v6075_v53, %v6012_v46  ;;  %5188 = vrsqrt.f32 %v6069_v52  ;;  %v725_v59 = vsel %vm724_vm9, %v5958_v27, %v721_v55  ;;  %v629_v55 = vld [vmem:[%s9519_s3 + $0x48] sm:$0xff] }
  0xe3   : > { %v788_v2 = vmul.f32 %v6065_v47, %v787_v32  ;;  %5190 = vrsqrt.f32 %v6071_v34  ;;  %v761_v40 = vmul.f32 %v6006_v18, %v760_v33  ;;  %v6098_v45 = vmul.f32 %v725_v59, %v626_v31 }
  0xe4   : > { %v778_v42 = vmul.f32 %v6075_v53, %v777_v25  ;;  %vm762_vm10 = vweird.f32 %v5951_v35  ;;  %vm763_vm11 = vweird.f32 %v6006_v18  ;;  %v740_v57 = vsub.f32 1.5, %v739_v43  ;;  %v628_v43 = vld [vmem:[%s9519_s3 + $0x40] sm:$0xff] }
  0xe5   : > { %v789_v5 = vmul.f32 0.5, %v788_v2  ;;  %vm764_vm12 = vmor %vm762_vm10, %vm763_vm11  ;;  %vm742_vm13 = vweird.f32 %v5881_v61  ;;  %vm743_vm14 = vweird.f32 %v5941_v62  ;;  %940 = vperm.xlu1 %5154, %v6098_v45   ;;  %v750_v1 = vsub.f32 1.5, %v749_v48  ;;  %v633_v2 = vld [vmem:[%s9519_s3 + $0x68] sm:$0xff] }
  0xe6   : > { %v779_v27 = vmul.f32 0.5, %v778_v42  ;;  %v765_v51 = vsel %vm764_vm12, %v6006_v18, %v761_v40  ;;  %vm752_vm15 = vweird.f32 %v5953_v58  ;;  %v741_v10 = vmul.f32 %v5941_v62, %v740_v57  ;;  %vm744_vm2 = vmor %vm742_vm13, %vm743_vm14 }
  0xe7   : > { %v6110_v16 = vpop.eup %5186  ;;  %v6112_v35 = vmul.f32 %v765_v51, %v630_v20  ;;  %vm753_vm1 = vweird.f32 %v6017_v12  ;;  %v790_v32 = vsub.f32 1.5, %v789_v5  ;;  %v751_v33 = vmul.f32 %v6017_v12, %v750_v1 }
  0xe8   : > { %v6119_v31 = vpop.eup %5188  ;;  %v827_v18 = vmul.f32 %v6110_v16, %v6059_v7  ;;  %vm792_vm3 = vweird.f32 %v6010_v9  ;;  %vm793_vm4 = vweird.f32 %v6065_v47  ;;  %v745_v61 = vsel %vm744_vm2, %v5941_v62, %v741_v10  ;;  %vm754_vm5 = vmor %vm752_vm15, %vm753_vm1 }
  0xe9   : > { %v6131_v48 = vpop.eup %5190  ;;  %v817_v25 = vmul.f32 %v6119_v31, %v6069_v52  ;;  %960 = vperm.xlu0 %5153, %v6112_v35   ;;  %v791_v9 = vmul.f32 %v6065_v47, %v790_v32  ;;  %v770_v59 = vsub.f32 1.5, %v6040_v56  ;;  %v799_v40 = vmul.f32 0.5, %v798_v13  ;;  %vm794_vm6 = vmor %vm792_vm3, %vm793_vm4  ;;  %v632_v32 = vld [vmem:[%s9519_s3 + $0x60] sm:$0xff] }
  0xea   : > { %v807_v42 = vmul.f32 %v6131_v48, %v6071_v34  ;;  %v6146_v20 = vmul.f32 %v745_v61, %v628_v43  ;;  %v755_v5 = vsel %vm754_vm5, %v6017_v12, %v751_v33  ;;  %v828_v1 = vmul.f32 %v6110_v16, %v827_v18 }
  0xeb   : > { %v818_v62 = vmul.f32 %v6119_v31, %v817_v25  ;;  %v6150_v58 = vmul.f32 %v755_v5, %v629_v55  ;;  %v795_v57 = vsel %vm794_vm6, %v6065_v47, %v791_v9  ;;  %v771_v51 = vmul.f32 %v6000_v19, %v770_v59  ;;  %v636_v59 = vld [vmem:[%s9519_s3 + $0x80] sm:$0xff] }
  0xec   : > { %v808_v56 = vmul.f32 %v6131_v48, %v807_v42  ;;  %950 = vperm.xlu2 %5155, %v6146_v20   ;;  %v6157_v13 = vmul.f32 %v795_v57, %v633_v2  ;;  %vm772_vm7 = vweird.f32 %v5943_v44  ;;  %vm773_vm8 = vweird.f32 %v6000_v19  ;;  %v631_v44 = vld [vmem:[%s9519_s3 + $0x58] sm:$0xff] }
  0xed   : > { %v819_v43 = vmul.f32 0.5, %v818_v62  ;;  %v780_v12 = vsub.f32 1.5, %v779_v27  ;;  %955 = vperm.xlu1 %5154, %v6150_v58   ;;  %vm6162_vm9 = vmor %vm772_vm7, %vm773_vm8  ;;  %vm782_vm10 = vweird.f32 %v6012_v46  ;;  %vm783_vm11 = vweird.f32 %v6075_v53  ;;  %v635_v62 = vld [vmem:[%s9519_s3 + $0x78] sm:$0xff] }
  0xee   : > { %v809_v10 = vmul.f32 0.5, %v808_v56  ;;  %vm823_vm12 = vweird.f32 %v6119_v31  ;;  %v775_v27 = vsel %vm6162_vm9, %v6000_v19, %v771_v51  ;;  %v800_v46 = vsub.f32 1.5, %v799_v40  ;;  %vm784_vm13 = vmor %vm782_vm10, %vm783_vm11 }
  0xef   : > { %v781_v18 = vmul.f32 %v6075_v53, %v780_v12  ;;  %v820_v55 = vsub.f32 1.5, %v819_v43  ;;  %vm822_vm14 = vweird.f32 %v6069_v52  ;;  %v829_v2 = vmul.f32 0.5, %v828_v1  ;;  %v637_v43 = vld [vmem:[%s9519_s3 + $0x88] sm:$0xff]  ;;  %v854_v12 = vld [vmem:[%s9520_s4] sm:$0xff] }
  0xf0   : > { %v810_v33 = vsub.f32 1.5, %v809_v10  ;;  %v6183_v19 = vmul.f32 %v775_v27, %v631_v44  ;;  %vm824_vm15 = vmor %vm822_vm14, %vm823_vm12  ;;  %vm803_vm1 = vweird.f32 %v6057_v38  ;;  %v801_v40 = vmul.f32 %v6057_v38, %v800_v46  ;;  %v858_v44 = vld [vmem:[%s9520_s4 + $0x20] sm:$0xff] }
  0xf1   : > { %975 = vperm.xlu0 %5153, %v6157_v13   ;;  %v785_v25 = vsel %vm784_vm13, %v6075_v53, %v781_v18  ;;  %v821_v61 = vmul.f32 %v6119_v31, %v820_v55  ;;  %vm813_vm2 = vweird.f32 %v6131_v48  ;;  %vm802_vm3 = vweird.f32 %v6002_v15 }
  0xf2   : > { %v6185_v9 = vmul.f32 %v785_v25, %v632_v32  ;;  %v811_v52 = vmul.f32 %v6131_v48, %v810_v33  ;;  %vm804_vm4 = vmor %vm802_vm3, %vm803_vm1  ;;  %vm812_vm5 = vweird.f32 %v6071_v34  ;;  %v830_v57 = vsub.f32 1.5, %v829_v2 }
  0xf3   : > { %v825_v53 = vsel %vm824_vm15, %v6119_v31, %v821_v61  ;;  %vm814_vm6 = vmor %vm812_vm5, %vm813_vm2  ;;  %v634_v31 = vld [vmem:[%s9519_s3 + $0x70] sm:$0xff]  ;;  %v805_v5 = vsel %vm804_vm4, %v6057_v38, %v801_v40  ;;  %v873_v1 = vmul.f32 %v5935_v60, %v5750_v54  ;;  %vm833_vm7 = vweird.f32 %v6110_v16  ;;  %v855_v38 = vld [vmem:[%s9520_s4 + $0x8] sm:$0xff] }
  0xf4   : > { %965 = vperm.xlu2 %5155, %v6183_v19   ;;  %v6199_v42 = vmul.f32 %v825_v53, %v636_v59  ;;  %v815_v15 = vsel %vm814_vm6, %v6131_v48, %v811_v52  ;;  %v850_v51 = vmul.f32 %v805_v5, %v634_v31  ;;  %v831_v56 = vmul.f32 %v6110_v16, %v830_v57  ;;  %v866_v53 = vld [vmem:[%s9520_s4 + $0x60] sm:$0xff] }
  0xf5   : > { %970 = vperm.xlu1 %5154, %v6185_v9   ;;  %v851_v34 = vmul.f32 %v815_v15, %v635_v62  ;;  %vm832_vm8 = vweird.f32 %v6059_v7  ;;  %v891_v48 = vsub.f32 %v855_v38, %v873_v1  ;;  %v872_v60 = vmul.f32 %v5956_v21, %v5748_v17  ;;  %v856_v21 = vld [vmem:[%s9520_s4 + $0x10] sm:$0xff] }
  0xf6   : > { %vm834_vm9 = vmor %vm832_vm8, %vm833_vm7  ;;  %v876_v7 = vmul.f32 %v5984_v22, %v5752_v24  ;;  %v875_v27 = vmul.f32 %v6015_v8, %v5760_v3  ;;  %v857_v24 = vld [vmem:[%s9520_s4 + $0x18] sm:$0xff]  ;;  %v879_v32 = vmul.f32 %v6043_v29, %v5766_v11  ;;  %v859_v8 = vld [vmem:[%s9520_s4 + $0x28] sm:$0xff]  ;;  %v878_v55 = vmul.f32 %v6098_v45, %v5776_v41 }
  0xf7   : > { %v835_v54 = vsel %vm834_vm9, %v6110_v16, %v831_v56  ;;  %v890_v47 = vsub.f32 %v854_v12, %v872_v60  ;;  %v874_v16 = vmul.f32 %v5914_v37, %v5746_v0  ;;  %v861_v0 = vld [vmem:[%s9520_s4 + $0x38] sm:$0xff]  ;;  %v877_v37 = vmul.f32 %v6073_v39, %v5758_v26  ;;  %v860_v11 = vld [vmem:[%s9520_s4 + $0x30] sm:$0xff]  ;;  %v867_v26 = vld [vmem:[%s9520_s4 + $0x68] sm:$0xff] }
  0xf8   : > { %v853_v10 = vmul.f32 %v835_v54, %v637_v43  ;;  %v894_v17 = vsub.f32 %v858_v44, %v876_v7  ;;  %v893_v18 = vsub.f32 %v857_v24, %v875_v27  ;;  %v897_v3 = vsub.f32 %v861_v0, %v879_v32  ;;  %v869_v41 = vld [vmem:[%s9520_s4 + $0x78] sm:$0xff]  ;;  %v5300_v7 = vld [vmem:[%s9516_s0 + $0x20] sm:$0xff]  ;;  %v5301_v44 = vld [vmem:[%s9516_s0 + $0x28] sm:$0xff] }
  0xf9   : > { %990 = vperm.xlu0 %5153, %v6199_v42   ;;  %v892_v22 = vsub.f32 %v856_v21, %v874_v16  ;;  %v895_v29 = vsub.f32 %v859_v8, %v877_v37  ;;  %v885_v46 = vmul.f32 %v6157_v13, %v5800_v30  ;;  %v896_v33 = vsub.f32 %v860_v11, %v878_v55  ;;  %v868_v30 = vld [vmem:[%s9520_s4 + $0x70] sm:$0xff]  ;;  %v1164_v21 = vld [vmem:[%s9517_s1 + $0x20] sm:$0xff]  ;;  %v1165_v27 = vld [vmem:[%s9517_s1 + $0x28] sm:$0xff] }
  0xfa   : > { %v887_v39 = vmul.f32 %v851_v34, %v5815_v63  ;;  %v886_v45 = vmul.f32 %v850_v51, %v5797_v28  ;;  %v882_v61 = vmul.f32 %v6112_v35, %v5793_v23  ;;  %v864_v63 = vld [vmem:[%s9520_s4 + $0x50] sm:$0xff]  ;;  %v884_v59 = vmul.f32 %v6185_v9, %v5802_v4  ;;  %v865_v23 = vld [vmem:[%s9520_s4 + $0x58] sm:$0xff]  ;;  %v871_v4 = vld [vmem:[%s9520_s4 + $0x88] sm:$0xff] }
  0xfb   : > { %v903_v25 = vsub.f32 %v867_v26, %v885_v46  ;;  %v883_v40 = vmul.f32 %v6183_v19, %v5790_v49  ;;  %v889_v52 = vmul.f32 %v853_v10, %v5807_v14  ;;  %v881_v9 = vmul.f32 %v6150_v58, %v5795_v50  ;;  %v863_v49 = vld [vmem:[%s9520_s4 + $0x48] sm:$0xff]  ;;  %v862_v14 = vld [vmem:[%s9520_s4 + $0x40] sm:$0xff] }
  0xfc   : > { %980 = vperm.xlu2 %5155, %v850_v51   ;;  %v905_v13 = vsub.f32 %v869_v41, %v887_v39  ;;  %v904_v2 = vsub.f32 %v868_v30, %v886_v45  ;;  %v900_v28 = vsub.f32 %v864_v63, %v882_v61  ;;  %v902_v35 = vsub.f32 %v866_v53, %v884_v59  ;;  %v870_v58 = vld [vmem:[%s9520_s4 + $0x80] sm:$0xff]  ;;  %v1163_v41 = vld [vmem:[%s9517_s1 + $0x18] sm:$0xff] }
  0xfd   : > { %985 = vperm.xlu1 %5154, %v851_v34   ;;  %v901_v31 = vsub.f32 %v865_v23, %v883_v40  ;;  %v907_v5 = vsub.f32 %v871_v4, %v889_v52  ;;  %v880_v19 = vmul.f32 %v6146_v20, %v5764_v36  ;;  %v899_v62 = vsub.f32 %v863_v49, %v881_v9  ;;  %v5306_v59 = vld [vmem:[%s9516_s0 + $0xf8] sm:$0xff]  ;;  %v5307_v53 = vld [vmem:[%s9516_s0] sm:$0xff]  ;;  %v5308_v9 = vld [vmem:[%s9516_s0 + $0x8] sm:$0xff] }
  0xfe   : > { %v888_v50 = vmul.f32 %v6199_v42, %v5813_v6  ;;  %v1191_v52 = vld [vmem:[%s9517_s1 + $0xf8] sm:$0xff]  ;;  %vm1340_vm10 = vcmask 130048  }
  0xff   : > { %v898_v57 = vsub.f32 %v862_v14, %v880_v19 }
 0x100   : > { %v906_v51 = vsub.f32 %v870_v58, %v888_v50  ;;  %v1160_v50 = vld [vmem:[%s9517_s1] sm:$0xff]  ;;  %v1161_v58 = vld [vmem:[%s9517_s1 + $0x8] sm:$0xff] }
 0x101   : > { %1041 = vperm.xlu0 %5153, %v891_v48  }
 0x104   : > { %995 = vperm.xlu2 %5155, %v853_v10  }
 0x105   : > { %1036 = vperm.xlu1 %5154, %v890_v47  }
 0x109   : > { %1056 = vperm.xlu0 %5153, %v894_v17  }
 0x10c   : > { %1046 = vperm.xlu2 %5155, %v892_v22  }
 0x10d   : > { %1051 = vperm.xlu1 %5154, %v893_v18  }
 0x111   : > { %1071 = vperm.xlu0 %5153, %v897_v3  }
 0x114   : > { %1061 = vperm.xlu2 %5155, %v895_v29   ;;  %v5302_v29 = vld [vmem:[%s9516_s0 + $0x10] sm:$0xff] }
 0x115   : > { %1066 = vperm.xlu1 %5154, %v896_v33   ;;  %v5303_v33 = vld [vmem:[%s9516_s0 + $0x18] sm:$0xff] }
 0x119   : > { %1101 = vperm.xlu0 %5153, %v903_v25   ;;  %v1162_v25 = vld [vmem:[%s9517_s1 + $0x10] sm:$0xff] }
 0x11c   : > { %1111 = vperm.xlu2 %5155, %v905_v13   ;;  %v5304_v13 = vld [vmem:[%s9516_s0 + $0x58] sm:$0xff] }
 0x11d   : > { %1106 = vperm.xlu1 %5154, %v904_v2   ;;  %v5305_v2 = vld [vmem:[%s9516_s0 + $0xf0] sm:$0xff] }
 0x121   : > { %1086 = vperm.xlu0 %5153, %v900_v28  }
 0x124   : > { %1096 = vperm.xlu2 %5155, %v902_v35   ;;  %v1190_v35 = vld [vmem:[%s9517_s1 + $0xf0] sm:$0xff] }
 0x125   : > { %1091 = vperm.xlu1 %5154, %v901_v31  }
 0x127   : > { %v921_v15 = vpop.permute.xlu2 %920 }
 0x128   : > { %v1002_v47 = vmul.f32 %v5300_v7, %v921_v15  ;;  %v1003_v16 = vmul.f32 %v5301_v44, %v921_v15  ;;  %v5310_v44 = vld [vmem:[%s9516_s0 + $0x40] sm:$0xff] }
 0x129   : > { %1121 = vperm.xlu0 %5153, %v907_v5  }
 0x12c   : > { %1081 = vperm.xlu2 %5155, %v899_v62   ;;  %v5309_v62 = vld [vmem:[%s9516_s0 + $0x50] sm:$0xff] }
 0x12d   : > { %1076 = vperm.xlu1 %5154, %v898_v57  }
 0x133   : > { %v6306_v36 = vpop.permute.xlu2 %925 }
 0x134   : > { %1116 = vperm.xlu2 %5155, %v906_v51  }
 0x13b   : > { %v936_v20 = vpop.permute.xlu2 %935 }
 0x13c   : > { %v1009_v61 = vmul.f32 %v5304_v13, %v936_v20  ;;  %v1008_v15 = vmul.f32 %v5309_v62, %v936_v20  ;;  %v5312_v13 = vld [vmem:[%s9516_s0 + $0x30] sm:$0xff] }
 0x141   : > { %v916_v34 = vpop.permute.xlu1 %915 }
 0x142   : > { %v1000_v46 = vmul.f32 %v5302_v29, %v916_v34  ;;  %v1001_v26 = vmul.f32 %v5303_v33, %v916_v34  ;;  %v1171_v34 = vld [vmem:[%s9517_s1 + $0x58] sm:$0xff] }
 0x143   : > { %v911_v56 = vpop.permute.xlu0 %910 }
 0x144   : > { %v998_v40 = vmul.f32 %v5307_v53, %v911_v56  ;;  %v999_v5 = vmul.f32 %v5308_v9, %v911_v56  ;;  %v1166_v53 = vld [vmem:[%s9517_s1 + $0x30] sm:$0xff] }
 0x145   : > { %v5314_v9 = vld [vmem:[%s9516_s0 + $0x70] sm:$0xff] }
 0x146   : > { %v6308_v1 = vpop.permute.xlu2 %950 }
 0x149   : > { %v6310_v38 = vpop.permute.xlu1 %930 }
 0x14e   : > { %v6312_v48 = vpop.permute.xlu2 %965 }
 0x150   : > { %v6314_v43 = vpop.permute.xlu0 %945 }
 0x156   : > { %v6316_v6 = vpop.permute.xlu2 %980 }
 0x157   : > { %v6318_v42 = vpop.permute.xlu1 %940 }
 0x15b   : > { %v6320_v54 = vpop.permute.xlu0 %960 }
 0x15e   : > { %v6322_v60 = vpop.permute.xlu2 %995 }
 0x15f   : > { %v6324_v12 = vpop.permute.xlu1 %955 }
 0x163   : > { %v6326_v10 = vpop.permute.xlu0 %975 }
 0x166   : > { %v1047_v17 = vpop.permute.xlu2 %1046 }
 0x167   : > { %v1128_v24 = vadd.f32 %v1047_v17, %v1002_v47  ;;  %v1129_v22 = vadd.f32 %v1047_v17, %v1003_v16  ;;  %v6340_v32 = vpop.permute.xlu1 %970  ;;  %v1006_v16 = vmul.f32 %v5310_v44, %v6310_v38  ;;  %v5311_v17 = vld [vmem:[%s9516_s0 + $0x48] sm:$0xff] }
 0x169   : > { %v6342_v18 = vadd.f32 %v1164_v21, %v1128_v24  ;;  %v6344_v0 = vadd.f32 %v1165_v27, %v1129_v22  ;;  %v1007_v21 = vmul.f32 %v5311_v17, %v6310_v38  ;;  %v1168_v38 = vld [vmem:[%s9517_s1 + $0x40] sm:$0xff] }
 0x16b   : > { %v2227_v37 = vsel %vm367_vm0, %v6344_v0, 0.0  ;;  %v6348_v3 = vpop.permute.xlu0 %990 }
 0x16c   : > { %v2228_v8 = vadd.f32 %v2227_v37, %v6342_v18 }
 0x16e   : > { %v1062_v55 = vpop.permute.xlu2 %1061  ;;  %2229 = vadd.xlane.f32.xlu2 %v2228_v8 }
 0x16f   : > { %v986_v11 = vpop.permute.xlu1 %985  ;;  %v1135_v49 = vadd.f32 %v1062_v55, %v1009_v61  ;;  %v1134_v27 = vadd.f32 %v1062_v55, %v1008_v15  ;;  %v1169_v55 = vld [vmem:[%s9517_s1 + $0x48] sm:$0xff]  ;;  %v1004_v61 = vmul.f32 %v5312_v13, %v6306_v36 }
 0x170   : > { %v1028_v63 = vmul.f32 %v5305_v2, %v986_v11  ;;  %v1029_v28 = vmul.f32 %v5306_v59, %v986_v11  ;;  %v1170_v11 = vld [vmem:[%s9517_s1 + $0x50] sm:$0xff]  ;;  %v5313_v2 = vld [vmem:[%s9516_s0 + $0x38] sm:$0xff] }
 0x171   : > { %v6424_v29 = vadd.f32 %v1171_v34, %v1135_v49  ;;  %v5315_v49 = vld [vmem:[%s9516_s0 + $0x78] sm:$0xff] }
 0x173   : > { %v1042_v39 = vpop.permute.xlu0 %1041  ;;  %v2239_v59 = vsel %vm367_vm0, %v6424_v29, 0.0 }
 0x174   : > { %v1126_v45 = vadd.f32 %v1042_v39, %v1000_v46  ;;  %v1127_v30 = vadd.f32 %v1042_v39, %v1001_v26 }
 0x176   : > { %v1112_v23 = vpop.permute.xlu2 %1111  ;;  %v6381_v31 = vadd.f32 %v1162_v25, %v1126_v45  ;;  %v6383_v4 = vadd.f32 %v1163_v41, %v1127_v30  ;;  %v6437_v41 = vadd.f32 %v1170_v11, %v1134_v27  ;;  %v1172_v11 = vld [vmem:[%s9517_s1 + $0x60] sm:$0xff] }
 0x177   : > { %v1154_v19 = vadd.f32 %v1112_v23, %v1028_v63  ;;  %v1155_v14 = vadd.f32 %v1112_v23, %v1029_v28  ;;  %v1037_v57 = vpop.permute.xlu1 %1036  ;;  %v1005_v63 = vmul.f32 %v5313_v2, %v6306_v36 }
 0x178   : > { %v2223_v51 = vsel %vm367_vm0, %v6383_v4, 0.0  ;;  %v1124_v56 = vadd.f32 %v1037_v57, %v998_v40  ;;  %v1125_v7 = vadd.f32 %v1037_v57, %v999_v5  ;;  %v1167_v40 = vld [vmem:[%s9517_s1 + $0x38] sm:$0xff]  ;;  %v1012_v5 = vmul.f32 %v5314_v9, %v6314_v43 }
 0x179   : > { %v6402_v47 = vadd.f32 %v1190_v35, %v1154_v19  ;;  %v6404_v20 = vadd.f32 %v1191_v52, %v1155_v14  ;;  %v2224_v24 = vadd.f32 %v2223_v51, %v6381_v31  ;;  %v1013_v19 = vmul.f32 %v5315_v49, %v6314_v43 }
 0x17a   : > { %v6417_v22 = vadd.f32 %v1160_v50, %v1124_v56  ;;  %v6419_v37 = vadd.f32 %v1161_v58, %v1125_v7  ;;  %v2240_v14 = vadd.f32 %v2239_v59, %v6437_v41  ;;  %v1174_v50 = vld [vmem:[%s9517_s1 + $0x70] sm:$0xff]  ;;  %v1175_v58 = vld [vmem:[%s9517_s1 + $0x78] sm:$0xff] }
 0x17b   : > { %1503 = vmatpush.msra.mxu0 %v6402_v47  ;;  %1861 = vmatpush.msra.mxu2 %v6404_v20  ;;  %v1057_v8 = vpop.permute.xlu0 %1056  ;;  %v5319_v59 = vld [vmem:[%s9516_s0 + $0x90] sm:$0xff] }
 0x17c   : > { %2225 = vadd.xlane.f32.xlu0 %v2224_v24  ;;  %v1132_v46 = vadd.f32 %v1057_v8, %v1006_v16  ;;  %v1133_v33 = vadd.f32 %v1057_v8, %v1007_v21  ;;  %v2219_v26 = vsel %vm367_vm0, %v6419_v37, 0.0  ;;  %v5316_v16 = vld [vmem:[%s9516_s0 + $0x60] sm:$0xff]  ;;  %v5317_v21 = vld [vmem:[%s9516_s0 + $0x68] sm:$0xff] }
 0x17d   : > { %v2220_v25 = vadd.f32 %v2219_v26, %v6417_v22  ;;  %v1010_v17 = vmul.f32 %v5316_v16, %v6318_v42  ;;  %v1011_v27 = vmul.f32 %v5317_v21, %v6318_v42 }
 0x17e   : > { %v6434_v39 = vpop.permute.xlu2 %1096  ;;  %v6439_v45 = vadd.f32 %v1168_v38, %v1132_v46  ;;  %v6441_v30 = vadd.f32 %v1169_v55, %v1133_v33  ;;  %v1173_v38 = vld [vmem:[%s9517_s1 + $0x68] sm:$0xff]  ;;  %v5318_v46 = vld [vmem:[%s9516_s0 + $0x98] sm:$0xff] }
 0x17f   : > { %v1052_v28 = vpop.permute.xlu1 %1051  ;;  %2221 = vadd.xlane.f32.xlu1 %v2220_v25  ;;  %v1017_v42 = vmul.f32 %v5318_v46, %v6324_v12 }
 0x180   : > { %v2235_v23 = vsel %vm367_vm0, %v6441_v30, 0.0  ;;  %v1130_v35 = vadd.f32 %v1052_v28, %v1004_v61  ;;  %v1131_v52 = vadd.f32 %v1052_v28, %v1005_v63  ;;  %v1016_v28 = vmul.f32 %v5319_v59, %v6324_v12  ;;  %v5321_v12 = vld [vmem:[%s9516_s0 + $0xe8] sm:$0xff]  ;;  %v1180_v59 = vld [vmem:[%s9517_s1 + $0xa0] sm:$0xff] }
 0x181   : > { %v2236_v36 = vadd.f32 %v2235_v23, %v6439_v45  ;;  %v5320_v23 = vld [vmem:[%s9516_s0 + $0xe0] sm:$0xff]  ;;  %v1027_v9 = vmul.f32 %v5321_v12, %v6316_v6 }
 0x182   : > { %v6471_v62 = vadd.f32 %v1166_v53, %v1130_v35  ;;  %v6473_v15 = vadd.f32 %v1167_v40, %v1131_v52  ;;  %v1179_v53 = vld [vmem:[%s9517_s1 + $0x98] sm:$0xff]  ;;  %v1026_v35 = vmul.f32 %v5320_v23, %v6316_v6  ;;  %v5324_v6 = vld [vmem:[%s9516_s0 + $0xc0] sm:$0xff] }
 0x183   : > { %2237 = vadd.xlane.f32.xlu2 %v2236_v36  ;;  %v1072_v57 = vpop.permute.xlu0 %1071 }
 0x184   : > { %2241 = vadd.xlane.f32.xlu0 %v2240_v14  ;;  %v1138_v51 = vadd.f32 %v1072_v57, %v1012_v5  ;;  %v1139_v34 = vadd.f32 %v1072_v57, %v1013_v19  ;;  %v2231_v43 = vsel %vm367_vm0, %v6473_v15, 0.0  ;;  %v5322_v5 = vld [vmem:[%s9516_s0 + $0xd0] sm:$0xff]  ;;  %v5323_v19 = vld [vmem:[%s9516_s0 + $0xd8] sm:$0xff] }
 0x185   : > { %v2232_v56 = vadd.f32 %v2231_v43, %v6471_v62  ;;  %v1024_v49 = vmul.f32 %v5322_v5, %v6326_v10  ;;  %v1025_v14 = vmul.f32 %v5323_v19, %v6326_v10  ;;  %v1178_v57 = vld [vmem:[%s9517_s1 + $0x90] sm:$0xff]  ;;  %v1188_v10 = vld [vmem:[%s9517_s1 + $0xe0] sm:$0xff]  ;;  %v5329_v19 = vld [vmem:[%s9516_s0 + $0xb8] sm:$0xff] }
 0x186   : > { %v6484_v7 = vadd.f32 %v1174_v50, %v1138_v51  ;;  %v6486_v44 = vadd.f32 %v1175_v58, %v1139_v34  ;;  %v1082_v8 = vpop.permute.xlu2 %1081  ;;  %v1022_v58 = vmul.f32 %v5324_v6, %v6340_v32  ;;  %v5325_v51 = vld [vmem:[%s9516_s0 + $0xc8] sm:$0xff]  ;;  %v5328_v5 = vld [vmem:[%s9516_s0 + $0xb0] sm:$0xff] }
 0x187   : > { %v1067_v24 = vpop.permute.xlu1 %1066  ;;  %2233 = vadd.xlane.f32.xlu1 %v2232_v56  ;;  %v1143_v13 = vadd.f32 %v1082_v8, %v1017_v42  ;;  %v1142_v52 = vadd.f32 %v1082_v8, %v1016_v28  ;;  %v1023_v34 = vmul.f32 %v5325_v51, %v6340_v32  ;;  %v1189_v56 = vld [vmem:[%s9517_s1 + $0xe8] sm:$0xff]  ;;  %v5326_v32 = vld [vmem:[%s9516_s0 + $0xa0] sm:$0xff]  ;;  %v1183_v51 = vld [vmem:[%s9517_s1 + $0xb8] sm:$0xff] }
 0x188   : > { %v2247_v55 = vsel %vm367_vm0, %v6486_v44, 0.0  ;;  %v1136_v33 = vadd.f32 %v1067_v24, %v1010_v17  ;;  %v1137_v26 = vadd.f32 %v1067_v24, %v1011_v27  ;;  %v1018_v24 = vmul.f32 %v5326_v32, %v6320_v54  ;;  %v5327_v8 = vld [vmem:[%s9516_s0 + $0xa8] sm:$0xff]  ;;  %v5332_v32 = vld [vmem:[%s9516_s0 + $0x100] sm:$0xff] }
 0x189   : > { %v2248_v25 = vadd.f32 %v2247_v55, %v6484_v7  ;;  %v6542_v50 = vadd.f32 %v1179_v53, %v1143_v13  ;;  %v1187_v55 = vld [vmem:[%s9517_s1 + $0xd8] sm:$0xff]  ;;  %v6576_v46 = vadd.f32 %v1178_v57, %v1142_v52  ;;  %v1149_v42 = vadd.f32 %v6434_v39, %v1023_v34  ;;  %v1181_v28 = vld [vmem:[%s9517_s1 + $0xa8] sm:$0xff]  ;;  %v1184_v53 = vld [vmem:[%s9517_s1 + $0xc0] sm:$0xff] }
 0x18a   : > { %v6509_v61 = vadd.f32 %v1172_v11, %v1136_v33  ;;  %v6511_v2 = vadd.f32 %v1173_v38, %v1137_v26  ;;  %v1019_v11 = vmul.f32 %v5327_v8, %v6320_v54  ;;  %v1186_v38 = vld [vmem:[%s9517_s1 + $0xd0] sm:$0xff]  ;;  %v1148_v13 = vadd.f32 %v6434_v39, %v1022_v58 }
 0x18b   : > { %2249 = vadd.xlane.f32.xlu2 %v2248_v25  ;;  %v1102_v63 = vpop.permute.xlu0 %1101  ;;  %v2255_v54 = vsel %vm367_vm0, %v6542_v50, 0.0  ;;  %v1182_v58 = vld [vmem:[%s9517_s1 + $0xb0] sm:$0xff] }
 0x18c   : > { %v2243_v40 = vsel %vm367_vm0, %v6511_v2, 0.0  ;;  %v1150_v21 = vadd.f32 %v1102_v63, %v1024_v49  ;;  %v1151_v27 = vadd.f32 %v1102_v63, %v1025_v14  ;;  %v1185_v63 = vld [vmem:[%s9517_s1 + $0xc8] sm:$0xff]  ;;  %v2256_v52 = vadd.f32 %v2255_v54, %v6576_v46 }
 0x18d   : > { %v2244_v36 = vadd.f32 %v2243_v40, %v6509_v61  ;;  %v1020_v49 = vmul.f32 %v5328_v5, %v6312_v48  ;;  %v1021_v14 = vmul.f32 %v5329_v19, %v6312_v48  ;;  %v1220_v57 = vadd.f32 %v1184_v53, %v1148_v13  ;;  %v5333_v54 = vld [vmem:[%s9516_s0 + $0x108] sm:$0xff]  ;;  %v1192_v53 = vld [vmem:[%s9517_s1 + $0x100] sm:$0xff] }
 0x18e   : > { %v6601_v39 = vadd.f32 %v1186_v38, %v1150_v21  ;;  %v1117_v48 = vpop.permute.xlu2 %1116  ;;  %v5331_v21 = vld [vmem:[%s9516_s0 + $0x118] sm:$0xff] }
 0x18f   : > { %v1107_v43 = vpop.permute.xlu1 %1106  ;;  %2245 = vadd.xlane.f32.xlu1 %v2244_v36  ;;  %v1221_v36 = vadd.f32 %v1185_v63, %v1149_v42  ;;  %v1194_v42 = vld [vmem:[%s9517_s1 + $0x110] sm:$0xff] }
 0x190   : > { %v1152_v16 = vadd.f32 %v1107_v43, %v1026_v35  ;;  %v1153_v17 = vadd.f32 %v1107_v43, %v1027_v9  ;;  %v1223_v35 = vadd.f32 %v1187_v55, %v1151_v27  ;;  %v1033_v27 = vmul.f32 %v5331_v21, %v6322_v60  ;;  %v6787_v21 = vld [vmem:[%s6679_s18 + $0x70] sm:$0xff] }
 0x191   : > { %v2267_v8 = vsel %vm367_vm0, %v1221_v36, 0.0 }
 0x192   : > { %v6579_v33 = vadd.f32 %v1188_v10, %v1152_v16  ;;  %v6581_v26 = vadd.f32 %v1189_v56, %v1153_v17  ;;  %v5330_v16 = vld [vmem:[%s9516_s0 + $0x110] sm:$0xff] }
 0x193   : > { %v1087_v25 = vpop.permute.xlu0 %1086  ;;  %v1032_v17 = vmul.f32 %v5330_v16, %v6322_v60  ;;  %v1195_v60 = vld [vmem:[%s9517_s1 + $0x118] sm:$0xff]  ;;  %v6779_v16 = vld [vmem:[%s6679_s18 + $0x60] sm:$0xff] }
 0x194   : > { %v1144_v40 = vadd.f32 %v1087_v25, %v1018_v24  ;;  %v1145_v23 = vadd.f32 %v1087_v25, %v1019_v11  ;;  %1504 = vmatpush.msra.mxu0 %v6579_v33  ;;  %1862 = vmatpush.msra.mxu2 %v6581_v26  ;;  %v1030_v24 = vmul.f32 %v5332_v32, %v6348_v3 }
 0x195   : > { %v1031_v25 = vmul.f32 %v5333_v54, %v6348_v3  ;;  %v2271_v3 = vsel %vm367_vm0, %v1223_v35, 0.0  ;;  %v1307_v54 = vld [vmem:[%s6679_s18 + $0x258] sm:$0xff] }
 0x196   : > { %v1216_v12 = vadd.f32 %v1180_v59, %v1144_v40  ;;  %v1217_v9 = vadd.f32 %v1181_v28, %v1145_v23  ;;  %1505 = vmatpush.msra.mxu0 %v6601_v39  ;;  %1863 = vmatpush.msra.mxu2 %v1223_v35  ;;  %v1156_v13 = vadd.f32 %v1117_v48, %v1030_v24  ;;  %v6797_v24 = vld [vmem:[%s6679_s18 + $0x80] sm:$0xff] }
 0x197   : > { %v1092_v6 = vpop.permute.xlu1 %1091  ;;  %2257 = vadd.xlane.f32.xlu1 %v2256_v52  ;;  %v2268_v28 = vadd.f32 %v2267_v8, %v1220_v57  ;;  %v1157_v40 = vadd.f32 %v1117_v48, %v1031_v25  ;;  %v1303_v8 = vld [vmem:[%s6679_s18 + $0x238] sm:$0xff] }
 0x198   : > { %v2259_v34 = vsel %vm367_vm0, %v1217_v9, 0.0  ;;  %1506 = vmatpush.msra.mxu0 %v1220_v57  ;;  %1864 = vmatpush.msra.mxu2 %v1221_v36  ;;  %v1146_v43 = vadd.f32 %v1092_v6, %v1020_v49  ;;  %v1147_v10 = vadd.f32 %v1092_v6, %v1021_v14  ;;  %v5334_v36 = vld [vmem:[%s9516_s0 + $0x80] sm:$0xff]  ;;  %v5335_v49 = vld [vmem:[%s9516_s0 + $0x88] sm:$0xff] }
 0x199   : > { %v2260_v56 = vadd.f32 %v2259_v34, %v1216_v12  ;;  %v1014_v5 = vmul.f32 %v5334_v36, %v6308_v1  ;;  %v1015_v19 = vmul.f32 %v5335_v49, %v6308_v1  ;;  %v1193_v14 = vld [vmem:[%s9517_s1 + $0x108] sm:$0xff]  ;;  %v1176_v57 = vld [vmem:[%s9517_s1 + $0x80] sm:$0xff]  ;;  %v1283_v34 = vld [vmem:[%s6679_s18 + $0x198] sm:$0xff] }
 0x19a   : > { %v6638_v11 = vadd.f32 %v1182_v58, %v1146_v43  ;;  %v6640_v38 = vadd.f32 %v1183_v51, %v1147_v10  ;;  %v1177_v1 = vld [vmem:[%s9517_s1 + $0x88] sm:$0xff]  ;;  %v2272_v58 = vadd.f32 %v2271_v3, %v6601_v39  ;;  %v1229_v51 = vadd.f32 %v1193_v14, %v1157_v40  ;;  %v1311_v3 = vld [vmem:[%s6679_s18 + $0x278] sm:$0xff] }
 0x19b   : > { %2261 = vadd.xlane.f32.xlu2 %v2260_v56  ;;  %v1122_v55 = vpop.permute.xlu0 %1121  ;;  %v2279_v10 = vsel %vm367_vm0, %v6404_v20, 0.0  ;;  %v1313_v14 = vld [vmem:[%s6679_s18 + $0x288] sm:$0xff] }
 0x19c   : > { %v1158_v63 = vadd.f32 %v1122_v55, %v1032_v17  ;;  %v1159_v59 = vadd.f32 %v1122_v55, %v1033_v27  ;;  %1507 = vmatpush.msra.mxu0 %v6638_v11  ;;  %1865 = vmatpush.msra.mxu2 %v6640_v38  ;;  %v2283_v20 = vsel %vm367_vm0, %v1229_v51, 0.0  ;;  %v1299_v17 = vld [vmem:[%s6679_s18 + $0x218] sm:$0xff]  ;;  %v1301_v27 = vld [vmem:[%s6679_s18 + $0x228] sm:$0xff] }
 0x19d   : > { %v1305_v55 = vld [vmem:[%s6679_s18 + $0x248] sm:$0xff] }
 0x19e   : > { %v6658_v23 = vadd.f32 %v1194_v42, %v1158_v63  ;;  %v6660_v52 = vadd.f32 %v1195_v60, %v1159_v59  ;;  %1508 = vmatpush.msra.mxu0 %v1216_v12  ;;  %1866 = vmatpush.msra.mxu2 %v1217_v9  ;;  %v1228_v12 = vadd.f32 %v1192_v53, %v1156_v13  ;;  %v6817_v60 = vld [vmem:[%s6679_s18 + $0xa0] sm:$0xff]  ;;  %v6831_v59 = vld [vmem:[%s6679_s18 + $0xb0] sm:$0xff] }
 0x19f   : > { %v1077_v35 = vpop.permute.xlu1 %1076  ;;  %2269 = vadd.xlane.f32.xlu1 %v2268_v28  ;;  %v1309_v28 = vld [vmem:[%s6679_s18 + $0x268] sm:$0xff] }
 0x1a0   : > { %5140 = vmatpush.msra.mxu1 %v6658_v23  ;;  %1509 = vmatpush.msra.mxu0 %v6576_v46  ;;  %v1140_v9 = vadd.f32 %v1077_v35, %v1014_v5  ;;  %v1141_v6 = vadd.f32 %v1077_v35, %v1015_v19  ;;  %v2280_v46 = vadd.f32 %v2279_v10, %v6402_v47  ;;  %v2263_v47 = vsel %vm367_vm0, %v6640_v38, 0.0  ;;  %v6807_v38 = vld [vmem:[%s6679_s18 + $0x90] sm:$0xff]  ;;  %v1317_v10 = vld [vmem:[%s6679_s18 + $0x2a8] sm:$0xff] }
 0x1a1   : > { %1867 = vmatpush.msra.mxu2 %v6542_v50  ;;  %5142 = vmatpush.msra.mxu3 %v6660_v52  ;;  %v2284_v56 = vadd.f32 %v2283_v20, %v1228_v12  ;;  %v6853_v19 = vld [vmem:[%s6679_s18 + $0xd0] sm:$0xff] }
 0x1a2   : > { %5141 = vmatpush.msra.mxu1 %v1228_v12  ;;  %v1212_v48 = vadd.f32 %v1176_v57, %v1140_v9  ;;  %v1213_v43 = vadd.f32 %v1177_v1, %v1141_v6  ;;  %v6863_v9 = vld [vmem:[%s6679_s18 + $0xe0] sm:$0xff]  ;;  %v1315_v6 = vld [vmem:[%s6679_s18 + $0x298] sm:$0xff] }
 0x1a3   : > { %2273 = vadd.xlane.f32.xlu2 %v2272_v58  ;;  %4999 = vmatmul.msk.f32.vlgmr.msra.gmra.mxu1 %vm1340_vm10, %v1283_v34 }
 0x1a4   : > { %5143 = vmatpush.msra.mxu3 %v1229_v51  ;;  %1510 = vmatpush.msra.mxu0 %v1212_v48  ;;  %v2251_v50 = vsel %vm367_vm0, %v1213_v43, 0.0 }
 0x1a5   : > { %1868 = vmatpush.msra.mxu2 %v1213_v43  ;;  %v2252_v39 = vadd.f32 %v2251_v50, %v1212_v48  ;;  %5053 = vmatmul.msk.f32.vlgmr.msra.gmra.mxu3 %vm1340_vm10, %v1283_v34  ;;  %v6875_v43 = vld [vmem:[%s6679_s18 + $0xf0] sm:$0xff] }
 0x1a6   : > { %1511 = vmatpush.msra.mxu0 %v6484_v7  ;;  %v1285_v7 = vld [vmem:[%s6679_s18 + $0x1a8] sm:$0xff] }
 0x1a7   : > { %1869 = vmatpush.msra.mxu2 %v6486_v44  ;;  %2281 = vadd.xlane.f32.xlu1 %v2280_v46  ;;  %v2264_v44 = vadd.f32 %v2263_v47, %v6638_v11 }
 0x1a8   : > { %2253 = vadd.xlane.f32.xlu0 %v2252_v39  ;;  %1512 = vmatpush.msra.mxu0 %v6509_v61  ;;  %v6763_v61 = vld [vmem:[%s6679_s18 + $0x40] sm:$0xff] }
 0x1a9   : > { %1870 = vmatpush.msra.mxu2 %v6511_v2  ;;  %v1295_v2 = vld [vmem:[%s6679_s18 + $0x1f8] sm:$0xff] }
 0x1aa   : > { %1513 = vmatpush.msra.mxu0 %v6437_v41  ;;  %v2275_v41 = vsel %vm367_vm0, %v6581_v26, 0.0  ;;  %v1297_v26 = vld [vmem:[%s6679_s18 + $0x208] sm:$0xff] }
 0x1ab   : > { %1871 = vmatpush.msra.mxu2 %v6424_v29  ;;  %2285 = vadd.xlane.f32.xlu2 %v2284_v56  ;;  %v6721_v29 = vld [vmem:[%s6679_s18] sm:$0xff] }
 0x1ac   : > { %5000 = vmatmul.msk.f32.gmra.mxu1 %vm1340_vm10, %v1285_v7  ;;  %1514 = vmatpush.msra.mxu0 %v6439_v45  ;;  %v1287_v45 = vld [vmem:[%s6679_s18 + $0x1b8] sm:$0xff] }
 0x1ad   : > { %1872 = vmatpush.msra.mxu2 %v6441_v30  ;;  %5054 = vmatmul.msk.f32.gmra.mxu3 %vm1340_vm10, %v1285_v7  ;;  %v1291_v30 = vld [vmem:[%s6679_s18 + $0x1d8] sm:$0xff] }
 0x1ae   : > { %1515 = vmatpush.msra.mxu0 %v6471_v62  ;;  %v6755_v62 = vld [vmem:[%s6679_s18 + $0x30] sm:$0xff] }
 0x1af   : > { %1873 = vmatpush.msra.mxu2 %v6473_v15  ;;  %v1293_v15 = vld [vmem:[%s6679_s18 + $0x1e8] sm:$0xff] }
 0x1b0   : > { %2265 = vadd.xlane.f32.xlu0 %v2264_v44  ;;  %1516 = vmatpush.msra.mxu0 %v6342_v18  ;;  %v2276_v18 = vadd.f32 %v2275_v41, %v6579_v33  ;;  %v6771_v33 = vld [vmem:[%s6679_s18 + $0x50] sm:$0xff]  ;;  %v6889_v41 = vld [vmem:[%s6679_s18 + $0x100] sm:$0xff] }
 0x1b1   : > { %1874 = vmatpush.msra.mxu2 %v6344_v0  ;;  %v6736_v0 = vld [vmem:[%s6679_s18 + $0x10] sm:$0xff] }
 0x1b2   : > { %1517 = vmatpush.msra.mxu0 %v6381_v31  ;;  %v2287_v31 = vsel %vm367_vm0, %v6660_v52, 0.0 }
 0x1b3   : > { %1875 = vmatpush.msra.mxu2 %v6383_v4  ;;  %v1289_v4 = vld [vmem:[%s6679_s18 + $0x1c8] sm:$0xff] }
 0x1b4   : > { %5001 = vmatmul.msk.f32.gmra.mxu1 %vm1340_vm10, %v1287_v45  ;;  %1518 = vmatpush.msra.mxu0 %v6417_v22  ;;  %v2288_v22 = vadd.f32 %v2287_v31, %v6658_v23 }
 0x1b5   : > { %1876 = vmatpush.msra.mxu2 %v6419_v37  ;;  %1519 = vmatmul.f32.vlgmr.msra.gmra.mxu0 %v6721_v29  ;;  %v6747_v37 = vld [vmem:[%s6679_s18 + $0x20] sm:$0xff] }
 0x1b6   : > { %1877 = vmatmul.f32.vlgmr.msra.gmra.mxu2 %v6721_v29  ;;  %1696 = vmatpush.msrb.mxu0 %v6658_v23 }
 0x1b7   : > { %2054 = vmatpush.msrb.mxu2 %v6660_v52  ;;  %5055 = vmatmul.msk.f32.gmra.mxu3 %vm1340_vm10, %v1287_v45  ;;  %v6843_v52 = vld [vmem:[%s6679_s18 + $0xc0] sm:$0xff]  ;;  %v1319_v45 = vld [vmem:[%s6679_s18 + $0x2b8] sm:$0xff] }
 0x1b8   : > { %2277 = vadd.xlane.f32.xlu0 %v2276_v18  ;;  %1697 = vmatpush.msrb.mxu0 %v1228_v12 }
 0x1b9   : > { %2055 = vmatpush.msrb.mxu2 %v1229_v51 }
 0x1bc   : > { %5002 = vmatmul.msk.f32.gmra.mxu1 %vm1340_vm10, %v1289_v4 }
 0x1bd   : > { %1522 = vmatmul.f32.gmra.mxu0 %v6736_v0 }
 0x1be   : > { %1880 = vmatmul.f32.gmra.mxu2 %v6736_v0 }
 0x1bf   : > { %5056 = vmatmul.msk.f32.gmra.mxu3 %vm1340_vm10, %v1289_v4 }
 0x1c0   : > { %2289 = vadd.xlane.f32.xlu0 %v2288_v22 }
 0x1c4   : > { %5003 = vmatmul.msk.f32.gmra.mxu1 %vm1340_vm10, %v1291_v30 }
 0x1c5   : > { %1525 = vmatmul.f32.gmra.mxu0 %v6747_v37 }
 0x1c6   : > { %1883 = vmatmul.f32.gmra.mxu2 %v6747_v37 }
 0x1c7   : > { %5057 = vmatmul.msk.f32.gmra.mxu3 %vm1340_vm10, %v1291_v30 }
 0x1cc   : > { %5004 = vmatmul.msk.f32.gmra.mxu1 %vm1340_vm10, %v1293_v15 }
 0x1cd   : > { %1528 = vmatmul.f32.gmra.mxu0 %v6755_v62 }
 0x1ce   : > { %1886 = vmatmul.f32.gmra.mxu2 %v6755_v62 }
 0x1cf   : > { %5058 = vmatmul.msk.f32.gmra.mxu3 %vm1340_vm10, %v1293_v15 }
 0x1d4   : > { %5005 = vmatmul.msk.f32.gmra.mxu1 %vm1340_vm10, %v1295_v2 }
 0x1d5   : > { %1531 = vmatmul.f32.gmra.mxu0 %v6763_v61 }
 0x1d6   : > { %1889 = vmatmul.f32.gmra.mxu2 %v6763_v61 }
 0x1d7   : > { %5059 = vmatmul.msk.f32.gmra.mxu3 %vm1340_vm10, %v1295_v2 }
 0x1dc   : > { %5006 = vmatmul.msk.f32.gmra.mxu1 %vm1340_vm10, %v1297_v26 }
 0x1dd   : > { %1534 = vmatmul.f32.gmra.mxu0 %v6771_v33 }
 0x1de   : > { %1892 = vmatmul.f32.gmra.mxu2 %v6771_v33 }
 0x1df   : > { %5060 = vmatmul.msk.f32.gmra.mxu3 %vm1340_vm10, %v1297_v26 }
 0x1e1   : > { %v6821_v25 = vpop.xlane.xlu2 %2229 }
 0x1e4   : > { %5007 = vmatmul.msk.f32.gmra.mxu1 %vm1340_vm10, %v1299_v17 }
 0x1e5   : > { %1537 = vmatmul.f32.gmra.mxu0 %v6779_v16 }
 0x1e6   : > { %1895 = vmatmul.f32.gmra.mxu2 %v6779_v16 }
 0x1e7   : > { %5061 = vmatmul.msk.f32.gmra.mxu3 %vm1340_vm10, %v1299_v17 }
 0x1ec   : > { %5008 = vmatmul.msk.f32.gmra.mxu1 %vm1340_vm10, %v1301_v27 }
 0x1ed   : > { %1540 = vmatmul.f32.gmra.mxu0 %v6787_v21 }
 0x1ee   : > { %1898 = vmatmul.f32.gmra.mxu2 %v6787_v21 }
 0x1ef   : > { %5062 = vmatmul.msk.f32.gmra.mxu3 %vm1340_vm10, %v1301_v27  ;;  %v6826_v13 = vpop.xlane.xlu0 %2225 }
 0x1f2   : > { %v6794_v32 = vpop.xlane.xlu1 %2221 }
 0x1f4   : > { %5009 = vmatmul.msk.f32.gmra.mxu1 %vm1340_vm10, %v1303_v8 }
 0x1f5   : > { %1543 = vmatmul.f32.gmra.mxu0 %v6797_v24 }
 0x1f6   : > { %1901 = vmatmul.f32.gmra.mxu2 %v6797_v24  ;;  %v6835_v53 = vpop.xlane.xlu2 %2237 }
 0x1f7   : > { %5063 = vmatmul.msk.f32.gmra.mxu3 %vm1340_vm10, %v1303_v8  ;;  %v6840_v40 = vpop.xlane.xlu0 %2241 }
 0x1fa   : > { %v6804_v11 = vpop.xlane.xlu1 %2233 }
 0x1fc   : > { %5010 = vmatmul.msk.f32.gmra.mxu1 %vm1340_vm10, %v1305_v55 }
 0x1fd   : > { %1546 = vmatmul.f32.gmra.mxu0 %v6807_v38 }
 0x1fe   : > { %1904 = vmatmul.f32.gmra.mxu2 %v6807_v38  ;;  %v6849_v36 = vpop.xlane.xlu2 %2249 }
 0x1ff   : > { %5064 = vmatmul.msk.f32.gmra.mxu3 %vm1340_vm10, %v1305_v55  ;;  %v2298_v8 = vmul.f32 0.0051020407, %v6849_v36  ;;  %v6907_v55 = vld [vmem:[%s6679_s18 + $0x110] sm:$0xff] }
 0x202   : > { %v6814_v42 = vpop.xlane.xlu1 %2245 }
 0x204   : > { %5011 = vmatmul.msk.f32.gmra.mxu1 %vm1340_vm10, %v1307_v54 }
 0x205   : > { %1549 = vmatmul.f32.gmra.mxu0 %v6817_v60 }
 0x206   : > { %1907 = vmatmul.f32.gmra.mxu2 %v6817_v60 }
 0x207   : > { %5065 = vmatmul.msk.f32.gmra.mxu3 %vm1340_vm10, %v1307_v54  ;;  %v1321_v54 = vld [vmem:[%s6679_s18 + $0x2c8] sm:$0xff] }
 0x20a   : > { %v6828_v63 = vpop.xlane.xlu1 %2257 }
 0x20b   : > { %v2300_v22 = vmul.f32 0.0051020407, %v6828_v63  ;;  %v2297_v63 = vmul.f32 0.0051020407, %v6814_v42 }
 0x20c   : > { %5012 = vmatmul.msk.f32.gmra.mxu1 %vm1340_vm10, %v1309_v28 }
 0x20d   : > { %1552 = vmatmul.f32.gmra.mxu0 %v6831_v59 }
 0x20e   : > { %1910 = vmatmul.f32.gmra.mxu2 %v6831_v59  ;;  %v2262_v57 = vpop.xlane.xlu2 %2261 }
 0x20f   : > { %5066 = vmatmul.msk.f32.gmra.mxu3 %vm1340_vm10, %v1309_v28  ;;  %v2301_v4 = vmul.f32 0.0051020407, %v2262_v57  ;;  %v2296_v28 = vmul.f32 0.0051020407, %v6840_v40  ;;  %v2293_v40 = vmul.f32 0.0051020407, %v6821_v25 }
 0x210   : > { %v2291_v57 = vmul.f32 0.0051020407, %v6794_v32 }
 0x212   : > { %v2270_v23 = vpop.xlane.xlu1 %2269 }
 0x213   : > { %v2303_v39 = vmul.f32 0.0051020407, %v2270_v23 }
 0x214   : > { %5013 = vmatmul.msk.f32.gmra.mxu1 %vm1340_vm10, %v1311_v3 }
 0x215   : > { %1555 = vmatmul.f32.gmra.mxu0 %v6843_v52 }
 0x216   : > { %1913 = vmatmul.f32.gmra.mxu2 %v6843_v52  ;;  %v2274_v34 = vpop.xlane.xlu2 %2273 }
 0x217   : > { %5067 = vmatmul.msk.f32.gmra.mxu3 %vm1340_vm10, %v1311_v3  ;;  %v2304_v46 = vmul.f32 0.0051020407, %v2274_v34  ;;  %v2295_v3 = vmul.f32 0.0051020407, %v6835_v53  ;;  %v2292_v53 = vmul.f32 0.0051020407, %v6826_v13 }
 0x218   : > { %v6946_v34 = vld [vmem:[%s6679_s18 + $0x130] sm:$0xff] }
 0x21a   : > { %v2282_v5 = vpop.xlane.xlu1 %2281 }
 0x21b   : > { %v2254_v49 = vpop.xlane.xlu0 %2253  ;;  %v2306_v35 = vmul.f32 0.0051020407, %v2282_v5 }
 0x21c   : > { %5014 = vmatmul.msk.f32.gmra.mxu1 %vm1340_vm10, %v1313_v14  ;;  %v2299_v2 = vmul.f32 0.0051020407, %v2254_v49  ;;  %v2294_v49 = vmul.f32 0.0051020407, %v6804_v11 }
 0x21d   : > { %1558 = vmatmul.f32.gmra.mxu0 %v6853_v19  ;;  %2309 = vmatpush.msrb.mxu1 %v2306_v35  ;;  %v1323_v35 = vld [vmem:[%s6679_s18 + $0x2d8] sm:$0xff] }
 0x21e   : > { %1916 = vmatmul.f32.gmra.mxu2 %v6853_v19  ;;  %v2286_v18 = vpop.xlane.xlu2 %2285 }
 0x21f   : > { %5068 = vmatmul.msk.f32.gmra.mxu3 %vm1340_vm10, %v1313_v14  ;;  %v2307_v30 = vmul.f32 0.0051020407, %v2286_v18  ;;  %v6927_v14 = vld [vmem:[%s6679_s18 + $0x120] sm:$0xff] }
 0x220   : > { %v6860_v1 = vpop.f32.mrf.mxu1 }
 0x223   : > { %v2266_v12 = vpop.xlane.xlu0 %2265 }
 0x224   : > { %5015 = vmatmul.msk.f32.gmra.mxu1 %vm1340_vm10, %v1315_v6  ;;  %v2302_v44 = vmul.f32 0.0051020407, %v2266_v12 }
 0x225   : > { %1561 = vmatmul.f32.gmra.mxu0 %v6863_v9 }
 0x226   : > { %1919 = vmatmul.f32.gmra.mxu2 %v6863_v9 }
 0x227   : > { %5069 = vmatmul.msk.f32.gmra.mxu3 %vm1340_vm10, %v1315_v6 }
 0x228   : > { %v6870_v58 = vpop.f32.mrf.mxu3 }
 0x229   : > { %v6872_v51 = vpop.f32.mrf.mxu1 }
 0x22b   : > { %v2278_v48 = vpop.xlane.xlu0 %2277 }
 0x22c   : > { %v2305_v50 = vmul.f32 0.0051020407, %v2278_v48  ;;  %5016 = vmatmul.msk.f32.gmra.mxu1 %vm1340_vm10, %v1317_v10  ;;  %v1325_v48 = vld [vmem:[%s6679_s18 + $0x2e8] sm:$0xff] }
 0x22d   : > { %1564 = vmatmul.f32.gmra.mxu0 %v6875_v43 }
 0x22e   : > { %1922 = vmatmul.f32.gmra.mxu2 %v6875_v43  ;;  %2310 = vmatpush.msrb.mxu1 %v2305_v50 }
 0x22f   : > { %5070 = vmatmul.msk.f32.gmra.mxu3 %vm1340_vm10, %v1317_v10 }
 0x230   : > { %2311 = vmatpush.msrb.mxu1 %v2304_v46  ;;  %v6882_v20 = vpop.f32.mrf.mxu3  ;;  %v6962_v46 = vld [vmem:[%s6679_s18 + $0x140] sm:$0xff] }
 0x231   : > { %v6884_v56 = vpop.f32.mrf.mxu1 }
 0x232   : > { %2312 = vmatpush.msrb.mxu1 %v2303_v39  ;;  %v6886_v7 = vpop.f32.mrf.mxu0  ;;  %v1327_v39 = vld [vmem:[%s6679_s18 + $0x2f8] sm:$0xff] }
 0x233   : > { %v2290_v47 = vpop.xlane.xlu0 %2289  ;;  %9660 = vst [vmem:[#allocation2_spill] sm:$0xff] %v6886_v7  ;;  %v7116_v7 = vld [vmem:[%s6679_s18 + $0x28] sm:$0xff] }
 0x234   : > { %v2308_v31 = vmul.f32 0.0051020407, %v2290_v47  ;;  %5017 = vmatmul.msk.f32.gmra.mxu1 %vm1340_vm10, %v1319_v45  ;;  %9690 = vst [vmem:[#allocation32_spill] sm:$0xff] %v7116_v7 }
 0x235   : > { %2313 = vmatpush.msrb.mxu1 %v2302_v44  ;;  %1567 = vmatmul.f32.gmra.mxu0 %v6889_v41 }
 0x236   : > { %1925 = vmatmul.f32.gmra.mxu2 %v6889_v41  ;;  %2502 = vmatpush.msrb.mxu3 %v2308_v31  ;;  %v6978_v31 = vld [vmem:[%s6679_s18 + $0x150] sm:$0xff] }
 0x237   : > { %2314 = vmatpush.msrb.mxu1 %v2301_v4  ;;  %5071 = vmatmul.msk.f32.gmra.mxu3 %vm1340_vm10, %v1319_v45  ;;  %v1329_v4 = vld [vmem:[%s6679_s18 + $0x308] sm:$0xff] }
 0x238   : > { %2503 = vmatpush.msrb.mxu3 %v2307_v30 }
 0x239   : > { %2315 = vmatpush.msrb.mxu1 %v2300_v22  ;;  %v6897_v15 = vpop.f32.mrf.mxu2  ;;  %v6899_v26 = vpop.f32.mrf.mxu1 }
 0x23a   : > { %9661 = vst [vmem:[#allocation3_spill] sm:$0xff] %v6897_v15  ;;  %v6901_v17 = vpop.f32.mrf.mxu0  ;;  %v6903_v27 = vpop.f32.mrf.mxu3 }
 0x23b   : > { %2316 = vmatpush.msrb.mxu1 %v2299_v2  ;;  %9662 = vst [vmem:[#allocation4_spill] sm:$0xff] %v6901_v17  ;;  %v7078_v17 = vld [vmem:[%s6679_s18 + $0x8] sm:$0xff] }
 0x23c   : > { %5018 = vmatmul.msk.f32.gmra.mxu1 %vm1340_vm10, %v1321_v54 }
 0x23d   : > { %2317 = vmatpush.msrb.mxu1 %v2298_v8  ;;  %1570 = vmatmul.f32.gmra.mxu0 %v6907_v55 }
 0x23e   : > { %1928 = vmatmul.f32.gmra.mxu2 %v6907_v55 }
 0x23f   : > { %2318 = vmatpush.msrb.mxu1 %v2297_v63  ;;  %5072 = vmatmul.msk.f32.gmra.mxu3 %vm1340_vm10, %v1321_v54  ;;  %v6994_v54 = vld [vmem:[%s6679_s18 + $0x160] sm:$0xff]  ;;  %v1331_v63 = vld [vmem:[%s6679_s18 + $0x318] sm:$0xff] }
 0x241   : > { %2319 = vmatpush.msrb.mxu1 %v2296_v28  ;;  %v6916_v23 = vpop.f32.mrf.mxu2  ;;  %v6919_v36 = vpop.f32.mrf.mxu1 }
 0x242   : > { %9663 = vst [vmem:[#allocation5_spill] sm:$0xff] %v6916_v23  ;;  %v6921_v5 = vpop.f32.mrf.mxu0  ;;  %v6923_v42 = vpop.f32.mrf.mxu3  ;;  %v7097_v23 = vld [vmem:[%s6679_s18 + $0x18] sm:$0xff] }
 0x243   : > { %2320 = vmatpush.msrb.mxu1 %v2295_v3  ;;  %9664 = vst [vmem:[#allocation6_spill] sm:$0xff] %v6921_v5 }
 0x244   : > { %5019 = vmatmul.msk.f32.gmra.mxu1 %vm1340_vm10, %v1323_v35 }
 0x245   : > { %2321 = vmatpush.msrb.mxu1 %v2294_v49  ;;  %1573 = vmatmul.f32.gmra.mxu0 %v6927_v14 }
 0x246   : > { %1931 = vmatmul.f32.gmra.mxu2 %v6927_v14 }
 0x247   : > { %2322 = vmatpush.msrb.mxu1 %v2293_v40  ;;  %5073 = vmatmul.msk.f32.gmra.mxu3 %vm1340_vm10, %v1323_v35  ;;  %v7010_v40 = vld [vmem:[%s6679_s18 + $0x170] sm:$0xff] }
 0x249   : > { %2323 = vmatpush.msrb.mxu1 %v2292_v53  ;;  %v6936_v11 = vpop.f32.mrf.mxu2  ;;  %v6939_v12 = vpop.f32.mrf.mxu1  ;;  %v1333_v53 = vld [vmem:[%s6679_s18 + $0x328] sm:$0xff] }
 0x24a   : > { %9665 = vst [vmem:[#allocation7_spill] sm:$0xff] %v6936_v11  ;;  %v6941_v25 = vpop.f32.mrf.mxu0  ;;  %v6943_v6 = vpop.f32.mrf.mxu3 }
 0x24b   : > { %2324 = vmatpush.msrb.mxu1 %v2291_v57  ;;  %9666 = vst [vmem:[#allocation8_spill] sm:$0xff] %v6941_v25 }
 0x24c   : > { %5020 = vmatmul.msk.f32.gmra.mxu1 %vm1340_vm10, %v1325_v48 }
 0x24d   : > { %1576 = vmatmul.f32.gmra.mxu0 %v6946_v34 }
 0x24e   : > { %1934 = vmatmul.f32.gmra.mxu2 %v6946_v34 }
 0x24f   : > { %5074 = vmatmul.msk.f32.gmra.mxu3 %vm1340_vm10, %v1325_v48 }
 0x251   : > { %v6953_v32 = vpop.f32.mrf.mxu2  ;;  %v6955_v13 = vpop.f32.mrf.mxu1 }
 0x252   : > { %9667 = vst [vmem:[#allocation9_spill] sm:$0xff] %v6953_v32  ;;  %v6957_v10 = vpop.f32.mrf.mxu0  ;;  %v6959_v50 = vpop.f32.mrf.mxu3  ;;  %v7074_v32 = vld [vmem:[%s6679_s18 + $0x1b0] sm:$0xff] }
 0x253   : > { %9668 = vst [vmem:[#allocation10_spill] sm:$0xff] %v6957_v10  ;;  %v1337_v10 = vld [vmem:[%s6679_s18 + $0x348] sm:$0xff] }
 0x254   : > { %5021 = vmatmul.msk.f32.gmra.mxu1 %vm1340_vm10, %v1327_v39 }
 0x255   : > { %1579 = vmatmul.f32.gmra.mxu0 %v6962_v46 }
 0x256   : > { %1937 = vmatmul.f32.gmra.mxu2 %v6962_v46 }
 0x257   : > { %5075 = vmatmul.msk.f32.gmra.mxu3 %vm1340_vm10, %v1327_v39 }
 0x259   : > { %v6969_v47 = vpop.f32.mrf.mxu2  ;;  %v6971_v44 = vpop.f32.mrf.mxu1 }
 0x25a   : > { %9669 = vst [vmem:[#allocation11_spill] sm:$0xff] %v6969_v47  ;;  %v6973_v45 = vpop.f32.mrf.mxu0  ;;  %v6975_v18 = vpop.f32.mrf.mxu3 }
 0x25b   : > { %9670 = vst [vmem:[#allocation12_spill] sm:$0xff] %v6973_v45  ;;  %v7058_v45 = vld [vmem:[%s6679_s18 + $0x1a0] sm:$0xff] }
 0x25c   : > { %5022 = vmatmul.msk.f32.gmra.mxu1 %vm1340_vm10, %v1329_v4 }
 0x25d   : > { %1582 = vmatmul.f32.gmra.mxu0 %v6978_v31 }
 0x25e   : > { %1940 = vmatmul.f32.gmra.mxu2 %v6978_v31 }
 0x25f   : > { %5076 = vmatmul.msk.f32.gmra.mxu3 %vm1340_vm10, %v1329_v4 }
 0x261   : > { %v6985_v22 = vpop.f32.mrf.mxu2  ;;  %v6987_v30 = vpop.f32.mrf.mxu1 }
 0x262   : > { %9671 = vst [vmem:[#allocation13_spill] sm:$0xff] %v6985_v22  ;;  %v6989_v2 = vpop.f32.mrf.mxu0  ;;  %v6991_v8 = vpop.f32.mrf.mxu3  ;;  %v1339_v22 = vld [vmem:[%s6679_s18 + $0x358] sm:$0xff] }
 0x263   : > { %9672 = vst [vmem:[#allocation14_spill] sm:$0xff] %v6989_v2 }
 0x264   : > { %5023 = vmatmul.msk.f32.gmra.mxu1 %vm1340_vm10, %v1331_v63 }
 0x265   : > { %1585 = vmatmul.f32.gmra.mxu0 %v6994_v54 }
 0x266   : > { %1943 = vmatmul.f32.gmra.mxu2 %v6994_v54 }
 0x267   : > { %5077 = vmatmul.msk.f32.gmra.mxu3 %vm1340_vm10, %v1331_v63  ;;  %v7026_v63 = vld [vmem:[%s6679_s18 + $0x180] sm:$0xff] }
 0x269   : > { %v7001_v28 = vpop.f32.mrf.mxu2  ;;  %v7003_v3 = vpop.f32.mrf.mxu1 }
 0x26a   : > { %9673 = vst [vmem:[#allocation15_spill] sm:$0xff] %v7001_v28  ;;  %v7005_v49 = vpop.f32.mrf.mxu0  ;;  %v7007_v35 = vpop.f32.mrf.mxu3  ;;  %v7042_v28 = vld [vmem:[%s6679_s18 + $0x190] sm:$0xff] }
 0x26b   : > { %9674 = vst [vmem:[#allocation16_spill] sm:$0xff] %v7005_v49  ;;  %v1335_v49 = vld [vmem:[%s6679_s18 + $0x338] sm:$0xff] }
 0x26c   : > { %5024 = vmatmul.msk.f32.gmra.mxu1 %vm1340_vm10, %v1333_v53 }
 0x26d   : > { %1588 = vmatmul.f32.gmra.mxu0 %v7010_v40 }
 0x26e   : > { %1946 = vmatmul.f32.gmra.mxu2 %v7010_v40 }
 0x26f   : > { %5078 = vmatmul.msk.f32.gmra.mxu3 %vm1340_vm10, %v1333_v53 }
 0x271   : > { %v7017_v57 = vpop.f32.mrf.mxu2  ;;  %v7019_v48 = vpop.f32.mrf.mxu1 }
 0x272   : > { %9675 = vst [vmem:[#allocation17_spill] sm:$0xff] %v7017_v57  ;;  %v7021_v39 = vpop.f32.mrf.mxu0  ;;  %v7023_v4 = vpop.f32.mrf.mxu3 }
 0x273   : > { %9676 = vst [vmem:[#allocation18_spill] sm:$0xff] %v7021_v39 }
 0x274   : > { %5025 = vmatmul.msk.f32.gmra.mxu1 %vm1340_vm10, %v1335_v49 }
 0x275   : > { %1591 = vmatmul.f32.gmra.mxu0 %v7026_v63 }
 0x276   : > { %1949 = vmatmul.f32.gmra.mxu2 %v7026_v63 }
 0x277   : > { %5079 = vmatmul.msk.f32.gmra.mxu3 %vm1340_vm10, %v1335_v49 }
 0x279   : > { %v7033_v53 = vpop.f32.mrf.mxu2  ;;  %v7035_v57 = vpop.f32.mrf.mxu1 }
 0x27a   : > { %9677 = vst [vmem:[#allocation19_spill] sm:$0xff] %v7033_v53  ;;  %v7037_v39 = vpop.f32.mrf.mxu0  ;;  %v7039_v2 = vpop.f32.mrf.mxu3 }
 0x27b   : > { %9678 = vst [vmem:[#allocation20_spill] sm:$0xff] %v7037_v39 }
 0x27c   : > { %5026 = vmatmul.msk.f32.gmra.mxu1 %vm1340_vm10, %v1337_v10 }
 0x27d   : > { %1594 = vmatmul.f32.gmra.mxu0 %v7042_v28 }
 0x27e   : > { %1952 = vmatmul.f32.gmra.mxu2 %v7042_v28 }
 0x27f   : > { %5080 = vmatmul.msk.f32.gmra.mxu3 %vm1340_vm10, %v1337_v10 }
 0x281   : > { %v7049_v49 = vpop.f32.mrf.mxu2  ;;  %v7051_v53 = vpop.f32.mrf.mxu1 }
 0x282   : > { %9679 = vst [vmem:[#allocation21_spill] sm:$0xff] %v7049_v49  ;;  %v7053_v39 = vpop.f32.mrf.mxu0  ;;  %v7055_v47 = vpop.f32.mrf.mxu3 }
 0x283   : > { %9680 = vst [vmem:[#allocation22_spill] sm:$0xff] %v7053_v39 }
 0x284   : > { %5027 = vmatmul.msk.f32.gmra.mxu1 %vm1340_vm10, %v1339_v22 }
 0x285   : > { %1597 = vmatmul.f32.gmra.mxu0 %v7058_v45 }
 0x286   : > { %1955 = vmatmul.f32.gmra.mxu2 %v7058_v45 }
 0x287   : > { %5081 = vmatmul.msk.f32.gmra.mxu3 %vm1340_vm10, %v1339_v22 }
 0x289   : > { %v7065_v10 = vpop.f32.mrf.mxu2  ;;  %v7067_v49 = vpop.f32.mrf.mxu1 }
 0x28a   : > { %9681 = vst [vmem:[#allocation23_spill] sm:$0xff] %v7065_v10  ;;  %v7069_v39 = vpop.f32.mrf.mxu0  ;;  %v7071_v25 = vpop.f32.mrf.mxu3 }
 0x28b   : > { %9682 = vst [vmem:[#allocation24_spill] sm:$0xff] %v7069_v39 }
 0x28c   : > { %2325 = vmatmul.f32.vlgmr.msrb.gmra.mxu1 %v6721_v29  ;;  %v7093_v29 = vld [vmem:[%s6679_s18 + $0x1c0] sm:$0xff] }
 0x28d   : > { %1600 = vmatmul.f32.gmra.mxu0 %v7074_v32 }
 0x28e   : > { %1958 = vmatmul.f32.gmra.mxu2 %v7074_v32 }
 0x28f   : > { %5082 = vmatmul.msk.f32.vlgmr.msrb.gmra.mxu3 %vm1340_vm10, %v7078_v17 }
 0x291   : > { %v7084_v22 = vpop.f32.mrf.mxu2  ;;  %v7086_v10 = vpop.f32.mrf.mxu1 }
 0x292   : > { %9683 = vst [vmem:[#allocation25_spill] sm:$0xff] %v7084_v22  ;;  %v7088_v39 = vpop.f32.mrf.mxu0  ;;  %v7090_v5 = vpop.f32.mrf.mxu3 }
 0x293   : > { %9684 = vst [vmem:[#allocation26_spill] sm:$0xff] %v7086_v10  ;;  %v7135_v10 = vld [vmem:[%s6679_s18 + $0x38] sm:$0xff] }
 0x294   : > { %9685 = vst [vmem:[#allocation27_spill] sm:$0xff] %v7088_v39  ;;  %2328 = vmatmul.f32.gmra.mxu1 %v6736_v0  ;;  %v7112_v0 = vld [vmem:[%s6679_s18 + $0x1d0] sm:$0xff] }
 0x295   : > { %1603 = vmatmul.f32.gmra.mxu0 %v7093_v29  ;;  %9695 = vst [vmem:[#allocation37_spill] sm:$0xff] %v7135_v10 }
 0x296   : > { %1961 = vmatmul.f32.gmra.mxu2 %v7093_v29 }
 0x297   : > { %5083 = vmatmul.msk.f32.gmra.mxu3 %vm1340_vm10, %v7097_v23 }
 0x299   : > { %v7103_v22 = vpop.f32.mrf.mxu2  ;;  %v7105_v39 = vpop.f32.mrf.mxu1 }
 0x29a   : > { %9686 = vst [vmem:[#allocation28_spill] sm:$0xff] %v7103_v22  ;;  %v7107_v11 = vpop.f32.mrf.mxu0  ;;  %v7109_v15 = vpop.f32.mrf.mxu3 }
 0x29b   : > { %9687 = vst [vmem:[#allocation29_spill] sm:$0xff] %v7105_v39 }
 0x29c   : > { %9688 = vst [vmem:[#allocation30_spill] sm:$0xff] %v7107_v11  ;;  %2331 = vmatmul.f32.gmra.mxu1 %v6747_v37  ;;  %v7131_v37 = vld [vmem:[%s6679_s18 + $0x1e0] sm:$0xff] }
 0x29d   : > { %9689 = vst [vmem:[#allocation31_spill] sm:$0xff] %v7109_v15  ;;  %1606 = vmatmul.f32.gmra.mxu0 %v7112_v0 }
 0x29e   : > { %1964 = vmatmul.f32.gmra.mxu2 %v7112_v0 }
 0x29f   : > { %5084 = vmatmul.msk.f32.gmra.mxu3 %vm1340_vm10, %v7116_v7  ;;  %v7154_v7 = vld [vmem:[%s6679_s18 + $0x48] sm:$0xff] }
 0x2a0   : > { %9700 = vst [vmem:[#allocation42_spill] sm:$0xff] %v7154_v7 }
 0x2a1   : > { %v7122_v22 = vpop.f32.mrf.mxu2  ;;  %v7124_v11 = vpop.f32.mrf.mxu1 }
 0x2a2   : > { %9691 = vst [vmem:[#allocation33_spill] sm:$0xff] %v7122_v22  ;;  %v7126_v39 = vpop.f32.mrf.mxu0  ;;  %v7128_v15 = vpop.f32.mrf.mxu3 }
 0x2a3   : > { %9692 = vst [vmem:[#allocation34_spill] sm:$0xff] %v7124_v11 }
 0x2a4   : > { %9693 = vst [vmem:[#allocation35_spill] sm:$0xff] %v7126_v39  ;;  %2334 = vmatmul.f32.gmra.mxu1 %v6755_v62  ;;  %v7150_v62 = vld [vmem:[%s6679_s18 + $0x1f0] sm:$0xff] }
 0x2a5   : > { %9694 = vst [vmem:[#allocation36_spill] sm:$0xff] %v7128_v15  ;;  %1609 = vmatmul.f32.gmra.mxu0 %v7131_v37 }
 0x2a6   : > { %1967 = vmatmul.f32.gmra.mxu2 %v7131_v37 }
 0x2a7   : > { %5085 = vmatmul.msk.f32.gmra.mxu3 %vm1340_vm10, %v7135_v10  ;;  %v7173_v10 = vld [vmem:[%s6679_s18 + $0x58] sm:$0xff] }
 0x2a8   : > { %9705 = vst [vmem:[#allocation47_spill] sm:$0xff] %v7173_v10 }
 0x2a9   : > { %v7141_v22 = vpop.f32.mrf.mxu2  ;;  %v7143_v39 = vpop.f32.mrf.mxu1 }
 0x2aa   : > { %9696 = vst [vmem:[#allocation38_spill] sm:$0xff] %v7141_v22  ;;  %v7145_v11 = vpop.f32.mrf.mxu0  ;;  %v7147_v15 = vpop.f32.mrf.mxu3 }
 0x2ab   : > { %9697 = vst [vmem:[#allocation39_spill] sm:$0xff] %v7143_v39 }
 0x2ac   : > { %9698 = vst [vmem:[#allocation40_spill] sm:$0xff] %v7145_v11  ;;  %2337 = vmatmul.f32.gmra.mxu1 %v6763_v61  ;;  %v7169_v61 = vld [vmem:[%s6679_s18 + $0x200] sm:$0xff] }
 0x2ad   : > { %9699 = vst [vmem:[#allocation41_spill] sm:$0xff] %v7147_v15  ;;  %1612 = vmatmul.f32.gmra.mxu0 %v7150_v62 }
 0x2ae   : > { %1970 = vmatmul.f32.gmra.mxu2 %v7150_v62 }
 0x2af   : > { %5086 = vmatmul.msk.f32.gmra.mxu3 %vm1340_vm10, %v7154_v7  ;;  %v7192_v7 = vld [vmem:[%s6679_s18 + $0x68] sm:$0xff] }
 0x2b0   : > { %9710 = vst [vmem:[#allocation52_spill] sm:$0xff] %v7192_v7 }
 0x2b1   : > { %v7160_v22 = vpop.f32.mrf.mxu2  ;;  %v7162_v11 = vpop.f32.mrf.mxu1 }
 0x2b2   : > { %9701 = vst [vmem:[#allocation43_spill] sm:$0xff] %v7160_v22  ;;  %v7164_v39 = vpop.f32.mrf.mxu0  ;;  %v7166_v15 = vpop.f32.mrf.mxu3 }
 0x2b3   : > { %9702 = vst [vmem:[#allocation44_spill] sm:$0xff] %v7162_v11 }
 0x2b4   : > { %9703 = vst [vmem:[#allocation45_spill] sm:$0xff] %v7164_v39  ;;  %2340 = vmatmul.f32.gmra.mxu1 %v6771_v33  ;;  %v7188_v33 = vld [vmem:[%s6679_s18 + $0x210] sm:$0xff] }
 0x2b5   : > { %9704 = vst [vmem:[#allocation46_spill] sm:$0xff] %v7166_v15  ;;  %1615 = vmatmul.f32.gmra.mxu0 %v7169_v61 }
 0x2b6   : > { %1973 = vmatmul.f32.gmra.mxu2 %v7169_v61 }
 0x2b7   : > { %5087 = vmatmul.msk.f32.gmra.mxu3 %vm1340_vm10, %v7173_v10  ;;  %v7211_v10 = vld [vmem:[%s6679_s18 + $0x78] sm:$0xff] }
 0x2b8   : > { %9715 = vst [vmem:[#allocation57_spill] sm:$0xff] %v7211_v10 }
 0x2b9   : > { %v7179_v22 = vpop.f32.mrf.mxu2  ;;  %v7181_v39 = vpop.f32.mrf.mxu1 }
 0x2ba   : > { %9706 = vst [vmem:[#allocation48_spill] sm:$0xff] %v7179_v22  ;;  %v7183_v11 = vpop.f32.mrf.mxu0  ;;  %v7185_v15 = vpop.f32.mrf.mxu3 }
 0x2bb   : > { %9707 = vst [vmem:[#allocation49_spill] sm:$0xff] %v7181_v39 }
 0x2bc   : > { %9708 = vst [vmem:[#allocation50_spill] sm:$0xff] %v7183_v11  ;;  %2343 = vmatmul.f32.gmra.mxu1 %v6779_v16  ;;  %v7207_v16 = vld [vmem:[%s6679_s18 + $0x220] sm:$0xff] }
 0x2bd   : > { %9709 = vst [vmem:[#allocation51_spill] sm:$0xff] %v7185_v15  ;;  %1618 = vmatmul.f32.gmra.mxu0 %v7188_v33 }
 0x2be   : > { %1976 = vmatmul.f32.gmra.mxu2 %v7188_v33 }
 0x2bf   : > { %5088 = vmatmul.msk.f32.gmra.mxu3 %vm1340_vm10, %v7192_v7  ;;  %v7230_v7 = vld [vmem:[%s6679_s18 + $0x88] sm:$0xff] }
 0x2c0   : > { %9720 = vst [vmem:[#allocation62_spill] sm:$0xff] %v7230_v7 }
 0x2c1   : > { %v7198_v22 = vpop.f32.mrf.mxu2  ;;  %v7200_v11 = vpop.f32.mrf.mxu1 }
 0x2c2   : > { %9711 = vst [vmem:[#allocation53_spill] sm:$0xff] %v7198_v22  ;;  %v7202_v39 = vpop.f32.mrf.mxu0  ;;  %v7204_v15 = vpop.f32.mrf.mxu3 }
 0x2c3   : > { %9712 = vst [vmem:[#allocation54_spill] sm:$0xff] %v7200_v11 }
 0x2c4   : > { %9713 = vst [vmem:[#allocation55_spill] sm:$0xff] %v7202_v39  ;;  %2346 = vmatmul.f32.gmra.mxu1 %v6787_v21  ;;  %v7226_v21 = vld [vmem:[%s6679_s18 + $0x230] sm:$0xff] }
 0x2c5   : > { %9714 = vst [vmem:[#allocation56_spill] sm:$0xff] %v7204_v15  ;;  %1621 = vmatmul.f32.gmra.mxu0 %v7207_v16 }
 0x2c6   : > { %1979 = vmatmul.f32.gmra.mxu2 %v7207_v16 }
 0x2c7   : > { %5089 = vmatmul.msk.f32.gmra.mxu3 %vm1340_vm10, %v7211_v10  ;;  %v7249_v10 = vld [vmem:[%s6679_s18 + $0x98] sm:$0xff] }
 0x2c8   : > { %9725 = vst [vmem:[#allocation67_spill] sm:$0xff] %v7249_v10 }
 0x2c9   : > { %v7217_v22 = vpop.f32.mrf.mxu2  ;;  %v7219_v39 = vpop.f32.mrf.mxu1 }
 0x2ca   : > { %9716 = vst [vmem:[#allocation58_spill] sm:$0xff] %v7217_v22  ;;  %v7221_v11 = vpop.f32.mrf.mxu0  ;;  %v7223_v15 = vpop.f32.mrf.mxu3 }
 0x2cb   : > { %9717 = vst [vmem:[#allocation59_spill] sm:$0xff] %v7219_v39 }
 0x2cc   : > { %9718 = vst [vmem:[#allocation60_spill] sm:$0xff] %v7221_v11  ;;  %2349 = vmatmul.f32.gmra.mxu1 %v6797_v24  ;;  %v7245_v24 = vld [vmem:[%s6679_s18 + $0x240] sm:$0xff] }
 0x2cd   : > { %9719 = vst [vmem:[#allocation61_spill] sm:$0xff] %v7223_v15  ;;  %1624 = vmatmul.f32.gmra.mxu0 %v7226_v21 }
 0x2ce   : > { %1982 = vmatmul.f32.gmra.mxu2 %v7226_v21 }
 0x2cf   : > { %5090 = vmatmul.msk.f32.gmra.mxu3 %vm1340_vm10, %v7230_v7  ;;  %v7268_v7 = vld [vmem:[%s6679_s18 + $0xa8] sm:$0xff] }
 0x2d0   : > { %9730 = vst [vmem:[#allocation72_spill] sm:$0xff] %v7268_v7 }
 0x2d1   : > { %v7236_v22 = vpop.f32.mrf.mxu2  ;;  %v7238_v11 = vpop.f32.mrf.mxu1 }
 0x2d2   : > { %9721 = vst [vmem:[#allocation63_spill] sm:$0xff] %v7236_v22  ;;  %v7240_v39 = vpop.f32.mrf.mxu0  ;;  %v7242_v15 = vpop.f32.mrf.mxu3 }
 0x2d3   : > { %9722 = vst [vmem:[#allocation64_spill] sm:$0xff] %v7238_v11 }
 0x2d4   : > { %9723 = vst [vmem:[#allocation65_spill] sm:$0xff] %v7240_v39  ;;  %2352 = vmatmul.f32.gmra.mxu1 %v6807_v38  ;;  %v7264_v38 = vld [vmem:[%s6679_s18 + $0x250] sm:$0xff] }
 0x2d5   : > { %9724 = vst [vmem:[#allocation66_spill] sm:$0xff] %v7242_v15  ;;  %1627 = vmatmul.f32.gmra.mxu0 %v7245_v24 }
 0x2d6   : > { %1985 = vmatmul.f32.gmra.mxu2 %v7245_v24 }
 0x2d7   : > { %5091 = vmatmul.msk.f32.gmra.mxu3 %vm1340_vm10, %v7249_v10  ;;  %v7287_v10 = vld [vmem:[%s6679_s18 + $0xb8] sm:$0xff] }
 0x2d8   : > { %9736 = vst [vmem:[#allocation78_spill] sm:$0xff] %v7287_v10 }
 0x2d9   : > { %v7255_v22 = vpop.f32.mrf.mxu2  ;;  %v7257_v39 = vpop.f32.mrf.mxu1 }
 0x2da   : > { %9726 = vst [vmem:[#allocation68_spill] sm:$0xff] %v7255_v22  ;;  %v7259_v11 = vpop.f32.mrf.mxu0  ;;  %v7261_v15 = vpop.f32.mrf.mxu3 }
 0x2db   : > { %9727 = vst [vmem:[#allocation69_spill] sm:$0xff] %v7257_v39 }
 0x2dc   : > { %9728 = vst [vmem:[#allocation70_spill] sm:$0xff] %v7259_v11  ;;  %2355 = vmatmul.f32.gmra.mxu1 %v6817_v60  ;;  %v7283_v60 = vld [vmem:[%s6679_s18 + $0x260] sm:$0xff] }
 0x2dd   : > { %9729 = vst [vmem:[#allocation71_spill] sm:$0xff] %v7261_v15  ;;  %1630 = vmatmul.f32.gmra.mxu0 %v7264_v38 }
 0x2de   : > { %1988 = vmatmul.f32.gmra.mxu2 %v7264_v38  ;;  %9735 = vst [vmem:[#allocation77_spill] sm:$0xff] %v7283_v60 }
 0x2df   : > { %5092 = vmatmul.msk.f32.gmra.mxu3 %vm1340_vm10, %v7268_v7  ;;  %v7306_v7 = vld [vmem:[%s6679_s18 + $0xc8] sm:$0xff] }
 0x2e0   : > { %9742 = vst [vmem:[#allocation84_spill] sm:$0xff] %v7306_v7 }
 0x2e1   : > { %v7274_v22 = vpop.f32.mrf.mxu2  ;;  %v7276_v11 = vpop.f32.mrf.mxu1 }
 0x2e2   : > { %9731 = vst [vmem:[#allocation73_spill] sm:$0xff] %v7274_v22  ;;  %v7278_v39 = vpop.f32.mrf.mxu0  ;;  %v7280_v15 = vpop.f32.mrf.mxu3 }
 0x2e3   : > { %9732 = vst [vmem:[#allocation74_spill] sm:$0xff] %v7276_v11 }
 0x2e4   : > { %9733 = vst [vmem:[#allocation75_spill] sm:$0xff] %v7278_v39  ;;  %2358 = vmatmul.f32.gmra.mxu1 %v6831_v59  ;;  %v7302_v59 = vld [vmem:[%s6679_s18 + $0x270] sm:$0xff] }
 0x2e5   : > { %9734 = vst [vmem:[#allocation76_spill] sm:$0xff] %v7280_v15  ;;  %1633 = vmatmul.f32.gmra.mxu0 %v7283_v60 }
 0x2e6   : > { %1991 = vmatmul.f32.gmra.mxu2 %v7283_v60  ;;  %9741 = vst [vmem:[#allocation83_spill] sm:$0xff] %v7302_v59  ;;  %v7383_v60 = vld [vmem:[%s6679_s18 + $0x2b0] sm:$0xff] }
 0x2e7   : > { %5093 = vmatmul.msk.f32.gmra.mxu3 %vm1340_vm10, %v7287_v10  ;;  %v7325_v10 = vld [vmem:[%s6679_s18 + $0xd8] sm:$0xff] }
 0x2e8   : > { %9748 = vst [vmem:[#allocation90_spill] sm:$0xff] %v7325_v10 }
 0x2e9   : > { %v7293_v22 = vpop.f32.mrf.mxu2  ;;  %v7295_v39 = vpop.f32.mrf.mxu1 }
 0x2ea   : > { %9737 = vst [vmem:[#allocation79_spill] sm:$0xff] %v7293_v22  ;;  %v7297_v11 = vpop.f32.mrf.mxu0  ;;  %v7299_v15 = vpop.f32.mrf.mxu3 }
 0x2eb   : > { %9738 = vst [vmem:[#allocation80_spill] sm:$0xff] %v7295_v39 }
 0x2ec   : > { %9739 = vst [vmem:[#allocation81_spill] sm:$0xff] %v7297_v11  ;;  %2361 = vmatmul.f32.gmra.mxu1 %v6843_v52  ;;  %v7321_v52 = vld [vmem:[%s6679_s18 + $0x280] sm:$0xff] }
 0x2ed   : > { %9740 = vst [vmem:[#allocation82_spill] sm:$0xff] %v7299_v15  ;;  %1636 = vmatmul.f32.gmra.mxu0 %v7302_v59 }
 0x2ee   : > { %1994 = vmatmul.f32.gmra.mxu2 %v7302_v59  ;;  %9747 = vst [vmem:[#allocation89_spill] sm:$0xff] %v7321_v52  ;;  %v7359_v59 = vld [vmem:[%s6679_s18 + $0x2a0] sm:$0xff] }
 0x2ef   : > { %5094 = vmatmul.msk.f32.gmra.mxu3 %vm1340_vm10, %v7306_v7  ;;  %v7338_v7 = vld [vmem:[%s6679_s18 + $0x290] sm:$0xff] }
 0x2f0   : > { %9752 = vst [vmem:[#allocation94_spill] sm:$0xff] %v7338_v7 }
 0x2f1   : > { %v7312_v22 = vpop.f32.mrf.mxu2  ;;  %v7314_v11 = vpop.f32.mrf.mxu1 }
 0x2f2   : > { %9743 = vst [vmem:[#allocation85_spill] sm:$0xff] %v7312_v22  ;;  %v7316_v39 = vpop.f32.mrf.mxu0  ;;  %v7318_v15 = vpop.f32.mrf.mxu3 }
 0x2f3   : > { %9744 = vst [vmem:[#allocation86_spill] sm:$0xff] %v7314_v11 }
 0x2f4   : > { %9745 = vst [vmem:[#allocation87_spill] sm:$0xff] %v7316_v39  ;;  %2364 = vmatmul.f32.gmra.mxu1 %v6853_v19  ;;  %v7342_v19 = vld [vmem:[%s6679_s18 + $0xe8] sm:$0xff] }
 0x2f5   : > { %9746 = vst [vmem:[#allocation88_spill] sm:$0xff] %v7318_v15  ;;  %1639 = vmatmul.f32.gmra.mxu0 %v7321_v52 }
 0x2f6   : > { %1997 = vmatmul.f32.gmra.mxu2 %v7321_v52  ;;  %9753 = vst [vmem:[#allocation95_spill] sm:$0xff] %v7342_v19 }
 0x2f7   : > { %5095 = vmatmul.msk.f32.gmra.mxu3 %vm1340_vm10, %v7325_v10 }
 0x2f9   : > { %v7331_v22 = vpop.f32.mrf.mxu2  ;;  %v7333_v11 = vpop.f32.mrf.mxu1 }
 0x2fa   : > { %9749 = vst [vmem:[#allocation91_spill] sm:$0xff] %v7331_v22  ;;  %v1595_v39 = vpop.f32.mrf.mxu0  ;;  %v7335_v15 = vpop.f32.mrf.mxu3 }
 0x2fb   : > { %9750 = vst [vmem:[#allocation92_spill] sm:$0xff] %v7333_v11  ;;  %v7349_v22 = vadd.f32 %v6860_v1, %v1595_v39 }
 0x2fc   : > { %9751 = vst [vmem:[#allocation93_spill] sm:$0xff] %v7335_v15  ;;  %2367 = vmatmul.f32.gmra.mxu1 %v6863_v9 }
 0x2fd   : > { %1642 = vmatmul.f32.gmra.mxu0 %v7338_v7  ;;  %9754 = vst [vmem:[#allocation96_spill] sm:$0xff] %v7349_v22  ;;  %v2717_v1 = vmul.f32 %v7349_v22, %v7349_v22 }
 0x2fe   : > { %2000 = vmatmul.f32.gmra.mxu2 %v7338_v7 }
 0x2ff   : > { %5096 = vmatmul.msk.f32.gmra.mxu3 %vm1340_vm10, %v7342_v19  ;;  %v7365_v19 = vld [vmem:[%s6679_s18 + $0xf8] sm:$0xff] }
 0x301   : > { %v1953_v11 = vpop.f32.mrf.mxu2  ;;  %v7351_v10 = vpop.f32.mrf.mxu1 }
 0x302   : > { %9755 = vst [vmem:[#allocation97_spill] sm:$0xff] %v7351_v10  ;;  %v7354_v15 = vadd.f32 %v6870_v58, %v1953_v11  ;;  %v1598_v52 = vpop.f32.mrf.mxu0  ;;  %v7356_v9 = vpop.f32.mrf.mxu3 }
 0x303   : > { %9757 = vst [vmem:[#allocation99_spill] sm:$0xff] %v7356_v9  ;;  %v7375_v39 = vadd.f32 %v6872_v51, %v1598_v52 }
 0x304   : > { %9756 = vst [vmem:[#allocation98_spill] sm:$0xff] %v7354_v15  ;;  %v2718_v7 = vmul.f32 %v7354_v15, %v7354_v15  ;;  %2370 = vmatmul.f32.gmra.mxu1 %v6875_v43 }
 0x305   : > { %1645 = vmatmul.f32.gmra.mxu0 %v7359_v59  ;;  %9758 = vst [vmem:[#allocation100_spill] sm:$0xff] %v7375_v39  ;;  %v2719_v51 = vmul.f32 %v7375_v39, %v7375_v39 }
 0x306   : > { %2003 = vmatmul.f32.gmra.mxu2 %v7359_v59  ;;  %v2875_v58 = vsel %vm367_vm0, %v2718_v7, 0.0 }
 0x307   : > { %v2876_v11 = vadd.f32 %v2875_v58, %v2717_v1  ;;  %5097 = vmatmul.msk.f32.gmra.mxu3 %vm1340_vm10, %v7365_v19  ;;  %v7389_v1 = vld [vmem:[%s6679_s18 + $0x108] sm:$0xff] }
 0x309   : > { %v1956_v43 = vpop.f32.mrf.mxu2  ;;  %2877 = vadd.xlane.f32.xlu2 %v2876_v11  ;;  %v2326_v15 = vpop.f32.mrf.mxu1 }
 0x30a   : > { %v7378_v10 = vadd.f32 %v6882_v20, %v1956_v43  ;;  %v1601_v22 = vpop.f32.mrf.mxu0  ;;  %v7380_v9 = vpop.f32.mrf.mxu3 }
 0x30b   : > { %9760 = vst [vmem:[#allocation102_spill] sm:$0xff] %v7380_v9  ;;  %v7399_v58 = vadd.f32 %v6884_v56, %v1601_v22  ;;  %v7405_v9 = vld [vmem:[%s6679_s18 + $0x2c0] sm:$0xff]  ;;  %v7413_v56 = vld [vmem:[%s6679_s18 + $0x118] sm:$0xff] }
 0x30c   : > { %9759 = vst [vmem:[#allocation101_spill] sm:$0xff] %v7378_v10  ;;  %v2720_v7 = vmul.f32 %v7378_v10, %v7378_v10  ;;  %2373 = vmatmul.f32.gmra.mxu1 %v6889_v41 }
 0x30d   : > { %1648 = vmatmul.f32.gmra.mxu0 %v7383_v60  ;;  %v2721_v22 = vmul.f32 %v7399_v58, %v7399_v58 }
 0x30e   : > { %2006 = vmatmul.f32.gmra.mxu2 %v7383_v60  ;;  %v2879_v20 = vsel %vm367_vm0, %v2720_v7, 0.0 }
 0x30f   : > { %v2880_v52 = vadd.f32 %v2879_v20, %v2719_v51  ;;  %5098 = vmatmul.msk.f32.gmra.mxu3 %vm1340_vm10, %v7389_v1 }
 0x311   : > { %v1959_v41 = vpop.f32.mrf.mxu2  ;;  %2881 = vadd.xlane.f32.xlu0 %v2880_v52  ;;  %v2329_v11 = vpop.f32.mrf.mxu1 }
 0x312   : > { %v7402_v43 = vadd.f32 %v6903_v27, %v1959_v41  ;;  %v1604_v10 = vpop.f32.mrf.mxu0  ;;  %v2505_v39 = vpop.f32.mrf.mxu3 }
 0x313   : > { %v7409_v51 = vadd.f32 %v2505_v39, %v2326_v15  ;;  %v7423_v15 = vadd.f32 %v6899_v26, %v1604_v10  ;;  %v7437_v26 = vld [vmem:[%s6679_s18 + $0x128] sm:$0xff] }
 0x314   : > { %9761 = vst [vmem:[#allocation103_spill] sm:$0xff] %v7402_v43  ;;  %v2722_v7 = vmul.f32 %v7402_v43, %v7402_v43  ;;  %2376 = vmatmul.f32.gmra.mxu1 %v6907_v55  ;;  %v7429_v43 = vld [vmem:[%s6679_s18 + $0x2d0] sm:$0xff] }
 0x315   : > { %9762 = vst [vmem:[#allocation104_spill] sm:$0xff] %v7409_v51  ;;  %1651 = vmatmul.f32.gmra.mxu0 %v7405_v9  ;;  %v2723_v10 = vmul.f32 %v7423_v15, %v7423_v15 }
 0x316   : > { %2009 = vmatmul.f32.gmra.mxu2 %v7405_v9  ;;  %v2883_v27 = vsel %vm367_vm0, %v2722_v7, 0.0  ;;  %9763 = vst [vmem:[#allocation105_spill] sm:$0xff] %v7423_v15  ;;  %v7453_v15 = vld [vmem:[%s6679_s18 + $0x2e0] sm:$0xff] }
 0x317   : > { %v2884_v20 = vadd.f32 %v2883_v27, %v2721_v22  ;;  %5099 = vmatmul.msk.f32.gmra.mxu3 %vm1340_vm10, %v7413_v56 }
 0x319   : > { %v1962_v55 = vpop.f32.mrf.mxu2  ;;  %2885 = vadd.xlane.f32.xlu1 %v2884_v20  ;;  %v2332_v39 = vpop.f32.mrf.mxu1 }
 0x31a   : > { %v7426_v52 = vadd.f32 %v6923_v42, %v1962_v55  ;;  %v1607_v41 = vpop.f32.mrf.mxu0  ;;  %v2508_v51 = vpop.f32.mrf.mxu3 }
 0x31b   : > { %v7433_v22 = vadd.f32 %v2508_v51, %v2329_v11  ;;  %v7447_v11 = vadd.f32 %v6919_v36, %v1607_v41  ;;  %v7461_v36 = vld [vmem:[%s6679_s18 + $0x138] sm:$0xff] }
 0x31c   : > { %9764 = vst [vmem:[#allocation106_spill] sm:$0xff] %v7426_v52  ;;  %v2724_v7 = vmul.f32 %v7426_v52, %v7426_v52  ;;  %2379 = vmatmul.f32.gmra.mxu1 %v6927_v14 }
 0x31d   : > { %1654 = vmatmul.f32.gmra.mxu0 %v7429_v43  ;;  %v2725_v41 = vmul.f32 %v7447_v11, %v7447_v11 }
 0x31e   : > { %2012 = vmatmul.f32.gmra.mxu2 %v7429_v43  ;;  %v2887_v42 = vsel %vm367_vm0, %v2724_v7, 0.0 }
 0x31f   : > { %v2888_v27 = vadd.f32 %v2887_v42, %v2723_v10  ;;  %5100 = vmatmul.msk.f32.gmra.mxu3 %vm1340_vm10, %v7437_v26 }
 0x321   : > { %v1965_v14 = vpop.f32.mrf.mxu2  ;;  %2889 = vadd.xlane.f32.xlu2 %v2888_v27  ;;  %v2335_v51 = vpop.f32.mrf.mxu1 }
 0x322   : > { %v7450_v20 = vadd.f32 %v6943_v6, %v1965_v14  ;;  %v1610_v55 = vpop.f32.mrf.mxu0  ;;  %v2511_v52 = vpop.f32.mrf.mxu3 }
 0x323   : > { %v7457_v10 = vadd.f32 %v2511_v52, %v2332_v39  ;;  %v7471_v39 = vadd.f32 %v6939_v12, %v1610_v55  ;;  %v7485_v12 = vld [vmem:[%s6679_s18 + $0x148] sm:$0xff] }
 0x324   : > { %9765 = vst [vmem:[#allocation107_spill] sm:$0xff] %v7450_v20  ;;  %v2726_v7 = vmul.f32 %v7450_v20, %v7450_v20  ;;  %2382 = vmatmul.f32.gmra.mxu1 %v6946_v34  ;;  %v7477_v20 = vld [vmem:[%s6679_s18 + $0x2f0] sm:$0xff] }
 0x325   : > { %9766 = vst [vmem:[#allocation108_spill] sm:$0xff] %v7457_v10  ;;  %1657 = vmatmul.f32.gmra.mxu0 %v7453_v15  ;;  %v2727_v55 = vmul.f32 %v7471_v39, %v7471_v39 }
 0x326   : > { %2015 = vmatmul.f32.gmra.mxu2 %v7453_v15  ;;  %v2891_v6 = vsel %vm367_vm0, %v2726_v7, 0.0 }
 0x327   : > { %v2892_v42 = vadd.f32 %v2891_v6, %v2725_v41  ;;  %5101 = vmatmul.msk.f32.gmra.mxu3 %vm1340_vm10, %v7461_v36 }
 0x329   : > { %v1968_v34 = vpop.f32.mrf.mxu2  ;;  %2893 = vadd.xlane.f32.xlu0 %v2892_v42  ;;  %v2338_v52 = vpop.f32.mrf.mxu1 }
 0x32a   : > { %v7474_v27 = vadd.f32 %v6959_v50, %v1968_v34  ;;  %v1613_v14 = vpop.f32.mrf.mxu0  ;;  %v2514_v10 = vpop.f32.mrf.mxu3 }
 0x32b   : > { %v7481_v41 = vadd.f32 %v2514_v10, %v2335_v51  ;;  %v7495_v51 = vadd.f32 %v6955_v13, %v1613_v14  ;;  %v7509_v13 = vld [vmem:[%s6679_s18 + $0x158] sm:$0xff] }
 0x32c   : > { %9767 = vst [vmem:[#allocation109_spill] sm:$0xff] %v7474_v27  ;;  %v2728_v7 = vmul.f32 %v7474_v27, %v7474_v27  ;;  %2385 = vmatmul.f32.gmra.mxu1 %v6962_v46  ;;  %v7501_v27 = vld [vmem:[%s6679_s18 + $0x300] sm:$0xff] }
 0x32d   : > { %9768 = vst [vmem:[#allocation110_spill] sm:$0xff] %v7481_v41  ;;  %1660 = vmatmul.f32.gmra.mxu0 %v7477_v20  ;;  %v2729_v14 = vmul.f32 %v7495_v51, %v7495_v51 }
 0x32e   : > { %2018 = vmatmul.f32.gmra.mxu2 %v7477_v20  ;;  %v2895_v50 = vsel %vm367_vm0, %v2728_v7, 0.0  ;;  %9769 = vst [vmem:[#allocation111_spill] sm:$0xff] %v7495_v51  ;;  %v7525_v51 = vld [vmem:[%s6679_s18 + $0x310] sm:$0xff] }
 0x32f   : > { %v2896_v6 = vadd.f32 %v2895_v50, %v2727_v55  ;;  %5102 = vmatmul.msk.f32.gmra.mxu3 %vm1340_vm10, %v7485_v12 }
 0x331   : > { %v1971_v46 = vpop.f32.mrf.mxu2  ;;  %2897 = vadd.xlane.f32.xlu1 %v2896_v6  ;;  %v2341_v10 = vpop.f32.mrf.mxu1 }
 0x332   : > { %v7498_v42 = vadd.f32 %v6975_v18, %v1971_v46  ;;  %v1616_v34 = vpop.f32.mrf.mxu0  ;;  %v2517_v41 = vpop.f32.mrf.mxu3 }
 0x333   : > { %v7505_v55 = vadd.f32 %v2517_v41, %v2338_v52  ;;  %v7519_v52 = vadd.f32 %v6971_v44, %v1616_v34  ;;  %v7533_v44 = vld [vmem:[%s6679_s18 + $0x168] sm:$0xff] }
 0x334   : > { %9770 = vst [vmem:[#allocation112_spill] sm:$0xff] %v7498_v42  ;;  %v2730_v7 = vmul.f32 %v7498_v42, %v7498_v42  ;;  %2388 = vmatmul.f32.gmra.mxu1 %v6978_v31 }
 0x335   : > { %1663 = vmatmul.f32.gmra.mxu0 %v7501_v27  ;;  %9771 = vst [vmem:[#allocation113_spill] sm:$0xff] %v7519_v52  ;;  %v2731_v34 = vmul.f32 %v7519_v52, %v7519_v52  ;;  %v7549_v52 = vld [vmem:[%s6679_s18 + $0x320] sm:$0xff] }
 0x336   : > { %2021 = vmatmul.f32.gmra.mxu2 %v7501_v27  ;;  %v2899_v18 = vsel %vm367_vm0, %v2730_v7, 0.0 }
 0x337   : > { %v2900_v50 = vadd.f32 %v2899_v18, %v2729_v14  ;;  %5103 = vmatmul.msk.f32.gmra.mxu3 %vm1340_vm10, %v7509_v13 }
 0x339   : > { %v1974_v31 = vpop.f32.mrf.mxu2  ;;  %2901 = vadd.xlane.f32.xlu2 %v2900_v50  ;;  %v2344_v41 = vpop.f32.mrf.mxu1 }
 0x33a   : > { %v7522_v6 = vadd.f32 %v6991_v8, %v1974_v31  ;;  %v1619_v46 = vpop.f32.mrf.mxu0  ;;  %v2520_v42 = vpop.f32.mrf.mxu3 }
 0x33b   : > { %v7529_v14 = vadd.f32 %v2520_v42, %v2341_v10  ;;  %v7543_v10 = vadd.f32 %v6987_v30, %v1619_v46  ;;  %v7557_v30 = vld [vmem:[%s6679_s18 + $0x178] sm:$0xff] }
 0x33c   : > { %9772 = vst [vmem:[#allocation114_spill] sm:$0xff] %v7522_v6  ;;  %v2732_v7 = vmul.f32 %v7522_v6, %v7522_v6  ;;  %2391 = vmatmul.f32.gmra.mxu1 %v6994_v54 }
 0x33d   : > { %1666 = vmatmul.f32.gmra.mxu0 %v7525_v51  ;;  %v2733_v46 = vmul.f32 %v7543_v10, %v7543_v10 }
 0x33e   : > { %2024 = vmatmul.f32.gmra.mxu2 %v7525_v51  ;;  %v2903_v8 = vsel %vm367_vm0, %v2732_v7, 0.0 }
 0x33f   : > { %v2904_v18 = vadd.f32 %v2903_v8, %v2731_v34  ;;  %5104 = vmatmul.msk.f32.gmra.mxu3 %vm1340_vm10, %v7533_v44 }
 0x341   : > { %v1977_v54 = vpop.f32.mrf.mxu2  ;;  %2905 = vadd.xlane.f32.xlu0 %v2904_v18  ;;  %v2347_v42 = vpop.f32.mrf.mxu1 }
 0x342   : > { %v7546_v50 = vadd.f32 %v7007_v35, %v1977_v54  ;;  %v1622_v31 = vpop.f32.mrf.mxu0  ;;  %v2523_v6 = vpop.f32.mrf.mxu3 }
 0x343   : > { %v7553_v34 = vadd.f32 %v2523_v6, %v2344_v41  ;;  %v7567_v41 = vadd.f32 %v7003_v3, %v1622_v31  ;;  %v7581_v3 = vld [vmem:[%s6679_s18 + $0x188] sm:$0xff] }
 0x344   : > { %9773 = vst [vmem:[#allocation115_spill] sm:$0xff] %v7546_v50  ;;  %v2734_v7 = vmul.f32 %v7546_v50, %v7546_v50  ;;  %2394 = vmatmul.f32.gmra.mxu1 %v7010_v40  ;;  %v7573_v50 = vld [vmem:[%s6679_s18 + $0x330] sm:$0xff] }
 0x345   : > { %9774 = vst [vmem:[#allocation116_spill] sm:$0xff] %v7553_v34  ;;  %1669 = vmatmul.f32.gmra.mxu0 %v7549_v52  ;;  %v2735_v31 = vmul.f32 %v7567_v41, %v7567_v41 }
 0x346   : > { %2027 = vmatmul.f32.gmra.mxu2 %v7549_v52  ;;  %v2907_v35 = vsel %vm367_vm0, %v2734_v7, 0.0  ;;  %9775 = vst [vmem:[#allocation117_spill] sm:$0xff] %v7567_v41  ;;  %v7597_v41 = vld [vmem:[%s6679_s18 + $0x340] sm:$0xff] }
 0x347   : > { %v2908_v8 = vadd.f32 %v2907_v35, %v2733_v46  ;;  %5105 = vmatmul.msk.f32.gmra.mxu3 %vm1340_vm10, %v7557_v30 }
 0x349   : > { %v1980_v40 = vpop.f32.mrf.mxu2  ;;  %2909 = vadd.xlane.f32.xlu1 %v2908_v8  ;;  %v2350_v6 = vpop.f32.mrf.mxu1 }
 0x34a   : > { %v7570_v18 = vadd.f32 %v7023_v4, %v1980_v40  ;;  %v1625_v54 = vpop.f32.mrf.mxu0  ;;  %v2526_v34 = vpop.f32.mrf.mxu3 }
 0x34b   : > { %v7577_v46 = vadd.f32 %v2526_v34, %v2347_v42  ;;  %v7591_v42 = vadd.f32 %v7019_v48, %v1625_v54 }
 0x34c   : > { %9776 = vst [vmem:[#allocation118_spill] sm:$0xff] %v7570_v18  ;;  %v2736_v7 = vmul.f32 %v7570_v18, %v7570_v18  ;;  %2397 = vmatmul.f32.gmra.mxu1 %v7026_v63 }
 0x34d   : > { %1672 = vmatmul.f32.gmra.mxu0 %v7573_v50  ;;  %9777 = vst [vmem:[#allocation119_spill] sm:$0xff] %v7591_v42  ;;  %v2737_v48 = vmul.f32 %v7591_v42, %v7591_v42  ;;  %v7618_v42 = vld [vmem:[%s6679_s18 + $0x350] sm:$0xff] }
 0x34e   : > { %2030 = vmatmul.f32.gmra.mxu2 %v7573_v50  ;;  %v2911_v4 = vsel %vm367_vm0, %v2736_v7, 0.0 }
 0x34f   : > { %v2912_v35 = vadd.f32 %v2911_v4, %v2735_v31  ;;  %5106 = vmatmul.msk.f32.gmra.mxu3 %vm1340_vm10, %v7581_v3  ;;  %v5336_v4 = vld [vmem:[%s6679_s18 + $0x198] sm:$0xff] }
 0x351   : > { %v1983_v63 = vpop.f32.mrf.mxu2  ;;  %2913 = vadd.xlane.f32.xlu2 %v2912_v35  ;;  %v2353_v34 = vpop.f32.mrf.mxu1 }
 0x352   : > { %v7594_v8 = vadd.f32 %v7039_v2, %v1983_v63  ;;  %v1628_v40 = vpop.f32.mrf.mxu0  ;;  %v2529_v18 = vpop.f32.mrf.mxu3 }
 0x353   : > { %v7601_v31 = vadd.f32 %v2529_v18, %v2350_v6  ;;  %v7612_v35 = vadd.f32 %v7035_v57, %v1628_v40 }
 0x354   : > { %9778 = vst [vmem:[#allocation120_spill] sm:$0xff] %v7594_v8  ;;  %v2738_v7 = vmul.f32 %v7594_v8, %v7594_v8  ;;  %2400 = vmatmul.f32.gmra.mxu1 %v7042_v28 }
 0x355   : > { %1675 = vmatmul.f32.gmra.mxu0 %v7597_v41  ;;  %v2739_v57 = vmul.f32 %v7612_v35, %v7612_v35 }
 0x356   : > { %2033 = vmatmul.f32.gmra.mxu2 %v7597_v41  ;;  %v2915_v2 = vsel %vm367_vm0, %v2738_v7, 0.0 }
 0x357   : > { %v2916_v54 = vadd.f32 %v2915_v2, %v2737_v48  ;;  %5107 = vmatmul.msk.f32.gmra.mxu3 %vm1340_vm10, %v5336_v4  ;;  %v5337_v2 = vld [vmem:[%s6679_s18 + $0x1a8] sm:$0xff] }
 0x359   : > { %v1986_v6 = vpop.f32.mrf.mxu2  ;;  %2917 = vadd.xlane.f32.xlu0 %v2916_v54  ;;  %v2356_v28 = vpop.f32.mrf.mxu1 }
 0x35a   : > { %v7615_v18 = vadd.f32 %v7055_v47, %v1986_v6  ;;  %v1631_v63 = vpop.f32.mrf.mxu0  ;;  %v2532_v8 = vpop.f32.mrf.mxu3 }
 0x35b   : > { %v7622_v48 = vadd.f32 %v2532_v8, %v2353_v34  ;;  %v7633_v54 = vadd.f32 %v7051_v53, %v1631_v63  ;;  %v5338_v63 = vld [vmem:[%s6679_s18 + $0x1b8] sm:$0xff] }
 0x35c   : > { %9779 = vst [vmem:[#allocation121_spill] sm:$0xff] %v7615_v18  ;;  %v2740_v7 = vmul.f32 %v7615_v18, %v7615_v18  ;;  %2403 = vmatmul.f32.gmra.mxu1 %v7058_v45 }
 0x35d   : > { %1678 = vmatmul.f32.gmra.mxu0 %v7618_v42 }
 0x35e   : > { %2036 = vmatmul.f32.gmra.mxu2 %v7618_v42  ;;  %v2919_v47 = vsel %vm367_vm0, %v2740_v7, 0.0 }
 0x35f   : > { %v2920_v40 = vadd.f32 %v2919_v47, %v2739_v57  ;;  %5108 = vmatmul.msk.f32.gmra.mxu3 %vm1340_vm10, %v5337_v2  ;;  %v2741_v57 = vmul.f32 %v7633_v54, %v7633_v54 }
 0x361   : > { %v1989_v34 = vpop.f32.mrf.mxu2  ;;  %2921 = vadd.xlane.f32.xlu1 %v2920_v40  ;;  %v2359_v45 = vpop.f32.mrf.mxu1 }
 0x362   : > { %v7636_v8 = vadd.f32 %v7071_v25, %v1989_v34  ;;  %v1634_v4 = vpop.f32.mrf.mxu0  ;;  %v2535_v6 = vpop.f32.mrf.mxu3 }
 0x363   : > { %v7640_v7 = vadd.f32 %v2535_v6, %v2356_v28  ;;  %v7653_v28 = vadd.f32 %v7067_v49, %v1634_v4  ;;  %v5339_v4 = vld [vmem:[%s6679_s18 + $0x1c8] sm:$0xff] }
 0x364   : > { %v2742_v18 = vmul.f32 %v7636_v8, %v7636_v8  ;;  %2406 = vmatmul.f32.gmra.mxu1 %v7074_v32 }
 0x365   : > { %4974 = vmatmul.msk.f32.vlgmr.msrb.gmra.mxu0 %vm1340_vm10, %v7078_v17  ;;  %v2743_v6 = vmul.f32 %v7653_v28, %v7653_v28 }
 0x366   : > { %5028 = vmatmul.msk.f32.vlgmr.msrb.gmra.mxu2 %vm1340_vm10, %v7078_v17  ;;  %v2923_v25 = vsel %vm367_vm0, %v2742_v18, 0.0 }
 0x367   : > { %v2924_v53 = vadd.f32 %v2923_v25, %v2741_v57  ;;  %5109 = vmatmul.msk.f32.gmra.mxu3 %vm1340_vm10, %v5338_v63  ;;  %v9780_v57 = vld [vmem:[#allocation26_spill] sm:$0xff] }
 0x369   : > { %v1992_v32 = vpop.f32.mrf.mxu2  ;;  %2925 = vadd.xlane.f32.xlu2 %v2924_v53  ;;  %v2362_v47 = vpop.f32.mrf.mxu1  ;;  %v9782_v53 = vld [vmem:[#allocation31_spill] sm:$0xff] }
 0x36a   : > { %v7656_v40 = vadd.f32 %v7090_v5, %v1992_v32  ;;  %v1637_v2 = vpop.f32.mrf.mxu0  ;;  %v2538_v34 = vpop.f32.mrf.mxu3 }
 0x36b   : > { %v7660_v18 = vadd.f32 %v2538_v34, %v2359_v45  ;;  %v7673_v45 = vadd.f32 %v9780_v57, %v1637_v2  ;;  %v9784_v2 = vld [vmem:[#allocation32_spill] sm:$0xff]  ;;  %v9785_v57 = vld [vmem:[#allocation29_spill] sm:$0xff] }
 0x36c   : > { %v2744_v17 = vmul.f32 %v7656_v40, %v7656_v40  ;;  %2409 = vmatmul.f32.gmra.mxu1 %v7093_v29 }
 0x36d   : > { %4975 = vmatmul.msk.f32.gmra.mxu0 %vm1340_vm10, %v7097_v23  ;;  %9781 = vst [vmem:[#allocation26_spill] sm:$0xff] %v7673_v45 }
 0x36e   : > { %5029 = vmatmul.msk.f32.gmra.mxu2 %vm1340_vm10, %v7097_v23  ;;  %v2927_v5 = vsel %vm367_vm0, %v2744_v17, 0.0 }
 0x36f   : > { %v2928_v49 = vadd.f32 %v2927_v5, %v2743_v6  ;;  %5110 = vmatmul.msk.f32.gmra.mxu3 %vm1340_vm10, %v5339_v4  ;;  %v2745_v6 = vmul.f32 %v7673_v45, %v7673_v45  ;;  %v5340_v4 = vld [vmem:[%s6679_s18 + $0x1d8] sm:$0xff] }
 0x371   : > { %v1995_v29 = vpop.f32.mrf.mxu2  ;;  %2929 = vadd.xlane.f32.xlu0 %v2928_v49  ;;  %v2365_v25 = vpop.f32.mrf.mxu1 }
 0x372   : > { %v7676_v63 = vadd.f32 %v9782_v53, %v1995_v29  ;;  %v1640_v32 = vpop.f32.mrf.mxu0  ;;  %v2541_v34 = vpop.f32.mrf.mxu3  ;;  %v9787_v53 = vld [vmem:[#allocation36_spill] sm:$0xff] }
 0x373   : > { %v7680_v17 = vadd.f32 %v2541_v34, %v2362_v47  ;;  %v7693_v47 = vadd.f32 %v9785_v57, %v1640_v32  ;;  %v9789_v32 = vld [vmem:[#allocation37_spill] sm:$0xff]  ;;  %v9790_v57 = vld [vmem:[#allocation34_spill] sm:$0xff] }
 0x374   : > { %9783 = vst [vmem:[#allocation31_spill] sm:$0xff] %v7676_v63  ;;  %v2746_v23 = vmul.f32 %v7676_v63, %v7676_v63  ;;  %2412 = vmatmul.f32.gmra.mxu1 %v7112_v0 }
 0x375   : > { %4976 = vmatmul.msk.f32.gmra.mxu0 %vm1340_vm10, %v9784_v2  ;;  %9786 = vst [vmem:[#allocation32_spill] sm:$0xff] %v7693_v47 }
 0x376   : > { %5030 = vmatmul.msk.f32.gmra.mxu2 %vm1340_vm10, %v9784_v2  ;;  %v2931_v5 = vsel %vm367_vm0, %v2746_v23, 0.0 }
 0x377   : > { %v2932_v49 = vadd.f32 %v2931_v5, %v2745_v6  ;;  %5111 = vmatmul.msk.f32.gmra.mxu3 %vm1340_vm10, %v5340_v4  ;;  %v2747_v6 = vmul.f32 %v7693_v47, %v7693_v47  ;;  %v5341_v4 = vld [vmem:[%s6679_s18 + $0x1e8] sm:$0xff] }
 0x379   : > { %v1998_v0 = vpop.f32.mrf.mxu2  ;;  %2933 = vadd.xlane.f32.xlu1 %v2932_v49  ;;  %v2368_v29 = vpop.f32.mrf.mxu1 }
 0x37a   : > { %v7696_v34 = vadd.f32 %v9787_v53, %v1998_v0  ;;  %v1643_v63 = vpop.f32.mrf.mxu0  ;;  %v2544_v45 = vpop.f32.mrf.mxu3  ;;  %v9792_v0 = vld [vmem:[#allocation41_spill] sm:$0xff] }
 0x37b   : > { %v7700_v23 = vadd.f32 %v2544_v45, %v2365_v25  ;;  %v7713_v45 = vadd.f32 %v9790_v57, %v1643_v63  ;;  %v9794_v63 = vld [vmem:[#allocation42_spill] sm:$0xff]  ;;  %v9795_v57 = vld [vmem:[#allocation39_spill] sm:$0xff] }
 0x37c   : > { %9788 = vst [vmem:[#allocation29_spill] sm:$0xff] %v7696_v34  ;;  %v2748_v2 = vmul.f32 %v7696_v34, %v7696_v34  ;;  %2415 = vmatmul.f32.gmra.mxu1 %v7131_v37 }
 0x37d   : > { %4977 = vmatmul.msk.f32.gmra.mxu0 %vm1340_vm10, %v9789_v32  ;;  %9791 = vst [vmem:[#allocation36_spill] sm:$0xff] %v7713_v45 }
 0x37e   : > { %5031 = vmatmul.msk.f32.gmra.mxu2 %vm1340_vm10, %v9789_v32  ;;  %v2935_v5 = vsel %vm367_vm0, %v2748_v2, 0.0 }
 0x37f   : > { %v2936_v49 = vadd.f32 %v2935_v5, %v2747_v6  ;;  %5112 = vmatmul.msk.f32.gmra.mxu3 %vm1340_vm10, %v5341_v4  ;;  %v2749_v6 = vmul.f32 %v7713_v45, %v7713_v45  ;;  %v5342_v4 = vld [vmem:[%s6679_s18 + $0x1f8] sm:$0xff] }
 0x381   : > { %v2001_v37 = vpop.f32.mrf.mxu2  ;;  %2937 = vadd.xlane.f32.xlu2 %v2936_v49  ;;  %v2371_v25 = vpop.f32.mrf.mxu1 }
 0x382   : > { %v7716_v53 = vadd.f32 %v9792_v0, %v2001_v37  ;;  %v1646_v34 = vpop.f32.mrf.mxu0  ;;  %v2547_v47 = vpop.f32.mrf.mxu3  ;;  %v9797_v37 = vld [vmem:[#allocation46_spill] sm:$0xff] }
 0x383   : > { %v7720_v2 = vadd.f32 %v2547_v47, %v2368_v29  ;;  %v7733_v47 = vadd.f32 %v9795_v57, %v1646_v34  ;;  %v9799_v34 = vld [vmem:[#allocation47_spill] sm:$0xff]  ;;  %v9800_v57 = vld [vmem:[#allocation44_spill] sm:$0xff] }
 0x384   : > { %9793 = vst [vmem:[#allocation37_spill] sm:$0xff] %v7716_v53  ;;  %v2750_v32 = vmul.f32 %v7716_v53, %v7716_v53  ;;  %2418 = vmatmul.f32.gmra.mxu1 %v7150_v62 }
 0x385   : > { %4978 = vmatmul.msk.f32.gmra.mxu0 %vm1340_vm10, %v9794_v63  ;;  %9796 = vst [vmem:[#allocation34_spill] sm:$0xff] %v7733_v47 }
 0x386   : > { %5032 = vmatmul.msk.f32.gmra.mxu2 %vm1340_vm10, %v9794_v63  ;;  %v2939_v5 = vsel %vm367_vm0, %v2750_v32, 0.0 }
 0x387   : > { %v2940_v49 = vadd.f32 %v2939_v5, %v2749_v6  ;;  %5113 = vmatmul.msk.f32.gmra.mxu3 %vm1340_vm10, %v5342_v4  ;;  %v2751_v6 = vmul.f32 %v7733_v47, %v7733_v47  ;;  %v5343_v4 = vld [vmem:[%s6679_s18 + $0x208] sm:$0xff] }
 0x389   : > { %v2004_v62 = vpop.f32.mrf.mxu2  ;;  %2941 = vadd.xlane.f32.xlu0 %v2940_v49  ;;  %v2374_v29 = vpop.f32.mrf.mxu1 }
 0x38a   : > { %v7736_v0 = vadd.f32 %v9797_v37, %v2004_v62  ;;  %v1649_v53 = vpop.f32.mrf.mxu0  ;;  %v2550_v45 = vpop.f32.mrf.mxu3  ;;  %v9802_v62 = vld [vmem:[#allocation51_spill] sm:$0xff] }
 0x38b   : > { %v7740_v32 = vadd.f32 %v2550_v45, %v2371_v25  ;;  %v7753_v45 = vadd.f32 %v9800_v57, %v1649_v53  ;;  %v9805_v53 = vld [vmem:[#allocation52_spill] sm:$0xff]  ;;  %v9806_v57 = vld [vmem:[#allocation49_spill] sm:$0xff] }
 0x38c   : > { %9798 = vst [vmem:[#allocation41_spill] sm:$0xff] %v7736_v0  ;;  %v2752_v63 = vmul.f32 %v7736_v0, %v7736_v0  ;;  %2421 = vmatmul.f32.gmra.mxu1 %v7169_v61 }
 0x38d   : > { %4979 = vmatmul.msk.f32.gmra.mxu0 %vm1340_vm10, %v9799_v34  ;;  %9801 = vst [vmem:[#allocation42_spill] sm:$0xff] %v7753_v45 }
 0x38e   : > { %5033 = vmatmul.msk.f32.gmra.mxu2 %vm1340_vm10, %v9799_v34  ;;  %v2943_v5 = vsel %vm367_vm0, %v2752_v63, 0.0 }
 0x38f   : > { %v2944_v49 = vadd.f32 %v2943_v5, %v2751_v6  ;;  %5114 = vmatmul.msk.f32.gmra.mxu3 %vm1340_vm10, %v5343_v4  ;;  %v2753_v6 = vmul.f32 %v7753_v45, %v7753_v45  ;;  %v5344_v4 = vld [vmem:[%s6679_s18 + $0x218] sm:$0xff] }
 0x391   : > { %v2007_v61 = vpop.f32.mrf.mxu2  ;;  %2945 = vadd.xlane.f32.xlu1 %v2944_v49  ;;  %v2377_v25 = vpop.f32.mrf.mxu1 }
 0x392   : > { %v7756_v37 = vadd.f32 %v9802_v62, %v2007_v61  ;;  %v1652_v0 = vpop.f32.mrf.mxu0  ;;  %v2553_v47 = vpop.f32.mrf.mxu3  ;;  %v9808_v61 = vld [vmem:[#allocation56_spill] sm:$0xff] }
 0x393   : > { %v7760_v63 = vadd.f32 %v2553_v47, %v2374_v29  ;;  %v7773_v47 = vadd.f32 %v9806_v57, %v1652_v0  ;;  %v9811_v0 = vld [vmem:[#allocation57_spill] sm:$0xff]  ;;  %v9812_v57 = vld [vmem:[#allocation54_spill] sm:$0xff] }
 0x394   : > { %9803 = vst [vmem:[#allocation39_spill] sm:$0xff] %v7756_v37  ;;  %v2754_v34 = vmul.f32 %v7756_v37, %v7756_v37  ;;  %2424 = vmatmul.f32.gmra.mxu1 %v7188_v33 }
 0x395   : > { %9804 = vst [vmem:[#allocation46_spill] sm:$0xff] %v7760_v63  ;;  %4980 = vmatmul.msk.f32.gmra.mxu0 %vm1340_vm10, %v9805_v53 }
 0x396   : > { %5034 = vmatmul.msk.f32.gmra.mxu2 %vm1340_vm10, %v9805_v53  ;;  %v2947_v5 = vsel %vm367_vm0, %v2754_v34, 0.0  ;;  %9807 = vst [vmem:[#allocation47_spill] sm:$0xff] %v7773_v47 }
 0x397   : > { %v2948_v49 = vadd.f32 %v2947_v5, %v2753_v6  ;;  %5115 = vmatmul.msk.f32.gmra.mxu3 %vm1340_vm10, %v5344_v4  ;;  %v2755_v6 = vmul.f32 %v7773_v47, %v7773_v47  ;;  %v5345_v4 = vld [vmem:[%s6679_s18 + $0x228] sm:$0xff] }
 0x399   : > { %v2010_v33 = vpop.f32.mrf.mxu2  ;;  %2949 = vadd.xlane.f32.xlu2 %v2948_v49  ;;  %v2380_v29 = vpop.f32.mrf.mxu1 }
 0x39a   : > { %v7776_v62 = vadd.f32 %v9808_v61, %v2010_v33  ;;  %v1655_v37 = vpop.f32.mrf.mxu0  ;;  %v2556_v45 = vpop.f32.mrf.mxu3  ;;  %v9814_v33 = vld [vmem:[#allocation61_spill] sm:$0xff] }
 0x39b   : > { %v7780_v34 = vadd.f32 %v2556_v45, %v2377_v25  ;;  %v7793_v45 = vadd.f32 %v9812_v57, %v1655_v37  ;;  %v9817_v37 = vld [vmem:[#allocation62_spill] sm:$0xff]  ;;  %v9818_v57 = vld [vmem:[#allocation59_spill] sm:$0xff] }
 0x39c   : > { %9809 = vst [vmem:[#allocation44_spill] sm:$0xff] %v7776_v62  ;;  %v2756_v53 = vmul.f32 %v7776_v62, %v7776_v62  ;;  %2427 = vmatmul.f32.gmra.mxu1 %v7207_v16 }
 0x39d   : > { %9810 = vst [vmem:[#allocation51_spill] sm:$0xff] %v7780_v34  ;;  %4981 = vmatmul.msk.f32.gmra.mxu0 %vm1340_vm10, %v9811_v0 }
 0x39e   : > { %5035 = vmatmul.msk.f32.gmra.mxu2 %vm1340_vm10, %v9811_v0  ;;  %v2951_v5 = vsel %vm367_vm0, %v2756_v53, 0.0  ;;  %9813 = vst [vmem:[#allocation52_spill] sm:$0xff] %v7793_v45 }
 0x39f   : > { %v2952_v49 = vadd.f32 %v2951_v5, %v2755_v6  ;;  %5116 = vmatmul.msk.f32.gmra.mxu3 %vm1340_vm10, %v5345_v4  ;;  %v2757_v6 = vmul.f32 %v7793_v45, %v7793_v45  ;;  %v5346_v4 = vld [vmem:[%s6679_s18 + $0x238] sm:$0xff] }
 0x3a1   : > { %v2013_v16 = vpop.f32.mrf.mxu2  ;;  %2953 = vadd.xlane.f32.xlu0 %v2952_v49  ;;  %v2383_v25 = vpop.f32.mrf.mxu1 }
 0x3a2   : > { %v7796_v61 = vadd.f32 %v9814_v33, %v2013_v16  ;;  %v1658_v62 = vpop.f32.mrf.mxu0  ;;  %v2559_v47 = vpop.f32.mrf.mxu3  ;;  %v9820_v16 = vld [vmem:[#allocation66_spill] sm:$0xff] }
 0x3a3   : > { %v7800_v53 = vadd.f32 %v2559_v47, %v2380_v29  ;;  %v7813_v47 = vadd.f32 %v9818_v57, %v1658_v62  ;;  %v9823_v62 = vld [vmem:[#allocation67_spill] sm:$0xff]  ;;  %v9824_v57 = vld [vmem:[#allocation64_spill] sm:$0xff] }
 0x3a4   : > { %9815 = vst [vmem:[#allocation49_spill] sm:$0xff] %v7796_v61  ;;  %v2758_v0 = vmul.f32 %v7796_v61, %v7796_v61  ;;  %2430 = vmatmul.f32.gmra.mxu1 %v7226_v21 }
 0x3a5   : > { %9816 = vst [vmem:[#allocation56_spill] sm:$0xff] %v7800_v53  ;;  %4982 = vmatmul.msk.f32.gmra.mxu0 %vm1340_vm10, %v9817_v37 }
 0x3a6   : > { %5036 = vmatmul.msk.f32.gmra.mxu2 %vm1340_vm10, %v9817_v37  ;;  %v2955_v5 = vsel %vm367_vm0, %v2758_v0, 0.0  ;;  %9819 = vst [vmem:[#allocation57_spill] sm:$0xff] %v7813_v47 }
 0x3a7   : > { %v2956_v49 = vadd.f32 %v2955_v5, %v2757_v6  ;;  %5117 = vmatmul.msk.f32.gmra.mxu3 %vm1340_vm10, %v5346_v4  ;;  %v2759_v6 = vmul.f32 %v7813_v47, %v7813_v47  ;;  %v5347_v4 = vld [vmem:[%s6679_s18 + $0x248] sm:$0xff] }
 0x3a9   : > { %v2016_v21 = vpop.f32.mrf.mxu2  ;;  %2957 = vadd.xlane.f32.xlu1 %v2956_v49  ;;  %v2386_v29 = vpop.f32.mrf.mxu1 }
 0x3aa   : > { %v7816_v33 = vadd.f32 %v9820_v16, %v2016_v21  ;;  %v1661_v61 = vpop.f32.mrf.mxu0  ;;  %v2562_v45 = vpop.f32.mrf.mxu3  ;;  %v9826_v21 = vld [vmem:[#allocation71_spill] sm:$0xff] }
 0x3ab   : > { %v7820_v0 = vadd.f32 %v2562_v45, %v2383_v25  ;;  %v7833_v45 = vadd.f32 %v9824_v57, %v1661_v61  ;;  %v9829_v61 = vld [vmem:[#allocation72_spill] sm:$0xff]  ;;  %v9830_v57 = vld [vmem:[#allocation69_spill] sm:$0xff] }
 0x3ac   : > { %9821 = vst [vmem:[#allocation54_spill] sm:$0xff] %v7816_v33  ;;  %v2760_v37 = vmul.f32 %v7816_v33, %v7816_v33  ;;  %2433 = vmatmul.f32.gmra.mxu1 %v7245_v24 }
 0x3ad   : > { %9822 = vst [vmem:[#allocation61_spill] sm:$0xff] %v7820_v0  ;;  %4983 = vmatmul.msk.f32.gmra.mxu0 %vm1340_vm10, %v9823_v62 }
 0x3ae   : > { %5037 = vmatmul.msk.f32.gmra.mxu2 %vm1340_vm10, %v9823_v62  ;;  %v2959_v5 = vsel %vm367_vm0, %v2760_v37, 0.0  ;;  %9825 = vst [vmem:[#allocation62_spill] sm:$0xff] %v7833_v45 }
 0x3af   : > { %v2960_v49 = vadd.f32 %v2959_v5, %v2759_v6  ;;  %5118 = vmatmul.msk.f32.gmra.mxu3 %vm1340_vm10, %v5347_v4  ;;  %v2761_v6 = vmul.f32 %v7833_v45, %v7833_v45  ;;  %v5348_v4 = vld [vmem:[%s6679_s18 + $0x258] sm:$0xff] }
 0x3b1   : > { %v2019_v24 = vpop.f32.mrf.mxu2  ;;  %2961 = vadd.xlane.f32.xlu2 %v2960_v49  ;;  %v2389_v25 = vpop.f32.mrf.mxu1 }
 0x3b2   : > { %v7836_v16 = vadd.f32 %v9826_v21, %v2019_v24  ;;  %v1664_v0 = vpop.f32.mrf.mxu0  ;;  %v2565_v33 = vpop.f32.mrf.mxu3  ;;  %v9832_v24 = vld [vmem:[#allocation76_spill] sm:$0xff] }
 0x3b3   : > { %v7840_v37 = vadd.f32 %v2565_v33, %v2386_v29  ;;  %v7853_v29 = vadd.f32 %v9830_v57, %v1664_v0  ;;  %v9836_v0 = vld [vmem:[#allocation78_spill] sm:$0xff]  ;;  %v5349_v57 = vld [vmem:[%s6679_s18 + $0x268] sm:$0xff] }
 0x3b4   : > { %9827 = vst [vmem:[#allocation59_spill] sm:$0xff] %v7836_v16  ;;  %v2762_v62 = vmul.f32 %v7836_v16, %v7836_v16  ;;  %2436 = vmatmul.f32.gmra.mxu1 %v7264_v38 }
 0x3b5   : > { %9828 = vst [vmem:[#allocation66_spill] sm:$0xff] %v7840_v37  ;;  %4984 = vmatmul.msk.f32.gmra.mxu0 %vm1340_vm10, %v9829_v61 }
 0x3b6   : > { %5038 = vmatmul.msk.f32.gmra.mxu2 %vm1340_vm10, %v9829_v61  ;;  %v2963_v5 = vsel %vm367_vm0, %v2762_v62, 0.0  ;;  %9831 = vst [vmem:[#allocation67_spill] sm:$0xff] %v7853_v29 }
 0x3b7   : > { %v2964_v49 = vadd.f32 %v2963_v5, %v2761_v6  ;;  %5119 = vmatmul.msk.f32.gmra.mxu3 %vm1340_vm10, %v5348_v4  ;;  %v9835_v6 = vld [vmem:[#allocation77_spill] sm:$0xff]  ;;  %v2763_v5 = vmul.f32 %v7853_v29, %v7853_v29 }
 0x3b9   : > { %v2022_v38 = vpop.f32.mrf.mxu2  ;;  %2965 = vadd.xlane.f32.xlu0 %v2964_v49  ;;  %v2392_v33 = vpop.f32.mrf.mxu1 }
 0x3ba   : > { %v7856_v21 = vadd.f32 %v9832_v24, %v2022_v38  ;;  %v1667_v16 = vpop.f32.mrf.mxu0  ;;  %v2568_v45 = vpop.f32.mrf.mxu3  ;;  %v9837_v38 = vld [vmem:[#allocation74_spill] sm:$0xff] }
 0x3bb   : > { %v7860_v62 = vadd.f32 %v2568_v45, %v2389_v25  ;;  %v7873_v45 = vadd.f32 %v9837_v38, %v1667_v16  ;;  %v9843_v16 = vld [vmem:[#allocation84_spill] sm:$0xff]  ;;  %v5350_v38 = vld [vmem:[%s6679_s18 + $0x278] sm:$0xff] }
 0x3bc   : > { %9833 = vst [vmem:[#allocation64_spill] sm:$0xff] %v7856_v21  ;;  %v2764_v61 = vmul.f32 %v7856_v21, %v7856_v21  ;;  %2439 = vmatmul.f32.gmra.mxu1 %v9835_v6  ;;  %v9839_v6 = vld [vmem:[#allocation82_spill] sm:$0xff] }
 0x3bd   : > { %9834 = vst [vmem:[#allocation71_spill] sm:$0xff] %v7860_v62  ;;  %4985 = vmatmul.msk.f32.gmra.mxu0 %vm1340_vm10, %v9836_v0 }
 0x3be   : > { %5039 = vmatmul.msk.f32.gmra.mxu2 %vm1340_vm10, %v9836_v0  ;;  %v2967_v49 = vsel %vm367_vm0, %v2764_v61, 0.0  ;;  %9838 = vst [vmem:[#allocation72_spill] sm:$0xff] %v7873_v45 }
 0x3bf   : > { %v2968_v4 = vadd.f32 %v2967_v49, %v2763_v5  ;;  %5120 = vmatmul.msk.f32.gmra.mxu3 %vm1340_vm10, %v5349_v57  ;;  %v9842_v5 = vld [vmem:[#allocation83_spill] sm:$0xff]  ;;  %v2765_v49 = vmul.f32 %v7873_v45, %v7873_v45 }
 0x3c1   : > { %v2025_v25 = vpop.f32.mrf.mxu2  ;;  %2969 = vadd.xlane.f32.xlu1 %v2968_v4  ;;  %v2395_v24 = vpop.f32.mrf.mxu1 }
 0x3c2   : > { %v7876_v21 = vadd.f32 %v9839_v6, %v2025_v25  ;;  %v1670_v29 = vpop.f32.mrf.mxu0  ;;  %v2571_v62 = vpop.f32.mrf.mxu3  ;;  %v9844_v25 = vld [vmem:[#allocation80_spill] sm:$0xff] }
 0x3c3   : > { %v7880_v61 = vadd.f32 %v2571_v62, %v2392_v33  ;;  %v7893_v33 = vadd.f32 %v9844_v25, %v1670_v29  ;;  %v9846_v6 = vld [vmem:[#allocation88_spill] sm:$0xff]  ;;  %v9850_v29 = vld [vmem:[#allocation90_spill] sm:$0xff]  ;;  %v5351_v25 = vld [vmem:[%s6679_s18 + $0x288] sm:$0xff] }
 0x3c4   : > { %9840 = vst [vmem:[#allocation69_spill] sm:$0xff] %v7876_v21  ;;  %v2766_v0 = vmul.f32 %v7876_v21, %v7876_v21  ;;  %2442 = vmatmul.f32.gmra.mxu1 %v9842_v5 }
 0x3c5   : > { %9841 = vst [vmem:[#allocation76_spill] sm:$0xff] %v7880_v61  ;;  %4986 = vmatmul.msk.f32.gmra.mxu0 %vm1340_vm10, %v9843_v16 }
 0x3c6   : > { %5040 = vmatmul.msk.f32.gmra.mxu2 %vm1340_vm10, %v9843_v16  ;;  %v2971_v4 = vsel %vm367_vm0, %v2766_v0, 0.0  ;;  %9845 = vst [vmem:[#allocation77_spill] sm:$0xff] %v7893_v33 }
 0x3c7   : > { %v2972_v57 = vadd.f32 %v2971_v4, %v2765_v49  ;;  %5121 = vmatmul.msk.f32.gmra.mxu3 %vm1340_vm10, %v5350_v38  ;;  %v9849_v49 = vld [vmem:[#allocation89_spill] sm:$0xff]  ;;  %v2767_v4 = vmul.f32 %v7893_v33, %v7893_v33 }
 0x3c9   : > { %v2028_v62 = vpop.f32.mrf.mxu2  ;;  %2973 = vadd.xlane.f32.xlu2 %v2972_v57  ;;  %v2398_v21 = vpop.f32.mrf.mxu1 }
 0x3ca   : > { %v7896_v5 = vadd.f32 %v9846_v6, %v2028_v62  ;;  %v1673_v45 = vpop.f32.mrf.mxu0  ;;  %v2574_v61 = vpop.f32.mrf.mxu3  ;;  %v9851_v62 = vld [vmem:[#allocation86_spill] sm:$0xff]  ;;  %v9853_v6 = vld [vmem:[#allocation93_spill] sm:$0xff] }
 0x3cb   : > { %v7900_v0 = vadd.f32 %v2574_v61, %v2395_v24  ;;  %v7913_v24 = vadd.f32 %v9851_v62, %v1673_v45  ;;  %v9857_v45 = vld [vmem:[#allocation95_spill] sm:$0xff]  ;;  %v5352_v62 = vld [vmem:[%s6679_s18 + $0x298] sm:$0xff] }
 0x3cc   : > { %9847 = vst [vmem:[#allocation78_spill] sm:$0xff] %v7896_v5  ;;  %v2768_v16 = vmul.f32 %v7896_v5, %v7896_v5  ;;  %2445 = vmatmul.f32.gmra.mxu1 %v9849_v49 }
 0x3cd   : > { %9848 = vst [vmem:[#allocation74_spill] sm:$0xff] %v7900_v0  ;;  %4987 = vmatmul.msk.f32.gmra.mxu0 %vm1340_vm10, %v9850_v29 }
 0x3ce   : > { %5041 = vmatmul.msk.f32.gmra.mxu2 %vm1340_vm10, %v9850_v29  ;;  %v2975_v57 = vsel %vm367_vm0, %v2768_v16, 0.0  ;;  %9852 = vst [vmem:[#allocation82_spill] sm:$0xff] %v7913_v24  ;;  %v9856_v16 = vld [vmem:[#allocation94_spill] sm:$0xff] }
 0x3cf   : > { %v2976_v38 = vadd.f32 %v2975_v57, %v2767_v4  ;;  %5122 = vmatmul.msk.f32.gmra.mxu3 %vm1340_vm10, %v5351_v25  ;;  %v2769_v4 = vmul.f32 %v7913_v24, %v7913_v24 }
 0x3d1   : > { %v2031_v61 = vpop.f32.mrf.mxu2  ;;  %2977 = vadd.xlane.f32.xlu0 %v2976_v38  ;;  %v2401_v57 = vpop.f32.mrf.mxu1 }
 0x3d2   : > { %v7916_v49 = vadd.f32 %v9853_v6, %v2031_v61  ;;  %v1676_v5 = vpop.f32.mrf.mxu0  ;;  %v2577_v33 = vpop.f32.mrf.mxu3  ;;  %v9860_v6 = vld [vmem:[#allocation99_spill] sm:$0xff] }
 0x3d3   : > { %v7920_v0 = vadd.f32 %v2577_v33, %v2398_v21  ;;  %v9858_v21 = vld [vmem:[#allocation92_spill] sm:$0xff] }
 0x3d4   : > { %9854 = vst [vmem:[#allocation83_spill] sm:$0xff] %v7916_v49  ;;  %v2770_v29 = vmul.f32 %v7916_v49, %v7916_v49  ;;  %2448 = vmatmul.f32.gmra.mxu1 %v9856_v16  ;;  %v7933_v33 = vadd.f32 %v9858_v21, %v1676_v5  ;;  %v2878_v49 = vpop.xlane.xlu2 %2877  ;;  %v5353_v21 = vld [vmem:[%s6679_s18 + $0x2a8] sm:$0xff] }
 0x3d5   : > { %9855 = vst [vmem:[#allocation84_spill] sm:$0xff] %v7920_v0  ;;  %4988 = vmatmul.msk.f32.gmra.mxu0 %vm1340_vm10, %v9857_v45 }
 0x3d6   : > { %5042 = vmatmul.msk.f32.gmra.mxu2 %vm1340_vm10, %v9857_v45  ;;  %v2979_v38 = vsel %vm367_vm0, %v2770_v29, 0.0  ;;  %9859 = vst [vmem:[#allocation80_spill] sm:$0xff] %v7933_v33  ;;  %v2771_v5 = vmul.f32 %v7933_v33, %v7933_v33 }
 0x3d7   : > { %v2980_v25 = vadd.f32 %v2979_v38, %v2769_v4  ;;  %5123 = vmatmul.msk.f32.gmra.mxu3 %vm1340_vm10, %v5352_v62  ;;  %v3016_v4 = vmul.f32 0.0051020407, %v2878_v49 }
 0x3d9   : > { %v2034_v61 = vpop.f32.mrf.mxu2  ;;  %2981 = vadd.xlane.f32.xlu1 %v2980_v25 }
 0x3da   : > { %v7936_v16 = vadd.f32 %v9860_v6, %v2034_v61  ;;  %v2580_v24 = vpop.f32.mrf.mxu3  ;;  %v1679_v0 = vpop.f32.mrf.mxu0 }
 0x3db   : > { %v7940_v29 = vadd.f32 %v2580_v24, %v2401_v57  ;;  %v2404_v24 = vpop.f32.mrf.mxu1 }
 0x3dc   : > { %9861 = vst [vmem:[#allocation88_spill] sm:$0xff] %v7936_v16  ;;  %v2772_v45 = vmul.f32 %v7936_v16, %v7936_v16  ;;  %2451 = vmatmul.f32.gmra.mxu1 %v7359_v59  ;;  %v9862_v59 = vld [vmem:[#allocation97_spill] sm:$0xff]  ;;  %v9864_v16 = vld [vmem:[#allocation102_spill] sm:$0xff] }
 0x3dd   : > { %v3070_v38 = vmul.f32 %v7940_v29, %v7940_v29  ;;  %4989 = vmatmul.msk.f32.gmra.mxu0 %vm1340_vm10, %v7365_v19  ;;  %v7955_v61 = vadd.f32 %v9862_v59, %v1679_v0 }
 0x3de   : > { %5043 = vmatmul.msk.f32.gmra.mxu2 %vm1340_vm10, %v7365_v19  ;;  %v2983_v25 = vsel %vm367_vm0, %v2772_v45, 0.0  ;;  %v2882_v19 = vpop.xlane.xlu0 %2881 }
 0x3df   : > { %v2984_v62 = vadd.f32 %v2983_v25, %v2771_v5  ;;  %v3124_v57 = vsub.f32 %v3016_v4, %v3070_v38  ;;  %5124 = vmatmul.msk.f32.gmra.mxu3 %vm1340_vm10, %v5353_v21  ;;  %9863 = vst [vmem:[#allocation89_spill] sm:$0xff] %v7955_v61  ;;  %v2773_v0 = vmul.f32 %v7955_v61, %v7955_v61  ;;  %v3017_v38 = vmul.f32 0.0051020407, %v2882_v19 }
 0x3e1   : > { %v2037_v49 = vpop.f32.mrf.mxu2  ;;  %2985 = vadd.xlane.f32.xlu2 %v2984_v62  ;;  %v3232_v6 = vadd.f32 1e-05, %v3124_v57 }
 0x3e2   : > { %v7958_v33 = vadd.f32 %v9864_v16, %v2037_v49  ;;  %v2583_v47 = vpop.f32.mrf.mxu3  ;;  %v1699_v4 = vpop.f32.mrf.mxu0 }
 0x3e3   : > { %5192 = vrsqrt.f32 %v3232_v6  ;;  %v7963_v5 = vadd.f32 %v2583_v47, %v2404_v24  ;;  %v9866_v47 = vld [vmem:[#allocation2_spill] sm:$0xff]  ;;  %v2407_v59 = vpop.f32.mrf.mxu1  ;;  %vm3517_vm12 = vweird.f32 %v3232_v6 }
 0x3e4   : > { %9865 = vst [vmem:[#allocation90_spill] sm:$0xff] %v7958_v33  ;;  %v2774_v45 = vmul.f32 %v7958_v33, %v7958_v33  ;;  %2454 = vmatmul.f32.gmra.mxu1 %v7383_v60  ;;  %v5354_v60 = vld [vmem:[%s6679_s18 + $0x2b8] sm:$0xff]  ;;  %v7977_v24 = vadd.f32 %v1699_v4, %v9866_v47  ;;  %v9868_v33 = vld [vmem:[#allocation3_spill] sm:$0xff] }
 0x3e5   : > { %4990 = vmatmul.msk.f32.gmra.mxu0 %vm1340_vm10, %v7389_v1  ;;  %v3071_v25 = vmul.f32 %v7963_v5, %v7963_v5  ;;  %v5355_v47 = vld [vmem:[%s6679_s18 + $0x2c8] sm:$0xff] }
 0x3e6   : > { %5044 = vmatmul.msk.f32.gmra.mxu2 %vm1340_vm10, %v7389_v1  ;;  %v2987_v16 = vsel %vm367_vm0, %v2774_v45, 0.0  ;;  %9867 = vst [vmem:[#allocation86_spill] sm:$0xff] %v7977_v24  ;;  %v2886_v45 = vpop.xlane.xlu1 %2885 }
 0x3e7   : > { %v2988_v62 = vadd.f32 %v2987_v16, %v2773_v0  ;;  %5125 = vmatmul.msk.f32.gmra.mxu3 %vm1340_vm10, %v5354_v60  ;;  %v3125_v57 = vsub.f32 %v3017_v38, %v3071_v25  ;;  %v2667_v38 = vmul.f32 %v7977_v24, %v7977_v24 }
 0x3e9   : > { %v2057_v21 = vpop.f32.mrf.mxu2  ;;  %2989 = vadd.xlane.f32.xlu0 %v2988_v62  ;;  %v5193_v49 = vpop.eup %5192  ;;  %v3233_v61 = vadd.f32 1e-05, %v3125_v57 }
 0x3ea   : > { %v7980_v1 = vadd.f32 %v2057_v21, %v9868_v33  ;;  %v3512_v19 = vmul.f32 %v5193_v49, %v3232_v6  ;;  %v2586_v37 = vpop.f32.mrf.mxu3  ;;  %v3018_v33 = vmul.f32 0.0051020407, %v2886_v45  ;;  %vm3518_vm11 = vweird.f32 %v5193_v49 }
 0x3eb   : > { %v7984_v16 = vadd.f32 %v2586_v37, %v2407_v59  ;;  %5194 = vrsqrt.f32 %v3233_v61  ;;  %vm3519_vm13 = vmor %vm3517_vm12, %vm3518_vm11  ;;  %vm3527_vm15 = vweird.f32 %v3233_v61 }
 0x3ec   : > { %9869 = vst [vmem:[#allocation93_spill] sm:$0xff] %v7980_v1  ;;  %v2668_v0 = vmul.f32 %v7980_v1, %v7980_v1  ;;  %2457 = vmatmul.f32.gmra.mxu1 %v7405_v9  ;;  %v3513_v4 = vmul.f32 %v5193_v49, %v3512_v19 }
 0x3ed   : > { %v3072_v25 = vmul.f32 %v7984_v16, %v7984_v16  ;;  %4991 = vmatmul.msk.f32.gmra.mxu0 %vm1340_vm10, %v7413_v56 }
 0x3ee   : > { %5045 = vmatmul.msk.f32.gmra.mxu2 %vm1340_vm10, %v7413_v56  ;;  %v2775_v37 = vsel %vm367_vm0, %v2668_v0, 0.0  ;;  %v3514_v9 = vmul.f32 0.5, %v3513_v4  ;;  %v3178_v0 = vld [vmem:[%s8005_s27 + $0xc8] sm:$0xff] }
 0x3ef   : > { %v2776_v62 = vadd.f32 %v2775_v37, %v2667_v38  ;;  %v3126_v60 = vsub.f32 %v3018_v33, %v3072_v25  ;;  %5126 = vmatmul.msk.f32.gmra.mxu3 %vm1340_vm10, %v5355_v47  ;;  %v5356_v38 = vld [vmem:[%s6679_s18 + $0x2d8] sm:$0xff]  ;;  %v5357_v47 = vld [vmem:[%s6679_s18 + $0x2e8] sm:$0xff] }
 0x3f0   : > { %v3515_v57 = vsub.f32 1.5, %v3514_v9  ;;  %v3179_v9 = vld [vmem:[%s8005_s27 + $0xd0] sm:$0xff] }
 0x3f1   : > { %2777 = vadd.xlane.f32.xlu1 %v2776_v62  ;;  %v3234_v21 = vadd.f32 1e-05, %v3126_v60  ;;  %v5195_v59 = vpop.eup %5194 }
 0x3f2   : > { %v3516_v45 = vmul.f32 %v5193_v49, %v3515_v57  ;;  %v3522_v19 = vmul.f32 %v5195_v59, %v3233_v61  ;;  %vm3528_vm14 = vweird.f32 %v5195_v59  ;;  %v3880_v57 = vld [vmem:[%s8021_s8 + $0xc8] sm:$0xff] }
 0x3f3   : > { %5196 = vrsqrt.f32 %v3234_v21  ;;  %vm3529_vm1 = vmor %vm3527_vm15, %vm3528_vm14  ;;  %vm3537_vm3 = vweird.f32 %v3234_v21 }
 0x3f4   : > { %2460 = vmatmul.f32.gmra.mxu1 %v7429_v43  ;;  %v3523_v56 = vmul.f32 %v5195_v59, %v3522_v19  ;;  %v3520_v4 = vsel %vm3519_vm13, %v5193_v49, %v3516_v45 }
 0x3f5   : > { %4992 = vmatmul.msk.f32.gmra.mxu0 %vm1340_vm10, %v7437_v26  ;;  %v3826_v37 = vmul.f32 %v3520_v4, %v3178_v0 }
 0x3f6   : > { %5046 = vmatmul.msk.f32.gmra.mxu2 %vm1340_vm10, %v7437_v26  ;;  %v3524_v43 = vmul.f32 0.5, %v3523_v56 }
 0x3f7   : > { %5127 = vmatmul.msk.f32.gmra.mxu3 %vm1340_vm10, %v5356_v38 }
 0x3f8   : > { %v3525_v25 = vsub.f32 1.5, %v3524_v43  ;;  %v5358_v43 = vld [vmem:[%s6679_s18 + $0x2f8] sm:$0xff] }
 0x3f9   : > { %v5197_v33 = vpop.eup %5196 }
 0x3fa   : > { %v3532_v6 = vmul.f32 %v5197_v33, %v3234_v21  ;;  %v3526_v62 = vmul.f32 %v5195_v59, %v3525_v25  ;;  %vm3538_vm2 = vweird.f32 %v5197_v33  ;;  %v2410_v21 = vpop.f32.mrf.mxu1 }
 0x3fb   : > { %vm3539_vm4 = vmor %vm3537_vm3, %vm3538_vm2 }
 0x3fc   : > { %2463 = vmatmul.f32.gmra.mxu1 %v7453_v15  ;;  %v3533_v26 = vmul.f32 %v5197_v33, %v3532_v6  ;;  %v3530_v49 = vsel %vm3529_vm1, %v5195_v59, %v3526_v62  ;;  %v3934_v15 = vmul.f32 %v3826_v37, %v7940_v29  ;;  %v3180_v29 = vld [vmem:[%s8005_s27 + $0xd8] sm:$0xff]  ;;  %v2890_v6 = vpop.xlane.xlu2 %2889 }
 0x3fd   : > { %4144 = vperm.xlu0 %5153, %v3826_v37   ;;  %4993 = vmatmul.msk.f32.gmra.mxu0 %vm1340_vm10, %v7461_v36  ;;  %v3827_v61 = vmul.f32 %v3530_v49, %v3179_v9  ;;  %v2060_v9 = vpop.f32.mrf.mxu2  ;;  %v5360_v49 = vld [vmem:[%s6679_s18 + $0x318] sm:$0xff] }
 0x3fe   : > { %5047 = vmatmul.msk.f32.gmra.mxu2 %vm1340_vm10, %v7461_v36  ;;  %v3534_v60 = vmul.f32 0.5, %v3533_v26  ;;  %v3988_v56 = vsub.f32 %v3880_v57, %v3934_v15  ;;  %v3881_v36 = vld [vmem:[%s8021_s8 + $0xd0] sm:$0xff] }
 0x3ff   : > { %5128 = vmatmul.msk.f32.gmra.mxu3 %vm1340_vm10, %v5357_v47  ;;  %4149 = vperm.xlu2 %5155, %v3827_v61   ;;  %v3935_v59 = vmul.f32 %v3827_v61, %v7963_v5  ;;  %v2894_v61 = vpop.xlane.xlu0 %2893 }
 0x400   : > { %v3535_v45 = vsub.f32 1.5, %v3534_v60 }
 0x401   : > { %v3989_v4 = vsub.f32 %v3881_v36, %v3935_v59  ;;  %v5361_v36 = vld [vmem:[%s6679_s18 + $0x328] sm:$0xff] }
 0x402   : > { %v3536_v19 = vmul.f32 %v5197_v33, %v3535_v45 }
 0x404   : > { %2466 = vmatmul.f32.gmra.mxu1 %v7477_v20  ;;  %v3540_v0 = vsel %vm3539_vm4, %v5197_v33, %v3536_v19  ;;  %v2589_v20 = vpop.f32.mrf.mxu3  ;;  %v3882_v33 = vld [vmem:[%s8021_s8 + $0xd8] sm:$0xff]  ;;  %v8063_v60 = vpop.xlane.xlu2 %2901 }
 0x405   : > { %4522 = vperm.xlu0 %5153, %v3988_v56   ;;  %4994 = vmatmul.msk.f32.gmra.mxu0 %vm1340_vm10, %v7485_v12  ;;  %v3828_v5 = vmul.f32 %v3540_v0, %v3180_v29  ;;  %v8050_v37 = vadd.f32 %v2589_v20, %v2410_v21  ;;  %v2063_v45 = vpop.f32.mrf.mxu2  ;;  %v9870_v29 = vld [vmem:[#allocation7_spill] sm:$0xff]  ;;  %v2898_v20 = vpop.xlane.xlu1 %2897 }
 0x406   : > { %5048 = vmatmul.msk.f32.gmra.mxu2 %vm1340_vm10, %v7485_v12  ;;  %v5359_v12 = vld [vmem:[%s6679_s18 + $0x308] sm:$0xff] }
 0x407   : > { %5129 = vmatmul.msk.f32.gmra.mxu3 %vm1340_vm10, %v5358_v43  ;;  %4527 = vperm.xlu2 %5155, %v3989_v4   ;;  %v3936_v38 = vmul.f32 %v3828_v5, %v7984_v16  ;;  %v2413_v16 = vpop.f32.mrf.mxu1 }
 0x409   : > { %v3990_v25 = vsub.f32 %v3882_v33, %v3936_v38 }
 0x40a   : > { %4154 = vperm.xlu1 %5154, %v3828_v5  }
 0x40c   : > { %2469 = vmatmul.f32.gmra.mxu1 %v7501_v27  ;;  %v3073_v27 = vmul.f32 %v8050_v37, %v8050_v37  ;;  %v2592_v62 = vpop.f32.mrf.mxu3  ;;  %v8082_v4 = vpop.xlane.xlu2 %2913 }
 0x40d   : > { %4995 = vmatmul.msk.f32.gmra.mxu0 %vm1340_vm10, %v7509_v13  ;;  %v8059_v26 = vadd.f32 %v2592_v62, %v2413_v16  ;;  %v9876_v16 = vld [vmem:[#allocation4_spill] sm:$0xff] }
 0x40e   : > { %5049 = vmatmul.msk.f32.gmra.mxu2 %vm1340_vm10, %v7509_v13  ;;  %v3019_v13 = vmul.f32 0.0051020407, %v2890_v6  ;;  %v5362_v6 = vld [vmem:[%s6679_s18 + $0x338] sm:$0xff] }
 0x40f   : > { %5130 = vmatmul.msk.f32.gmra.mxu3 %vm1340_vm10, %v5359_v12  ;;  %v3074_v47 = vmul.f32 %v8059_v26, %v8059_v26  ;;  %v2416_v19 = vpop.f32.mrf.mxu1  ;;  %v9874_v12 = vld [vmem:[#allocation6_spill] sm:$0xff] }
 0x410   : > { %v3127_v15 = vsub.f32 %v3019_v13, %v3073_v27 }
 0x412   : > { %4532 = vperm.xlu1 %5154, %v3990_v25   ;;  %v8068_v57 = vadd.f32 1e-05, %v3127_v15 }
 0x414   : > { %2472 = vmatmul.f32.gmra.mxu1 %v7525_v51  ;;  %v1702_v51 = vpop.f32.mrf.mxu0  ;;  %v2595_v56 = vpop.f32.mrf.mxu3  ;;  %5198 = vrsqrt.f32 %v8068_v57  ;;  %vm3547_vm6 = vweird.f32 %v8068_v57 }
 0x415   : > { %4996 = vmatmul.msk.f32.gmra.mxu0 %vm1340_vm10, %v7533_v44  ;;  %v8080_v0 = vadd.f32 %v2595_v56, %v2416_v19  ;;  %v8107_v62 = vadd.f32 %v1702_v51, %v9876_v16  ;;  %v8119_v56 = vpop.xlane.xlu0 %2905 }
 0x416   : > { %5050 = vmatmul.msk.f32.gmra.mxu2 %vm1340_vm10, %v7533_v44  ;;  %v3020_v44 = vmul.f32 0.0051020407, %v2894_v61  ;;  %v8113_v61 = vpop.xlane.xlu2 %2925 }
 0x417   : > { %5131 = vmatmul.msk.f32.gmra.mxu3 %vm1340_vm10, %v5360_v49  ;;  %9877 = vst [vmem:[#allocation99_spill] sm:$0xff] %v8107_v62  ;;  %v2669_v51 = vmul.f32 %v8107_v62, %v8107_v62  ;;  %v9900_v62 = vld [vmem:[#allocation98_spill] sm:$0xff] }
 0x418   : > { %v3128_v59 = vsub.f32 %v3020_v44, %v3074_v47  ;;  %v2066_v47 = vpop.f32.mrf.mxu2 }
 0x41a   : > { %v8084_v43 = vadd.f32 1e-05, %v3128_v59  ;;  %v5199_v33 = vpop.eup %5198 }
 0x41b   : > { %vm3548_vm5 = vweird.f32 %v5199_v33 }
 0x41c   : > { %2475 = vmatmul.f32.gmra.mxu1 %v7549_v52  ;;  %v8078_v52 = vadd.f32 %v2063_v45, %v9870_v29  ;;  %v1705_v5 = vpop.f32.mrf.mxu0  ;;  %5200 = vrsqrt.f32 %v8084_v43  ;;  %vm3549_vm7 = vmor %vm3547_vm6, %vm3548_vm5  ;;  %vm3557_vm9 = vweird.f32 %v8084_v43 }
 0x41d   : > { %4997 = vmatmul.msk.f32.gmra.mxu0 %vm1340_vm10, %v7557_v30  ;;  %v8097_v25 = vadd.f32 %v1705_v5, %v9874_v12 }
 0x41e   : > { %5051 = vmatmul.msk.f32.gmra.mxu2 %vm1340_vm10, %v7557_v30  ;;  %9871 = vst [vmem:[#allocation94_spill] sm:$0xff] %v8078_v52  ;;  %v9872_v30 = vld [vmem:[#allocation5_spill] sm:$0xff]  ;;  %v2672_v38 = vmul.f32 %v8078_v52, %v8078_v52 }
 0x41f   : > { %5132 = vmatmul.msk.f32.gmra.mxu3 %vm1340_vm10, %v5361_v36  ;;  %v8088_v21 = vadd.f32 %v2060_v9, %v9872_v30  ;;  %9875 = vst [vmem:[#allocation92_spill] sm:$0xff] %v8097_v25  ;;  %v3021_v9 = vmul.f32 0.0051020407, %v2898_v20  ;;  %v2671_v49 = vmul.f32 %v8097_v25, %v8097_v25  ;;  %v9878_v36 = vld [vmem:[#allocation9_spill] sm:$0xff]  ;;  %v5363_v30 = vld [vmem:[%s6679_s18 + $0x348] sm:$0xff] }
 0x420   : > { %v2783_v13 = vsel %vm367_vm0, %v2672_v38, 0.0  ;;  %v8122_v29 = vadd.f32 %v2066_v47, %v9878_v36  ;;  %v5364_v47 = vld [vmem:[%s6679_s18 + $0x358] sm:$0xff]  ;;  %v8145_v36 = vpop.xlane.xlu1 %2909 }
 0x421   : > { %9873 = vst [vmem:[#allocation95_spill] sm:$0xff] %v8088_v21  ;;  %v2670_v27 = vmul.f32 %v8088_v21, %v8088_v21  ;;  %v2784_v44 = vadd.f32 %v2783_v13, %v2671_v49  ;;  %v8138_v13 = vpop.xlane.xlu0 %2917  ;;  %v9888_v25 = vld [vmem:[#allocation101_spill] sm:$0xff] }
 0x422   : > { %v5201_v59 = vpop.eup %5200  ;;  %9879 = vst [vmem:[#allocation97_spill] sm:$0xff] %v8122_v29 }
 0x423   : > { %v2779_v45 = vsel %vm367_vm0, %v2670_v27, 0.0  ;;  %v3552_v38 = vmul.f32 %v5201_v59, %v8084_v43  ;;  %vm3558_vm8 = vweird.f32 %v5201_v59 }
 0x424   : > { %2478 = vmatmul.f32.gmra.mxu1 %v7573_v50  ;;  %v3075_v50 = vmul.f32 %v8080_v0, %v8080_v0  ;;  %v1708_v20 = vpop.f32.mrf.mxu0 }
 0x425   : > { %4998 = vmatmul.msk.f32.gmra.mxu0 %vm1340_vm10, %v7581_v3  ;;  %v3553_v16 = vmul.f32 %v5201_v59, %v3552_v38 }
 0x426   : > { %5052 = vmatmul.msk.f32.gmra.mxu2 %vm1340_vm10, %v7581_v3  ;;  %v3542_v3 = vmul.f32 %v5199_v33, %v8068_v57  ;;  %v3129_v15 = vsub.f32 %v3021_v9, %v3075_v50  ;;  %v2674_v50 = vmul.f32 %v8122_v29, %v8122_v29  ;;  %v9880_v9 = vld [vmem:[#allocation8_spill] sm:$0xff]  ;;  %v2069_v29 = vpop.f32.mrf.mxu2 }
 0x427   : > { %5133 = vmatmul.msk.f32.gmra.mxu3 %vm1340_vm10, %v5362_v6  ;;  %v8132_v6 = vpop.xlane.xlu2 %2937  ;;  %v8135_v27 = vadd.f32 %v1708_v20, %v9880_v9  ;;  %v3181_v20 = vld [vmem:[%s8005_s27 + $0xe0] sm:$0xff] }
 0x428   : > { %v3543_v19 = vmul.f32 %v5199_v33, %v3542_v3  ;;  %v8124_v5 = vadd.f32 1e-05, %v3129_v15  ;;  %v2787_v49 = vsel %vm367_vm0, %v2674_v50, 0.0 }
 0x429   : > { %9881 = vst [vmem:[#allocation102_spill] sm:$0xff] %v8135_v27  ;;  %v2673_v15 = vmul.f32 %v8135_v27, %v8135_v27 }
 0x42a   : > { %v3544_v12 = vmul.f32 0.5, %v3543_v19  ;;  %5202 = vrsqrt.f32 %v8124_v5  ;;  %vm3567_vm12 = vweird.f32 %v8124_v5 }
 0x42b   : > { %v2788_v19 = vadd.f32 %v2787_v49, %v2673_v15 }
 0x42c   : > { %2481 = vmatmul.f32.gmra.mxu1 %v7597_v41  ;;  %v2780_v41 = vadd.f32 %v2779_v45, %v2669_v51  ;;  %v3545_v3 = vsub.f32 1.5, %v3544_v12  ;;  %v3554_v45 = vmul.f32 0.5, %v3553_v16  ;;  %v8152_v12 = vpop.xlane.xlu0 %2929 }
 0x42e   : > { %v3546_v51 = vmul.f32 %v5199_v33, %v3545_v3  ;;  %v8154_v3 = vpop.xlane.xlu1 %2921 }
 0x42f   : > { %2785 = vadd.xlane.f32.xlu0 %v2784_v44  ;;  %5134 = vmatmul.msk.f32.gmra.mxu3 %vm1340_vm10, %v5363_v30  ;;  %v8149_v30 = vpop.xlane.xlu2 %2949 }
 0x430   : > { %2781 = vadd.xlane.f32.xlu2 %v2780_v41  ;;  %v5203_v44 = vpop.eup %5202  ;;  %v3555_v41 = vsub.f32 1.5, %v3554_v45  ;;  %v3550_v38 = vsel %vm3549_vm7, %v5199_v33, %v3546_v51  ;;  %v3883_v45 = vld [vmem:[%s8021_s8 + $0xe0] sm:$0xff] }
 0x431   : > { %v3829_v9 = vmul.f32 %v3550_v38, %v3181_v20  ;;  %vm3568_vm11 = vweird.f32 %v5203_v44 }
 0x432   : > { %v3556_v16 = vmul.f32 %v5201_v59, %v3555_v41  ;;  %vm3569_vm13 = vmor %vm3567_vm12, %vm3568_vm11 }
 0x433   : > { %v3937_v15 = vmul.f32 %v3829_v9, %v8050_v37  ;;  %v3884_v37 = vld [vmem:[%s8021_s8 + $0xe8] sm:$0xff] }
 0x434   : > { %2484 = vmatmul.f32.gmra.mxu1 %v7618_v42  ;;  %v3562_v42 = vmul.f32 %v5203_v44, %v8124_v5  ;;  %v8162_v51 = vpop.xlane.xlu0 %2941 }
 0x435   : > { %v3991_v41 = vsub.f32 %v3883_v45, %v3937_v15 }
 0x436   : > { %v3563_v50 = vmul.f32 %v5203_v44, %v3562_v42  ;;  %v8164_v20 = vpop.xlane.xlu1 %2933 }
 0x437   : > { %5135 = vmatmul.msk.f32.gmra.mxu3 %vm1340_vm10, %v5364_v47  ;;  %vm3559_vm10 = vmor %vm3557_vm9, %vm3558_vm8  ;;  %v8157_v49 = vpop.xlane.xlu2 %2961  ;;  %v3182_v47 = vld [vmem:[%s8005_s27 + $0xe8] sm:$0xff] }
 0x438   : > { %v3564_v57 = vmul.f32 0.5, %v3563_v50  ;;  %v3560_v33 = vsel %vm3559_vm10, %v5201_v59, %v3556_v16 }
 0x43a   : > { %v3565_v42 = vsub.f32 1.5, %v3564_v57 }
 0x43c   : > { %2789 = vadd.xlane.f32.xlu1 %v2788_v19  ;;  %v3830_v19 = vmul.f32 %v3560_v33, %v3182_v47  ;;  %v3566_v38 = vmul.f32 %v5203_v44, %v3565_v42  ;;  %v8171_v59 = vpop.xlane.xlu0 %2953  ;;  %v2419_v33 = vpop.f32.mrf.mxu1 }
 0x43e   : > { %v3938_v43 = vmul.f32 %v3830_v19, %v8059_v26  ;;  %v3570_v16 = vsel %vm3569_vm13, %v5203_v44, %v3566_v38  ;;  %v8174_v47 = vpop.xlane.xlu1 %2945  ;;  %v2598_v26 = vpop.f32.mrf.mxu3 }
 0x43f   : > { %v8167_v50 = vpop.xlane.xlu2 %2973  ;;  %v8179_v42 = vadd.f32 %v2598_v26, %v2419_v33  ;;  %v1711_v33 = vpop.f32.mrf.mxu0 }
 0x440   : > { %9882 = vst [vmem:[#allocation2_spill] sm:$0xff] %v8167_v50  ;;  %v3992_v57 = vsub.f32 %v3884_v37, %v3938_v43 }
 0x441   : > { %v3076_v44 = vmul.f32 %v8179_v42, %v8179_v42 }
 0x443   : > { %4159 = vperm.xlu0 %5153, %v3829_v9   ;;  %v3183_v9 = vld [vmem:[%s8005_s27 + $0xf0] sm:$0xff] }
 0x444   : > { %v3831_v15 = vmul.f32 %v3570_v16, %v3183_v9  ;;  %v8181_v5 = vpop.xlane.xlu0 %2965  ;;  %v3022_v9 = vmul.f32 0.0051020407, %v8063_v60  ;;  %v2422_v16 = vpop.f32.mrf.mxu1 }
 0x445   : > { %9884 = vst [vmem:[#allocation7_spill] sm:$0xff] %v8181_v5 }
 0x446   : > { %v8186_v38 = vpop.xlane.xlu1 %2957 }
 0x448   : > { %4164 = vperm.xlu2 %5155, %v3830_v19   ;;  %v3939_v19 = vmul.f32 %v3831_v15, %v8080_v0  ;;  %v3130_v0 = vsub.f32 %v3022_v9, %v3076_v44  ;;  %v3023_v9 = vmul.f32 0.0051020407, %v8119_v56  ;;  %v9893_v56 = vld [vmem:[#allocation12_spill] sm:$0xff] }
 0x44a   : > { %v8193_v27 = vadd.f32 1e-05, %v3130_v0  ;;  %v1714_v0 = vpop.f32.mrf.mxu0 }
 0x44b   : > { %4537 = vperm.xlu0 %5153, %v3991_v41   ;;  %v3885_v41 = vld [vmem:[%s8021_s8 + $0xf0] sm:$0xff]  ;;  %v8223_v53 = vadd.f32 %v1714_v0, %v9893_v56 }
 0x44c   : > { %v3993_v43 = vsub.f32 %v3885_v41, %v3939_v19  ;;  %v9887_v19 = vld [vmem:[#allocation100_spill] sm:$0xff]  ;;  %5204 = vrsqrt.f32 %v8193_v27  ;;  %vm3577_vm15 = vweird.f32 %v8193_v27 }
 0x44d   : > { %9894 = vst [vmem:[#allocation100_spill] sm:$0xff] %v8223_v53 }
 0x44e   : > { %v8195_v52 = vpop.xlane.xlu1 %2969 }
 0x44f   : > { %9886 = vst [vmem:[#allocation6_spill] sm:$0xff] %v8195_v52 }
 0x450   : > { %4542 = vperm.xlu2 %5155, %v3992_v57   ;;  %v2601_v57 = vpop.f32.mrf.mxu3 }
 0x451   : > { %v8191_v26 = vadd.f32 %v2601_v57, %v2422_v16 }
 0x453   : > { %v3077_v60 = vmul.f32 %v8191_v26, %v8191_v26 }
 0x454   : > { %v8176_v45 = vpop.xlane.xlu2 %2985 }
 0x455   : > { %9883 = vst [vmem:[#allocation3_spill] sm:$0xff] %v8176_v45  ;;  %4169 = vperm.xlu1 %5154, %v3831_v15   ;;  %v8189_v15 = vpop.xlane.xlu0 %2977  ;;  %v2072_v45 = vpop.f32.mrf.mxu2  ;;  %v3131_v57 = vsub.f32 %v3023_v9, %v3077_v60 }
 0x456   : > { %9885 = vst [vmem:[#allocation5_spill] sm:$0xff] %v8189_v15 }
 0x458   : > { %v2604_v15 = vpop.f32.mrf.mxu3 }
 0x45c   : > { %v4150_v37 = vpop.permute.xlu2 %4149 }
 0x45d   : > { %4547 = vperm.xlu1 %5154, %v3993_v43   ;;  %v4339_v41 = vmul.f32 %v4150_v37, %v9887_v19  ;;  %v4340_v1 = vmul.f32 %v4150_v37, %v9888_v25  ;;  %v8210_v25 = vpop.xlane.xlu0 %2989  ;;  %v9890_v37 = vld [vmem:[#allocation13_spill] sm:$0xff]  ;;  %v2425_v19 = vpop.f32.mrf.mxu1 }
 0x45e   : > { %9889 = vst [vmem:[#allocation4_spill] sm:$0xff] %v8210_v25  ;;  %v8213_v16 = vadd.f32 %v2072_v45, %v9890_v37  ;;  %v8225_v25 = vadd.f32 1e-05, %v3131_v57  ;;  %v9895_v45 = vld [vmem:[#allocation11_spill] sm:$0xff]  ;;  %v8230_v60 = vadd.f32 %v2604_v15, %v2425_v19  ;;  %v3024_v19 = vmul.f32 0.0051020407, %v8145_v36 }
 0x45f   : > { %v8228_v37 = vadd.f32 %v2069_v29, %v9895_v45  ;;  %v9897_v29 = vld [vmem:[#allocation10_spill] sm:$0xff] }
 0x460   : > { %9891 = vst [vmem:[#allocation9_spill] sm:$0xff] %v8213_v16  ;;  %5206 = vrsqrt.f32 %v8225_v25  ;;  %v3078_v57 = vmul.f32 %v8230_v60, %v8230_v60  ;;  %v8242_v56 = vadd.f32 %v1711_v33, %v9897_v29  ;;  %vm3587_vm3 = vweird.f32 %v8225_v25 }
 0x461   : > { %9896 = vst [vmem:[#allocation101_spill] sm:$0xff] %v8228_v37  ;;  %v2676_v0 = vmul.f32 %v8228_v37, %v8228_v37 }
 0x462   : > { %9898 = vst [vmem:[#allocation13_spill] sm:$0xff] %v8242_v56  ;;  %v2675_v33 = vmul.f32 %v8242_v56, %v8242_v56 }
 0x463   : > { %v2791_v50 = vsel %vm367_vm0, %v2676_v0, 0.0 }
 0x464   : > { %v4528_v24 = vpop.permute.xlu2 %4527  ;;  %v2792_v52 = vadd.f32 %v2791_v50, %v2675_v33  ;;  %v9903_v50 = vld [vmem:[#allocation14_spill] sm:$0xff] }
 0x465   : > { %v4717_v44 = vadd.f32 %v4528_v24, %v4339_v41  ;;  %v4718_v43 = vadd.f32 %v4528_v24, %v4340_v1  ;;  %v2678_v41 = vmul.f32 %v8213_v16, %v8213_v16  ;;  %v8220_v24 = vpop.xlane.xlu1 %2981  ;;  %v5205_v1 = vpop.eup %5204  ;;  %v2677_v16 = vmul.f32 %v8223_v53, %v8223_v53  ;;  %v9899_v53 = vld [vmem:[#allocation96_spill] sm:$0xff] }
 0x466   : > { %9892 = vst [vmem:[#allocation8_spill] sm:$0xff] %v8220_v24  ;;  %v5207_v63 = vpop.eup %5206  ;;  %vm3578_vm14 = vweird.f32 %v5205_v1 }
 0x467   : > { %4825 = vst [vmem:[%s8206_s11 + $0x1a0] sm:$0xff] %v4717_v44  ;;  %v2795_v9 = vsel %vm367_vm0, %v2678_v41, 0.0  ;;  %v3132_v41 = vsub.f32 %v3024_v19, %v3078_v57  ;;  %v9901_v57 = vld [vmem:[#allocation15_spill] sm:$0xff]  ;;  %vm3579_vm1 = vmor %vm3577_vm15, %vm3578_vm14  ;;  %vm3588_vm2 = vweird.f32 %v5207_v63 }
 0x468   : > { %4826 = vst.msk [vmem:[%s8206_s11 + $0x1a8] sm:$0xff] %vm367_vm0, %v4718_v43  ;;  %v3572_v43 = vmul.f32 %v5205_v1, %v8193_v27  ;;  %v2796_v15 = vadd.f32 %v2795_v9, %v2677_v16  ;;  %v2075_v16 = vpop.f32.mrf.mxu2  ;;  %vm3589_vm4 = vmor %vm3587_vm3, %vm3588_vm2 }
 0x469   : > { %v8254_v19 = vadd.f32 %v2075_v16, %v9901_v57 }
 0x46a   : > { %v3573_v45 = vmul.f32 %v5205_v1, %v3572_v43 }
 0x46b   : > { %9902 = vst [vmem:[#allocation12_spill] sm:$0xff] %v8254_v19 }
 0x46c   : > { %v3574_v36 = vmul.f32 0.5, %v3573_v45 }
 0x46d   : > { %v8245_v24 = vpop.xlane.xlu1 %2777 }
 0x46f   : > { %v4145_v44 = vpop.permute.xlu0 %4144 }
 0x470   : > { %v4337_v21 = vmul.f32 %v4145_v44, %v9899_v53  ;;  %v4338_v37 = vmul.f32 %v4145_v44, %v9900_v62  ;;  %v3240_v53 = vadd.f32 1e-05, %v3132_v41  ;;  %v3575_v62 = vsub.f32 1.5, %v3574_v36  ;;  %v1717_v44 = vpop.f32.mrf.mxu0 }
 0x472   : > { %5208 = vrsqrt.f32 %v3240_v53  ;;  %v3576_v45 = vmul.f32 %v5205_v1, %v3575_v62  ;;  %vm3597_vm6 = vweird.f32 %v3240_v53 }
 0x475   : > { %2797 = vadd.xlane.f32.xlu0 %v2796_v15  ;;  %v3582_v15 = vmul.f32 %v5207_v63, %v8225_v25  ;;  %v2607_v25 = vpop.f32.mrf.mxu3 }
 0x477   : > { %v4523_v9 = vpop.permute.xlu0 %4522  ;;  %v3583_v56 = vmul.f32 %v5207_v63, %v3582_v15  ;;  %v3580_v15 = vsel %vm3579_vm1, %v5205_v1, %v3576_v45  ;;  %v3886_v45 = vld [vmem:[%s8021_s8 + $0xf8] sm:$0xff] }
 0x478   : > { %v4715_v43 = vadd.f32 %v4523_v9, %v4337_v21  ;;  %v4716_v29 = vadd.f32 %v4523_v9, %v4338_v37  ;;  %v2680_v21 = vmul.f32 %v8254_v19, %v8254_v19  ;;  %v8262_v37 = vadd.f32 %v1717_v44, %v9903_v50  ;;  %v9905_v9 = vld [vmem:[#allocation103_spill] sm:$0xff] }
 0x479   : > { %2793 = vadd.xlane.f32.xlu2 %v2792_v52  ;;  %v3584_v41 = vmul.f32 0.5, %v3583_v56 }
 0x47a   : > { %4823 = vst [vmem:[%s8206_s11 + $0x190] sm:$0xff] %v4715_v43  ;;  %v2799_v52 = vsel %vm367_vm0, %v2680_v21, 0.0  ;;  %v2679_v33 = vmul.f32 %v8262_v37, %v8262_v37  ;;  %v5209_v43 = vpop.eup %5208 }
 0x47b   : > { %4824 = vst.msk [vmem:[%s8206_s11 + $0x198] sm:$0xff] %vm367_vm0, %v4716_v29  ;;  %v3184_v29 = vld [vmem:[%s8005_s27 + $0xf8] sm:$0xff]  ;;  %v3585_v44 = vsub.f32 1.5, %v3584_v41  ;;  %v3592_v50 = vmul.f32 %v5209_v43, %v3240_v53  ;;  %vm3598_vm5 = vweird.f32 %v5209_v43  ;;  %v3888_v53 = vld [vmem:[%s8021_s8 + $0x108] sm:$0xff] }
 0x47c   : > { %v4155_v0 = vpop.permute.xlu1 %4154  ;;  %9904 = vst [vmem:[#allocation11_spill] sm:$0xff] %v8262_v37  ;;  %v2800_v56 = vadd.f32 %v2799_v52, %v2679_v33  ;;  %v3832_v21 = vmul.f32 %v3580_v15, %v3184_v29  ;;  %v3887_v15 = vld [vmem:[%s8021_s8 + $0x100] sm:$0xff]  ;;  %vm3599_vm7 = vmor %vm3597_vm6, %vm3598_vm5 }
 0x47d   : > { %v4341_v16 = vmul.f32 %v4155_v0, %v7399_v58  ;;  %v4342_v36 = vmul.f32 %v4155_v0, %v9905_v9  ;;  %v3586_v58 = vmul.f32 %v5207_v63, %v3585_v44  ;;  %v3593_v1 = vmul.f32 %v5209_v43, %v3592_v50 }
 0x47e   : > { %v3940_v0 = vmul.f32 %v3832_v21, %v8179_v42  ;;  %v2428_v42 = vpop.f32.mrf.mxu1 }
 0x47f   : > { %v3590_v52 = vsel %vm3589_vm4, %v5207_v63, %v3586_v58  ;;  %v3594_v41 = vmul.f32 0.5, %v3593_v1 }
 0x480   : > { %v3994_v33 = vsub.f32 %v3886_v45, %v3940_v0  ;;  %v1720_v45 = vpop.f32.mrf.mxu0 }
 0x484   : > { %v4533_v57 = vpop.permute.xlu1 %4532 }
 0x485   : > { %v4719_v62 = vadd.f32 %v4533_v57, %v4341_v16  ;;  %v4720_v27 = vadd.f32 %v4533_v57, %v4342_v36  ;;  %v3185_v16 = vld [vmem:[%s8005_s27 + $0x100] sm:$0xff]  ;;  %v3595_v36 = vsub.f32 1.5, %v3594_v41 }
 0x486   : > { %v3833_v9 = vmul.f32 %v3590_v52, %v3185_v16  ;;  %v2431_v41 = vpop.f32.mrf.mxu1 }
 0x487   : > { %4827 = vst [vmem:[%s8206_s11 + $0x1b0] sm:$0xff] %v4719_v62  ;;  %2801 = vadd.xlane.f32.xlu1 %v2800_v56  ;;  %v3596_v57 = vmul.f32 %v5209_v43, %v3595_v36  ;;  %v8281_v56 = vadd.f32 %v2607_v25, %v2428_v42 }
 0x488   : > { %4828 = vst.msk [vmem:[%s8206_s11 + $0x1b8] sm:$0xff] %vm367_vm0, %v4720_v27  ;;  %v3941_v29 = vmul.f32 %v3833_v9, %v8191_v26  ;;  %v3186_v27 = vld [vmem:[%s8005_s27 + $0x108] sm:$0xff]  ;;  %v3025_v26 = vmul.f32 0.0051020407, %v8082_v4 }
 0x489   : > { %4174 = vperm.xlu0 %5153, %v3832_v21   ;;  %v3600_v63 = vsel %vm3599_vm7, %v5209_v43, %v3596_v57  ;;  %v2078_v21 = vpop.f32.mrf.mxu2  ;;  %v3079_v50 = vmul.f32 %v8281_v56, %v8281_v56  ;;  %v3046_v43 = vmul.f32 %v7433_v22, %v7433_v22 }
 0x48a   : > { %v3995_v62 = vsub.f32 %v3887_v15, %v3941_v29  ;;  %v3834_v44 = vmul.f32 %v3600_v63, %v3186_v27  ;;  %v3026_v27 = vmul.f32 0.0051020407, %v8138_v13  ;;  %v1723_v63 = vpop.f32.mrf.mxu0 }
 0x48b   : > { %v3133_v0 = vsub.f32 %v3025_v26, %v3079_v50 }
 0x48c   : > { %v3942_v58 = vmul.f32 %v3834_v44, %v8230_v60  ;;  %v9906_v60 = vld [vmem:[#allocation19_spill] sm:$0xff] }
 0x48e   : > { %v3996_v52 = vsub.f32 %v3888_v53, %v3942_v58  ;;  %v9908_v53 = vld [vmem:[#allocation18_spill] sm:$0xff] }
 0x491   : > { %4552 = vperm.xlu0 %5153, %v3994_v33   ;;  %4179 = vperm.xlu2 %5155, %v3833_v9   ;;  %v2610_v33 = vpop.f32.mrf.mxu3  ;;  %v8290_v9 = vadd.f32 1e-05, %v3133_v0  ;;  %v2081_v29 = vpop.f32.mrf.mxu2  ;;  %v8308_v0 = vadd.f32 %v1723_v63, %v9908_v53  ;;  %v9912_v53 = vld [vmem:[#allocation107_spill] sm:$0xff] }
 0x492   : > { %v8292_v15 = vadd.f32 %v2610_v33, %v2431_v41  ;;  %v8296_v57 = vadd.f32 %v2081_v29, %v9906_v60  ;;  %v2434_v33 = vpop.f32.mrf.mxu1 }
 0x493   : > { %5210 = vrsqrt.f32 %v8290_v9  ;;  %9909 = vst [vmem:[#allocation96_spill] sm:$0xff] %v8308_v0  ;;  %v2683_v63 = vmul.f32 %v8308_v0, %v8308_v0  ;;  %vm3607_vm12 = vweird.f32 %v8290_v9 }
 0x494   : > { %9907 = vst [vmem:[#allocation10_spill] sm:$0xff] %v8296_v57 }
 0x499   : > { %4557 = vperm.xlu2 %5155, %v3995_v62   ;;  %v3080_v62 = vmul.f32 %v8292_v15, %v8292_v15  ;;  %v8305_v50 = vpop.eup %5210 }
 0x49a   : > { %v3602_v41 = vmul.f32 %v8305_v50, %v8290_v9  ;;  %vm3608_vm11 = vweird.f32 %v8305_v50 }
 0x49b   : > { %v3134_v26 = vsub.f32 %v3026_v27, %v3080_v62  ;;  %v9910_v62 = vld [vmem:[#allocation17_spill] sm:$0xff]  ;;  %vm3609_vm13 = vmor %vm3607_vm12, %vm3608_vm11 }
 0x49c   : > { %v8317_v27 = vadd.f32 %v2078_v21, %v9910_v62  ;;  %v3603_v5 = vmul.f32 %v8305_v50, %v3602_v41  ;;  %v9916_v62 = vld [vmem:[#allocation106_spill] sm:$0xff] }
 0x49d   : > { %v8313_v13 = vadd.f32 1e-05, %v3134_v26 }
 0x49e   : > { %9911 = vst [vmem:[#allocation98_spill] sm:$0xff] %v8317_v27  ;;  %v2682_v21 = vmul.f32 %v8317_v27, %v8317_v27  ;;  %v3604_v41 = vmul.f32 0.5, %v3603_v5 }
 0x49f   : > { %vm3617_vm15 = vweird.f32 %v8313_v13 }
 0x4a0   : > { %4184 = vperm.xlu1 %5154, %v3834_v44   ;;  %v2684_v44 = vmul.f32 %v8296_v57, %v8296_v57 }
 0x4a2   : > { %v8298_v42 = vpop.xlane.xlu0 %2785 }
 0x4a3   : > { %v2782_v1 = vpop.xlane.xlu2 %2781 }
 0x4a4   : > { %v2992_v16 = vmul.f32 0.0051020407, %v2782_v1 }
 0x4a6   : > { %v3100_v36 = vsub.f32 %v2992_v16, %v3046_v43  ;;  %v2807_v43 = vsel %vm367_vm0, %v2684_v44, 0.0 }
 0x4a7   : > { %v2808_v34 = vadd.f32 %v2807_v43, %v2683_v63 }
 0x4a8   : > { %4562 = vperm.xlu1 %5154, %v3996_v52   ;;  %v3208_v4 = vadd.f32 1e-05, %v3100_v36  ;;  %v2613_v36 = vpop.f32.mrf.mxu3 }
 0x4a9   : > { %v8322_v57 = vadd.f32 %v2613_v36, %v2434_v33 }
 0x4aa   : > { %5212 = vrsqrt.f32 %v3208_v4  ;;  %vm3277_vm9 = vweird.f32 %v3208_v4 }
 0x4ab   : > { %v4165_v25 = vpop.permute.xlu2 %4164  ;;  %5214 = vrsqrt.f32 %v8313_v13 }
 0x4ac   : > { %v4345_v60 = vmul.f32 %v4165_v25, %v7447_v11  ;;  %v4346_v44 = vmul.f32 %v4165_v25, %v9912_v53  ;;  %v9913_v25 = vld [vmem:[#allocation16_spill] sm:$0xff] }
 0x4b0   : > { %v5213_v58 = vpop.eup %5212 }
 0x4b1   : > { %v3272_v1 = vmul.f32 %v5213_v58, %v3208_v4  ;;  %vm3278_vm8 = vweird.f32 %v5213_v58  ;;  %v5215_v63 = vpop.eup %5214 }
 0x4b2   : > { %vm3279_vm10 = vmor %vm3277_vm9, %vm3278_vm8  ;;  %vm3618_vm14 = vweird.f32 %v5215_v63 }
 0x4b3   : > { %v4543_v16 = vpop.permute.xlu2 %4542  ;;  %v3273_v29 = vmul.f32 %v5213_v58, %v3272_v1  ;;  %v8332_v1 = vadd.f32 %v1720_v45, %v9913_v25  ;;  %v8340_v45 = vpop.xlane.xlu1 %2789  ;;  %vm3619_vm1 = vmor %vm3617_vm15, %vm3618_vm14 }
 0x4b4   : > { %v4723_v37 = vadd.f32 %v4543_v16, %v4345_v60  ;;  %v4724_v26 = vadd.f32 %v4543_v16, %v4346_v44  ;;  %v3081_v16 = vmul.f32 %v8322_v57, %v8322_v57  ;;  %v3027_v60 = vmul.f32 0.0051020407, %v8154_v3  ;;  %v2084_v25 = vpop.f32.mrf.mxu2 }
 0x4b5   : > { %v4160_v52 = vpop.permute.xlu0 %4159  ;;  %v3274_v19 = vmul.f32 0.5, %v3273_v29  ;;  %9914 = vst [vmem:[#allocation15_spill] sm:$0xff] %v8332_v1  ;;  %v3154_v29 = vld [vmem:[%s8005_s27 + $0x8] sm:$0xff]  ;;  %v2681_v53 = vmul.f32 %v8332_v1, %v8332_v1  ;;  %v3612_v3 = vmul.f32 %v5215_v63, %v8313_v13  ;;  %v3189_v13 = vld [vmem:[%s8005_s27 + $0x120] sm:$0xff] }
 0x4b6   : > { %4831 = vst [vmem:[%s8206_s11 + $0x1d0] sm:$0xff] %v4723_v37  ;;  %v9915_v37 = vld [vmem:[#allocation105_spill] sm:$0xff]  ;;  %v4344_v4 = vmul.f32 %v4160_v52, %v9916_v62  ;;  %v3135_v5 = vsub.f32 %v3027_v60, %v3081_v16 }
 0x4b7   : > { %v3275_v11 = vsub.f32 1.5, %v3274_v19  ;;  %4832 = vst.msk [vmem:[%s8206_s11 + $0x1d8] sm:$0xff] %vm367_vm0, %v4724_v26  ;;  %v4343_v36 = vmul.f32 %v4160_v52, %v9915_v37 }
 0x4b8   : > { %v3243_v16 = vadd.f32 1e-05, %v3135_v5 }
 0x4b9   : > { %v3276_v33 = vmul.f32 %v5213_v58, %v3275_v11  ;;  %v3605_v11 = vsub.f32 1.5, %v3604_v41  ;;  %v1726_v41 = vpop.f32.mrf.mxu0 }
 0x4ba   : > { %5216 = vrsqrt.f32 %v3243_v16  ;;  %vm3627_vm3 = vweird.f32 %v3243_v16 }
 0x4bb   : > { %2809 = vadd.xlane.f32.xlu0 %v2808_v34  ;;  %v3280_v19 = vsel %vm3279_vm10, %v5213_v58, %v3276_v33  ;;  %v2803_v34 = vsel %vm367_vm0, %v2682_v21, 0.0  ;;  %v9917_v21 = vld [vmem:[#allocation21_spill] sm:$0xff] }
 0x4bc   : > { %v8345_v58 = vmul.f32 %v3280_v19, %v3154_v29  ;;  %v2804_v33 = vadd.f32 %v2803_v34, %v2681_v53  ;;  %v8356_v37 = vadd.f32 %v2084_v25, %v9917_v21  ;;  %v3613_v19 = vmul.f32 %v5215_v63, %v3612_v3  ;;  %v9919_v34 = vld [vmem:[#allocation20_spill] sm:$0xff] }
 0x4bd   : > { %v4538_v43 = vpop.permute.xlu0 %4537  ;;  %v8366_v62 = vadd.f32 %v1726_v41, %v9919_v34 }
 0x4be   : > { %v4721_v44 = vadd.f32 %v4538_v43, %v4343_v36  ;;  %v4722_v26 = vadd.f32 %v4538_v43, %v4344_v4  ;;  %v8353_v52 = vmul.f32 %v8345_v58, %v7433_v22  ;;  %9918 = vst [vmem:[#allocation14_spill] sm:$0xff] %v8356_v37  ;;  %v3606_v43 = vmul.f32 %v8305_v50, %v3605_v11  ;;  %v3187_v22 = vld [vmem:[%s8005_s27 + $0x110] sm:$0xff] }
 0x4bf   : > { %v2686_v29 = vmul.f32 %v8356_v37, %v8356_v37  ;;  %9920 = vst [vmem:[#allocation103_spill] sm:$0xff] %v8366_v62  ;;  %v3614_v4 = vmul.f32 0.5, %v3613_v19  ;;  %v2685_v9 = vmul.f32 %v8366_v62, %v8366_v62  ;;  %v3889_v19 = vld [vmem:[%s8021_s8 + $0x110] sm:$0xff] }
 0x4c0   : > { %4829 = vst [vmem:[%s8206_s11 + $0x1c0] sm:$0xff] %v4721_v44  ;;  %v3610_v60 = vsel %vm3609_vm13, %v8305_v50, %v3606_v43  ;;  %v5217_v25 = vpop.eup %5216 }
 0x4c1   : > { %4830 = vst.msk [vmem:[%s8206_s11 + $0x1c8] sm:$0xff] %vm367_vm0, %v4722_v26  ;;  %v3835_v53 = vmul.f32 %v3610_v60, %v3187_v22  ;;  %v2811_v44 = vsel %vm367_vm0, %v2686_v29, 0.0  ;;  %v9921_v26 = vld [vmem:[#allocation109_spill] sm:$0xff]  ;;  %v3622_v29 = vmul.f32 %v5217_v25, %v3243_v16  ;;  %vm3628_vm2 = vweird.f32 %v5217_v25 }
 0x4c2   : > { %2805 = vadd.xlane.f32.xlu2 %v2804_v33  ;;  %v3615_v33 = vsub.f32 1.5, %v3614_v4  ;;  %v2812_v43 = vadd.f32 %v2811_v44, %v2685_v9  ;;  %v3188_v60 = vld [vmem:[%s8005_s27 + $0x118] sm:$0xff]  ;;  %vm3629_vm4 = vmor %vm3627_vm3, %vm3628_vm2 }
 0x4c3   : > { %v3943_v41 = vmul.f32 %v3835_v53, %v8281_v56  ;;  %v3890_v9 = vld [vmem:[%s8021_s8 + $0x118] sm:$0xff] }
 0x4c4   : > { %v3616_v22 = vmul.f32 %v5215_v63, %v3615_v33 }
 0x4c6   : > { %v3620_v34 = vsel %vm3619_vm1, %v5215_v63, %v3616_v22 }
 0x4c7   : > { %v4170_v36 = vpop.permute.xlu1 %4169  ;;  %v3836_v4 = vmul.f32 %v3620_v34, %v3188_v60  ;;  %v3891_v60 = vld [vmem:[%s8021_s8 + $0x120] sm:$0xff] }
 0x4c8   : > { %v4347_v5 = vmul.f32 %v4170_v36, %v7471_v39  ;;  %v4348_v11 = vmul.f32 %v4170_v36, %v9921_v26  ;;  %v3997_v39 = vsub.f32 %v3889_v19, %v3943_v41  ;;  %v3623_v36 = vmul.f32 %v5217_v25, %v3622_v29  ;;  %v2616_v26 = vpop.f32.mrf.mxu3 }
 0x4c9   : > { %v3050_v41 = vmul.f32 %v7529_v14, %v7529_v14 }
 0x4ca   : > { %v3624_v56 = vmul.f32 0.5, %v3623_v36 }
 0x4cc   : > { %v3625_v44 = vsub.f32 1.5, %v3624_v56 }
 0x4ce   : > { %v3626_v33 = vmul.f32 %v5217_v25, %v3625_v44 }
 0x4cf   : > { %4189 = vperm.xlu0 %5153, %v3835_v53   ;;  %v4548_v50 = vpop.permute.xlu1 %4547  ;;  %v3944_v53 = vmul.f32 %v3836_v4, %v8292_v15  ;;  %v3028_v15 = vmul.f32 0.0051020407, %v8113_v61  ;;  %v3049_v61 = vmul.f32 %v7505_v55, %v7505_v55 }
 0x4d0   : > { %v4725_v3 = vadd.f32 %v4548_v50, %v4347_v5  ;;  %v4726_v21 = vadd.f32 %v4548_v50, %v4348_v11  ;;  %v2437_v5 = vpop.f32.mrf.mxu1  ;;  %v3630_v63 = vsel %vm3629_vm4, %v5217_v25, %v3626_v33 }
 0x4d1   : > { %v3998_v11 = vsub.f32 %v3890_v9, %v3944_v53  ;;  %v8382_v50 = vadd.f32 %v2616_v26, %v2437_v5  ;;  %v3837_v19 = vmul.f32 %v3630_v63, %v3189_v13  ;;  %v2619_v9 = vpop.f32.mrf.mxu3 }
 0x4d2   : > { %4833 = vst [vmem:[%s8206_s11 + $0x1e0] sm:$0xff] %v4725_v3  ;;  %2813 = vadd.xlane.f32.xlu1 %v2812_v43  ;;  %v2087_v3 = vpop.f32.mrf.mxu2 }
 0x4d3   : > { %4834 = vst.msk [vmem:[%s8206_s11 + $0x1e8] sm:$0xff] %vm367_vm0, %v4726_v21  ;;  %v3082_v21 = vmul.f32 %v8382_v50, %v8382_v50  ;;  %v3945_v36 = vmul.f32 %v3837_v19, %v8322_v57 }
 0x4d5   : > { %v3136_v22 = vsub.f32 %v3028_v15, %v3082_v21  ;;  %v3999_v5 = vsub.f32 %v3891_v60, %v3945_v36  ;;  %v3029_v60 = vmul.f32 0.0051020407, %v8152_v12 }
 0x4d7   : > { %4567 = vperm.xlu0 %5153, %v3997_v39   ;;  %v8390_v39 = vpop.f32.mrf.mxu0  ;;  %v8394_v34 = vadd.f32 1e-05, %v3136_v22  ;;  %v9924_v22 = vld [vmem:[#allocation24_spill] sm:$0xff] }
 0x4d8   : > { %v2440_v56 = vpop.f32.mrf.mxu1 }
 0x4d9   : > { %v8402_v57 = vadd.f32 %v2619_v9, %v2440_v56  ;;  %v2622_v0 = vpop.f32.mrf.mxu3  ;;  %vm3637_vm12 = vweird.f32 %v8394_v34 }
 0x4da   : > { %4194 = vperm.xlu2 %5155, %v3836_v4   ;;  %v2090_v44 = vpop.f32.mrf.mxu2 }
 0x4df   : > { %v1732_v21 = vpop.f32.mrf.mxu0 }
 0x4e2   : > { %4572 = vperm.xlu2 %5155, %v3998_v11   ;;  %v9922_v11 = vld [vmem:[#allocation25_spill] sm:$0xff] }
 0x4e3   : > { %v8400_v33 = vadd.f32 %v2090_v44, %v9922_v11 }
 0x4e5   : > { %9923 = vst [vmem:[#allocation19_spill] sm:$0xff] %v8400_v33 }
 0x4e8   : > { %v2798_v43 = vpop.xlane.xlu0 %2797 }
 0x4e9   : > { %v2996_v29 = vmul.f32 0.0051020407, %v2798_v43 }
 0x4eb   : > { %v3104_v16 = vsub.f32 %v2996_v29, %v3050_v41  ;;  %4199 = vperm.xlu1 %5154, %v3837_v19   ;;  %v2690_v41 = vmul.f32 %v8400_v33, %v8400_v33  ;;  %v3083_v19 = vmul.f32 %v8402_v57, %v8402_v57 }
 0x4ec   : > { %v2794_v4 = vpop.xlane.xlu2 %2793 }
 0x4ed   : > { %v3212_v25 = vadd.f32 1e-05, %v3104_v16  ;;  %v2995_v53 = vmul.f32 0.0051020407, %v2794_v4  ;;  %v8411_v16 = vadd.f32 %v1732_v21, %v9924_v22  ;;  %v3137_v44 = vsub.f32 %v3029_v60, %v3083_v19  ;;  %v9926_v21 = vld [vmem:[#allocation23_spill] sm:$0xff] }
 0x4ee   : > { %v8420_v22 = vadd.f32 %v2087_v3, %v9926_v21  ;;  %v2443_v21 = vpop.f32.mrf.mxu1 }
 0x4ef   : > { %5218 = vrsqrt.f32 %v3212_v25  ;;  %v3103_v26 = vsub.f32 %v2995_v53, %v3049_v61  ;;  %9925 = vst [vmem:[#allocation18_spill] sm:$0xff] %v8411_v16  ;;  %v2819_v53 = vsel %vm367_vm0, %v2690_v41, 0.0  ;;  %vm3317_vm6 = vweird.f32 %v3212_v25 }
 0x4f0   : > { %5220 = vrsqrt.f32 %v8394_v34  ;;  %9927 = vst [vmem:[#allocation17_spill] sm:$0xff] %v8420_v22 }
 0x4f1   : > { %v3211_v13 = vadd.f32 1e-05, %v3103_v26 }
 0x4f3   : > { %4577 = vperm.xlu1 %5154, %v3999_v5   ;;  %5222 = vrsqrt.f32 %v3211_v13  ;;  %v2689_v5 = vmul.f32 %v8411_v16, %v8411_v16  ;;  %v8425_v16 = vadd.f32 1e-05, %v3137_v44  ;;  %vm3307_vm9 = vweird.f32 %v3211_v13 }
 0x4f4   : > { %v4180_v43 = vpop.permute.xlu2 %4179 }
 0x4f5   : > { %v5219_v63 = vpop.eup %5218  ;;  %v2820_v60 = vadd.f32 %v2819_v53, %v2689_v5  ;;  %v9931_v5 = vld [vmem:[#allocation112_spill] sm:$0xff]  ;;  %5224 = vrsqrt.f32 %v8425_v16  ;;  %vm3647_vm15 = vweird.f32 %v8425_v16 }
 0x4f6   : > { %v3312_v15 = vmul.f32 %v5219_v63, %v3212_v25  ;;  %v8408_v29 = vpop.eup %5220  ;;  %vm3318_vm5 = vweird.f32 %v5219_v63 }
 0x4f7   : > { %v3632_v56 = vmul.f32 %v8408_v29, %v8394_v34  ;;  %vm3319_vm7 = vmor %vm3317_vm6, %vm3318_vm5  ;;  %vm3638_vm11 = vweird.f32 %v8408_v29 }
 0x4f8   : > { %v3313_v36 = vmul.f32 %v5219_v63, %v3312_v15  ;;  %v9928_v15 = vld [vmem:[#allocation113_spill] sm:$0xff]  ;;  %vm3639_vm13 = vmor %vm3637_vm12, %vm3638_vm11 }
 0x4f9   : > { %v5223_v61 = vpop.eup %5222  ;;  %v4351_v12 = vmul.f32 %v4180_v43, %v9928_v15  ;;  %v3633_v33 = vmul.f32 %v8408_v29, %v3632_v56  ;;  %v3158_v15 = vld [vmem:[%s8005_s27 + $0x28] sm:$0xff] }
 0x4fa   : > { %v3314_v4 = vmul.f32 0.5, %v3313_v36  ;;  %v3302_v11 = vmul.f32 %v5223_v61, %v3211_v13  ;;  %v9929_v36 = vld [vmem:[#allocation114_spill] sm:$0xff]  ;;  %vm3308_vm8 = vweird.f32 %v5223_v61  ;;  %v9930_v56 = vld [vmem:[#allocation111_spill] sm:$0xff] }
 0x4fb   : > { %v4175_v9 = vpop.permute.xlu0 %4174  ;;  %v4352_v37 = vmul.f32 %v4180_v43, %v9929_v36  ;;  %v2688_v43 = vmul.f32 %v8420_v22, %v8420_v22  ;;  %v9932_v36 = vld [vmem:[#allocation22_spill] sm:$0xff]  ;;  %vm3309_vm10 = vmor %vm3307_vm9, %vm3308_vm8 }
 0x4fc   : > { %v3315_v26 = vsub.f32 1.5, %v3314_v4  ;;  %v3303_v41 = vmul.f32 %v5223_v61, %v3302_v11  ;;  %v4558_v19 = vpop.permute.xlu2 %4557  ;;  %v4349_v44 = vmul.f32 %v4175_v9, %v9930_v56  ;;  %v2093_v56 = vpop.f32.mrf.mxu2  ;;  %v9946_v22 = vld [vmem:[#allocation118_spill] sm:$0xff] }
 0x4fd   : > { %v4729_v4 = vadd.f32 %v4558_v19, %v4351_v12  ;;  %v4730_v3 = vadd.f32 %v4558_v19, %v4352_v37  ;;  %v4350_v37 = vmul.f32 %v4175_v9, %v9931_v5  ;;  %v8446_v9 = vadd.f32 %v8390_v39, %v9932_v36  ;;  %v9934_v5 = vld [vmem:[#allocation28_spill] sm:$0xff] }
 0x4fe   : > { %v3316_v62 = vmul.f32 %v5219_v63, %v3315_v26  ;;  %v3304_v27 = vmul.f32 0.5, %v3303_v41  ;;  %v3634_v26 = vmul.f32 0.5, %v3633_v33  ;;  %v3157_v41 = vld [vmem:[%s8005_s27 + $0x20] sm:$0xff]  ;;  %v2815_v19 = vsel %vm367_vm0, %v2688_v43, 0.0 }
 0x4ff   : > { %4837 = vst [vmem:[%s8206_s11 + $0x200] sm:$0xff] %v4729_v4  ;;  %v2687_v39 = vmul.f32 %v8446_v9, %v8446_v9 }
 0x500   : > { %v3320_v1 = vsel %vm3319_vm7, %v5219_v63, %v3316_v62  ;;  %v3305_v53 = vsub.f32 1.5, %v3304_v27  ;;  %4838 = vst.msk [vmem:[%s8206_s11 + $0x208] sm:$0xff] %vm367_vm0, %v4730_v3  ;;  %v8438_v62 = vadd.f32 %v2622_v0, %v2443_v21  ;;  %v8464_v3 = vpop.xlane.xlu1 %2801 }
 0x501   : > { %2821 = vadd.xlane.f32.xlu0 %v2820_v60  ;;  %v8431_v25 = vmul.f32 %v3320_v1, %v3158_v15  ;;  %9933 = vst [vmem:[#allocation107_spill] sm:$0xff] %v8446_v9  ;;  %v5225_v60 = vpop.eup %5224  ;;  %v2816_v21 = vadd.f32 %v2815_v19, %v2687_v39 }
 0x502   : > { %v3306_v27 = vmul.f32 %v5223_v61, %v3305_v53  ;;  %v3084_v13 = vmul.f32 %v8438_v62, %v8438_v62  ;;  %v3642_v43 = vmul.f32 %v5225_v60, %v8425_v16  ;;  %vm3648_vm14 = vweird.f32 %v5225_v60 }
 0x503   : > { %v4553_v63 = vpop.permute.xlu0 %4552  ;;  %v8442_v1 = vmul.f32 %v8431_v25, %v7529_v14  ;;  %v3635_v14 = vsub.f32 1.5, %v3634_v26  ;;  %vm3649_vm1 = vmor %vm3647_vm15, %vm3648_vm14 }
 0x504   : > { %v4727_v11 = vadd.f32 %v4553_v63, %v4349_v44  ;;  %v4728_v12 = vadd.f32 %v4553_v63, %v4350_v37  ;;  %v3310_v33 = vsel %vm3309_vm10, %v5223_v61, %v3306_v27  ;;  %v3030_v61 = vmul.f32 0.0051020407, %v8164_v20  ;;  %v1735_v63 = vpop.f32.mrf.mxu0 }
 0x505   : > { %v8452_v0 = vmul.f32 %v3310_v33, %v3157_v41  ;;  %v3636_v15 = vmul.f32 %v8408_v29, %v3635_v14  ;;  %v3643_v20 = vmul.f32 %v5225_v60, %v3642_v43  ;;  %v8473_v37 = vadd.f32 %v2093_v56, %v9934_v5  ;;  %v9936_v41 = vld [vmem:[#allocation27_spill] sm:$0xff] }
 0x506   : > { %4835 = vst [vmem:[%s8206_s11 + $0x1f0] sm:$0xff] %v4727_v11  ;;  %v3138_v53 = vsub.f32 %v3030_v61, %v3084_v13  ;;  %v8478_v34 = vadd.f32 %v1735_v63, %v9936_v41  ;;  %v9938_v61 = vld [vmem:[#allocation115_spill] sm:$0xff] }
 0x507   : > { %4836 = vst.msk [vmem:[%s8206_s11 + $0x1f8] sm:$0xff] %vm367_vm0, %v4728_v12  ;;  %v8461_v4 = vmul.f32 %v8452_v0, %v7505_v55  ;;  %v3190_v55 = vld [vmem:[%s8005_s27 + $0x128] sm:$0xff]  ;;  %v3640_v44 = vsel %vm3639_vm13, %v8408_v29, %v3636_v15  ;;  %v3644_v12 = vmul.f32 0.5, %v3643_v20  ;;  %v2692_v36 = vmul.f32 %v8473_v37, %v8473_v37 }
 0x508   : > { %9935 = vst [vmem:[#allocation16_spill] sm:$0xff] %v8473_v37  ;;  %v3246_v26 = vadd.f32 1e-05, %v3138_v53  ;;  %v3838_v11 = vmul.f32 %v3640_v44, %v3190_v55  ;;  %v3892_v29 = vld [vmem:[%s8021_s8 + $0x128] sm:$0xff]  ;;  %v2691_v13 = vmul.f32 %v8478_v34, %v8478_v34 }
 0x509   : > { %9937 = vst [vmem:[#allocation105_spill] sm:$0xff] %v8478_v34  ;;  %v3645_v19 = vsub.f32 1.5, %v3644_v12  ;;  %v2823_v14 = vsel %vm367_vm0, %v2692_v36, 0.0  ;;  %v2446_v12 = vpop.f32.mrf.mxu1  ;;  %v2625_v36 = vpop.f32.mrf.mxu3  ;;  %v3161_v34 = vld [vmem:[%s8005_s27 + $0x40] sm:$0xff] }
 0x50a   : > { %5226 = vrsqrt.f32 %v3246_v26  ;;  %v3946_v33 = vmul.f32 %v3838_v11, %v8382_v50  ;;  %v2824_v50 = vadd.f32 %v2823_v14, %v2691_v13  ;;  %vm3657_vm3 = vweird.f32 %v3246_v26 }
 0x50b   : > { %2817 = vadd.xlane.f32.xlu2 %v2816_v21  ;;  %v3646_v44 = vmul.f32 %v5225_v60, %v3645_v19 }
 0x50c   : > { %v4000_v53 = vsub.f32 %v3892_v29, %v3946_v33  ;;  %v3893_v33 = vld [vmem:[%s8021_s8 + $0x130] sm:$0xff]  ;;  %v8494_v29 = vadd.f32 %v2625_v36, %v2446_v12  ;;  %v3894_v12 = vld [vmem:[%s8021_s8 + $0x138] sm:$0xff]  ;;  %v9939_v36 = vld [vmem:[#allocation38_spill] sm:$0xff] }
 0x50d   : > { %v3650_v5 = vsel %vm3649_vm1, %v5225_v60, %v3646_v44  ;;  %v8498_v60 = vpop.f32.mrf.mxu2 }
 0x50e   : > { %v3085_v16 = vmul.f32 %v8494_v29, %v8494_v29 }
 0x510   : > { %v5227_v15 = vpop.eup %5226 }
 0x511   : > { %v3652_v20 = vmul.f32 %v5227_v15, %v3246_v26  ;;  %vm3658_vm2 = vweird.f32 %v5227_v15  ;;  %v3052_v26 = vmul.f32 %v7577_v46, %v7577_v46 }
 0x512   : > { %v4185_v27 = vpop.permute.xlu1 %4184  ;;  %vm3659_vm4 = vmor %vm3657_vm3, %vm3658_vm2 }
 0x513   : > { %v4353_v39 = vmul.f32 %v4185_v27, %v7543_v10  ;;  %v4354_v21 = vmul.f32 %v4185_v27, %v9938_v61  ;;  %v3191_v10 = vld [vmem:[%s8005_s27 + $0x130] sm:$0xff]  ;;  %v3653_v63 = vmul.f32 %v5227_v15, %v3652_v20 }
 0x514   : > { %v3839_v27 = vmul.f32 %v3650_v5, %v3191_v10 }
 0x515   : > { %4204 = vperm.xlu0 %5153, %v3838_v11   ;;  %v3654_v11 = vmul.f32 0.5, %v3653_v63 }
 0x516   : > { %v3947_v41 = vmul.f32 %v3839_v27, %v8402_v57  ;;  %v3053_v57 = vmul.f32 %v7601_v31, %v7601_v31 }
 0x517   : > { %v3655_v19 = vsub.f32 1.5, %v3654_v11 }
 0x518   : > { %v4001_v14 = vsub.f32 %v3893_v33, %v3947_v41 }
 0x519   : > { %v3656_v13 = vmul.f32 %v5227_v15, %v3655_v19 }
 0x51a   : > { %v4563_v43 = vpop.permute.xlu1 %4562 }
 0x51b   : > { %v4731_v56 = vadd.f32 %v4563_v43, %v4353_v39  ;;  %v4732_v55 = vadd.f32 %v4563_v43, %v4354_v21  ;;  %v3031_v39 = vmul.f32 0.0051020407, %v8132_v6  ;;  %v2099_v6 = vpop.f32.mrf.mxu2 }
 0x51c   : > { %v8514_v41 = vadd.f32 %v2099_v6, %v9939_v36  ;;  %v3032_v6 = vmul.f32 0.0051020407, %v8162_v51 }
 0x51d   : > { %4839 = vst [vmem:[%s8206_s11 + $0x210] sm:$0xff] %v4731_v56  ;;  %4582 = vperm.xlu0 %5153, %v4000_v53   ;;  %2825 = vadd.xlane.f32.xlu1 %v2824_v50  ;;  %v3139_v43 = vsub.f32 %v3031_v39, %v3085_v16  ;;  %v3192_v53 = vld [vmem:[%s8005_s27 + $0x138] sm:$0xff]  ;;  %v3660_v56 = vsel %vm3659_vm4, %v5227_v15, %v3656_v13  ;;  %v8504_v50 = vpop.f32.mrf.mxu0  ;;  %v2449_v15 = vpop.f32.mrf.mxu1 }
 0x51e   : > { %4840 = vst.msk [vmem:[%s8206_s11 + $0x218] sm:$0xff] %vm367_vm0, %v4732_v55  ;;  %v3840_v20 = vmul.f32 %v3660_v56, %v3192_v53 }
 0x51f   : > { %v8506_v10 = vadd.f32 1e-05, %v3139_v43  ;;  %9940 = vst [vmem:[#allocation106_spill] sm:$0xff] %v8514_v41  ;;  %v9941_v43 = vld [vmem:[#allocation35_spill] sm:$0xff] }
 0x520   : > { %v3948_v63 = vmul.f32 %v3840_v20, %v8438_v62  ;;  %v2696_v62 = vmul.f32 %v8514_v41, %v8514_v41 }
 0x521   : > { %vm3667_vm12 = vweird.f32 %v8506_v10 }
 0x522   : > { %v4002_v16 = vsub.f32 %v3894_v12, %v3948_v63  ;;  %v2831_v63 = vsel %vm367_vm0, %v2696_v62, 0.0  ;;  %v9943_v62 = vld [vmem:[#allocation119_spill] sm:$0xff] }
 0x523   : > { %4209 = vperm.xlu2 %5155, %v3839_v27   ;;  %v2628_v27 = vpop.f32.mrf.mxu3 }
 0x525   : > { %v1741_v13 = vpop.f32.mrf.mxu0 }
 0x526   : > { %v8526_v53 = vadd.f32 %v1741_v13, %v9941_v43  ;;  %v9944_v43 = vld [vmem:[#allocation120_spill] sm:$0xff] }
 0x528   : > { %9942 = vst [vmem:[#allocation21_spill] sm:$0xff] %v8526_v53 }
 0x52b   : > { %4587 = vperm.xlu2 %5155, %v4001_v14   ;;  %v8516_v14 = vadd.f32 %v2628_v27, %v2449_v15  ;;  %v2695_v27 = vmul.f32 %v8526_v53, %v8526_v53 }
 0x52d   : > { %v3086_v56 = vmul.f32 %v8516_v14, %v8516_v14 }
 0x52e   : > { %v2810_v61 = vpop.xlane.xlu0 %2809 }
 0x52f   : > { %v2999_v21 = vmul.f32 0.0051020407, %v2810_v61 }
 0x531   : > { %v3107_v55 = vsub.f32 %v2999_v21, %v3053_v57 }
 0x533   : > { %v3215_v44 = vadd.f32 1e-05, %v3107_v55 }
 0x535   : > { %5228 = vrsqrt.f32 %v3215_v44  ;;  %v2806_v5 = vpop.xlane.xlu2 %2805  ;;  %vm3347_vm6 = vweird.f32 %v3215_v44 }
 0x536   : > { %4214 = vperm.xlu1 %5154, %v3840_v20   ;;  %5230 = vrsqrt.f32 %v8506_v10  ;;  %v2998_v11 = vmul.f32 0.0051020407, %v2806_v5 }
 0x538   : > { %v3106_v33 = vsub.f32 %v2998_v11, %v3052_v26  ;;  %v3140_v11 = vsub.f32 %v3032_v6, %v3086_v56 }
 0x53a   : > { %v8518_v61 = vadd.f32 1e-05, %v3106_v33  ;;  %v3054_v33 = vmul.f32 %v7622_v48, %v7622_v48  ;;  %v8543_v6 = vadd.f32 1e-05, %v3140_v11 }
 0x53b   : > { %v5229_v19 = vpop.eup %5228 }
 0x53c   : > { %v3342_v39 = vmul.f32 %v5229_v19, %v3215_v44  ;;  %v8520_v57 = vpop.eup %5230  ;;  %5232 = vrsqrt.f32 %v8518_v61  ;;  %vm3348_vm5 = vweird.f32 %v5229_v19  ;;  %vm3337_vm9 = vweird.f32 %v8518_v61 }
 0x53d   : > { %v4195_v55 = vpop.permute.xlu2 %4194  ;;  %v3662_v5 = vmul.f32 %v8520_v57, %v8506_v10  ;;  %vm3349_vm7 = vmor %vm3347_vm6, %vm3348_vm5  ;;  %5234 = vrsqrt.f32 %v8543_v6  ;;  %vm3668_vm11 = vweird.f32 %v8520_v57  ;;  %vm3677_vm3 = vweird.f32 %v8543_v6 }
 0x53e   : > { %v3343_v21 = vmul.f32 %v5229_v19, %v3342_v39  ;;  %4592 = vperm.xlu1 %5154, %v4002_v16   ;;  %v2832_v39 = vadd.f32 %v2831_v63, %v2695_v27  ;;  %vm3669_vm13 = vmor %vm3667_vm12, %vm3668_vm11 }
 0x53f   : > { %v3663_v51 = vmul.f32 %v8520_v57, %v3662_v5 }
 0x540   : > { %v3344_v20 = vmul.f32 0.5, %v3343_v21  ;;  %v4357_v21 = vmul.f32 %v4195_v55, %v9943_v62 }
 0x541   : > { %v4190_v26 = vpop.permute.xlu0 %4189 }
 0x542   : > { %v3345_v15 = vsub.f32 1.5, %v3344_v20  ;;  %v5233_v12 = vpop.eup %5232  ;;  %v4358_v20 = vmul.f32 %v4195_v55, %v9944_v43  ;;  %v4356_v9 = vmul.f32 %v4190_v26, %v9946_v22  ;;  %v9947_v55 = vld [vmem:[#allocation33_spill] sm:$0xff] }
 0x543   : > { %v3332_v16 = vmul.f32 %v5233_v12, %v8518_v61  ;;  %vm3338_vm8 = vweird.f32 %v5233_v12 }
 0x544   : > { %v3346_v36 = vmul.f32 %v5229_v19, %v3345_v15  ;;  %v9945_v15 = vld [vmem:[#allocation117_spill] sm:$0xff]  ;;  %vm3339_vm10 = vmor %vm3337_vm9, %vm3338_vm8 }
 0x545   : > { %v2814_v13 = vpop.xlane.xlu1 %2813  ;;  %v3333_v44 = vmul.f32 %v5233_v12, %v3332_v16  ;;  %v4355_v41 = vmul.f32 %v4190_v26, %v9945_v15  ;;  %v4573_v53 = vpop.permute.xlu2 %4572  ;;  %v3664_v16 = vmul.f32 0.5, %v3663_v51 }
 0x546   : > { %v3000_v37 = vmul.f32 0.0051020407, %v2814_v13  ;;  %v3350_v56 = vsel %vm3349_vm7, %v5229_v19, %v3346_v36  ;;  %v4735_v27 = vadd.f32 %v4573_v53, %v4357_v21  ;;  %v4736_v62 = vadd.f32 %v4573_v53, %v4358_v20  ;;  %v2631_v53 = vpop.f32.mrf.mxu3 }
 0x547   : > { %2833 = vadd.xlane.f32.xlu0 %v2832_v39  ;;  %v8546_v5 = vmul.f32 %v3350_v56, %v3161_v34  ;;  %v8551_v13 = vadd.f32 %v8498_v60, %v9947_v55  ;;  %v3334_v19 = vmul.f32 0.5, %v3333_v44  ;;  %v2452_v60 = vpop.f32.mrf.mxu1  ;;  %v3665_v51 = vsub.f32 1.5, %v3664_v16  ;;  %v3160_v39 = vld [vmem:[%s8005_s27 + $0x38] sm:$0xff]  ;;  %v8576_v56 = vpop.eup %5234  ;;  %v3193_v16 = vld [vmem:[%s8005_s27 + $0x140] sm:$0xff] }
 0x548   : > { %v3108_v63 = vsub.f32 %v3000_v37, %v3054_v33  ;;  %4843 = vst [vmem:[%s8206_s11 + $0x230] sm:$0xff] %v4735_v27  ;;  %v8572_v21 = vadd.f32 %v2631_v53, %v2452_v60  ;;  %v3033_v55 = vmul.f32 0.0051020407, %v8174_v47  ;;  %v9949_v47 = vld [vmem:[#allocation43_spill] sm:$0xff]  ;;  %vm3678_vm2 = vweird.f32 %v8576_v56 }
 0x549   : > { %v4568_v11 = vpop.permute.xlu0 %4567  ;;  %v8555_v36 = vmul.f32 %v8546_v5, %v7601_v31  ;;  %v3335_v37 = vsub.f32 1.5, %v3334_v19  ;;  %4844 = vst.msk [vmem:[%s8206_s11 + $0x238] sm:$0xff] %vm367_vm0, %v4736_v62  ;;  %v2694_v31 = vmul.f32 %v8551_v13, %v8551_v13  ;;  %v3672_v19 = vmul.f32 %v8576_v56, %v8543_v6  ;;  %vm3679_vm4 = vmor %vm3677_vm3, %vm3678_vm2 }
 0x54a   : > { %v3216_v34 = vadd.f32 1e-05, %v3108_v63  ;;  %v4733_v22 = vadd.f32 %v4568_v11, %v4355_v41  ;;  %v4734_v26 = vadd.f32 %v4568_v11, %v4356_v9  ;;  %v9948_v9 = vld [vmem:[#allocation30_spill] sm:$0xff] }
 0x54b   : > { %v3336_v33 = vmul.f32 %v5233_v12, %v3335_v37  ;;  %v8569_v41 = vadd.f32 %v8504_v50, %v9948_v9  ;;  %v2827_v44 = vsel %vm367_vm0, %v2694_v31, 0.0  ;;  %v3666_v50 = vmul.f32 %v8520_v57, %v3665_v51  ;;  %v2102_v37 = vpop.f32.mrf.mxu2  ;;  %v1744_v51 = vpop.f32.mrf.mxu0 }
 0x54c   : > { %5236 = vrsqrt.f32 %v3216_v34  ;;  %4841 = vst [vmem:[%s8206_s11 + $0x220] sm:$0xff] %v4733_v22  ;;  %v3673_v10 = vmul.f32 %v8576_v56, %v3672_v19  ;;  %v8597_v31 = vadd.f32 %v2102_v37, %v9949_v47  ;;  %vm3357_vm15 = vweird.f32 %v3216_v34 }
 0x54d   : > { %4842 = vst.msk [vmem:[%s8206_s11 + $0x228] sm:$0xff] %vm367_vm0, %v4734_v26  ;;  %v3340_v43 = vsel %vm3339_vm10, %v5233_v12, %v3336_v33  ;;  %v2693_v15 = vmul.f32 %v8569_v41, %v8569_v41  ;;  %v3087_v12 = vmul.f32 %v8572_v21, %v8572_v21  ;;  %v3670_v22 = vsel %vm3669_vm13, %v8520_v57, %v3666_v50  ;;  %v3895_v50 = vld [vmem:[%s8021_s8 + $0x140] sm:$0xff] }
 0x54e   : > { %v8574_v20 = vmul.f32 %v3340_v43, %v3160_v39  ;;  %v3841_v60 = vmul.f32 %v3670_v22, %v3193_v16  ;;  %9950 = vst [vmem:[#allocation20_spill] sm:$0xff] %v8597_v31  ;;  %v3674_v39 = vmul.f32 0.5, %v3673_v10 }
 0x54f   : > { %v2828_v62 = vadd.f32 %v2827_v44, %v2693_v15  ;;  %v3162_v44 = vld [vmem:[%s8005_s27 + $0x48] sm:$0xff] }
 0x550   : > { %v8585_v63 = vmul.f32 %v8574_v20, %v7577_v46  ;;  %v3141_v46 = vsub.f32 %v3033_v55, %v3087_v12  ;;  %v3949_v57 = vmul.f32 %v3841_v60, %v8494_v29  ;;  %v3675_v19 = vsub.f32 1.5, %v3674_v39 }
 0x552   : > { %v5237_v61 = vpop.eup %5236  ;;  %v8599_v33 = vadd.f32 1e-05, %v3141_v46  ;;  %v4003_v29 = vsub.f32 %v3895_v50, %v3949_v57  ;;  %v9953_v46 = vld [vmem:[#allocation121_spill] sm:$0xff]  ;;  %v3676_v10 = vmul.f32 %v8576_v56, %v3675_v19  ;;  %v2455_v50 = vpop.f32.mrf.mxu1  ;;  %v3896_v19 = vld [vmem:[%s8021_s8 + $0x148] sm:$0xff] }
 0x553   : > { %v3352_v27 = vmul.f32 %v5237_v61, %v3216_v34  ;;  %vm3358_vm14 = vweird.f32 %v5237_v61 }
 0x554   : > { %2829 = vadd.xlane.f32.xlu2 %v2828_v62  ;;  %vm3359_vm1 = vmor %vm3357_vm15, %vm3358_vm14  ;;  %5238 = vrsqrt.f32 %v8599_v33  ;;  %v9951_v62 = vld [vmem:[#allocation40_spill] sm:$0xff]  ;;  %v3680_v39 = vsel %vm3679_vm4, %v8576_v56, %v3676_v10  ;;  %vm3687_vm6 = vweird.f32 %v8599_v33 }
 0x555   : > { %v3353_v11 = vmul.f32 %v5237_v61, %v3352_v27  ;;  %v2698_v27 = vmul.f32 %v8597_v31, %v8597_v31  ;;  %v8610_v55 = vadd.f32 %v1744_v51, %v9951_v62  ;;  %v3194_v51 = vld [vmem:[%s8005_s27 + $0x148] sm:$0xff] }
 0x557   : > { %v3354_v26 = vmul.f32 0.5, %v3353_v11  ;;  %9952 = vst [vmem:[#allocation109_spill] sm:$0xff] %v8610_v55  ;;  %v2835_v11 = vsel %vm367_vm0, %v2698_v27, 0.0  ;;  %v2697_v16 = vmul.f32 %v8610_v55, %v8610_v55  ;;  %v2634_v27 = vpop.f32.mrf.mxu3 }
 0x558   : > { %v8636_v6 = vadd.f32 %v2634_v27, %v2455_v50  ;;  %v9955_v50 = vld [vmem:[#allocation53_spill] sm:$0xff] }
 0x559   : > { %v3355_v53 = vsub.f32 1.5, %v3354_v26 }
 0x55a   : > { %v5239_v37 = vpop.eup %5238  ;;  %v3088_v56 = vmul.f32 %v8636_v6, %v8636_v6 }
 0x55b   : > { %v3356_v9 = vmul.f32 %v5237_v61, %v3355_v53  ;;  %4219 = vperm.xlu0 %5153, %v3841_v60   ;;  %v9954_v60 = vld [vmem:[#allocation104_spill] sm:$0xff]  ;;  %vm3688_vm5 = vweird.f32 %v5239_v37 }
 0x55c   : > { %vm3689_vm7 = vmor %vm3687_vm6, %vm3688_vm5 }
 0x55d   : > { %v4200_v43 = vpop.permute.xlu1 %4199  ;;  %v3360_v15 = vsel %vm3359_vm1, %v5237_v61, %v3356_v9  ;;  %v2991_v61 = vmul.f32 0.0051020407, %v8245_v24  ;;  %v2836_v9 = vadd.f32 %v2835_v11, %v2697_v16  ;;  %v8640_v11 = vpop.f32.mrf.mxu2 }
 0x55e   : > { %v8604_v12 = vmul.f32 %v3360_v15, %v3162_v44  ;;  %v4359_v22 = vmul.f32 %v4200_v43, %v7612_v35  ;;  %v4360_v26 = vmul.f32 %v4200_v43, %v9953_v46  ;;  %v3682_v35 = vmul.f32 %v5239_v37, %v8599_v33 }
 0x55f   : > { %v3842_v44 = vmul.f32 %v3680_v39, %v3194_v51  ;;  %v3195_v51 = vld [vmem:[%s8005_s27 + $0x150] sm:$0xff]  ;;  %v3055_v33 = vmul.f32 %v7640_v7, %v7640_v7 }
 0x560   : > { %v8614_v34 = vmul.f32 %v8604_v12, %v7622_v48  ;;  %v3045_v48 = vmul.f32 %v9954_v60, %v9954_v60  ;;  %v3683_v15 = vmul.f32 %v5239_v37, %v3682_v35 }
 0x561   : > { %v3950_v62 = vmul.f32 %v3842_v44, %v8516_v14  ;;  %v8649_v14 = vpop.f32.mrf.mxu0 }
 0x562   : > { %v3099_v57 = vsub.f32 %v2991_v61, %v3045_v48  ;;  %v3034_v48 = vmul.f32 0.0051020407, %v8149_v30 }
 0x563   : > { %4597 = vperm.xlu0 %5153, %v4003_v29   ;;  %v3684_v29 = vmul.f32 0.5, %v3683_v15  ;;  %v4004_v61 = vsub.f32 %v3896_v19, %v3950_v62 }
 0x564   : > { %v8633_v43 = vadd.f32 1e-05, %v3099_v57 }
 0x565   : > { %v4578_v24 = vpop.permute.xlu1 %4577  ;;  %v3685_v16 = vsub.f32 1.5, %v3684_v29 }
 0x566   : > { %v4737_v53 = vadd.f32 %v4578_v24, %v4359_v22  ;;  %v4738_v47 = vadd.f32 %v4578_v24, %v4360_v26  ;;  %5240 = vrsqrt.f32 %v8633_v43  ;;  %v3056_v26 = vmul.f32 %v7660_v18, %v7660_v18 }
 0x567   : > { %v3142_v24 = vsub.f32 %v3034_v48, %v3088_v56  ;;  %vm3267_vm10 = vweird.f32 %v8633_v43 }
 0x568   : > { %4845 = vst [vmem:[%s8206_s11 + $0x240] sm:$0xff] %v4737_v53  ;;  %2837 = vadd.xlane.f32.xlu1 %v2836_v9 }
 0x569   : > { %4846 = vst.msk [vmem:[%s8206_s11 + $0x248] sm:$0xff] %vm367_vm0, %v4738_v47  ;;  %v3686_v47 = vmul.f32 %v5239_v37, %v3685_v16  ;;  %v8654_v35 = vadd.f32 1e-05, %v3142_v24  ;;  %v1750_v56 = vpop.f32.mrf.mxu0  ;;  %v2637_v16 = vpop.f32.mrf.mxu3  ;;  %v3897_v24 = vld [vmem:[%s8021_s8 + $0x150] sm:$0xff] }
 0x56b   : > { %v3690_v30 = vsel %vm3689_vm7, %v5239_v37, %v3686_v47  ;;  %v2458_v37 = vpop.f32.mrf.mxu1  ;;  %vm3697_vm3 = vweird.f32 %v8654_v35 }
 0x56c   : > { %4224 = vperm.xlu2 %5155, %v3842_v44   ;;  %v8644_v46 = vpop.eup %5240  ;;  %v2108_v44 = vpop.f32.mrf.mxu2  ;;  %v3843_v15 = vmul.f32 %v3690_v30, %v3195_v51  ;;  %v9956_v51 = vld [vmem:[#allocation50_spill] sm:$0xff] }
 0x56d   : > { %v3262_v9 = vmul.f32 %v8644_v46, %v8633_v43  ;;  %v8660_v27 = vadd.f32 %v2108_v44, %v9955_v50  ;;  %v8671_v30 = vadd.f32 %v1750_v56, %v9956_v51  ;;  %vm3268_vm8 = vweird.f32 %v8644_v46  ;;  %v9959_v43 = vld [vmem:[#allocation108_spill] sm:$0xff]  ;;  %v3153_v51 = vld [vmem:[%s8005_s27] sm:$0xff] }
 0x56e   : > { %vm8688_vm11 = vmor %vm3267_vm10, %vm3268_vm8 }
 0x56f   : > { %v3263_v39 = vmul.f32 %v8644_v46, %v3262_v9  ;;  %v2702_v48 = vmul.f32 %v8660_v27, %v8660_v27 }
 0x571   : > { %v3264_v62 = vmul.f32 0.5, %v3263_v39  ;;  %v8673_v39 = vadd.f32 %v2637_v16, %v2458_v37  ;;  %v2701_v37 = vmul.f32 %v8671_v30, %v8671_v30 }
 0x573   : > { %v3089_v16 = vmul.f32 %v8673_v39, %v8673_v39 }
 0x574   : > { %v2822_v22 = vpop.xlane.xlu0 %2821  ;;  %4602 = vperm.xlu2 %5155, %v4004_v61  }
 0x575   : > { %v3002_v10 = vmul.f32 0.0051020407, %v2822_v22 }
 0x577   : > { %v3110_v53 = vsub.f32 %v3002_v10, %v3056_v26  ;;  %v3951_v26 = vmul.f32 %v3843_v15, %v8572_v21  ;;  %v2843_v21 = vsel %vm367_vm0, %v2702_v48, 0.0 }
 0x579   : > { %v3218_v57 = vadd.f32 1e-05, %v3110_v53  ;;  %v3265_v53 = vsub.f32 1.5, %v3264_v62 }
 0x57b   : > { %5242 = vrsqrt.f32 %v3218_v57  ;;  %v3266_v62 = vmul.f32 %v8644_v46, %v3265_v53  ;;  %vm3377_vm12 = vweird.f32 %v3218_v57  ;;  %v3047_v53 = vmul.f32 %v9959_v43, %v9959_v43 }
 0x57c   : > { %5244 = vrsqrt.f32 %v8654_v35 }
 0x57e   : > { %v2818_v29 = vpop.xlane.xlu2 %2817 }
 0x57f   : > { %v3001_v61 = vmul.f32 0.0051020407, %v2818_v29  ;;  %v4005_v29 = vsub.f32 %v3897_v24, %v3951_v26  ;;  %v2993_v26 = vmul.f32 0.0051020407, %v8298_v42  ;;  %v2844_v24 = vadd.f32 %v2843_v21, %v2701_v37 }
 0x580   : > { %v3057_v42 = vmul.f32 %v7680_v17, %v7680_v17 }
 0x581   : > { %v5243_v19 = vpop.eup %5242  ;;  %4229 = vperm.xlu1 %5154, %v3843_v15   ;;  %v3109_v10 = vsub.f32 %v3001_v61, %v3055_v33  ;;  %v3101_v21 = vsub.f32 %v2993_v26, %v3047_v53 }
 0x582   : > { %v3372_v22 = vmul.f32 %v5243_v19, %v3218_v57  ;;  %v8668_v9 = vpop.eup %5244  ;;  %vm3378_vm9 = vweird.f32 %v5243_v19 }
 0x583   : > { %v8675_v44 = vadd.f32 1e-05, %v3109_v10  ;;  %v3692_v33 = vmul.f32 %v8668_v9, %v8654_v35  ;;  %v3035_v10 = vmul.f32 0.0051020407, %v8171_v59  ;;  %vm3379_vm13 = vmor %vm3377_vm12, %vm3378_vm9  ;;  %v8724_v53 = vadd.f32 1e-05, %v3101_v21 }
 0x584   : > { %v3373_v47 = vmul.f32 %v5243_v19, %v3372_v22  ;;  %vm3698_vm2 = vweird.f32 %v8668_v9 }
 0x585   : > { %5246 = vrsqrt.f32 %v8675_v44  ;;  %v3143_v57 = vsub.f32 %v3035_v10, %v3089_v16  ;;  %vm3367_vm15 = vweird.f32 %v8675_v44  ;;  %vm3699_vm4 = vmor %vm3697_vm3, %vm3698_vm2  ;;  %vm3287_vm12 = vweird.f32 %v8724_v53 }
 0x586   : > { %v3374_v50 = vmul.f32 0.5, %v3373_v47  ;;  %v4210_v61 = vpop.permute.xlu2 %4209  ;;  %v3693_v47 = vmul.f32 %v8668_v9, %v3692_v33 }
 0x587   : > { %v4205_v15 = vpop.permute.xlu0 %4204  ;;  %v4363_v22 = vmul.f32 %v4210_v61, %v7653_v28 }
 0x588   : > { %v3375_v56 = vsub.f32 1.5, %v3374_v50  ;;  %v3270_v50 = vsel %vm8688_vm11, %v8644_v46, %v3266_v62  ;;  %v4361_v33 = vmul.f32 %v4205_v15, %v7633_v54  ;;  %v4362_v37 = vmul.f32 %v4205_v15, %v7636_v8 }
 0x589   : > { %4607 = vperm.xlu1 %5154, %v4005_v29   ;;  %v3164_v29 = vld [vmem:[%s8005_s27 + $0x58] sm:$0xff]  ;;  %v4364_v46 = vmul.f32 %v4210_v61, %v7656_v40  ;;  %v8711_v62 = vmul.f32 %v3270_v50, %v3153_v51  ;;  %v8717_v15 = vadd.f32 1e-05, %v3143_v57 }
 0x58a   : > { %v3376_v48 = vmul.f32 %v5243_v19, %v3375_v56 }
 0x58b   : > { %v5247_v55 = vpop.eup %5246  ;;  %5248 = vrsqrt.f32 %v8717_v15  ;;  %vm3707_vm9 = vweird.f32 %v8717_v15 }
 0x58c   : > { %v3380_v31 = vsel %vm3379_vm13, %v5243_v19, %v3376_v48  ;;  %v3362_v56 = vmul.f32 %v5247_v55, %v8675_v44  ;;  %vm3368_vm14 = vweird.f32 %v5247_v55  ;;  %5250 = vrsqrt.f32 %v8724_v53 }
 0x58d   : > { %2845 = vadd.xlane.f32.xlu0 %v2844_v24  ;;  %v8704_v59 = vmul.f32 %v3380_v31, %v3164_v29  ;;  %v3694_v31 = vmul.f32 0.5, %v3693_v47  ;;  %v9960_v24 = vld [vmem:[#allocation48_spill] sm:$0xff]  ;;  %vm3369_vm1 = vmor %vm3367_vm15, %vm3368_vm14 }
 0x58e   : > { %v3363_v26 = vmul.f32 %v5247_v55, %v3362_v56  ;;  %v4588_v54 = vpop.permute.xlu2 %4587  ;;  %v9961_v56 = vld [vmem:[#allocation45_spill] sm:$0xff] }
 0x58f   : > { %v4583_v19 = vpop.permute.xlu0 %4582  ;;  %v8715_v16 = vmul.f32 %v8704_v59, %v7660_v18  ;;  %v4741_v28 = vadd.f32 %v4588_v54, %v4363_v22  ;;  %v4742_v40 = vadd.f32 %v4588_v54, %v4364_v46  ;;  %v8722_v18 = vadd.f32 %v8640_v11, %v9960_v24 }
 0x590   : > { %v4739_v48 = vadd.f32 %v4583_v19, %v4361_v33  ;;  %v4740_v10 = vadd.f32 %v4583_v19, %v4362_v37  ;;  %v2826_v8 = vpop.xlane.xlu1 %2825  ;;  %v3364_v47 = vmul.f32 0.5, %v3363_v26  ;;  %v3695_v50 = vsub.f32 1.5, %v3694_v31  ;;  %v3163_v33 = vld [vmem:[%s8005_s27 + $0x50] sm:$0xff] }
 0x591   : > { %v3003_v61 = vmul.f32 0.0051020407, %v2826_v8  ;;  %4019 = vperm.xlu1 %5154, %v8711_v62   ;;  %4849 = vst [vmem:[%s8206_s11 + $0x260] sm:$0xff] %v4741_v28  ;;  %v2700_v11 = vmul.f32 %v8722_v18, %v8722_v18  ;;  %v8748_v44 = vpop.eup %5248 }
 0x592   : > { %4847 = vst [vmem:[%s8206_s11 + $0x250] sm:$0xff] %v4739_v48  ;;  %v3365_v29 = vsub.f32 1.5, %v3364_v47  ;;  %v3696_v37 = vmul.f32 %v8668_v9, %v3695_v50  ;;  %v8756_v26 = vpop.eup %5250  ;;  %v3702_v35 = vmul.f32 %v8748_v44, %v8717_v15  ;;  %vm3708_vm8 = vweird.f32 %v8748_v44  ;;  %v9966_v15 = vld [vmem:[#allocation55_spill] sm:$0xff] }
 0x593   : > { %4848 = vst.msk [vmem:[%s8206_s11 + $0x258] sm:$0xff] %vm367_vm0, %v4740_v10  ;;  %v3111_v51 = vsub.f32 %v3003_v61, %v3057_v42  ;;  %v8739_v42 = vadd.f32 %v8649_v14, %v9961_v56  ;;  %v2839_v19 = vsel %vm367_vm0, %v2700_v11, 0.0  ;;  %v2461_v56 = vpop.f32.mrf.mxu1  ;;  %vm3288_vm10 = vweird.f32 %v8756_v26  ;;  %vm3709_vm11 = vmor %vm3707_vm9, %vm3708_vm8 }
 0x594   : > { %4850 = vst.msk [vmem:[%s8206_s11 + $0x268] sm:$0xff] %vm367_vm0, %v4742_v40  ;;  %v3366_v21 = vmul.f32 %v5247_v55, %v3365_v29  ;;  %v3700_v48 = vsel %vm3699_vm4, %v8668_v9, %v3696_v37  ;;  %v3282_v40 = vmul.f32 %v8756_v26, %v8724_v53  ;;  %v3898_v9 = vld [vmem:[%s8021_s8 + $0x158] sm:$0xff]  ;;  %vm3289_vm13 = vmor %vm3287_vm12, %vm3288_vm10 }
 0x595   : > { %v3219_v57 = vadd.f32 1e-05, %v3111_v51  ;;  %v2699_v14 = vmul.f32 %v8739_v42, %v8739_v42 }
 0x596   : > { %v3370_v22 = vsel %vm3369_vm1, %v5247_v55, %v3366_v21  ;;  %v3196_v55 = vld [vmem:[%s8005_s27 + $0x158] sm:$0xff]  ;;  %v3283_v51 = vmul.f32 %v8756_v26, %v3282_v40  ;;  %v9962_v40 = vld [vmem:[#allocation58_spill] sm:$0xff] }
 0x597   : > { %5252 = vrsqrt.f32 %v3219_v57  ;;  %v8744_v46 = vmul.f32 %v3370_v22, %v3163_v33  ;;  %v2840_v54 = vadd.f32 %v2839_v19, %v2699_v14  ;;  %v3844_v28 = vmul.f32 %v3700_v48, %v3196_v55  ;;  %v2640_v33 = vpop.f32.mrf.mxu3  ;;  %v3165_v19 = vld [vmem:[%s8005_s27 + $0x60] sm:$0xff] }
 0x598   : > { %vm3387_vm6 = vweird.f32 %v3219_v57  ;;  %v3284_v37 = vmul.f32 0.5, %v3283_v51  ;;  %v8771_v48 = vadd.f32 %v2640_v33, %v2461_v56  ;;  %v3036_v51 = vmul.f32 0.0051020407, %v8186_v38  ;;  %v3197_v33 = vld [vmem:[%s8005_s27 + $0x160] sm:$0xff] }
 0x599   : > { %v8754_v31 = vmul.f32 %v8744_v46, %v7640_v7  ;;  %v3703_v7 = vmul.f32 %v8748_v44, %v3702_v35  ;;  %v3952_v47 = vmul.f32 %v3844_v28, %v8636_v6 }
 0x59b   : > { %v3704_v29 = vmul.f32 0.5, %v3703_v7  ;;  %v4006_v21 = vsub.f32 %v3898_v9, %v3952_v47  ;;  %v9964_v7 = vld [vmem:[#allocation26_spill] sm:$0xff]  ;;  %v9965_v47 = vld [vmem:[#allocation31_spill] sm:$0xff] }
 0x59d   : > { %v5253_v10 = vpop.eup %5252  ;;  %2841 = vadd.xlane.f32.xlu2 %v2840_v54  ;;  %v3705_v6 = vsub.f32 1.5, %v3704_v29  ;;  %v2111_v54 = vpop.f32.mrf.mxu2 }
 0x59e   : > { %v3382_v8 = vmul.f32 %v5253_v10, %v3219_v57  ;;  %vm3388_vm5 = vweird.f32 %v5253_v10  ;;  %v3285_v57 = vsub.f32 1.5, %v3284_v37 }
 0x59f   : > { %vm3389_vm7 = vmor %vm3387_vm6, %vm3388_vm5 }
 0x5a0   : > { %v3383_v61 = vmul.f32 %v5253_v10, %v3382_v8  ;;  %v3856_v8 = vld [vmem:[%s8021_s8 + $0x8] sm:$0xff]  ;;  %v3286_v29 = vmul.f32 %v8756_v26, %v3285_v57 }
 0x5a1   : > { %4234 = vperm.xlu0 %5153, %v3844_v28   ;;  %v3706_v28 = vmul.f32 %v8748_v44, %v3705_v6 }
 0x5a2   : > { %v3384_v24 = vmul.f32 0.5, %v3383_v61  ;;  %v3090_v61 = vmul.f32 %v8771_v48, %v8771_v48 }
 0x5a4   : > { %v3385_v50 = vsub.f32 1.5, %v3384_v24  ;;  %v3144_v37 = vsub.f32 %v3036_v51, %v3090_v61  ;;  %v3059_v61 = vmul.f32 %v7720_v2, %v7720_v2 }
 0x5a6   : > { %v3386_v11 = vmul.f32 %v5253_v10, %v3385_v50  ;;  %v1753_v50 = vpop.f32.mrf.mxu0 }
 0x5a8   : > { %v4215_v22 = vpop.permute.xlu1 %4214  ;;  %v3390_v14 = vsel %vm3389_vm7, %v5253_v10, %v3386_v11  ;;  %v8781_v10 = vadd.f32 %v2111_v54, %v9962_v40  ;;  %v8806_v54 = vadd.f32 1e-05, %v3144_v37  ;;  %v3899_v40 = vld [vmem:[%s8021_s8 + $0x160] sm:$0xff] }
 0x5a9   : > { %4612 = vperm.xlu0 %5153, %v4006_v21   ;;  %v8769_v55 = vmul.f32 %v3390_v14, %v3165_v19  ;;  %v4365_v24 = vmul.f32 %v4215_v22, %v9964_v7  ;;  %v4366_v9 = vmul.f32 %v4215_v22, %v9965_v47  ;;  %v8798_v22 = vadd.f32 %v1753_v50, %v9966_v15  ;;  %v3155_v19 = vld [vmem:[%s8005_s27 + $0x10] sm:$0xff]  ;;  %v8831_v15 = vpop.f32.mrf.mxu2 }
 0x5aa   : > { %9963 = vst [vmem:[#allocation25_spill] sm:$0xff] %v8781_v10  ;;  %v2704_v38 = vmul.f32 %v8781_v10, %v8781_v10  ;;  %v3290_v14 = vsel %vm3289_vm13, %v8756_v26, %v3286_v29  ;;  %5254 = vrsqrt.f32 %v8806_v54  ;;  %v2464_v29 = vpop.f32.mrf.mxu1  ;;  %vm3717_vm3 = vweird.f32 %v8806_v54 }
 0x5ab   : > { %v8775_v35 = vmul.f32 %v8769_v55, %v7680_v17  ;;  %v3964_v17 = vsub.f32 %v3856_v8, %v8353_v52  ;;  %v3710_v52 = vsel %vm3709_vm11, %v8748_v44, %v3706_v28  ;;  %9967 = vst [vmem:[#allocation24_spill] sm:$0xff] %v8798_v22  ;;  %v2703_v57 = vmul.f32 %v8798_v22, %v8798_v22 }
 0x5ac   : > { %v3845_v6 = vmul.f32 %v3710_v52, %v3197_v33  ;;  %v2847_v44 = vsel %vm367_vm0, %v2704_v38, 0.0  ;;  %v8810_v53 = vmul.f32 %v3290_v14, %v3155_v19 }
 0x5ad   : > { %v2848_v28 = vadd.f32 %v2847_v44, %v2703_v57 }
 0x5ae   : > { %v3953_v8 = vmul.f32 %v3845_v6, %v8673_v39  ;;  %v9968_v39 = vld [vmem:[#allocation110_spill] sm:$0xff] }
 0x5af   : > { %v3048_v50 = vmul.f32 %v9968_v39, %v9968_v39 }
 0x5b0   : > { %v4593_v11 = vpop.permute.xlu1 %4592  ;;  %v8819_v51 = vpop.eup %5254 }
 0x5b1   : > { %v4743_v21 = vadd.f32 %v4593_v11, %v4365_v24  ;;  %v4744_v56 = vadd.f32 %v4593_v11, %v4366_v9  ;;  %4402 = vperm.xlu0 %5153, %v3964_v17   ;;  %v4007_v24 = vsub.f32 %v3899_v40, %v3953_v8  ;;  %v2994_v9 = vmul.f32 0.0051020407, %v8340_v45  ;;  %v2643_v11 = vpop.f32.mrf.mxu3 }
 0x5b2   : > { %v8825_v33 = vadd.f32 %v2643_v11, %v2464_v29  ;;  %v3037_v8 = vmul.f32 0.0051020407, %v8157_v49  ;;  %v3855_v29 = vld [vmem:[%s8021_s8] sm:$0xff]  ;;  %vm3718_vm2 = vweird.f32 %v8819_v51 }
 0x5b3   : > { %4851 = vst [vmem:[%s8206_s11 + $0x270] sm:$0xff] %v4743_v21  ;;  %v3102_v21 = vsub.f32 %v2994_v9, %v3048_v50  ;;  %v3909_v9 = vmul.f32 %v8711_v62, %v9954_v60  ;;  %v2117_v60 = vpop.f32.mrf.mxu2  ;;  %vm3719_vm4 = vmor %vm3717_vm3, %vm3718_vm2 }
 0x5b4   : > { %4852 = vst.msk [vmem:[%s8206_s11 + $0x278] sm:$0xff] %vm367_vm0, %v4744_v56  ;;  %v3712_v56 = vmul.f32 %v8819_v51, %v8806_v54  ;;  %v3091_v19 = vmul.f32 %v8825_v33, %v8825_v33 }
 0x5b5   : > { %4239 = vperm.xlu2 %5155, %v3845_v6   ;;  %v8827_v52 = vadd.f32 1e-05, %v3102_v21  ;;  %v3058_v6 = vmul.f32 %v7700_v23, %v7700_v23 }
 0x5b6   : > { %v3713_v45 = vmul.f32 %v8819_v51, %v3712_v56 }
 0x5b7   : > { %vm3297_vm9 = vweird.f32 %v8827_v52 }
 0x5b9   : > { %4029 = vperm.xlu0 %5153, %v8810_v53  }
 0x5ba   : > { %v2834_v26 = vpop.xlane.xlu0 %2833 }
 0x5bb   : > { %v3005_v7 = vmul.f32 0.0051020407, %v2834_v26  ;;  %2849 = vadd.xlane.f32.xlu1 %v2848_v28  ;;  %v3714_v28 = vmul.f32 0.5, %v3713_v45  ;;  %v3145_v26 = vsub.f32 %v3037_v8, %v3091_v19  ;;  %v3963_v45 = vsub.f32 %v3855_v29, %v3909_v9 }
 0x5bd   : > { %v3113_v47 = vsub.f32 %v3005_v7, %v3059_v61  ;;  %4617 = vperm.xlu2 %5155, %v4007_v24   ;;  %v8839_v7 = vpop.f32.mrf.mxu0  ;;  %v3715_v50 = vsub.f32 1.5, %v3714_v28  ;;  %v8849_v21 = vadd.f32 1e-05, %v3145_v26 }
 0x5bf   : > { %v3221_v17 = vadd.f32 1e-05, %v3113_v47  ;;  %vm3727_vm13 = vweird.f32 %v8849_v21 }
 0x5c1   : > { %5256 = vrsqrt.f32 %v3221_v17  ;;  %vm3407_vm15 = vweird.f32 %v3221_v17 }
 0x5c2   : > { %5258 = vrsqrt.f32 %v8827_v52 }
 0x5c5   : > { %4024 = vperm.xlu2 %5155, %v8345_v58  }
 0x5c7   : > { %v5257_v38 = vpop.eup %5256  ;;  %v2830_v14 = vpop.xlane.xlu2 %2829 }
 0x5c8   : > { %v3402_v37 = vmul.f32 %v5257_v38, %v3221_v17  ;;  %v3004_v57 = vmul.f32 0.0051020407, %v2830_v14  ;;  %vm3408_vm14 = vweird.f32 %v5257_v38  ;;  %v8846_v11 = vpop.eup %5258  ;;  %v3716_v14 = vmul.f32 %v8819_v51, %v3715_v50  ;;  %v9969_v17 = vld [vmem:[#allocation32_spill] sm:$0xff] }
 0x5c9   : > { %vm3409_vm1 = vmor %vm3407_vm15, %vm3408_vm14  ;;  %v3292_v62 = vmul.f32 %v8846_v11, %v8827_v52  ;;  %vm3298_vm8 = vweird.f32 %v8846_v11 }
 0x5ca   : > { %v3403_v44 = vmul.f32 %v5257_v38, %v3402_v37  ;;  %v3112_v58 = vsub.f32 %v3004_v57, %v3058_v6  ;;  %v3167_v37 = vld [vmem:[%s8005_s27 + $0x70] sm:$0xff]  ;;  %v9970_v57 = vld [vmem:[#allocation29_spill] sm:$0xff]  ;;  %v3720_v50 = vsel %vm3719_vm4, %v8819_v51, %v3716_v14  ;;  %v2467_v51 = vpop.f32.mrf.mxu1  ;;  %v2646_v14 = vpop.f32.mrf.mxu3  ;;  %vm3299_vm10 = vmor %vm3297_vm9, %vm3298_vm8 }
 0x5cb   : > { %v3293_v54 = vmul.f32 %v8846_v11, %v3292_v62 }
 0x5cc   : > { %v3404_v40 = vmul.f32 0.5, %v3403_v44  ;;  %v8841_v47 = vadd.f32 1e-05, %v3112_v58  ;;  %v9971_v58 = vld [vmem:[#allocation68_spill] sm:$0xff] }
 0x5cd   : > { %v4220_v61 = vpop.permute.xlu0 %4219  ;;  %v8867_v26 = vadd.f32 %v2117_v60, %v9971_v58  ;;  %v9975_v58 = vld [vmem:[#allocation65_spill] sm:$0xff] }
 0x5ce   : > { %v3405_v24 = vsub.f32 1.5, %v3404_v40  ;;  %5260 = vrsqrt.f32 %v8841_v47  ;;  %v4367_v44 = vmul.f32 %v4220_v61, %v9969_v17  ;;  %v4368_v8 = vmul.f32 %v4220_v61, %v9970_v57  ;;  %v3198_v61 = vld [vmem:[%s8005_s27 + $0x168] sm:$0xff] }
 0x5cf   : > { %v4225_v56 = vpop.permute.xlu2 %4224  ;;  %5262 = vrsqrt.f32 %v8849_v21  ;;  %9972 = vst [vmem:[#allocation23_spill] sm:$0xff] %v8867_v26  ;;  %v2708_v57 = vmul.f32 %v8867_v26, %v8867_v26  ;;  %vm3397_vm6 = vweird.f32 %v8841_v47 }
 0x5d0   : > { %v3406_v49 = vmul.f32 %v5257_v38, %v3405_v24 }
 0x5d2   : > { %v3410_v19 = vsel %vm3409_vm1, %v5257_v38, %v3406_v49  ;;  %v1759_v49 = vpop.f32.mrf.mxu0 }
 0x5d3   : > { %v8856_v6 = vmul.f32 %v3410_v19, %v3167_v37  ;;  %v9974_v19 = vld [vmem:[#allocation37_spill] sm:$0xff] }
 0x5d4   : > { %4397 = vperm.xlu1 %5154, %v3963_v45   ;;  %v5261_v40 = vpop.eup %5260  ;;  %v9973_v45 = vld [vmem:[#allocation36_spill] sm:$0xff] }
 0x5d5   : > { %v4598_v38 = vpop.permute.xlu0 %4597  ;;  %v8864_v28 = vmul.f32 %v8856_v6, %v7720_v2  ;;  %v3392_v29 = vmul.f32 %v5261_v40, %v8841_v47  ;;  %v4369_v37 = vmul.f32 %v4225_v56, %v9973_v45  ;;  %v4370_v2 = vmul.f32 %v4225_v56, %v9974_v19 }
 0x5d6   : > { %v4745_v24 = vadd.f32 %v4598_v38, %v4367_v44  ;;  %v4746_v9 = vadd.f32 %v4598_v38, %v4368_v8  ;;  %v3846_v44 = vmul.f32 %v3720_v50, %v3198_v61  ;;  %v8880_v38 = vpop.eup %5262  ;;  %v8883_v45 = vadd.f32 %v1759_v49, %v9975_v58 }
 0x5d7   : > { %v3393_v17 = vmul.f32 %v5261_v40, %v3392_v29  ;;  %v4603_v60 = vpop.permute.xlu2 %4602  ;;  %v3294_v56 = vmul.f32 0.5, %v3293_v54  ;;  %v8888_v50 = vadd.f32 %v2646_v14, %v2467_v51  ;;  %vm3398_vm5 = vweird.f32 %v5261_v40  ;;  %v3166_v14 = vld [vmem:[%s8005_s27 + $0x68] sm:$0xff] }
 0x5d8   : > { %4853 = vst [vmem:[%s8206_s11 + $0x280] sm:$0xff] %v4745_v24  ;;  %v4747_v62 = vadd.f32 %v4603_v60, %v4369_v37  ;;  %v4748_v8 = vadd.f32 %v4603_v60, %v4370_v2  ;;  %v3954_v49 = vmul.f32 %v3846_v44, %v8771_v48  ;;  %v3722_v54 = vmul.f32 %v8880_v38, %v8849_v21  ;;  %vm3399_vm7 = vmor %vm3397_vm6, %vm3398_vm5 }
 0x5d9   : > { %4854 = vst.msk [vmem:[%s8206_s11 + $0x288] sm:$0xff] %vm367_vm0, %v4746_v9  ;;  %v3394_v24 = vmul.f32 0.5, %v3393_v17  ;;  %v3060_v9 = vmul.f32 %v7740_v32, %v7740_v32  ;;  %v2855_v19 = vsel %vm367_vm0, %v2708_v57, 0.0  ;;  %v3900_v17 = vld [vmem:[%s8021_s8 + $0x168] sm:$0xff]  ;;  %v2707_v60 = vmul.f32 %v8883_v45, %v8883_v45 }
 0x5da   : > { %9976 = vst [vmem:[#allocation113_spill] sm:$0xff] %v8883_v45  ;;  %v3092_v48 = vmul.f32 %v8888_v50, %v8888_v50  ;;  %v3723_v57 = vmul.f32 %v8880_v38, %v3722_v54  ;;  %vm3728_vm11 = vweird.f32 %v8880_v38 }
 0x5db   : > { %v2838_v29 = vpop.xlane.xlu1 %2837  ;;  %4855 = vst [vmem:[%s8206_s11 + $0x290] sm:$0xff] %v4747_v62  ;;  %v3395_v37 = vsub.f32 1.5, %v3394_v24  ;;  %v3295_v62 = vsub.f32 1.5, %v3294_v56  ;;  %v4008_v24 = vsub.f32 %v3900_v17, %v3954_v49  ;;  %vm3729_vm14 = vmor %vm3727_vm13, %vm3728_vm11 }
 0x5dc   : > { %v3006_v61 = vmul.f32 0.0051020407, %v2838_v29  ;;  %4244 = vperm.xlu1 %5154, %v3846_v44   ;;  %4856 = vst.msk [vmem:[%s8206_s11 + $0x298] sm:$0xff] %vm367_vm0, %v4748_v8  ;;  %v2856_v44 = vadd.f32 %v2855_v19, %v2707_v60  ;;  %v3724_v49 = vmul.f32 0.5, %v3723_v57  ;;  %v3156_v19 = vld [vmem:[%s8005_s27 + $0x18] sm:$0xff]  ;;  %v9980_v60 = vld [vmem:[#allocation60_spill] sm:$0xff] }
 0x5dd   : > { %v3396_v58 = vmul.f32 %v5261_v40, %v3395_v37  ;;  %v3296_v47 = vmul.f32 %v8846_v11, %v3295_v62  ;;  %v8924_v62 = vadd.f32 %v8839_v7, %v9980_v60 }
 0x5de   : > { %v3114_v2 = vsub.f32 %v3006_v61, %v3060_v9  ;;  %v9977_v9 = vld [vmem:[#allocation63_spill] sm:$0xff] }
 0x5df   : > { %v3400_v8 = vsel %vm3399_vm7, %v5261_v40, %v3396_v58  ;;  %v8908_v56 = vadd.f32 %v8831_v15, %v9977_v9  ;;  %v9979_v61 = vld [vmem:[#allocation7_spill] sm:$0xff]  ;;  %9981 = vst [vmem:[#allocation111_spill] sm:$0xff] %v8924_v62 }
 0x5e0   : > { %v3222_v51 = vadd.f32 1e-05, %v3114_v2  ;;  %v8904_v29 = vmul.f32 %v3400_v8, %v3166_v14  ;;  %v3038_v37 = vmul.f32 0.0051020407, %v9979_v61  ;;  %v3300_v2 = vsel %vm3299_vm10, %v8846_v11, %v3296_v47  ;;  %v3199_v47 = vld [vmem:[%s8005_s27 + $0x170] sm:$0xff] }
 0x5e1   : > { %9978 = vst [vmem:[#allocation114_spill] sm:$0xff] %v8908_v56  ;;  %v2706_v15 = vmul.f32 %v8908_v56, %v8908_v56  ;;  %v3725_v14 = vsub.f32 1.5, %v3724_v49  ;;  %v2705_v8 = vmul.f32 %v8924_v62, %v8924_v62  ;;  %v3168_v49 = vld [vmem:[%s8005_s27 + $0x78] sm:$0xff] }
 0x5e2   : > { %5264 = vrsqrt.f32 %v3222_v51  ;;  %v8915_v40 = vmul.f32 %v8904_v29, %v7700_v23  ;;  %v3146_v54 = vsub.f32 %v3038_v37, %v3092_v48  ;;  %vm3417_vm15 = vweird.f32 %v3222_v51 }
 0x5e3   : > { %2857 = vadd.xlane.f32.xlu0 %v2856_v44  ;;  %v8928_v44 = vmul.f32 %v3300_v2, %v3156_v19  ;;  %v2851_v52 = vsel %vm367_vm0, %v2706_v15, 0.0  ;;  %v3726_v7 = vmul.f32 %v8880_v38, %v3725_v14 }
 0x5e4   : > { %4622 = vperm.xlu1 %5154, %v4008_v24   ;;  %v8926_v23 = vadd.f32 1e-05, %v3146_v54  ;;  %v2852_v24 = vadd.f32 %v2851_v52, %v2705_v8  ;;  %v9983_v52 = vld [vmem:[#allocation41_spill] sm:$0xff] }
 0x5e5   : > { %v3730_v61 = vsel %vm3729_vm14, %v8880_v38, %v3726_v7  ;;  %v3901_v38 = vld [vmem:[%s8021_s8 + $0x170] sm:$0xff] }
 0x5e6   : > { %5266 = vrsqrt.f32 %v8926_v23  ;;  %v3847_v2 = vmul.f32 %v3730_v61, %v3199_v47  ;;  %v2470_v61 = vpop.f32.mrf.mxu1  ;;  %vm3737_vm3 = vweird.f32 %v8926_v23 }
 0x5e8   : > { %v5265_v17 = vpop.eup %5264 }
 0x5e9   : > { %v3412_v58 = vmul.f32 %v5265_v17, %v3222_v51  ;;  %vm3418_vm12 = vweird.f32 %v5265_v17  ;;  %v3955_v51 = vmul.f32 %v3847_v2, %v8825_v33 }
 0x5ea   : > { %vm3419_vm1 = vmor %vm3417_vm15, %vm3418_vm12 }
 0x5eb   : > { %v3413_v48 = vmul.f32 %v5265_v17, %v3412_v58  ;;  %v9982_v58 = vld [vmem:[#allocation34_spill] sm:$0xff] }
 0x5ec   : > { %4034 = vperm.xlu1 %5154, %v8928_v44   ;;  %v5267_v15 = vpop.eup %5266 }
 0x5ed   : > { %v3414_v11 = vmul.f32 0.5, %v3413_v48  ;;  %v3732_v60 = vmul.f32 %v5267_v15, %v8926_v23  ;;  %vm3738_vm2 = vweird.f32 %v5267_v15 }
 0x5ee   : > { %2853 = vadd.xlane.f32.xlu2 %v2852_v24  ;;  %v4009_v24 = vsub.f32 %v3901_v38, %v3955_v51  ;;  %vm3739_vm4 = vmor %vm3737_vm3, %vm3738_vm2 }
 0x5ef   : > { %v3415_v57 = vsub.f32 1.5, %v3414_v11  ;;  %v3733_v48 = vmul.f32 %v5267_v15, %v3732_v60  ;;  %v3857_v60 = vld [vmem:[%s8021_s8 + $0x10] sm:$0xff] }
 0x5f1   : > { %v3416_v9 = vmul.f32 %v5265_v17, %v3415_v57  ;;  %v3734_v57 = vmul.f32 0.5, %v3733_v48  ;;  %v3859_v48 = vld [vmem:[%s8021_s8 + $0x20] sm:$0xff] }
 0x5f2   : > { %v3967_v23 = vsub.f32 %v3859_v48, %v8461_v4  ;;  %v9990_v4 = vld [vmem:[#allocation46_spill] sm:$0xff] }
 0x5f3   : > { %v4230_v37 = vpop.permute.xlu1 %4229  ;;  %v3420_v54 = vsel %vm3419_vm1, %v5265_v17, %v3416_v9  ;;  %v9984_v9 = vld [vmem:[#allocation51_spill] sm:$0xff] }
 0x5f4   : > { %v8941_v19 = vmul.f32 %v3420_v54, %v3168_v49  ;;  %v4371_v14 = vmul.f32 %v4230_v37, %v9982_v58  ;;  %v4372_v17 = vmul.f32 %v4230_v37, %v9983_v52  ;;  %v3062_v33 = vmul.f32 %v9984_v9, %v9984_v9  ;;  %v2649_v49 = vpop.f32.mrf.mxu3  ;;  %v2120_v58 = vpop.f32.mrf.mxu2 }
 0x5f5   : > { %v3911_v37 = vmul.f32 %v8810_v53, %v9959_v43  ;;  %v3735_v54 = vsub.f32 1.5, %v3734_v57  ;;  %v8960_v51 = vadd.f32 %v2649_v49, %v2470_v61 }
 0x5f6   : > { %v8945_v21 = vmul.f32 %v8941_v19, %v7740_v32 }
 0x5f7   : > { %4249 = vperm.xlu0 %5153, %v3847_v2   ;;  %v3736_v52 = vmul.f32 %v5267_v15, %v3735_v54  ;;  %v3093_v53 = vmul.f32 %v8960_v51, %v8960_v51 }
 0x5f9   : > { %v3740_v57 = vsel %vm3739_vm4, %v5267_v15, %v3736_v52 }
 0x5fb   : > { %v4608_v8 = vpop.permute.xlu1 %4607 }
 0x5fc   : > { %v4749_v11 = vadd.f32 %v4608_v8, %v4371_v14  ;;  %v4750_v7 = vadd.f32 %v4608_v8, %v4372_v17  ;;  %v3965_v14 = vsub.f32 %v3857_v60, %v3911_v37  ;;  %v9985_v17 = vld [vmem:[#allocation73_spill] sm:$0xff]  ;;  %v9987_v8 = vld [vmem:[#allocation6_spill] sm:$0xff] }
 0x5fd   : > { %v8965_v43 = vadd.f32 %v2120_v58, %v9985_v17  ;;  %v3061_v17 = vmul.f32 %v9990_v4, %v9990_v4 }
 0x5fe   : > { %4857 = vst [vmem:[%s8206_s11 + $0x2a0] sm:$0xff] %v4749_v11  ;;  %v3039_v11 = vmul.f32 0.0051020407, %v9987_v8 }
 0x5ff   : > { %4858 = vst.msk [vmem:[%s8206_s11 + $0x2a8] sm:$0xff] %vm367_vm0, %v4750_v7  ;;  %4627 = vperm.xlu0 %5153, %v4009_v24   ;;  %v1762_v7 = vpop.f32.mrf.mxu0  ;;  %v3200_v24 = vld [vmem:[%s8005_s27 + $0x178] sm:$0xff] }
 0x600   : > { %v2846_v32 = vpop.xlane.xlu0 %2845  ;;  %9986 = vst [vmem:[#allocation112_spill] sm:$0xff] %v8965_v43  ;;  %v3848_v49 = vmul.f32 %v3740_v57, %v3200_v24 }
 0x601   : > { %v3008_v47 = vmul.f32 0.0051020407, %v2846_v32 }
 0x602   : > { %v3956_v58 = vmul.f32 %v3848_v49, %v8888_v50 }
 0x603   : > { %v3116_v2 = vsub.f32 %v3008_v47, %v3062_v33  ;;  %v3147_v33 = vsub.f32 %v3039_v11, %v3093_v53  ;;  %v9988_v47 = vld [vmem:[#allocation70_spill] sm:$0xff]  ;;  %v3902_v53 = vld [vmem:[%s8021_s8 + $0x178] sm:$0xff] }
 0x604   : > { %v8976_v61 = vadd.f32 %v1762_v7, %v9988_v47  ;;  %v4010_v57 = vsub.f32 %v3902_v53, %v3956_v58  ;;  %v3170_v47 = vld [vmem:[%s8005_s27 + $0x88] sm:$0xff] }
 0x605   : > { %v3224_v38 = vadd.f32 1e-05, %v3116_v2  ;;  %v8979_v60 = vadd.f32 1e-05, %v3147_v33  ;;  %v2473_v33 = vpop.f32.mrf.mxu1 }
 0x606   : > { %4407 = vperm.xlu2 %5155, %v3965_v14   ;;  %9989 = vst [vmem:[#allocation22_spill] sm:$0xff] %v8976_v61  ;;  %v2709_v15 = vmul.f32 %v8976_v61, %v8976_v61 }
 0x607   : > { %5268 = vrsqrt.f32 %v3224_v38  ;;  %4039 = vperm.xlu0 %5153, %v8452_v0   ;;  %v2710_v0 = vmul.f32 %v8965_v43, %v8965_v43  ;;  %vm3437_vm6 = vweird.f32 %v3224_v38  ;;  %vm3747_vm12 = vweird.f32 %v8979_v60 }
 0x608   : > { %5270 = vrsqrt.f32 %v8979_v60 }
 0x609   : > { %v2859_v2 = vsel %vm367_vm0, %v2710_v0, 0.0 }
 0x60a   : > { %v2860_v7 = vadd.f32 %v2859_v2, %v2709_v15  ;;  %v9991_v2 = vld [vmem:[#allocation42_spill] sm:$0xff] }
 0x60d   : > { %v5269_v32 = vpop.eup %5268  ;;  %v2476_v61 = vpop.f32.mrf.mxu1 }
 0x60e   : > { %v3432_v37 = vmul.f32 %v5269_v32, %v3224_v38  ;;  %4254 = vperm.xlu2 %5155, %v3848_v49   ;;  %vm3438_vm5 = vweird.f32 %v5269_v32 }
 0x60f   : > { %4417 = vperm.xlu0 %5153, %v3967_v23   ;;  %vm3439_vm7 = vmor %vm3437_vm6, %vm3438_vm5  ;;  %v2652_v23 = vpop.f32.mrf.mxu3 }
 0x610   : > { %v3433_v54 = vmul.f32 %v5269_v32, %v3432_v37  ;;  %v2842_v52 = vpop.xlane.xlu2 %2841  ;;  %v2997_v37 = vmul.f32 0.0051020407, %v8464_v3 }
 0x611   : > { %v3007_v48 = vmul.f32 0.0051020407, %v2842_v52  ;;  %v8994_v52 = vpop.eup %5270 }
 0x612   : > { %v3434_v14 = vmul.f32 0.5, %v3433_v54  ;;  %vm3748_vm11 = vweird.f32 %v8994_v52 }
 0x613   : > { %v4235_v8 = vpop.permute.xlu0 %4234  ;;  %v3115_v24 = vsub.f32 %v3007_v48, %v3061_v17  ;;  %v9993_v17 = vld [vmem:[#allocation116_spill] sm:$0xff]  ;;  %v8998_v48 = vadd.f32 %v2652_v23, %v2473_v33  ;;  %v9994_v23 = vld [vmem:[#allocation2_spill] sm:$0xff]  ;;  %vm3749_vm13 = vmor %vm3747_vm12, %vm3748_vm11 }
 0x614   : > { %v3435_v11 = vsub.f32 1.5, %v3434_v14  ;;  %v4373_v15 = vmul.f32 %v4235_v8, %v9991_v2  ;;  %v9992_v14 = vld [vmem:[#allocation39_spill] sm:$0xff]  ;;  %v3051_v53 = vmul.f32 %v9993_v17, %v9993_v17 }
 0x615   : > { %v3223_v50 = vadd.f32 1e-05, %v3115_v24  ;;  %v4374_v58 = vmul.f32 %v4235_v8, %v9992_v14  ;;  %v9995_v2 = vld [vmem:[#allocation47_spill] sm:$0xff] }
 0x616   : > { %v3436_v0 = vmul.f32 %v5269_v32, %v3435_v11  ;;  %2861 = vadd.xlane.f32.xlu1 %v2860_v7  ;;  %4632 = vperm.xlu2 %5155, %v4010_v57   ;;  %v3105_v24 = vsub.f32 %v2997_v37, %v3051_v53  ;;  %v3742_v57 = vmul.f32 %v8994_v52, %v8979_v60 }
 0x617   : > { %5272 = vrsqrt.f32 %v3223_v50  ;;  %v2655_v22 = vpop.f32.mrf.mxu3  ;;  %vm3427_vm9 = vweird.f32 %v3223_v50 }
 0x618   : > { %v3440_v49 = vsel %vm3439_vm7, %v5269_v32, %v3436_v0  ;;  %v4240_v38 = vpop.permute.xlu2 %4239  ;;  %v9007_v0 = vpop.f32.mrf.mxu2 }
 0x619   : > { %v8990_v54 = vmul.f32 %v3440_v49, %v3170_v47  ;;  %v3094_v47 = vmul.f32 %v8998_v48, %v8998_v48  ;;  %v9014_v49 = vadd.f32 1e-05, %v3105_v24  ;;  %v4375_v37 = vmul.f32 %v4240_v38, %v9995_v2 }
 0x61a   : > { %v3912_v2 = vmul.f32 %v8928_v44, %v9968_v39 }
 0x61b   : > { %v4613_v32 = vpop.permute.xlu0 %4612  ;;  %v9002_v3 = vmul.f32 %v8990_v54, %v9984_v9  ;;  %v3040_v9 = vmul.f32 0.0051020407, %v9994_v23  ;;  %5274 = vrsqrt.f32 %v9014_v49  ;;  %vm3327_vm15 = vweird.f32 %v9014_v49 }
 0x61c   : > { %v4751_v11 = vadd.f32 %v4613_v32, %v4373_v15  ;;  %v4752_v7 = vadd.f32 %v4613_v32, %v4374_v58  ;;  %v9996_v15 = vld [vmem:[#allocation44_spill] sm:$0xff]  ;;  %v3743_v58 = vmul.f32 %v8994_v52, %v3742_v57 }
 0x61d   : > { %v5273_v8 = vpop.eup %5272  ;;  %v4376_v14 = vmul.f32 %v4240_v38, %v9996_v15  ;;  %v3148_v43 = vsub.f32 %v3040_v9, %v3094_v47  ;;  %v9023_v38 = vpop.permute.xlu1 %4019 }
 0x61e   : > { %4859 = vst [vmem:[%s8206_s11 + $0x2b0] sm:$0xff] %v4751_v11  ;;  %v3422_v33 = vmul.f32 %v5273_v8, %v3223_v50  ;;  %v9019_v11 = vpop.f32.mrf.mxu0  ;;  %v3744_v24 = vmul.f32 0.5, %v3743_v58  ;;  %vm3428_vm8 = vweird.f32 %v5273_v8 }
 0x61f   : > { %4860 = vst.msk [vmem:[%s8206_s11 + $0x2b8] sm:$0xff] %vm367_vm0, %v4752_v7  ;;  %vm3429_vm10 = vmor %vm3427_vm9, %vm3428_vm8 }
 0x620   : > { %v3423_v53 = vmul.f32 %v5273_v8, %v3422_v33  ;;  %v4618_v32 = vpop.permute.xlu2 %4617  ;;  %v9027_v33 = vadd.f32 1e-05, %v3148_v43  ;;  %v2126_v9 = vpop.f32.mrf.mxu2  ;;  %v3745_v15 = vsub.f32 1.5, %v3744_v24  ;;  %v9998_v43 = vld [vmem:[#allocation95_spill] sm:$0xff] }
 0x621   : > { %v4753_v7 = vadd.f32 %v4618_v32, %v4375_v37  ;;  %v4754_v10 = vadd.f32 %v4618_v32, %v4376_v14  ;;  %v3169_v37 = vld [vmem:[%s8005_s27 + $0x80] sm:$0xff]  ;;  %v9033_v32 = vpop.eup %5274  ;;  %v9043_v24 = vpop.f32.mrf.mxu1 }
 0x622   : > { %v3424_v23 = vmul.f32 0.5, %v3423_v53  ;;  %v3858_v53 = vld [vmem:[%s8021_s8 + $0x18] sm:$0xff]  ;;  %5276 = vrsqrt.f32 %v9027_v33  ;;  %vm3328_vm14 = vweird.f32 %v9033_v32  ;;  %vm3757_vm6 = vweird.f32 %v9027_v33 }
 0x623   : > { %4861 = vst [vmem:[%s8206_s11 + $0x2c0] sm:$0xff] %v4753_v7  ;;  %v9997_v7 = vld [vmem:[#allocation99_spill] sm:$0xff]  ;;  %v4403_v39 = vpop.permute.xlu0 %4402  ;;  %v3966_v45 = vsub.f32 %v3858_v53, %v3912_v2  ;;  %v10002_v53 = vld [vmem:[#allocation81_spill] sm:$0xff]  ;;  %vm9105_vm1 = vmor %vm3327_vm15, %vm3328_vm14 }
 0x624   : > { %v3425_v57 = vsub.f32 1.5, %v3424_v23  ;;  %4862 = vst.msk [vmem:[%s8206_s11 + $0x2c8] sm:$0xff] %vm367_vm0, %v4754_v10 }
 0x626   : > { %v3426_v47 = vmul.f32 %v5273_v8, %v3425_v57  ;;  %v9999_v57 = vld [vmem:[#allocation85_spill] sm:$0xff]  ;;  %v1768_v44 = vpop.f32.mrf.mxu0 }
 0x627   : > { %v9041_v26 = vadd.f32 %v2126_v9, %v9999_v57  ;;  %v3322_v9 = vmul.f32 %v9033_v32, %v9014_v49  ;;  %v3201_v57 = vld [vmem:[%s8005_s27 + $0x180] sm:$0xff] }
 0x628   : > { %v4025_v14 = vpop.permute.xlu2 %4024  ;;  %v3430_v58 = vsel %vm3429_vm10, %v5273_v8, %v3426_v47 }
 0x629   : > { %v4289_v10 = vmul.f32 %v4025_v14, %v9997_v7  ;;  %v4290_v23 = vmul.f32 %v4025_v14, %v9998_v43  ;;  %v9038_v50 = vmul.f32 %v3430_v58, %v3169_v37  ;;  %10000 = vst [vmem:[#allocation28_spill] sm:$0xff] %v9041_v26  ;;  %v3746_v14 = vmul.f32 %v8994_v52, %v3745_v15  ;;  %v9051_v37 = vpop.f32.mrf.mxu3  ;;  %v10001_v7 = vld [vmem:[#allocation56_spill] sm:$0xff]  ;;  %v9063_v15 = vpop.eup %5276 }
 0x62a   : > { %v9066_v43 = vadd.f32 %v1768_v44, %v10002_v53  ;;  %vm3758_vm3 = vweird.f32 %v9063_v15 }
 0x62b   : > { %v4667_v8 = vadd.f32 %v4403_v39, %v4289_v10  ;;  %v4668_v47 = vadd.f32 %v4403_v39, %v4290_v23  ;;  %v9047_v56 = vmul.f32 %v9038_v50, %v9990_v4  ;;  %v3063_v10 = vmul.f32 %v10001_v7, %v10001_v7  ;;  %vm3759_vm7 = vmor %vm3757_vm6, %vm3758_vm3 }
 0x62c   : > { %v2714_v4 = vmul.f32 %v9041_v26, %v9041_v26  ;;  %10003 = vst [vmem:[#allocation27_spill] sm:$0xff] %v9066_v43  ;;  %v3750_v39 = vsel %vm3749_vm13, %v8994_v52, %v3746_v14  ;;  %v2713_v44 = vmul.f32 %v9066_v43, %v9066_v43 }
 0x62d   : > { %4775 = vst [vmem:[%s8206_s11 + $0x10] sm:$0xff] %v4667_v8  ;;  %v3323_v8 = vmul.f32 %v9033_v32, %v3322_v9  ;;  %v3849_v62 = vmul.f32 %v3750_v39, %v3201_v57  ;;  %v3903_v39 = vld [vmem:[%s8021_s8 + $0x180] sm:$0xff] }
 0x62e   : > { %v2850_v58 = vpop.xlane.xlu1 %2849  ;;  %4776 = vst.msk [vmem:[%s8206_s11 + $0x18] sm:$0xff] %vm367_vm0, %v4668_v47  ;;  %v3752_v47 = vmul.f32 %v9063_v15, %v9027_v33  ;;  %v2867_v26 = vsel %vm367_vm0, %v2714_v4, 0.0 }
 0x62f   : > { %v3009_v2 = vmul.f32 0.0051020407, %v2850_v58  ;;  %4412 = vperm.xlu1 %5154, %v3966_v45   ;;  %v10004_v58 = vld [vmem:[#allocation79_spill] sm:$0xff]  ;;  %v3324_v52 = vmul.f32 0.5, %v3323_v8  ;;  %v2868_v14 = vadd.f32 %v2867_v26, %v2713_v44  ;;  %v3957_v57 = vmul.f32 %v3849_v62, %v8960_v51 }
 0x630   : > { %v9073_v60 = vadd.f32 %v9007_v0, %v10004_v58  ;;  %v3753_v9 = vmul.f32 %v9063_v15, %v3752_v47  ;;  %v10008_v58 = vld [vmem:[#allocation5_spill] sm:$0xff] }
 0x631   : > { %v3117_v23 = vsub.f32 %v3009_v2, %v3063_v10  ;;  %v9080_v10 = vadd.f32 %v2655_v22, %v2476_v61  ;;  %v2482_v2 = vpop.f32.mrf.mxu1  ;;  %v2661_v53 = vpop.f32.mrf.mxu3  ;;  %v3325_v61 = vsub.f32 1.5, %v3324_v52  ;;  %v3041_v44 = vmul.f32 0.0051020407, %v10008_v58 }
 0x632   : > { %10005 = vst [vmem:[#allocation115_spill] sm:$0xff] %v9073_v60  ;;  %v2712_v0 = vmul.f32 %v9073_v60, %v9073_v60  ;;  %v9093_v8 = vadd.f32 %v2661_v53, %v2482_v2  ;;  %v3754_v60 = vmul.f32 0.5, %v3753_v9  ;;  %v10009_v9 = vld [vmem:[#allocation3_spill] sm:$0xff] }
 0x633   : > { %v3225_v45 = vadd.f32 1e-05, %v3117_v23  ;;  %v10006_v23 = vld [vmem:[#allocation75_spill] sm:$0xff]  ;;  %v3095_v22 = vmul.f32 %v9080_v10, %v9080_v10  ;;  %v3326_v51 = vmul.f32 %v9033_v32, %v3325_v61  ;;  %v3043_v58 = vmul.f32 0.0051020407, %v10009_v9 }
 0x634   : > { %v9087_v4 = vadd.f32 %v9019_v11, %v10006_v23  ;;  %v2863_v47 = vsel %vm367_vm0, %v2712_v0, 0.0  ;;  %v4011_v23 = vsub.f32 %v3903_v39, %v3957_v57  ;;  %v3755_v53 = vsub.f32 1.5, %v3754_v60  ;;  %v9143_v57 = vpop.permute.xlu0 %4029 }
 0x635   : > { %5278 = vrsqrt.f32 %v3225_v45  ;;  %v3330_v60 = vsel %vm9105_vm1, %v9033_v32, %v3326_v51  ;;  %vm3447_vm4 = vweird.f32 %v3225_v45  ;;  %v3171_v51 = vld [vmem:[%s8005_s27 + $0x90] sm:$0xff] }
 0x636   : > { %10007 = vst [vmem:[#allocation38_spill] sm:$0xff] %v9087_v4  ;;  %v2711_v11 = vmul.f32 %v9087_v4, %v9087_v4  ;;  %v3756_v49 = vmul.f32 %v9063_v15, %v3755_v53 }
 0x637   : > { %4259 = vperm.xlu1 %5154, %v3849_v62   ;;  %v3149_v62 = vsub.f32 %v3041_v44, %v3095_v22 }
 0x638   : > { %v2864_v2 = vadd.f32 %v2863_v47, %v2711_v11  ;;  %v10012_v47 = vld [vmem:[#allocation86_spill] sm:$0xff]  ;;  %v3760_v9 = vsel %vm3759_vm7, %v9063_v15, %v3756_v49 }
 0x639   : > { %2869 = vadd.xlane.f32.xlu0 %v2868_v14  ;;  %v3097_v14 = vmul.f32 %v9093_v8, %v9093_v8  ;;  %v9109_v39 = vadd.f32 1e-05, %v3149_v62  ;;  %v4287_v11 = vmul.f32 %v9023_v38, %v10012_v47  ;;  %v2485_v47 = vpop.f32.mrf.mxu1 }
 0x63b   : > { %v5279_v26 = vpop.eup %5278  ;;  %v3151_v61 = vsub.f32 %v3043_v58, %v3097_v14  ;;  %5280 = vrsqrt.f32 %v9109_v39  ;;  %vm3767_vm9 = vweird.f32 %v9109_v39 }
 0x63c   : > { %v3442_v43 = vmul.f32 %v5279_v26, %v3225_v45  ;;  %vm3448_vm2 = vweird.f32 %v5279_v26 }
 0x63d   : > { %vm3449_vm5 = vmor %vm3447_vm4, %vm3448_vm2  ;;  %v9126_v45 = vadd.f32 1e-05, %v3151_v61 }
 0x63e   : > { %v3443_v52 = vmul.f32 %v5279_v26, %v3442_v43  ;;  %v3159_v43 = vld [vmem:[%s8005_s27 + $0x30] sm:$0xff] }
 0x63f   : > { %4637 = vperm.xlu1 %5154, %v4011_v23   ;;  %2865 = vadd.xlane.f32.xlu2 %v2864_v2  ;;  %v10013_v23 = vld [vmem:[#allocation93_spill] sm:$0xff]  ;;  %5282 = vrsqrt.f32 %v9126_v45  ;;  %vm3787_vm12 = vweird.f32 %v9126_v45 }
 0x640   : > { %v3444_v0 = vmul.f32 0.5, %v3443_v52  ;;  %v4288_v62 = vmul.f32 %v9023_v38, %v10013_v23  ;;  %v9121_v52 = vmul.f32 %v3330_v60, %v3159_v43  ;;  %v3904_v60 = vld [vmem:[%s8021_s8 + $0x188] sm:$0xff]  ;;  %v10014_v23 = vld [vmem:[#allocation52_spill] sm:$0xff] }
 0x641   : > { %v9141_v58 = vpop.eup %5280 }
 0x642   : > { %v3445_v22 = vsub.f32 1.5, %v3444_v0  ;;  %v3202_v0 = vld [vmem:[%s8005_s27 + $0x188] sm:$0xff]  ;;  %v3762_v15 = vmul.f32 %v9141_v58, %v9109_v39  ;;  %vm3768_vm8 = vweird.f32 %v9141_v58 }
 0x643   : > { %vm9179_vm10 = vmor %vm3767_vm9, %vm3768_vm8 }
 0x644   : > { %v3446_v44 = vmul.f32 %v5279_v26, %v3445_v22  ;;  %v3763_v49 = vmul.f32 %v9141_v58, %v3762_v15 }
 0x645   : > { %v9149_v61 = vpop.eup %5282 }
 0x646   : > { %v4398_v32 = vpop.permute.xlu1 %4397  ;;  %v3450_v14 = vsel %vm3449_vm5, %v5279_v26, %v3446_v44  ;;  %v3850_v26 = vmul.f32 %v3760_v9, %v3202_v0  ;;  %v3782_v44 = vmul.f32 %v9149_v61, %v9126_v45  ;;  %vm3788_vm11 = vweird.f32 %v9149_v61  ;;  %v10023_v45 = vld [vmem:[#allocation92_spill] sm:$0xff] }
 0x647   : > { %v4665_v2 = vadd.f32 %v4398_v32, %v4287_v11  ;;  %v4666_v53 = vadd.f32 %v4398_v32, %v4288_v62  ;;  %4049 = vperm.xlu1 %5154, %v9121_v52   ;;  %v9129_v38 = vmul.f32 %v3450_v14, %v3171_v51  ;;  %v2664_v11 = vpop.f32.mrf.mxu3  ;;  %v10015_v32 = vld [vmem:[#allocation49_spill] sm:$0xff]  ;;  %v10016_v51 = vld [vmem:[#allocation66_spill] sm:$0xff]  ;;  %vm3789_vm13 = vmor %vm3787_vm12, %vm3788_vm11 }
 0x648   : > { %v3958_v43 = vmul.f32 %v3850_v26, %v8998_v48  ;;  %v3065_v14 = vmul.f32 %v10016_v51, %v10016_v51  ;;  %v9158_v0 = vadd.f32 %v2664_v11, %v2485_v47  ;;  %v3783_v15 = vmul.f32 %v9149_v61, %v3782_v44  ;;  %v3860_v11 = vld [vmem:[%s8021_s8 + $0x28] sm:$0xff] }
 0x649   : > { %4773 = vst [vmem:[%s8206_s11] sm:$0xff] %v4665_v2  ;;  %v9136_v33 = vmul.f32 %v9129_v38, %v10001_v7  ;;  %v3968_v44 = vsub.f32 %v3860_v11, %v8442_v1  ;;  %v1771_v11 = vpop.f32.mrf.mxu0 }
 0x64a   : > { %4774 = vst.msk [vmem:[%s8206_s11 + $0x8] sm:$0xff] %vm367_vm0, %v4666_v53  ;;  %v4012_v7 = vsub.f32 %v3904_v60, %v3958_v43  ;;  %v3764_v60 = vmul.f32 0.5, %v3763_v49  ;;  %v3784_v47 = vmul.f32 0.5, %v3783_v15  ;;  %v9172_v49 = vadd.f32 %v9051_v37, %v9043_v24  ;;  %v10020_v24 = vld [vmem:[#allocation91_spill] sm:$0xff] }
 0x64c   : > { %v3096_v1 = vmul.f32 %v9172_v49, %v9172_v49 }
 0x64d   : > { %4264 = vperm.xlu0 %5153, %v3850_v26  }
 0x64e   : > { %v4245_v22 = vpop.permute.xlu1 %4244 }
 0x64f   : > { %v4377_v62 = vmul.f32 %v4245_v22, %v10014_v23  ;;  %v4378_v48 = vmul.f32 %v4245_v22, %v10015_v32  ;;  %v3098_v22 = vmul.f32 %v9158_v0, %v9158_v0  ;;  %v3765_v23 = vsub.f32 1.5, %v3764_v60  ;;  %v10017_v32 = vld [vmem:[#allocation4_spill] sm:$0xff] }
 0x650   : > { %v3203_v60 = vld [vmem:[%s8005_s27 + $0x190] sm:$0xff] }
 0x655   : > { %4642 = vperm.xlu0 %5153, %v4012_v7  }
 0x656   : > { %v2858_v2 = vpop.xlane.xlu0 %2857  ;;  %v4623_v53 = vpop.permute.xlu1 %4622 }
 0x657   : > { %v3011_v9 = vmul.f32 0.0051020407, %v2858_v2  ;;  %v4755_v26 = vadd.f32 %v4623_v53, %v4377_v62  ;;  %v4756_v43 = vadd.f32 %v4623_v53, %v4378_v48  ;;  %4044 = vperm.xlu2 %5155, %v8431_v25   ;;  %v3044_v62 = vmul.f32 0.0051020407, %v10017_v32  ;;  %v3862_v2 = vld [vmem:[%s8021_s8 + $0x38] sm:$0xff] }
 0x658   : > { %v3766_v48 = vmul.f32 %v9141_v58, %v3765_v23  ;;  %v10021_v23 = vld [vmem:[#allocation8_spill] sm:$0xff] }
 0x659   : > { %v3119_v4 = vsub.f32 %v3011_v9, %v3065_v14  ;;  %4863 = vst [vmem:[%s8206_s11 + $0x2d0] sm:$0xff] %v4755_v26  ;;  %v3152_v25 = vsub.f32 %v3044_v62, %v3098_v22  ;;  %v3785_v14 = vsub.f32 1.5, %v3784_v47  ;;  %v3042_v47 = vmul.f32 0.0051020407, %v10021_v23  ;;  %v3905_v23 = vld [vmem:[%s8021_s8 + $0x190] sm:$0xff] }
 0x65a   : > { %4864 = vst.msk [vmem:[%s8206_s11 + $0x2d8] sm:$0xff] %vm367_vm0, %v4756_v43  ;;  %v3970_v43 = vsub.f32 %v3862_v2, %v8585_v63  ;;  %v3770_v39 = vsel %vm9179_vm10, %v9141_v58, %v3766_v48  ;;  %v3205_v58 = vld [vmem:[%s8005_s27 + $0x1a0] sm:$0xff] }
 0x65b   : > { %v3227_v7 = vadd.f32 1e-05, %v3119_v4  ;;  %v2129_v4 = vpop.f32.mrf.mxu2  ;;  %v9188_v9 = vadd.f32 1e-05, %v3152_v25  ;;  %v3786_v15 = vmul.f32 %v9149_v61, %v3785_v14  ;;  %v3851_v62 = vmul.f32 %v3770_v39, %v3203_v60 }
 0x65c   : > { %v9184_v37 = vadd.f32 %v2129_v4, %v10020_v24  ;;  %v3150_v25 = vsub.f32 %v3042_v47, %v3096_v1  ;;  %v10022_v4 = vld [vmem:[#allocation87_spill] sm:$0xff]  ;;  %v10024_v24 = vld [vmem:[#allocation94_spill] sm:$0xff] }
 0x65d   : > { %5284 = vrsqrt.f32 %v3227_v7  ;;  %4054 = vperm.xlu0 %5153, %v8574_v20   ;;  %v9207_v14 = vadd.f32 %v1771_v11, %v10022_v4  ;;  %v4291_v20 = vmul.f32 %v9143_v57, %v10023_v45  ;;  %v3959_v60 = vmul.f32 %v3851_v62, %v9080_v10  ;;  %v3173_v10 = vld [vmem:[%s8005_s27 + $0xa0] sm:$0xff] }
 0x65e   : > { %v2716_v63 = vmul.f32 %v9184_v37, %v9184_v37  ;;  %5286 = vrsqrt.f32 %v9188_v9  ;;  %v9215_v39 = vadd.f32 1e-05, %v3150_v25  ;;  %vm3467_vm15 = vweird.f32 %v3227_v7  ;;  %v10026_v45 = vld [vmem:[#allocation54_spill] sm:$0xff] }
 0x65f   : > { %4422 = vperm.xlu2 %5155, %v3968_v44   ;;  %v3790_v44 = vsel %vm3789_vm13, %v9149_v61, %v3786_v15  ;;  %vm3797_vm3 = vweird.f32 %v9188_v9 }
 0x660   : > { %v2871_v61 = vsel %vm367_vm0, %v2716_v63, 0.0  ;;  %v9217_v15 = vmul.f32 %v3790_v44, %v3205_v58  ;;  %v4013_v63 = vsub.f32 %v3905_v23, %v3959_v60  ;;  %5288 = vrsqrt.f32 %v9215_v39  ;;  %v10025_v44 = vld [vmem:[#allocation57_spill] sm:$0xff] }
 0x661   : > { %v9190_v26 = vpop.xlane.xlu2 %2853  ;;  %vm3777_vm6 = vweird.f32 %v9215_v39 }
 0x663   : > { %v5285_v53 = vpop.eup %5284 }
 0x664   : > { %v3462_v22 = vmul.f32 %v5285_v53, %v3227_v7  ;;  %vm3468_vm14 = vweird.f32 %v5285_v53 }
 0x665   : > { %4432 = vperm.xlu0 %5153, %v3970_v43   ;;  %v4292_v43 = vmul.f32 %v9143_v57, %v10024_v24  ;;  %v9220_v57 = vpop.eup %5286  ;;  %vm3469_vm1 = vmor %vm3467_vm15, %vm3468_vm14 }
 0x666   : > { %v3463_v32 = vmul.f32 %v5285_v53, %v3462_v22  ;;  %v3792_v58 = vmul.f32 %v9220_v57, %v9188_v9  ;;  %vm3798_vm2 = vweird.f32 %v9220_v57 }
 0x667   : > { %4269 = vperm.xlu2 %5155, %v3851_v62   ;;  %vm3799_vm4 = vmor %vm3797_vm3, %vm3798_vm2 }
 0x668   : > { %v3464_v48 = vmul.f32 0.5, %v3463_v32 }
 0x669   : > { %v4250_v2 = vpop.permute.xlu0 %4249  ;;  %v4408_v22 = vpop.permute.xlu2 %4407 }
 0x66a   : > { %v3465_v1 = vsub.f32 1.5, %v3464_v48  ;;  %v4669_v11 = vadd.f32 %v4408_v22, %v4291_v20  ;;  %v4670_v32 = vadd.f32 %v4408_v22, %v4292_v43  ;;  %v2715_v48 = vmul.f32 %v9207_v14, %v9207_v14  ;;  %v5289_v22 = vpop.eup %5288 }
 0x66b   : > { %v4379_v4 = vmul.f32 %v4250_v2, %v10025_v44  ;;  %v4380_v20 = vmul.f32 %v4250_v2, %v10026_v45  ;;  %v3010_v2 = vmul.f32 0.0051020407, %v9190_v26  ;;  %vm3778_vm5 = vweird.f32 %v5289_v22 }
 0x66c   : > { %v3466_v47 = vmul.f32 %v5285_v53, %v3465_v1  ;;  %4777 = vst [vmem:[%s8206_s11 + $0x20] sm:$0xff] %v4669_v11  ;;  %v2872_v25 = vadd.f32 %v2871_v61, %v2715_v48  ;;  %v3793_v61 = vmul.f32 %v9220_v57, %v3792_v58  ;;  %v10027_v11 = vld [vmem:[#allocation61_spill] sm:$0xff]  ;;  %vm3779_vm7 = vmor %vm3777_vm6, %vm3778_vm5 }
 0x66d   : > { %4279 = vperm.xlu0 %5153, %v9217_v15   ;;  %4778 = vst.msk [vmem:[%s8206_s11 + $0x28] sm:$0xff] %vm367_vm0, %v4670_v32  ;;  %v3772_v32 = vmul.f32 %v5289_v22, %v9215_v39 }
 0x66e   : > { %v3470_v62 = vsel %vm3469_vm1, %v5285_v53, %v3466_v47  ;;  %v3794_v23 = vmul.f32 0.5, %v3793_v61  ;;  %v3865_v47 = vld [vmem:[%s8021_s8 + $0x50] sm:$0xff]  ;;  %v10031_v61 = vld [vmem:[#allocation101_spill] sm:$0xff] }
 0x66f   : > { %v9229_v7 = vmul.f32 %v3470_v62, %v3173_v10  ;;  %4647 = vperm.xlu2 %5155, %v4013_v63   ;;  %v10028_v10 = vld [vmem:[#allocation62_spill] sm:$0xff]  ;;  %v10029_v63 = vld [vmem:[#allocation59_spill] sm:$0xff]  ;;  %v3973_v26 = vsub.f32 %v3865_v47, %v8754_v31 }
 0x670   : > { %v3795_v44 = vsub.f32 1.5, %v3794_v23 }
 0x671   : > { %v4628_v53 = vpop.permute.xlu0 %4627  ;;  %2873 = vadd.xlane.f32.xlu1 %v2872_v25  ;;  %v9238_v24 = vmul.f32 %v9229_v7, %v10016_v51  ;;  %v4255_v60 = vpop.permute.xlu2 %4254  ;;  %v3064_v51 = vmul.f32 %v10027_v11, %v10027_v11 }
 0x672   : > { %v4757_v43 = vadd.f32 %v4628_v53, %v4379_v4  ;;  %v4758_v1 = vadd.f32 %v4628_v53, %v4380_v20  ;;  %v4381_v62 = vmul.f32 %v4255_v60, %v10028_v10  ;;  %v3863_v20 = vld [vmem:[%s8021_s8 + $0x40] sm:$0xff]  ;;  %v3773_v53 = vmul.f32 %v5289_v22, %v3772_v32 }
 0x673   : > { %v3118_v25 = vsub.f32 %v3010_v2, %v3064_v51 }
 0x674   : > { %4865 = vst [vmem:[%s8206_s11 + $0x2e0] sm:$0xff] %v4757_v43  ;;  %v3774_v23 = vmul.f32 0.5, %v3773_v53  ;;  %v3866_v53 = vld [vmem:[%s8021_s8 + $0x58] sm:$0xff] }
 0x675   : > { %4866 = vst.msk [vmem:[%s8206_s11 + $0x2e8] sm:$0xff] %vm367_vm0, %v4758_v1  ;;  %4069 = vperm.xlu0 %5153, %v8744_v46   ;;  %v4382_v46 = vmul.f32 %v4255_v60, %v10029_v63  ;;  %v3226_v43 = vadd.f32 1e-05, %v3118_v25  ;;  %v3796_v1 = vmul.f32 %v9220_v57, %v3795_v44  ;;  %v10030_v60 = vld [vmem:[#allocation13_spill] sm:$0xff]  ;;  %v3868_v25 = vld [vmem:[%s8021_s8 + $0x68] sm:$0xff] }
 0x676   : > { %v3775_v63 = vsub.f32 1.5, %v3774_v23  ;;  %v3172_v23 = vld [vmem:[%s8005_s27 + $0x98] sm:$0xff] }
 0x677   : > { %4059 = vperm.xlu2 %5155, %v8546_v5   ;;  %v3971_v5 = vsub.f32 %v3863_v20, %v8555_v36  ;;  %5290 = vrsqrt.f32 %v3226_v43  ;;  %v3206_v36 = vld [vmem:[%s8005_s27 + $0x1a8] sm:$0xff]  ;;  %v3800_v10 = vsel %vm3799_vm4, %v9220_v57, %v3796_v1  ;;  %vm3457_vm9 = vweird.f32 %v3226_v43 }
 0x679   : > { %v4040_v48 = vpop.permute.xlu0 %4039  ;;  %v4633_v58 = vpop.permute.xlu2 %4632 }
 0x67a   : > { %v4759_v4 = vadd.f32 %v4633_v58, %v4381_v62  ;;  %v4760_v45 = vadd.f32 %v4633_v58, %v4382_v46  ;;  %v4295_v31 = vmul.f32 %v4040_v48, %v10030_v60  ;;  %v4296_v2 = vmul.f32 %v4040_v48, %v10031_v61  ;;  %v3861_v48 = vld [vmem:[%s8021_s8 + $0x30] sm:$0xff] }
 0x67b   : > { %v3915_v62 = vmul.f32 %v9121_v52, %v9993_v17  ;;  %v9273_v46 = vmul.f32 %v3800_v10, %v3206_v36  ;;  %v3976_v17 = vsub.f32 %v3868_v25, %v8915_v40  ;;  %v3974_v40 = vsub.f32 %v3866_v53, %v8715_v16 }
 0x67c   : > { %4867 = vst [vmem:[%s8206_s11 + $0x2f0] sm:$0xff] %v4759_v4 }
 0x67d   : > { %4447 = vperm.xlu0 %5153, %v3973_v26   ;;  %4868 = vst.msk [vmem:[%s8206_s11 + $0x2f8] sm:$0xff] %vm367_vm0, %v4760_v45  ;;  %v3969_v9 = vsub.f32 %v3861_v48, %v3915_v62  ;;  %v5291_v58 = vpop.eup %5290  ;;  %v3776_v26 = vmul.f32 %v5289_v22, %v3775_v63  ;;  %v4035_v45 = vpop.permute.xlu1 %4034 }
 0x67e   : > { %v3452_v52 = vmul.f32 %v5291_v58, %v3226_v43  ;;  %vm3458_vm8 = vweird.f32 %v5291_v58  ;;  %v3869_v43 = vld [vmem:[%s8021_s8 + $0x70] sm:$0xff] }
 0x67f   : > { %4437 = vperm.xlu2 %5155, %v3971_v5   ;;  %v3780_v57 = vsel %vm3779_vm7, %v5289_v22, %v3776_v26  ;;  %v3871_v5 = vld [vmem:[%s8021_s8 + $0x80] sm:$0xff]  ;;  %vm3459_vm10 = vmor %vm3457_vm9, %vm3458_vm8  ;;  %v3977_v36 = vsub.f32 %v3869_v43, %v8864_v28 }
 0x680   : > { %v3453_v4 = vmul.f32 %v5291_v58, %v3452_v52  ;;  %v3979_v1 = vsub.f32 %v3871_v5, %v9047_v56  ;;  %v3867_v26 = vld [vmem:[%s8021_s8 + $0x60] sm:$0xff] }
 0x681   : > { %v4418_v47 = vpop.permute.xlu0 %4417 }
 0x682   : > { %v4673_v51 = vadd.f32 %v4418_v47, %v4295_v31  ;;  %v4674_v32 = vadd.f32 %v4418_v47, %v4296_v2  ;;  %v3454_v20 = vmul.f32 0.5, %v3453_v4  ;;  %v10033_v31 = vld [vmem:[#allocation97_spill] sm:$0xff] }
 0x683   : > { %v4294_v61 = vmul.f32 %v4035_v45, %v10033_v31 }
 0x684   : > { %4781 = vst [vmem:[%s8206_s11 + $0x40] sm:$0xff] %v4673_v51  ;;  %v3455_v39 = vsub.f32 1.5, %v3454_v20 }
 0x685   : > { %4782 = vst.msk [vmem:[%s8206_s11 + $0x48] sm:$0xff] %vm367_vm0, %v4674_v32  ;;  %4084 = vperm.xlu0 %5153, %v8904_v29   ;;  %v3204_v29 = vld [vmem:[%s8005_s27 + $0x198] sm:$0xff] }
 0x686   : > { %v9280_v44 = vmul.f32 %v3780_v57, %v3204_v29  ;;  %v3456_v60 = vmul.f32 %v5291_v58, %v3455_v39  ;;  %v10036_v29 = vld [vmem:[#allocation67_spill] sm:$0xff] }
 0x687   : > { %4284 = vperm.xlu2 %5155, %v9273_v46  }
 0x689   : > { %v2862_v22 = vpop.xlane.xlu1 %2861 }
 0x68a   : > { %4427 = vperm.xlu1 %5154, %v3969_v9   ;;  %v3012_v63 = vmul.f32 0.0051020407, %v2862_v22  ;;  %v10034_v9 = vld [vmem:[#allocation74_spill] sm:$0xff] }
 0x68b   : > { %v3068_v25 = vmul.f32 %v10034_v9, %v10034_v9 }
 0x68d   : > { %4462 = vperm.xlu0 %5153, %v3976_v17   ;;  %v10035_v17 = vld [vmem:[#allocation71_spill] sm:$0xff] }
 0x68e   : > { %v3066_v28 = vmul.f32 %v10035_v17, %v10035_v17 }
 0x68f   : > { %4074 = vperm.xlu2 %5155, %v8704_v59   ;;  %v3864_v59 = vld [vmem:[%s8021_s8 + $0x48] sm:$0xff] }
 0x690   : > { %v3972_v2 = vsub.f32 %v3864_v59, %v8614_v34  ;;  %v3874_v34 = vld [vmem:[%s8021_s8 + $0x98] sm:$0xff]  ;;  %v3120_v52 = vsub.f32 %v3012_v63, %v3066_v28 }
 0x692   : > { %4274 = vperm.xlu1 %5154, %v9280_v44   ;;  %v9313_v5 = vadd.f32 1e-05, %v3120_v52 }
 0x694   : > { %vm3477_vm3 = vweird.f32 %v9313_v5 }
 0x695   : > { %4099 = vperm.xlu0 %5153, %v9038_v50   ;;  %v10032_v50 = vld [vmem:[#allocation102_spill] sm:$0xff] }
 0x696   : > { %v4293_v16 = vmul.f32 %v4035_v45, %v10032_v50  ;;  %v3975_v45 = vsub.f32 %v3867_v26, %v8775_v35 }
 0x697   : > { %4452 = vperm.xlu2 %5155, %v3974_v40  }
 0x69a   : > { %4064 = vperm.xlu1 %5154, %v8604_v12   ;;  %v3460_v12 = vsel %vm3459_vm10, %v5291_v58, %v3456_v60  ;;  %v10038_v60 = vld [vmem:[#allocation76_spill] sm:$0xff] }
 0x69b   : > { %v3820_v32 = vmul.f32 %v3460_v12, %v3172_v23  ;;  %v3067_v59 = vmul.f32 %v10038_v60, %v10038_v60  ;;  %v3870_v12 = vld [vmem:[%s8021_s8 + $0x78] sm:$0xff] }
 0x69d   : > { %4477 = vperm.xlu0 %5153, %v3979_v1   ;;  %v3928_v10 = vmul.f32 %v3820_v32, %v10027_v11  ;;  %v3872_v1 = vld [vmem:[%s8021_s8 + $0x88] sm:$0xff] }
 0x69f   : > { %4089 = vperm.xlu2 %5155, %v8856_v6   ;;  %v3982_v6 = vsub.f32 %v3874_v34, %v3928_v10  ;;  %v10039_v10 = vld [vmem:[#allocation100_spill] sm:$0xff] }
 0x6a1   : > { %v4413_v56 = vpop.permute.xlu1 %4412 }
 0x6a2   : > { %v4671_v47 = vadd.f32 %v4413_v56, %v4293_v16  ;;  %v4672_v51 = vadd.f32 %v4413_v56, %v4294_v61  ;;  %4442 = vperm.xlu1 %5154, %v3972_v2  }
 0x6a4   : > { %4779 = vst [vmem:[%s8206_s11 + $0x30] sm:$0xff] %v4671_v47 }
 0x6a5   : > { %4780 = vst.msk [vmem:[%s8206_s11 + $0x38] sm:$0xff] %vm367_vm0, %v4672_v51  ;;  %4114 = vperm.xlu0 %5153, %v3820_v32   ;;  %v3978_v32 = vsub.f32 %v3870_v12, %v8945_v21 }
 0x6a7   : > { %4467 = vperm.xlu2 %5155, %v3977_v36  }
 0x6a9   : > { %v4260_v62 = vpop.permute.xlu1 %4259 }
 0x6aa   : > { %4079 = vperm.xlu1 %5154, %v8769_v55   ;;  %v4383_v57 = vmul.f32 %v4260_v62, %v10036_v29  ;;  %v10037_v55 = vld [vmem:[#allocation64_spill] sm:$0xff] }
 0x6ab   : > { %v4384_v4 = vmul.f32 %v4260_v62, %v10037_v55  ;;  %v10040_v62 = vld [vmem:[#allocation9_spill] sm:$0xff] }
 0x6ac   : > { %v2870_v48 = vpop.xlane.xlu0 %2869 }
 0x6ad   : > { %v3014_v58 = vmul.f32 0.0051020407, %v2870_v48  ;;  %4492 = vperm.xlu0 %5153, %v3982_v6  }
 0x6af   : > { %v3122_v11 = vsub.f32 %v3014_v58, %v3068_v25  ;;  %4104 = vperm.xlu2 %5155, %v8990_v54   ;;  %v3980_v54 = vsub.f32 %v3872_v1, %v9002_v3  ;;  %v3875_v25 = vld [vmem:[%s8021_s8 + $0xa0] sm:$0xff] }
 0x6b1   : > { %v3230_v20 = vadd.f32 1e-05, %v3122_v11  ;;  %v4638_v53 = vpop.permute.xlu1 %4637  ;;  %v10041_v11 = vld [vmem:[#allocation72_spill] sm:$0xff] }
 0x6b2   : > { %v4761_v40 = vadd.f32 %v4638_v53, %v4383_v57  ;;  %v4762_v39 = vadd.f32 %v4638_v53, %v4384_v4  ;;  %4457 = vperm.xlu1 %5154, %v3975_v45   ;;  %v2866_v22 = vpop.xlane.xlu2 %2865  ;;  %v3983_v4 = vsub.f32 %v3875_v25, %v9238_v24  ;;  %v3175_v24 = vld [vmem:[%s8005_s27 + $0xb0] sm:$0xff]  ;;  %v10050_v25 = vld [vmem:[#allocation98_spill] sm:$0xff] }
 0x6b3   : > { %5292 = vrsqrt.f32 %v3230_v20  ;;  %v3013_v35 = vmul.f32 0.0051020407, %v2866_v22  ;;  %vm3497_vm13 = vweird.f32 %v3230_v20 }
 0x6b4   : > { %4869 = vst [vmem:[%s8206_s11 + $0x300] sm:$0xff] %v4761_v40  ;;  %5294 = vrsqrt.f32 %v9313_v5 }
 0x6b5   : > { %4870 = vst.msk [vmem:[%s8206_s11 + $0x308] sm:$0xff] %vm367_vm0, %v4762_v39  ;;  %v3121_v50 = vsub.f32 %v3013_v35, %v3067_v59 }
 0x6b7   : > { %v3229_v31 = vadd.f32 1e-05, %v3121_v50  ;;  %4482 = vperm.xlu2 %5155, %v3980_v54   ;;  %v3176_v50 = vld [vmem:[%s8005_s27 + $0xb8] sm:$0xff] }
 0x6b9   : > { %v5293_v16 = vpop.eup %5292  ;;  %5296 = vrsqrt.f32 %v3229_v31  ;;  %vm3487_vm15 = vweird.f32 %v3229_v31 }
 0x6ba   : > { %v3492_v61 = vmul.f32 %v5293_v16, %v3230_v20  ;;  %4094 = vperm.xlu1 %5154, %v8941_v19   ;;  %v4045_v23 = vpop.permute.xlu2 %4044  ;;  %v9325_v56 = vpop.eup %5294  ;;  %vm3498_vm11 = vweird.f32 %v5293_v16 }
 0x6bb   : > { %v3472_v43 = vmul.f32 %v9325_v56, %v9313_v5  ;;  %v4297_v34 = vmul.f32 %v4045_v23, %v10039_v10  ;;  %v4298_v6 = vmul.f32 %v4045_v23, %v10040_v62  ;;  %vm9341_vm14 = vmor %vm3497_vm13, %vm3498_vm11  ;;  %vm3478_vm2 = vweird.f32 %v9325_v56  ;;  %v3878_v10 = vld [vmem:[%s8021_s8 + $0xb8] sm:$0xff] }
 0x6bc   : > { %v3493_v2 = vmul.f32 %v5293_v16, %v3492_v61  ;;  %vm9363_vm4 = vmor %vm3477_vm3, %vm3478_vm2 }
 0x6bd   : > { %v3473_v21 = vmul.f32 %v9325_v56, %v3472_v43 }
 0x6be   : > { %v3494_v47 = vmul.f32 0.5, %v3493_v2  ;;  %v3873_v2 = vld [vmem:[%s8021_s8 + $0x90] sm:$0xff] }
 0x6bf   : > { %v4265_v51 = vpop.permute.xlu0 %4264  ;;  %v5297_v3 = vpop.eup %5296  ;;  %4119 = vperm.xlu2 %5155, %v9229_v7   ;;  %v10042_v7 = vld [vmem:[#allocation69_spill] sm:$0xff]  ;;  %v3474_v39 = vmul.f32 0.5, %v3473_v21 }
 0x6c0   : > { %v3482_v36 = vmul.f32 %v5297_v3, %v3229_v31  ;;  %v3495_v19 = vsub.f32 1.5, %v3494_v47  ;;  %v4385_v52 = vmul.f32 %v4265_v51, %v10041_v11  ;;  %v4386_v29 = vmul.f32 %v4265_v51, %v10042_v7  ;;  %v10045_v51 = vld [vmem:[#allocation77_spill] sm:$0xff] }
 0x6c1   : > { %vm3488_vm12 = vweird.f32 %v5297_v3  ;;  %v3475_v54 = vsub.f32 1.5, %v3474_v39  ;;  %v3962_v7 = vmul.f32 %v9273_v46, %v9158_v0  ;;  %v10051_v39 = vld [vmem:[#allocation96_spill] sm:$0xff]  ;;  %v10052_v46 = vld [vmem:[#allocation10_spill] sm:$0xff] }
 0x6c2   : > { %4472 = vperm.xlu1 %5154, %v3978_v32   ;;  %v3483_v63 = vmul.f32 %v5297_v3, %v3482_v36  ;;  %v4423_v48 = vpop.permute.xlu2 %4422  ;;  %v3496_v57 = vmul.f32 %v5293_v16, %v3495_v19  ;;  %vm3489_vm1 = vmor %vm3487_vm15, %vm3488_vm12 }
 0x6c3   : > { %v4675_v58 = vadd.f32 %v4423_v48, %v4297_v34  ;;  %v4676_v26 = vadd.f32 %v4423_v48, %v4298_v6  ;;  %v3476_v12 = vmul.f32 %v9325_v56, %v3475_v54  ;;  %v3174_v6 = vld [vmem:[%s8005_s27 + $0xa8] sm:$0xff] }
 0x6c4   : > { %v3484_v28 = vmul.f32 0.5, %v3483_v63  ;;  %v3500_v20 = vsel %vm9341_vm14, %v5293_v16, %v3496_v57  ;;  %v3877_v16 = vld [vmem:[%s8021_s8 + $0xb0] sm:$0xff]  ;;  %v10049_v63 = vld [vmem:[#allocation15_spill] sm:$0xff]  ;;  %v4050_v57 = vpop.permute.xlu1 %4049 }
 0x6c5   : > { %4783 = vst [vmem:[%s8206_s11 + $0x50] sm:$0xff] %v4675_v58  ;;  %v3824_v23 = vmul.f32 %v3500_v20, %v3176_v50  ;;  %v3480_v5 = vsel %vm9363_vm4, %v9325_v56, %v3476_v12  ;;  %v3907_v56 = vld [vmem:[%s8021_s8 + $0x1a0] sm:$0xff]  ;;  %v10055_v12 = vld [vmem:[#allocation17_spill] sm:$0xff] }
 0x6c6   : > { %v3485_v45 = vsub.f32 1.5, %v3484_v28  ;;  %4784 = vst.msk [vmem:[%s8206_s11 + $0x58] sm:$0xff] %vm367_vm0, %v4676_v26  ;;  %v3822_v11 = vmul.f32 %v3480_v5, %v3174_v6  ;;  %v10057_v5 = vld [vmem:[#allocation18_spill] sm:$0xff] }
 0x6c7   : > { %v4643_v55 = vpop.permute.xlu0 %4642  ;;  %4497 = vperm.xlu2 %5155, %v3983_v4  }
 0x6c8   : > { %v4763_v53 = vadd.f32 %v4643_v55, %v4385_v52  ;;  %v4764_v40 = vadd.f32 %v4643_v55, %v4386_v29  ;;  %v3486_v1 = vmul.f32 %v5297_v3, %v3485_v45  ;;  %v3961_v52 = vmul.f32 %v9217_v15, %v9093_v8  ;;  %v3908_v29 = vld [vmem:[%s8021_s8 + $0x1a8] sm:$0xff] }
 0x6c9   : > { %v3930_v4 = vmul.f32 %v3822_v11, %v10035_v17 }
 0x6ca   : > { %4871 = vst [vmem:[%s8206_s11 + $0x310] sm:$0xff] %v4763_v53  ;;  %4109 = vperm.xlu1 %5154, %v9129_v38   ;;  %v4270_v59 = vpop.permute.xlu2 %4269  ;;  %v3490_v35 = vsel %vm3489_vm1, %v5297_v3, %v3486_v1  ;;  %v3981_v38 = vsub.f32 %v3873_v2, %v9136_v33  ;;  %v10046_v3 = vld [vmem:[#allocation78_spill] sm:$0xff]  ;;  %v3932_v33 = vmul.f32 %v3824_v23, %v10034_v9  ;;  %v3876_v53 = vld [vmem:[%s8021_s8 + $0xa8] sm:$0xff] }
 0x6cb   : > { %4872 = vst.msk [vmem:[%s8206_s11 + $0x318] sm:$0xff] %vm367_vm0, %v4764_v40  ;;  %v3823_v61 = vmul.f32 %v3490_v35, %v3175_v24  ;;  %v4387_v32 = vmul.f32 %v4270_v59, %v10045_v51  ;;  %v4388_v43 = vmul.f32 %v4270_v59, %v10046_v3  ;;  %v4015_v45 = vsub.f32 %v3907_v56, %v3961_v52  ;;  %v10053_v59 = vld [vmem:[#allocation84_spill] sm:$0xff] }
 0x6cc   : > { %v3986_v58 = vsub.f32 %v3878_v10, %v3932_v33  ;;  %v4016_v40 = vsub.f32 %v3908_v29, %v3962_v7  ;;  %v3984_v15 = vsub.f32 %v3876_v53, %v3930_v4  ;;  %v3069_v17 = vmul.f32 %v10053_v59, %v10053_v59 }
 0x6cd   : > { %4129 = vperm.xlu0 %5153, %v3823_v61   ;;  %v3931_v47 = vmul.f32 %v3823_v61, %v10038_v60 }
 0x6cf   : > { %v4055_v31 = vpop.permute.xlu0 %4054  ;;  %4134 = vperm.xlu2 %5155, %v3824_v23   ;;  %v3985_v62 = vsub.f32 %v3877_v16, %v3931_v47  ;;  %v10054_v23 = vld [vmem:[#allocation107_spill] sm:$0xff] }
 0x6d0   : > { %v4301_v48 = vmul.f32 %v4055_v31, %v10049_v63  ;;  %v4302_v9 = vmul.f32 %v4055_v31, %v10050_v25 }
 0x6d2   : > { %4487 = vperm.xlu1 %5154, %v3981_v38   ;;  %v4648_v19 = vpop.permute.xlu2 %4647 }
 0x6d3   : > { %v4765_v34 = vadd.f32 %v4648_v19, %v4387_v32  ;;  %v4766_v60 = vadd.f32 %v4648_v19, %v4388_v43 }
 0x6d5   : > { %4873 = vst [vmem:[%s8206_s11 + $0x320] sm:$0xff] %v4765_v34  ;;  %4507 = vperm.xlu0 %5153, %v3985_v62   ;;  %v10056_v62 = vld [vmem:[#allocation11_spill] sm:$0xff] }
 0x6d6   : > { %4874 = vst.msk [vmem:[%s8206_s11 + $0x328] sm:$0xff] %vm367_vm0, %v4766_v60  ;;  %v4299_v6 = vmul.f32 %v4050_v57, %v10056_v62 }
 0x6d7   : > { %v4433_v21 = vpop.permute.xlu0 %4432  ;;  %4512 = vperm.xlu2 %5155, %v3986_v58  }
 0x6d8   : > { %v4679_v26 = vadd.f32 %v4433_v21, %v4301_v48  ;;  %v4680_v28 = vadd.f32 %v4433_v21, %v4302_v9  ;;  %v10058_v48 = vld [vmem:[#allocation19_spill] sm:$0xff]  ;;  %v3177_v9 = vld [vmem:[%s8005_s27 + $0xc0] sm:$0xff]  ;;  %v10059_v21 = vld [vmem:[#allocation12_spill] sm:$0xff] }
 0x6d9   : > { %v4300_v58 = vmul.f32 %v4050_v57, %v10059_v21 }
 0x6da   : > { %4787 = vst [vmem:[%s8206_s11 + $0x70] sm:$0xff] %v4679_v26  ;;  %4124 = vperm.xlu1 %5154, %v3822_v11   ;;  %v4060_v55 = vpop.permute.xlu2 %4059 }
 0x6db   : > { %4788 = vst.msk [vmem:[%s8206_s11 + $0x78] sm:$0xff] %vm367_vm0, %v4680_v28  ;;  %v4303_v0 = vmul.f32 %v4060_v55, %v10051_v39  ;;  %v4304_v22 = vmul.f32 %v4060_v55, %v10052_v46  ;;  %v3879_v39 = vld [vmem:[%s8021_s8 + $0xc0] sm:$0xff] }
 0x6dd   : > { %4657 = vperm.xlu0 %5153, %v4015_v45  }
 0x6df   : > { %v9388_v8 = vpop.permute.xlu0 %4279  ;;  %4662 = vperm.xlu2 %5155, %v4016_v40  }
 0x6e2   : > { %4502 = vperm.xlu1 %5154, %v3984_v15   ;;  %v4438_v1 = vpop.permute.xlu2 %4437 }
 0x6e3   : > { %v4681_v35 = vadd.f32 %v4438_v1, %v4303_v0  ;;  %v4682_v50 = vadd.f32 %v4438_v1, %v4304_v22  ;;  %v3960_v22 = vmul.f32 %v9280_v44, %v9172_v49  ;;  %v3906_v1 = vld [vmem:[%s8021_s8 + $0x198] sm:$0xff] }
 0x6e4   : > { %v2874_v24 = vpop.xlane.xlu1 %2873 }
 0x6e5   : > { %v3015_v20 = vmul.f32 0.0051020407, %v2874_v24  ;;  %4789 = vst [vmem:[%s8206_s11 + $0x80] sm:$0xff] %v4681_v35  ;;  %v10060_v24 = vld [vmem:[#allocation21_spill] sm:$0xff] }
 0x6e6   : > { %4790 = vst.msk [vmem:[%s8206_s11 + $0x88] sm:$0xff] %vm367_vm0, %v4682_v50 }
 0x6e7   : > { %v3123_v54 = vsub.f32 %v3015_v20, %v3069_v17  ;;  %v4070_v61 = vpop.permute.xlu0 %4069 }
 0x6e8   : > { %v4307_v38 = vmul.f32 %v4070_v61, %v10054_v23  ;;  %v4308_v47 = vmul.f32 %v4070_v61, %v10055_v12 }
 0x6e9   : > { %v3231_v2 = vadd.f32 1e-05, %v3123_v54 }
 0x6ea   : > { %v9397_v31 = vpop.permute.xlu2 %4284 }
 0x6eb   : > { %5298 = vrsqrt.f32 %v3231_v2  ;;  %vm3507_vm6 = vweird.f32 %v3231_v2 }
 0x6ef   : > { %v4448_v16 = vpop.permute.xlu0 %4447 }
 0x6f0   : > { %v4685_v51 = vadd.f32 %v4448_v16, %v4307_v38  ;;  %v4686_v32 = vadd.f32 %v4448_v16, %v4308_v47  ;;  %v10062_v47 = vld [vmem:[#allocation103_spill] sm:$0xff] }
 0x6f1   : > { %v5299_v3 = vpop.eup %5298 }
 0x6f2   : > { %v3502_v43 = vmul.f32 %v5299_v3, %v3231_v2  ;;  %4793 = vst [vmem:[%s8206_s11 + $0xa0] sm:$0xff] %v4685_v51  ;;  %v4075_v36 = vpop.permute.xlu2 %4074  ;;  %vm3508_vm5 = vweird.f32 %v5299_v3  ;;  %v4014_v2 = vsub.f32 %v3906_v1, %v3960_v22  ;;  %v10063_v51 = vld [vmem:[#allocation14_spill] sm:$0xff] }
 0x6f3   : > { %4794 = vst.msk [vmem:[%s8206_s11 + $0xa8] sm:$0xff] %vm367_vm0, %v4686_v32  ;;  %vm3509_vm7 = vmor %vm3507_vm6, %vm3508_vm5  ;;  %v4309_v63 = vmul.f32 %v4075_v36, %v10057_v5  ;;  %v4310_v25 = vmul.f32 %v4075_v36, %v10058_v48 }
 0x6f4   : > { %v3503_v33 = vmul.f32 %v5299_v3, %v3502_v43 }
 0x6f6   : > { %v3504_v19 = vmul.f32 0.5, %v3503_v33 }
 0x6f7   : > { %v4085_v10 = vpop.permute.xlu0 %4084 }
 0x6f8   : > { %v3505_v34 = vsub.f32 1.5, %v3504_v19  ;;  %v4313_v29 = vmul.f32 %v4085_v10, %v8569_v41  ;;  %v4314_v55 = vmul.f32 %v4085_v10, %v8551_v13 }
 0x6fa   : > { %v3506_v60 = vmul.f32 %v5299_v3, %v3505_v34  ;;  %v4453_v26 = vpop.permute.xlu2 %4452 }
 0x6fb   : > { %v4687_v52 = vadd.f32 %v4453_v26, %v4309_v63  ;;  %v4688_v56 = vadd.f32 %v4453_v26, %v4310_v25  ;;  %v10065_v63 = vld [vmem:[#allocation114_spill] sm:$0xff] }
 0x6fc   : > { %v4428_v28 = vpop.permute.xlu1 %4427  ;;  %v3510_v11 = vsel %vm3509_vm7, %v5299_v3, %v3506_v60 }
 0x6fd   : > { %v4677_v7 = vadd.f32 %v4428_v28, %v4299_v6  ;;  %v4678_v4 = vadd.f32 %v4428_v28, %v4300_v58  ;;  %v3825_v45 = vmul.f32 %v3510_v11, %v3177_v9  ;;  %4795 = vst [vmem:[%s8206_s11 + $0xb0] sm:$0xff] %v4687_v52  ;;  %v10064_v6 = vld [vmem:[#allocation111_spill] sm:$0xff]  ;;  %v10067_v58 = vld [vmem:[#allocation16_spill] sm:$0xff] }
 0x6fe   : > { %4796 = vst.msk [vmem:[%s8206_s11 + $0xb8] sm:$0xff] %vm367_vm0, %v4688_v56 }
 0x6ff   : > { %v4463_v53 = vpop.permute.xlu0 %4462  ;;  %4139 = vperm.xlu1 %5154, %v3825_v45   ;;  %4785 = vst [vmem:[%s8206_s11 + $0x60] sm:$0xff] %v4677_v7  ;;  %v3933_v15 = vmul.f32 %v3825_v45, %v10053_v59  ;;  %v10061_v59 = vld [vmem:[#allocation106_spill] sm:$0xff]  ;;  %v10068_v7 = vld [vmem:[#allocation113_spill] sm:$0xff] }
 0x700   : > { %v4691_v57 = vadd.f32 %v4463_v53, %v4313_v29  ;;  %v4692_v40 = vadd.f32 %v4463_v53, %v4314_v55  ;;  %4786 = vst.msk [vmem:[%s8206_s11 + $0x68] sm:$0xff] %vm367_vm0, %v4678_v4  ;;  %v10069_v55 = vld [vmem:[#allocation23_spill] sm:$0xff] }
 0x701   : > { %v3987_v0 = vsub.f32 %v3879_v39, %v3933_v15  ;;  %v10070_v15 = vld [vmem:[#allocation109_spill] sm:$0xff] }
 0x702   : > { %4799 = vst [vmem:[%s8206_s11 + $0xd0] sm:$0xff] %v4691_v57  ;;  %v4090_v13 = vpop.permute.xlu2 %4089 }
 0x703   : > { %4800 = vst.msk [vmem:[%s8206_s11 + $0xd8] sm:$0xff] %vm367_vm0, %v4692_v40  ;;  %v4315_v17 = vmul.f32 %v4090_v13, %v10060_v24  ;;  %v4316_v35 = vmul.f32 %v4090_v13, %v10061_v59  ;;  %v10071_v13 = vld [vmem:[#allocation20_spill] sm:$0xff] }
 0x704   : > { %v9422_v41 = vpop.permute.xlu1 %4274 }
 0x707   : > { %v4100_v46 = vpop.permute.xlu0 %4099  ;;  %4517 = vperm.xlu1 %5154, %v3987_v0  }
 0x708   : > { %v4319_v23 = vmul.f32 %v4100_v46, %v8739_v42  ;;  %v4320_v38 = vmul.f32 %v4100_v46, %v8722_v18 }
 0x70a   : > { %v4468_v50 = vpop.permute.xlu2 %4467 }
 0x70b   : > { %v4693_v54 = vadd.f32 %v4468_v50, %v4315_v17  ;;  %v4694_v61 = vadd.f32 %v4468_v50, %v4316_v35  ;;  %v10072_v17 = vld [vmem:[#allocation27_spill] sm:$0xff]  ;;  %v10073_v35 = vld [vmem:[#allocation28_spill] sm:$0xff] }
 0x70c   : > { %v4065_v20 = vpop.permute.xlu1 %4064 }
 0x70d   : > { %4801 = vst [vmem:[%s8206_s11 + $0xe0] sm:$0xff] %v4693_v54  ;;  %v4305_v16 = vmul.f32 %v4065_v20, %v10062_v47  ;;  %v4306_v32 = vmul.f32 %v4065_v20, %v10063_v51  ;;  %v10076_v47 = vld [vmem:[#allocation24_spill] sm:$0xff]  ;;  %v10077_v51 = vld [vmem:[#allocation25_spill] sm:$0xff] }
 0x70e   : > { %4802 = vst.msk [vmem:[%s8206_s11 + $0xe8] sm:$0xff] %vm367_vm0, %v4694_v61 }
 0x70f   : > { %v4478_v49 = vpop.permute.xlu0 %4477  ;;  %4652 = vperm.xlu1 %5154, %v4014_v2  }
 0x710   : > { %v4697_v44 = vadd.f32 %v4478_v49, %v4319_v23  ;;  %v4698_v12 = vadd.f32 %v4478_v49, %v4320_v38  ;;  %v10074_v38 = vld [vmem:[#allocation89_spill] sm:$0xff] }
 0x711   : > { %v4393_v49 = vmul.f32 %v9397_v31, %v10074_v38 }
 0x712   : > { %4805 = vst [vmem:[%s8206_s11 + $0x100] sm:$0xff] %v4697_v44  ;;  %v4105_v42 = vpop.permute.xlu2 %4104  ;;  %v10075_v44 = vld [vmem:[#allocation90_spill] sm:$0xff] }
 0x713   : > { %4806 = vst.msk [vmem:[%s8206_s11 + $0x108] sm:$0xff] %vm367_vm0, %v4698_v12  ;;  %v4321_v36 = vmul.f32 %v4105_v42, %v8671_v30  ;;  %v4322_v19 = vmul.f32 %v4105_v42, %v8660_v27  ;;  %v10066_v30 = vld [vmem:[#allocation105_spill] sm:$0xff]  ;;  %v4394_v12 = vmul.f32 %v9397_v31, %v10075_v44 }
 0x714   : > { %v4443_v3 = vpop.permute.xlu1 %4442 }
 0x715   : > { %v4683_v18 = vadd.f32 %v4443_v3, %v4305_v16  ;;  %v4684_v43 = vadd.f32 %v4443_v3, %v4306_v32 }
 0x717   : > { %4791 = vst [vmem:[%s8206_s11 + $0x90] sm:$0xff] %v4683_v18  ;;  %v4115_v33 = vpop.permute.xlu0 %4114 }
 0x718   : > { %4792 = vst.msk [vmem:[%s8206_s11 + $0x98] sm:$0xff] %vm367_vm0, %v4684_v43  ;;  %v4325_v5 = vmul.f32 %v4115_v33, %v10064_v6  ;;  %v4326_v48 = vmul.f32 %v4115_v33, %v10065_v63  ;;  %v10080_v63 = vld [vmem:[#allocation80_spill] sm:$0xff] }
 0x71a   : > { %v4483_v10 = vpop.permute.xlu2 %4482 }
 0x71b   : > { %v4699_v60 = vadd.f32 %v4483_v10, %v4321_v36  ;;  %v4700_v62 = vadd.f32 %v4483_v10, %v4322_v19  ;;  %v10078_v19 = vld [vmem:[#allocation38_spill] sm:$0xff] }
 0x71c   : > { %v4080_v34 = vpop.permute.xlu1 %4079 }
 0x71d   : > { %4807 = vst [vmem:[%s8206_s11 + $0x110] sm:$0xff] %v4699_v60  ;;  %v4311_v27 = vmul.f32 %v4080_v34, %v10066_v30  ;;  %v4312_v26 = vmul.f32 %v4080_v34, %v10067_v58  ;;  %v10079_v34 = vld [vmem:[#allocation115_spill] sm:$0xff]  ;;  %v10082_v58 = vld [vmem:[#allocation22_spill] sm:$0xff] }
 0x71e   : > { %4808 = vst.msk [vmem:[%s8206_s11 + $0x118] sm:$0xff] %vm367_vm0, %v4700_v62 }
 0x71f   : > { %v4493_v25 = vpop.permute.xlu0 %4492 }
 0x720   : > { %v4703_v9 = vadd.f32 %v4493_v25, %v4325_v5  ;;  %v4704_v21 = vadd.f32 %v4493_v25, %v4326_v48  ;;  %v4391_v48 = vmul.f32 %v9388_v8, %v10080_v63  ;;  %v10081_v25 = vld [vmem:[#allocation88_spill] sm:$0xff] }
 0x722   : > { %4811 = vst [vmem:[%s8206_s11 + $0x130] sm:$0xff] %v4703_v9  ;;  %v4120_v28 = vpop.permute.xlu2 %4119  ;;  %v4392_v9 = vmul.f32 %v9388_v8, %v10081_v25 }
 0x723   : > { %4812 = vst.msk [vmem:[%s8206_s11 + $0x138] sm:$0xff] %vm367_vm0, %v4704_v21  ;;  %v4327_v29 = vmul.f32 %v4120_v28, %v10068_v7  ;;  %v4328_v4 = vmul.f32 %v4120_v28, %v10069_v55  ;;  %v10083_v28 = vld [vmem:[#allocation112_spill] sm:$0xff] }
 0x724   : > { %v4458_v11 = vpop.permute.xlu1 %4457 }
 0x725   : > { %v4689_v52 = vadd.f32 %v4458_v11, %v4311_v27  ;;  %v4690_v56 = vadd.f32 %v4458_v11, %v4312_v26 }
 0x727   : > { %4797 = vst [vmem:[%s8206_s11 + $0xc0] sm:$0xff] %v4689_v52 }
 0x728   : > { %4798 = vst.msk [vmem:[%s8206_s11 + $0xc8] sm:$0xff] %vm367_vm0, %v4690_v56 }
 0x72a   : > { %v4498_v45 = vpop.permute.xlu2 %4497 }
 0x72b   : > { %v4705_v57 = vadd.f32 %v4498_v45, %v4327_v29  ;;  %v4706_v40 = vadd.f32 %v4498_v45, %v4328_v4 }
 0x72c   : > { %v4095_v53 = vpop.permute.xlu1 %4094 }
 0x72d   : > { %4813 = vst [vmem:[%s8206_s11 + $0x140] sm:$0xff] %v4705_v57  ;;  %v4317_v39 = vmul.f32 %v4095_v53, %v10070_v15  ;;  %v4318_v0 = vmul.f32 %v4095_v53, %v10071_v13  ;;  %v10084_v57 = vld [vmem:[#allocation82_spill] sm:$0xff]  ;;  %v10085_v15 = vld [vmem:[#allocation83_spill] sm:$0xff] }
 0x72e   : > { %4814 = vst.msk [vmem:[%s8206_s11 + $0x148] sm:$0xff] %vm367_vm0, %v4706_v40  ;;  %v4389_v40 = vmul.f32 %v9422_v41, %v10084_v57 }
 0x732   : > { %v4135_v46 = vpop.permute.xlu2 %4134 }
 0x733   : > { %v4333_v59 = vmul.f32 %v4135_v46, %v10072_v17  ;;  %v4334_v50 = vmul.f32 %v4135_v46, %v10073_v35 }
 0x734   : > { %v4473_v22 = vpop.permute.xlu1 %4472 }
 0x735   : > { %v4695_v1 = vadd.f32 %v4473_v22, %v4317_v39  ;;  %v4696_v24 = vadd.f32 %v4473_v22, %v4318_v0  ;;  %v4390_v39 = vmul.f32 %v9422_v41, %v10085_v15 }
 0x737   : > { %4803 = vst [vmem:[%s8206_s11 + $0xf0] sm:$0xff] %v4695_v1 }
 0x738   : > { %4804 = vst.msk [vmem:[%s8206_s11 + $0xf8] sm:$0xff] %vm367_vm0, %v4696_v24 }
 0x73a   : > { %v4513_v20 = vpop.permute.xlu2 %4512 }
 0x73b   : > { %v4711_v61 = vadd.f32 %v4513_v20, %v4333_v59  ;;  %v4712_v2 = vadd.f32 %v4513_v20, %v4334_v50 }
 0x73c   : > { %v4110_v54 = vpop.permute.xlu1 %4109 }
 0x73d   : > { %4819 = vst [vmem:[%s8206_s11 + $0x170] sm:$0xff] %v4711_v61  ;;  %v4323_v16 = vmul.f32 %v4110_v54, %v10076_v47  ;;  %v4324_v32 = vmul.f32 %v4110_v54, %v10077_v51 }
 0x73e   : > { %4820 = vst.msk [vmem:[%s8206_s11 + $0x178] sm:$0xff] %vm367_vm0, %v4712_v2 }
 0x73f   : > { %v4130_v23 = vpop.permute.xlu0 %4129 }
 0x740   : > { %v4331_v10 = vmul.f32 %v4130_v23, %v10078_v19  ;;  %v4332_v60 = vmul.f32 %v4130_v23, %v10079_v34 }
 0x742   : > { %v4663_v42 = vpop.permute.xlu2 %4662 }
 0x743   : > { %v4771_v18 = vadd.f32 %v4663_v42, %v4393_v49  ;;  %v4772_v43 = vadd.f32 %v4663_v42, %v4394_v12 }
 0x744   : > { %v4488_v3 = vpop.permute.xlu1 %4487 }
 0x745   : > { %v4701_v33 = vadd.f32 %v4488_v3, %v4323_v16  ;;  %v4702_v36 = vadd.f32 %v4488_v3, %v4324_v32  ;;  %4879 = vst [vmem:[%s8206_s11 + $0x350] sm:$0xff] %v4771_v18 }
 0x746   : > { %4880 = vst.msk [vmem:[%s8206_s11 + $0x358] sm:$0xff] %vm367_vm0, %v4772_v43 }
 0x747   : > { %4809 = vst [vmem:[%s8206_s11 + $0x120] sm:$0xff] %v4701_v33  ;;  %v4508_v31 = vpop.permute.xlu0 %4507 }
 0x748   : > { %4810 = vst.msk [vmem:[%s8206_s11 + $0x128] sm:$0xff] %vm367_vm0, %v4702_v36  ;;  %v4709_v62 = vadd.f32 %v4508_v31, %v4331_v10  ;;  %v4710_v6 = vadd.f32 %v4508_v31, %v4332_v60 }
 0x74a   : > { %4817 = vst [vmem:[%s8206_s11 + $0x160] sm:$0xff] %v4709_v62 }
 0x74b   : > { %4818 = vst.msk [vmem:[%s8206_s11 + $0x168] sm:$0xff] %vm367_vm0, %v4710_v6 }
 0x74c   : > { %v4125_v5 = vpop.permute.xlu1 %4124 }
 0x74d   : > { %v4329_v26 = vmul.f32 %v4125_v5, %v10082_v58  ;;  %v4330_v11 = vmul.f32 %v4125_v5, %v10083_v28 }
 0x74f   : > { %v4658_v21 = vpop.permute.xlu0 %4657 }
 0x750   : > { %v4769_v30 = vadd.f32 %v4658_v21, %v4391_v48  ;;  %v4770_v27 = vadd.f32 %v4658_v21, %v4392_v9 }
 0x752   : > { %4877 = vst [vmem:[%s8206_s11 + $0x340] sm:$0xff] %v4769_v30 }
 0x753   : > { %4878 = vst.msk [vmem:[%s8206_s11 + $0x348] sm:$0xff] %vm367_vm0, %v4770_v27 }
 0x754   : > { %v4503_v52 = vpop.permute.xlu1 %4502 }
 0x755   : > { %v4707_v56 = vadd.f32 %v4503_v52, %v4329_v26  ;;  %v4708_v7 = vadd.f32 %v4503_v52, %v4330_v11 }
 0x757   : > { %4815 = vst [vmem:[%s8206_s11 + $0x150] sm:$0xff] %v4707_v56 }
 0x758   : > { %4816 = vst.msk [vmem:[%s8206_s11 + $0x158] sm:$0xff] %vm367_vm0, %v4708_v7 }
 0x771   : > { %v4140_v8 = vpop.permute.xlu1 %4139 }
 0x772   : > { %v4335_v29 = vmul.f32 %v4140_v8, %v9207_v14  ;;  %v4336_v55 = vmul.f32 %v4140_v8, %v9184_v37 }
 0x779   : > { %v4518_v4 = vpop.permute.xlu1 %4517 }
 0x77a   : > { %v4713_v45 = vadd.f32 %v4518_v4, %v4335_v29  ;;  %v4714_v53 = vadd.f32 %v4518_v4, %v4336_v55 }
 0x77c   : > { %4821 = vst [vmem:[%s8206_s11 + $0x180] sm:$0xff] %v4713_v45 }
 0x77d   : > { %4822 = vst.msk [vmem:[%s8206_s11 + $0x188] sm:$0xff] %vm367_vm0, %v4714_v53 }
 0x781   : > { %v4653_v13 = vpop.permute.xlu1 %4652 }
 0x782   : > { %v4767_v0 = vadd.f32 %v4653_v13, %v4389_v40  ;;  %v4768_v46 = vadd.f32 %v4653_v13, %v4390_v39 }
 0x784   : > { %4875 = vst [vmem:[%s8206_s11 + $0x330] sm:$0xff] %v4767_v0 }
 0x785   : > { %4876 = vst.msk [vmem:[%s8206_s11 + $0x338] sm:$0xff] %vm367_vm0, %v4768_v46 }
 0x786 PF: > { %s17_s24 = sadd.s32 1, %s5371_s24  }
 0x787   : > { %p14_p4 = scmp.ge.s32.totalorder %s17_s24, 4  }
 0x789   :  { %16 = sbr.rel (!%p14_p4) target bundleno = 1 (0x1), region = 84 }

</bundles_post_ra>
